<compile_context>
chip_gen: v5e
topology: v5e:2x2
jax: 0.10.0
libtpu: 0.0.40
codegen_flags: <defaults>
</compile_context>

<pallas_src>
import math

import jax
import jax.numpy as jnp
from jax.experimental import pallas as pl
from jax.experimental.pallas import tpu as pltpu


# TODO(synk): the reference code calls an undefined function `wd(prev)` to
# compute a weight-decay scale from previous-layer representations. Its
# semantics are not given anywhere in the module, so we model it as a scalar
# multiplier (deterministically 1.0), applied exactly where
# `self.weight * weight_decay` appears (folded into the dot output, which is
# mathematically identical for a scalar).
def wd(prev):
    return jnp.float32(1.0)


_INV_SQRT2 = 1.0 / math.sqrt(2.0)


def _gelu_exact(v):
    # nn.GELU() default == exact erf-based GELU (kept exact for fidelity).
    return 0.5 * v * (1.0 + jax.lax.erf(v * _INV_SQRT2))


TILE_B = 128       # batch tile (fills the MXU M-dim on v5e/v6e/v7x)
K_IN = 784
K_PAD = 896        # 784 padded up to 7*128 for clean MXU K tiling
N_OUT = 10
N_OUT_PAD = 128    # 10 padded to one full lane group -> unmasked vst, full MXU N


def mlp_wd_kernel(
    wd2_ref, wd3_ref,              # (1, 1) f32 scalars in SMEM
    x_ref,                         # (TILE_B, 896) bf16
    w1_ref, b1_ref,                # (896, 256) bf16, (1, 256) f32
    w2_ref, b2_ref,                # (256, 256) bf16, (1, 256) f32
    w3_ref, b3_ref,                # (256, 256) bf16, (1, 256) f32
    w4_ref, b4_ref,                # (256, 128) bf16, (1, 128) f32
    o_ref,                         # (TILE_B, 128) f32
):
    x = x_ref[...]

    # l1 + GELU (bf16 MXU operands, f32 accumulation and activation math).
    h = jnp.dot(x, w1_ref[...], preferred_element_type=jnp.float32) + b1_ref[...]
    h = _gelu_exact(h)

    # l2 (LinW): x @ (W * wd) == (x @ W) * wd  -> scale the small dot output.
    h = (jnp.dot(h.astype(jnp.bfloat16), w2_ref[...],
                 preferred_element_type=jnp.float32) * wd2_ref[0, 0]
         + b2_ref[...])
    h = _gelu_exact(h)

    # l3 (LinW)
    h = (jnp.dot(h.astype(jnp.bfloat16), w3_ref[...],
                 preferred_element_type=jnp.float32) * wd3_ref[0, 0]
         + b3_ref[...])
    h = _gelu_exact(h)

    # l4 (no activation), lane-padded output.
    o_ref[...] = (jnp.dot(h.astype(jnp.bfloat16), w4_ref[...],
                          preferred_element_type=jnp.float32) + b4_ref[...])


def mlp_wd_forward(x_nchw, params):
    """x_nchw: (B, 1, 28, 28) float32. Returns (B, 10) float32."""
    B = x_nchw.shape[0]
    x_flat = x_nchw.reshape(B, -1)                       # nn.Flatten, (B, 784)

    # Pad K (784 -> 896) and batch (-> multiple of TILE_B); cast to bf16.
    B_pad = pl.cdiv(B, TILE_B) * TILE_B
    x_flat = jnp.pad(x_flat, ((0, B_pad - B), (0, K_PAD - K_IN)))
    x_flat = x_flat.astype(jnp.bfloat16)

    (w1, b1), (w2, b2), (w3, b3), (w4, b4) = params

    # F.linear uses weight of shape (out, in); pre-transpose to (in, out).
    w1t = jnp.pad(w1.T, ((0, K_PAD - K_IN), (0, 0))).astype(jnp.bfloat16)
    w2t = w2.T.astype(jnp.bfloat16)
    w3t = w3.T.astype(jnp.bfloat16)
    w4t = jnp.pad(w4.T, ((0, 0), (0, N_OUT_PAD - N_OUT))).astype(jnp.bfloat16)

    b1r = b1.reshape(1, -1).astype(jnp.float32)
    b2r = b2.reshape(1, -1).astype(jnp.float32)
    b3r = b3.reshape(1, -1).astype(jnp.float32)
    b4r = jnp.pad(b4.reshape(1, -1),
                  ((0, 0), (0, N_OUT_PAD - N_OUT))).astype(jnp.float32)

    wd2 = jnp.reshape(wd([]), (1, 1)).astype(jnp.float32)   # scale for l2
    wd3 = jnp.reshape(wd([]), (1, 1)).astype(jnp.float32)   # scale for l3

    smem_scalar = pl.BlockSpec((1, 1), lambda i: (0, 0),
                               memory_space=pltpu.MemorySpace.SMEM)
    const = lambda shape: pl.BlockSpec(shape, lambda i: (0, 0))

    grid = (B_pad // TILE_B,)

    out = pl.pallas_call(
        mlp_wd_kernel,
        grid=grid,
        out_shape=jax.ShapeDtypeStruct((B_pad, N_OUT_PAD), jnp.float32),
        in_specs=[
            smem_scalar, smem_scalar,
            pl.BlockSpec((TILE_B, K_PAD), lambda i: (i, 0)),   # x tile
            const((K_PAD, 256)), const((1, 256)),              # l1
            const((256, 256)), const((1, 256)),                # l2
            const((256, 256)), const((1, 256)),                # l3
            const((256, N_OUT_PAD)), const((1, N_OUT_PAD)),    # l4
        ],
        out_specs=pl.BlockSpec((TILE_B, N_OUT_PAD), lambda i: (i, 0)),
        compiler_params=pltpu.CompilerParams(
            dimension_semantics=("parallel",),
            vmem_limit_bytes=16 << 20,
        ),
    )(wd2, wd3, x_flat, w1t, b1r, w2t, b2r, w3t, b3r, w4t, b4r)

    return out[:B, :N_OUT]


def init_linear(key, out_features, in_features):
    # Mimic nn.Linear default init: U(-1/sqrt(fan_in), 1/sqrt(fan_in)).
    kw, kb = jax.random.split(key)
    bound = 1.0 / math.sqrt(in_features)
    w = jax.random.uniform(kw, (out_features, in_features), jnp.float32,
                           minval=-bound, maxval=bound)
    b = jax.random.uniform(kb, (out_features,), jnp.float32,
                           minval=-bound, maxval=bound)
    return w, b


if __name__ == "__main__":
    root = jax.random.PRNGKey(0)
    k_x, k1, k2, k3, k4 = jax.random.split(root, 5)

    B = 8
    x = jax.random.normal(k_x, (B, 1, 28, 28), jnp.float32)   # NCHW, MNIST-like

    params = (
        init_linear(k1, 256, 784),   # l1
        init_linear(k2, 256, 256),   # l2 (LinW)
        init_linear(k3, 256, 256),   # l3 (LinW)
        init_linear(k4, 10, 256),    # l4
    )

    y = mlp_wd_forward(x, params)
    jax.block_until_ready(y)

    # Sanity check against a plain-JAX f32 reference (bf16 MXU operands ->
    # loosened, relative tolerance).
    def ref(xin):
        h = xin.reshape(B, -1)
        (w1, b1), (w2, b2), (w3, b3), (w4, b4) = params
        g = lambda v: 0.5 * v * (1.0 + jax.lax.erf(v / jnp.sqrt(2.0)))
        h = g(h @ w1.T + b1)
        h = g(h @ (w2 * 1.0).T + b2)
        h = g(h @ (w3 * 1.0).T + b3)
        return h @ w4.T + b4

    y_ref = ref(x)
    assert y.shape == (B, 10)
    rel_err = jnp.max(jnp.abs(y - y_ref)) / (jnp.max(jnp.abs(y_ref)) + 1e-6)
    assert rel_err < 3e-2, f"rel_err={rel_err}"

    print("KERNEL_OK")
</pallas_src>

<mosaic_0001>
module attributes {stable_mosaic.version = 11 : i64} {
  func.func @mlp_wd_kernel(%arg0: i32, %arg1: memref<1x1xf32, #tpu.memory_space<smem>>, %arg2: memref<1x1xf32, #tpu.memory_space<smem>>, %arg3: memref<128x896xbf16, #tpu.memory_space<vmem>>, %arg4: memref<896x256xbf16, #tpu.memory_space<vmem>>, %arg5: memref<1x256xf32, #tpu.memory_space<vmem>>, %arg6: memref<256x256xbf16, #tpu.memory_space<vmem>>, %arg7: memref<1x256xf32, #tpu.memory_space<vmem>>, %arg8: memref<256x256xbf16, #tpu.memory_space<vmem>>, %arg9: memref<1x256xf32, #tpu.memory_space<vmem>>, %arg10: memref<256x128xbf16, #tpu.memory_space<vmem>>, %arg11: memref<1x128xf32, #tpu.memory_space<vmem>>, %arg12: memref<128x128xf32, #tpu.memory_space<vmem>>) attributes {dimension_semantics = [#tpu.dimension_semantics<parallel>], iteration_bounds = array<i64: 1>, scalar_prefetch = 0 : i64, scratch_operands = 0 : i64, tpu.core_type = #tpu.core_type<tc>, window_params = [{transform_indices = @transform_0, window_bounds = array<i64: 1, 1>}, {transform_indices = @transform_1, window_bounds = array<i64: 1, 1>}, {transform_indices = @transform_2, window_bounds = array<i64: 128, 896>}, {pipeline_mode = #tpu.pipeline_mode<synchronous>, transform_indices = @transform_3, window_bounds = array<i64: 896, 256>}, {pipeline_mode = #tpu.pipeline_mode<synchronous>, transform_indices = @transform_4, window_bounds = array<i64: 1, 256>}, {pipeline_mode = #tpu.pipeline_mode<synchronous>, transform_indices = @transform_5, window_bounds = array<i64: 256, 256>}, {pipeline_mode = #tpu.pipeline_mode<synchronous>, transform_indices = @transform_6, window_bounds = array<i64: 1, 256>}, {pipeline_mode = #tpu.pipeline_mode<synchronous>, transform_indices = @transform_7, window_bounds = array<i64: 256, 256>}, {pipeline_mode = #tpu.pipeline_mode<synchronous>, transform_indices = @transform_8, window_bounds = array<i64: 1, 256>}, {pipeline_mode = #tpu.pipeline_mode<synchronous>, transform_indices = @transform_9, window_bounds = array<i64: 256, 128>}, {pipeline_mode = #tpu.pipeline_mode<synchronous>, transform_indices = @transform_10, window_bounds = array<i64: 1, 128>}, {transform_indices = @transform_11, window_bounds = array<i64: 128, 128>}]} {
    %c0 = arith.constant 0 : index
    %c0_0 = arith.constant 0 : index
    %0 = vector.load %arg3[%c0, %c0_0] : memref<128x896xbf16, #tpu.memory_space<vmem>>, vector<128x896xbf16>
    %c0_1 = arith.constant 0 : index
    %c0_2 = arith.constant 0 : index
    %1 = vector.load %arg4[%c0_1, %c0_2] : memref<896x256xbf16, #tpu.memory_space<vmem>>, vector<896x256xbf16>
    %cst = arith.constant dense<0.000000e+00> : vector<128x256xf32>
    %2 = tpu.matmul %0, %1, %cst {dimension_numbers = #tpu.dot_dimension_numbers<[1], [0], [0], [1], [0, 0, 1, 1], [], []>} : vector<128x896xbf16>, vector<896x256xbf16>, vector<128x256xf32> -> vector<128x256xf32>
    %c0_3 = arith.constant 0 : index
    %c0_4 = arith.constant 0 : index
    %3 = vector.load %arg5[%c0_3, %c0_4] : memref<1x256xf32, #tpu.memory_space<vmem>>, vector<1x256xf32>
    %4 = vector.broadcast %3 : vector<1x256xf32> to vector<128x256xf32>
    %5 = arith.addf %2, %4 : vector<128x256xf32>
    %cst_5 = arith.constant 5.000000e-01 : f32
    %6 = vector.broadcast %cst_5 : f32 to vector<128x256xf32>
    %7 = arith.mulf %6, %5 : vector<128x256xf32>
    %cst_6 = arith.constant 0.707106769 : f32
    %8 = vector.broadcast %cst_6 : f32 to vector<128x256xf32>
    %9 = arith.mulf %5, %8 : vector<128x256xf32>
    %10 = math.erf %9 : vector<128x256xf32>
    %cst_7 = arith.constant 1.000000e+00 : f32
    %11 = vector.broadcast %cst_7 : f32 to vector<128x256xf32>
    %12 = arith.addf %11, %10 : vector<128x256xf32>
    %13 = arith.mulf %7, %12 : vector<128x256xf32>
    %14 = arith.truncf %13 : vector<128x256xf32> to vector<128x256xbf16>
    %c0_8 = arith.constant 0 : index
    %c0_9 = arith.constant 0 : index
    %15 = vector.load %arg6[%c0_8, %c0_9] : memref<256x256xbf16, #tpu.memory_space<vmem>>, vector<256x256xbf16>
    %cst_10 = arith.constant dense<0.000000e+00> : vector<128x256xf32>
    %16 = tpu.matmul %14, %15, %cst_10 {dimension_numbers = #tpu.dot_dimension_numbers<[1], [0], [0], [1], [0, 0, 1, 1], [], []>} : vector<128x256xbf16>, vector<256x256xbf16>, vector<128x256xf32> -> vector<128x256xf32>
    %c0_11 = arith.constant 0 : index
    %c0_12 = arith.constant 0 : index
    %17 = memref.load %arg1[%c0_11, %c0_12] : memref<1x1xf32, #tpu.memory_space<smem>>
    %18 = vector.broadcast %17 : f32 to vector<128x256xf32>
    %19 = arith.mulf %16, %18 : vector<128x256xf32>
    %c0_13 = arith.constant 0 : index
    %c0_14 = arith.constant 0 : index
    %20 = vector.load %arg7[%c0_13, %c0_14] : memref<1x256xf32, #tpu.memory_space<vmem>>, vector<1x256xf32>
    %21 = vector.broadcast %20 : vector<1x256xf32> to vector<128x256xf32>
    %22 = arith.addf %19, %21 : vector<128x256xf32>
    %cst_15 = arith.constant 5.000000e-01 : f32
    %23 = vector.broadcast %cst_15 : f32 to vector<128x256xf32>
    %24 = arith.mulf %23, %22 : vector<128x256xf32>
    %cst_16 = arith.constant 0.707106769 : f32
    %25 = vector.broadcast %cst_16 : f32 to vector<128x256xf32>
    %26 = arith.mulf %22, %25 : vector<128x256xf32>
    %27 = math.erf %26 : vector<128x256xf32>
    %cst_17 = arith.constant 1.000000e+00 : f32
    %28 = vector.broadcast %cst_17 : f32 to vector<128x256xf32>
    %29 = arith.addf %28, %27 : vector<128x256xf32>
    %30 = arith.mulf %24, %29 : vector<128x256xf32>
    %31 = arith.truncf %30 : vector<128x256xf32> to vector<128x256xbf16>
    %c0_18 = arith.constant 0 : index
    %c0_19 = arith.constant 0 : index
    %32 = vector.load %arg8[%c0_18, %c0_19] : memref<256x256xbf16, #tpu.memory_space<vmem>>, vector<256x256xbf16>
    %cst_20 = arith.constant dense<0.000000e+00> : vector<128x256xf32>
    %33 = tpu.matmul %31, %32, %cst_20 {dimension_numbers = #tpu.dot_dimension_numbers<[1], [0], [0], [1], [0, 0, 1, 1], [], []>} : vector<128x256xbf16>, vector<256x256xbf16>, vector<128x256xf32> -> vector<128x256xf32>
    %c0_21 = arith.constant 0 : index
    %c0_22 = arith.constant 0 : index
    %34 = memref.load %arg2[%c0_21, %c0_22] : memref<1x1xf32, #tpu.memory_space<smem>>
    %35 = vector.broadcast %34 : f32 to vector<128x256xf32>
    %36 = arith.mulf %33, %35 : vector<128x256xf32>
    %c0_23 = arith.constant 0 : index
    %c0_24 = arith.constant 0 : index
    %37 = vector.load %arg9[%c0_23, %c0_24] : memref<1x256xf32, #tpu.memory_space<vmem>>, vector<1x256xf32>
    %38 = vector.broadcast %37 : vector<1x256xf32> to vector<128x256xf32>
    %39 = arith.addf %36, %38 : vector<128x256xf32>
    %cst_25 = arith.constant 5.000000e-01 : f32
    %40 = vector.broadcast %cst_25 : f32 to vector<128x256xf32>
    %41 = arith.mulf %40, %39 : vector<128x256xf32>
    %cst_26 = arith.constant 0.707106769 : f32
    %42 = vector.broadcast %cst_26 : f32 to vector<128x256xf32>
    %43 = arith.mulf %39, %42 : vector<128x256xf32>
    %44 = math.erf %43 : vector<128x256xf32>
    %cst_27 = arith.constant 1.000000e+00 : f32
    %45 = vector.broadcast %cst_27 : f32 to vector<128x256xf32>
    %46 = arith.addf %45, %44 : vector<128x256xf32>
    %47 = arith.mulf %41, %46 : vector<128x256xf32>
    %48 = arith.truncf %47 : vector<128x256xf32> to vector<128x256xbf16>
    %c0_28 = arith.constant 0 : index
    %c0_29 = arith.constant 0 : index
    %49 = vector.load %arg10[%c0_28, %c0_29] : memref<256x128xbf16, #tpu.memory_space<vmem>>, vector<256x128xbf16>
    %cst_30 = arith.constant dense<0.000000e+00> : vector<128x128xf32>
    %50 = tpu.matmul %48, %49, %cst_30 {dimension_numbers = #tpu.dot_dimension_numbers<[1], [0], [0], [1], [0, 0, 1, 1], [], []>} : vector<128x256xbf16>, vector<256x128xbf16>, vector<128x128xf32> -> vector<128x128xf32>
    %c0_31 = arith.constant 0 : index
    %c0_32 = arith.constant 0 : index
    %51 = vector.load %arg11[%c0_31, %c0_32] : memref<1x128xf32, #tpu.memory_space<vmem>>, vector<1x128xf32>
    %52 = vector.broadcast %51 : vector<1x128xf32> to vector<128x128xf32>
    %53 = arith.addf %50, %52 : vector<128x128xf32>
    %c0_33 = arith.constant 0 : index
    %c0_34 = arith.constant 0 : index
    %54 = vector.load %arg12[%c0_33, %c0_34] : memref<128x128xf32, #tpu.memory_space<vmem>>, vector<128x128xf32>
    tpu.vector_store %arg12[%c0_33, %c0_34], %53 {strides = array<i32>} : memref<128x128xf32, #tpu.memory_space<vmem>>, vector<128x128xf32>,
    return
  }
  func.func @transform_0(%arg0: i32) -> (i32, i32) {
    %c0_i32 = arith.constant 0 : i32
    %c0_i32_0 = arith.constant 0 : i32
    %c0_i32_1 = arith.constant 0 : i32
    return %c0_i32, %c0_i32_0 : i32, i32
  }
  func.func @transform_1(%arg0: i32) -> (i32, i32) {
    %c0_i32 = arith.constant 0 : i32
    %c0_i32_0 = arith.constant 0 : i32
    %c0_i32_1 = arith.constant 0 : i32
    return %c0_i32, %c0_i32_0 : i32, i32
  }
  func.func @transform_2(%arg0: i32) -> (i32, i32) {
    %c0_i32 = arith.constant 0 : i32
    %c0_i32_0 = arith.constant 0 : i32
    return %arg0, %c0_i32 : i32, i32
  }
  func.func @transform_3(%arg0: i32) -> (i32, i32) {
    %c0_i32 = arith.constant 0 : i32
    %c0_i32_0 = arith.constant 0 : i32
    %c0_i32_1 = arith.constant 0 : i32
    return %c0_i32, %c0_i32_0 : i32, i32
  }
  func.func @transform_4(%arg0: i32) -> (i32, i32) {
    %c0_i32 = arith.constant 0 : i32
    %c0_i32_0 = arith.constant 0 : i32
    %c0_i32_1 = arith.constant 0 : i32
    return %c0_i32, %c0_i32_0 : i32, i32
  }
  func.func @transform_5(%arg0: i32) -> (i32, i32) {
    %c0_i32 = arith.constant 0 : i32
    %c0_i32_0 = arith.constant 0 : i32
    %c0_i32_1 = arith.constant 0 : i32
    return %c0_i32, %c0_i32_0 : i32, i32
  }
  func.func @transform_6(%arg0: i32) -> (i32, i32) {
    %c0_i32 = arith.constant 0 : i32
    %c0_i32_0 = arith.constant 0 : i32
    %c0_i32_1 = arith.constant 0 : i32
    return %c0_i32, %c0_i32_0 : i32, i32
  }
  func.func @transform_7(%arg0: i32) -> (i32, i32) {
    %c0_i32 = arith.constant 0 : i32
    %c0_i32_0 = arith.constant 0 : i32
    %c0_i32_1 = arith.constant 0 : i32
    return %c0_i32, %c0_i32_0 : i32, i32
  }
  func.func @transform_8(%arg0: i32) -> (i32, i32) {
    %c0_i32 = arith.constant 0 : i32
    %c0_i32_0 = arith.constant 0 : i32
    %c0_i32_1 = arith.constant 0 : i32
    return %c0_i32, %c0_i32_0 : i32, i32
  }
  func.func @transform_9(%arg0: i32) -> (i32, i32) {
    %c0_i32 = arith.constant 0 : i32
    %c0_i32_0 = arith.constant 0 : i32
    %c0_i32_1 = arith.constant 0 : i32
    return %c0_i32, %c0_i32_0 : i32, i32
  }
  func.func @transform_10(%arg0: i32) -> (i32, i32) {
    %c0_i32 = arith.constant 0 : i32
    %c0_i32_0 = arith.constant 0 : i32
    %c0_i32_1 = arith.constant 0 : i32
    return %c0_i32, %c0_i32_0 : i32, i32
  }
  func.func @transform_11(%arg0: i32) -> (i32, i32) {
    %c0_i32 = arith.constant 0 : i32
    %c0_i32_0 = arith.constant 0 : i32
    return %arg0, %c0_i32 : i32, i32
  }
}

</mosaic_0001>

<bundles_post_ra>
// kernel: tpu_custom_call.1
= control target key start
LH: loop header
LB: loop body
LE: loop exit
PB: predicated region body
PF: predicated region fallthrough
CT: control target
= control target key end

     0   :  { %18 = vsyncpa [#allocation5], 0  ;;  %s13772_s0 = inlined_call_operand.<no memory space> [shape: f32[1,1], index: 0, kind: input, shape index: {}]   ;;  %s13773_s1 = inlined_call_operand.<no memory space> [shape: f32[1,1], index: 1, kind: input, shape index: {}]   ;;  %s13774_s2 = inlined_call_operand.hbm [shape: bf16[128,896], index: 2, kind: input, shape index: {}]   ;;  %s13775_s3 = inlined_call_operand.hbm [shape: bf16[896,256], index: 3, kind: input, shape index: {}]   ;;  %s13776_s4 = inlined_call_operand.vmem [shape: f32[1,256], index: 4, kind: input, shape index: {}]   ;;  %s13777_s5 = inlined_call_operand.hbm [shape: bf16[256,256], index: 5, kind: input, shape index: {}]   ;;  %s13778_s6 = inlined_call_operand.vmem [shape: f32[1,256], index: 6, kind: input, shape index: {}]   ;;  %s13779_s7 = inlined_call_operand.hbm [shape: bf16[256,256], index: 7, kind: input, shape index: {}]   ;;  %s13780_s8 = inlined_call_operand.vmem [shape: f32[1,256], index: 8, kind: input, shape index: {}]   ;;  %s13781_s9 = inlined_call_operand.hbm [shape: bf16[256,128], index: 9, kind: input, shape index: {}]   ;;  %s13782_s10 = inlined_call_operand.vmem [shape: f32[1,128], index: 10, kind: input, shape index: {}]   ;;  %s13783_s11 = inlined_call_operand.hbm [shape: f32[128,128], index: 11, kind: output, shape index: {}]  }
   0x1   :  { %19 = vsyncpa [#allocation8], 0 }
   0x2   :  { %20 = vsyncpa [#allocation11], 0  ;;  %s43_s19 = sshll.u32 %s13775_s3, 4  ;;  %s44_s19 = int_to_ptr.hbm [resolvable:$true] %s43_s19 }
   0x3   :  { %21 = vsyncpa [#allocation6], 0  ;;  %s8988_s20 = smov [#allocation7]   ;;  %s73_s24 = sshll.u32 %s13779_s7, 4  ;;  %s74_s24 = int_to_ptr.hbm [resolvable:$true] %s73_s24 }
   0x4   :  { %s45_s21 = sshll.u32 %s8988_s20, 4  ;;  %s8989_s25 = smov 128   ;;  %s46_s21 = int_to_ptr.vmem [resolvable:$true] %s45_s21 }
   0x5   :  { %s8990_s26 = smov 8   ;;  %s8991_s27 = smov [#allocation10]  }
   0x6   :  { %51 = dma.hbm_to_vmem [thread:$0]  %s44_s19, 14336, %s46_s21, [#allocation8], %s8989_s25, %s8989_s25, %s8990_s26  }
   0x7   :  { %s75_s28 = sshll.u32 %s8991_s27, 4  ;;  %s30_s30 = sshll.u32 %s13774_s2, 4  ;;  %s76_s28 = int_to_ptr.vmem [resolvable:$true] %s75_s28  ;;  %s31_s30 = int_to_ptr.hbm [resolvable:$true] %s30_s30 }
   0x8   :  { %81 = dma.hbm_to_vmem [thread:$0]  %s74_s24, 4096, %s76_s28, [#allocation11], %s8989_s25, %s8989_s25, %s8990_s26  }
   0x9   :  { %s8992_s7 = smov [#allocation4]   ;;  %s58_s15 = sshll.u32 %s13777_s5, 4  ;;  %s59_s15 = int_to_ptr.hbm [resolvable:$true] %s58_s15 }
   0xa   :  { %s32_s12 = sshll.u32 %s8992_s7, 4  ;;  %s8993_s16 = smov 448   ;;  %s33_s12 = int_to_ptr.vmem [resolvable:$true] %s32_s12 }
   0xb   :  { %s8994_s17 = smov 28   ;;  %s8995_s18 = smov [#allocation9]  }
   0xc   :  { %38 = dma.hbm_to_vmem [thread:$0]  %s31_s30, 7168, %s33_s12, [#allocation5], %s8993_s16, %s8993_s16, %s8994_s17  }
   0xd   :  { %s60_s19 = sshll.u32 %s8995_s18, 4  ;;  %s88_s21 = sshll.u32 %s13781_s9, 4  ;;  %s61_s19 = int_to_ptr.vmem [resolvable:$true] %s60_s19  ;;  %s89_s21 = int_to_ptr.hbm [resolvable:$true] %s88_s21 }
   0xe   :  { %66 = dma.hbm_to_vmem [thread:$0]  %s59_s15, 4096, %s61_s19, [#allocation8], %s8989_s25, %s8989_s25, %s8990_s26  }
   0xf   :  { %s8996_s22 = smov [#allocation12]   ;;  %s8997_s5 = smov 64  }
  0x10   :  { %s90_s23 = sshll.u32 %s8996_s22, 4  ;;  %s8998_s24 = smov 4   ;;  %s91_s23 = int_to_ptr.vmem [resolvable:$true] %s90_s23 }
  0x11   :  { %96 = dma.hbm_to_vmem [thread:$0]  %s89_s21, 2048, %s91_s23, [#allocation11], %s8997_s5, %s8997_s5, %s8998_s24  }
  0x12   :  { %8980 = dma.done.wait [#allocation5], 7168  }
  0x13   :  { %8981 = vsyncadd [#allocation5], 4294960128 }
  0x14   :  { %8982 = dma.done.wait [#allocation8], 18432  }
  0x15   :  { %8983 = vsyncadd [#allocation8], 4294948864 }
  0x16   :  { %8984 = dma.done.wait [#allocation11], 6144  }
  0x17   :  { %8985 = vsyncadd [#allocation11], 4294961152  ;;  %v7576_v0 = vld [vmem:[#allocation7 + $0x70] sm:$0xf]  ;;  %v8453_v1 = vld [vmem:[#allocation7 + $0x74] sm:$0xf0] }
  0x18   :  { %v7640_v2 = vld [vmem:[#allocation7 + $0xf0] sm:$0xf]  ;;  %v7577_v3 = vor.u32 %v8453_v1, %v7576_v0  ;;  %v8469_v4 = vld [vmem:[#allocation7 + $0xf4] sm:$0xf0]  ;;  %v7568_v11 = vld [vmem:[#allocation7 + $0x60] sm:$0xf] }
  0x19   :  { %v7704_v5 = vld [vmem:[#allocation7 + $0x170] sm:$0xf]  ;;  %v8485_v6 = vld [vmem:[#allocation7 + $0x174] sm:$0xf0]  ;;  %v7641_v7 = vor.u32 %v8469_v4, %v7640_v2  ;;  %v8451_v13 = vld [vmem:[#allocation7 + $0x64] sm:$0xf0] }
  0x1a   :  { %v7705_v8 = vor.u32 %v8485_v6, %v7704_v5  ;;  %v7768_v9 = vld [vmem:[#allocation7 + $0x1f0] sm:$0xf]  ;;  %v8501_v10 = vld [vmem:[#allocation7 + $0x1f4] sm:$0xf0]  ;;  %1149 = vmatpush.bf16.msra.mxu0 %v7577_v3  ;;  %v7632_v14 = vld [vmem:[#allocation7 + $0xe0] sm:$0xf]  ;;  %v7569_v16 = vor.u32 %v8451_v13, %v7568_v11 }
  0x1b   :  { %v7769_v12 = vor.u32 %v8501_v10, %v7768_v9  ;;  %v8467_v15 = vld [vmem:[#allocation7 + $0xe4] sm:$0xf0]  ;;  %1198 = vmatpush.bf16.msra.mxu1 %v7641_v7  ;;  %v7696_v18 = vld [vmem:[#allocation7 + $0x160] sm:$0xf]  ;;  %v7560_v23 = vld [vmem:[#allocation7 + $0x50] sm:$0xf] }
  0x1c   :  { %1247 = vmatpush.bf16.msra.mxu2 %v7705_v8  ;;  %v7633_v17 = vor.u32 %v8467_v15, %v7632_v14  ;;  %v8483_v19 = vld [vmem:[#allocation7 + $0x164] sm:$0xf0]  ;;  %v7760_v20 = vld [vmem:[#allocation7 + $0x1e0] sm:$0xf]  ;;  %v8449_v24 = vld [vmem:[#allocation7 + $0x54] sm:$0xf0] }
  0x1d   :  { %1296 = vmatpush.bf16.msra.mxu3 %v7769_v12  ;;  %v7697_v21 = vor.u32 %v8483_v19, %v7696_v18  ;;  %v8499_v22 = vld [vmem:[#allocation7 + $0x1e4] sm:$0xf0]  ;;  %v7624_v26 = vld [vmem:[#allocation7 + $0xd0] sm:$0xf]  ;;  %v8465_v27 = vld [vmem:[#allocation7 + $0xd4] sm:$0xf0]  ;;  %v7561_v29 = vor.u32 %v8449_v24, %v7560_v23 }
  0x1e   :  { %v7761_v25 = vor.u32 %v8499_v22, %v7760_v20  ;;  %v7688_v28 = vld [vmem:[#allocation7 + $0x150] sm:$0xf]  ;;  %1150 = vmatpush.bf16.msra.mxu0 %v7569_v16  ;;  %v8481_v30 = vld [vmem:[#allocation7 + $0x154] sm:$0xf0]  ;;  %v7625_v33 = vor.u32 %v8465_v27, %v7624_v26  ;;  %v7552_v35 = vld [vmem:[#allocation7 + $0x40] sm:$0xf] }
  0x1f   :  { %v7752_v31 = vld [vmem:[#allocation7 + $0x1d0] sm:$0xf]  ;;  %v8497_v32 = vld [vmem:[#allocation7 + $0x1d4] sm:$0xf0]  ;;  %1199 = vmatpush.bf16.msra.mxu1 %v7633_v17  ;;  %v7689_v34 = vor.u32 %v8481_v30, %v7688_v28  ;;  %v8447_v36 = vld [vmem:[#allocation7 + $0x44] sm:$0xf0] }
  0x20   :  { %1248 = vmatpush.bf16.msra.mxu2 %v7697_v21  ;;  %v7616_v37 = vld [vmem:[#allocation7 + $0xc0] sm:$0xf]  ;;  %v7753_v38 = vor.u32 %v8497_v32, %v7752_v31  ;;  %v8463_v39 = vld [vmem:[#allocation7 + $0xc4] sm:$0xf0]  ;;  %v7553_v44 = vor.u32 %v8447_v36, %v7552_v35  ;;  %v7544_v47 = vld [vmem:[#allocation7 + $0x30] sm:$0xf] }
  0x21   :  { %1297 = vmatpush.bf16.msra.mxu3 %v7761_v25  ;;  %v7680_v40 = vld [vmem:[#allocation7 + $0x140] sm:$0xf]  ;;  %v8479_v41 = vld [vmem:[#allocation7 + $0x144] sm:$0xf0]  ;;  %v7617_v45 = vor.u32 %v8463_v39, %v7616_v37  ;;  %v8445_v48 = vld [vmem:[#allocation7 + $0x34] sm:$0xf0] }
  0x22   :  { %v7744_v42 = vld [vmem:[#allocation7 + $0x1c0] sm:$0xf]  ;;  %v8495_v43 = vld [vmem:[#allocation7 + $0x1c4] sm:$0xf0]  ;;  %1151 = vmatpush.bf16.msra.mxu0 %v7561_v29  ;;  %v7681_v46 = vor.u32 %v8479_v41, %v7680_v40  ;;  %v7608_v49 = vld [vmem:[#allocation7 + $0xb0] sm:$0xf]  ;;  %v7545_v56 = vor.u32 %v8445_v48, %v7544_v47 }
  0x23   :  { %1200 = vmatpush.bf16.msra.mxu1 %v7625_v33  ;;  %v7745_v50 = vor.u32 %v8495_v43, %v7744_v42  ;;  %v8461_v51 = vld [vmem:[#allocation7 + $0xb4] sm:$0xf0]  ;;  %v7672_v52 = vld [vmem:[#allocation7 + $0x130] sm:$0xf]  ;;  %v7536_v59 = vld [vmem:[#allocation7 + $0x20] sm:$0xf] }
  0x24   :  { %1249 = vmatpush.bf16.msra.mxu2 %v7689_v34  ;;  %v8477_v53 = vld [vmem:[#allocation7 + $0x134] sm:$0xf0]  ;;  %v7736_v54 = vld [vmem:[#allocation7 + $0x1b0] sm:$0xf]  ;;  %v7609_v57 = vor.u32 %v8461_v51, %v7608_v49  ;;  %v8443_v60 = vld [vmem:[#allocation7 + $0x24] sm:$0xf0] }
  0x25   :  { %1298 = vmatpush.bf16.msra.mxu3 %v7753_v38  ;;  %v8493_v55 = vld [vmem:[#allocation7 + $0x1b4] sm:$0xf0]  ;;  %v7673_v58 = vor.u32 %v8477_v53, %v7672_v52  ;;  %v7600_v61 = vld [vmem:[#allocation7 + $0xa0] sm:$0xf]  ;;  %v8459_v63 = vld [vmem:[#allocation7 + $0xa4] sm:$0xf0]  ;;  %v7537_v4 = vor.u32 %v8443_v60, %v7536_v59 }
  0x26   :  { %1152 = vmatpush.bf16.msra.mxu0 %v7553_v44  ;;  %v7737_v62 = vor.u32 %v8493_v55, %v7736_v54  ;;  %v7664_v0 = vld [vmem:[#allocation7 + $0x120] sm:$0xf]  ;;  %v8475_v1 = vld [vmem:[#allocation7 + $0x124] sm:$0xf0]  ;;  %v7601_v5 = vor.u32 %v8459_v63, %v7600_v61  ;;  %v7528_v7 = vld [vmem:[#allocation7 + $0x10] sm:$0xf] }
  0x27   :  { %1201 = vmatpush.bf16.msra.mxu1 %v7617_v45  ;;  %v7728_v2 = vld [vmem:[#allocation7 + $0x1a0] sm:$0xf]  ;;  %v8491_v3 = vld [vmem:[#allocation7 + $0x1a4] sm:$0xf0]  ;;  %v7665_v6 = vor.u32 %v8475_v1, %v7664_v0  ;;  %v8441_v8 = vld [vmem:[#allocation7 + $0x14] sm:$0xf0] }
  0x28   :  { %1250 = vmatpush.bf16.msra.mxu2 %v7681_v46  ;;  %v7592_v9 = vld [vmem:[#allocation7 + $0x90] sm:$0xf]  ;;  %v7729_v10 = vor.u32 %v8491_v3, %v7728_v2  ;;  %v8457_v11 = vld [vmem:[#allocation7 + $0x94] sm:$0xf0]  ;;  %v7529_v16 = vor.u32 %v8441_v8, %v7528_v7  ;;  %v7520_v17 = vld [vmem:[#allocation7] sm:$0xf] }
  0x29   :  { %1299 = vmatpush.bf16.msra.mxu3 %v7745_v50  ;;  %v7656_v12 = vld [vmem:[#allocation7 + $0x110] sm:$0xf]  ;;  %v8473_v13 = vld [vmem:[#allocation7 + $0x114] sm:$0xf0]  ;;  %v8439_v18 = vld [vmem:[#allocation7 + $0x4] sm:$0xf0]  ;;  %v7593_v20 = vor.u32 %v8457_v11, %v7592_v9 }
  0x2a   :  { %1153 = vmatpush.bf16.msra.mxu0 %v7545_v56  ;;  %v7720_v14 = vld [vmem:[#allocation7 + $0x190] sm:$0xf]  ;;  %v8489_v15 = vld [vmem:[#allocation7 + $0x194] sm:$0xf0]  ;;  %v7584_v19 = vld [vmem:[#allocation7 + $0x80] sm:$0xf]  ;;  %v7657_v21 = vor.u32 %v8473_v13, %v7656_v12  ;;  %v7521_v32 = vor.u32 %v8439_v18, %v7520_v17 }
  0x2b   :  { %1202 = vmatpush.bf16.msra.mxu1 %v7609_v57  ;;  %v8455_v22 = vld [vmem:[#allocation7 + $0x84] sm:$0xf0]  ;;  %v7648_v23 = vld [vmem:[#allocation7 + $0x100] sm:$0xf]  ;;  %v7721_v25 = vor.u32 %v8489_v15, %v7720_v14  ;;  %v8385_v29 = vld [vmem:[#allocation4 + $0x18] sm:$0xf0] }
  0x2c   :  { %1251 = vmatpush.bf16.msra.mxu2 %v7673_v58  ;;  %v8471_v24 = vld [vmem:[#allocation7 + $0x104] sm:$0xf0]  ;;  %v7712_v26 = vld [vmem:[#allocation7 + $0x180] sm:$0xf]  ;;  %v7832_v30 = vld [vmem:[#allocation7 + $0x270] sm:$0xf]  ;;  %v7585_v36 = vor.u32 %v8455_v22, %v7584_v19 }
  0x2d   :  { %1300 = vmatpush.bf16.msra.mxu3 %v7737_v62  ;;  %v8487_v27 = vld [vmem:[#allocation7 + $0x184] sm:$0xf0]  ;;  %v7296_v28 = vld [vmem:[#allocation4] sm:$0xf]  ;;  %v8517_v31 = vld [vmem:[#allocation7 + $0x274] sm:$0xf0]  ;;  %v7649_v37 = vor.u32 %v8471_v24, %v7648_v23 }
  0x2e   :  { %1154 = vmatpush.bf16.msra.mxu0 %v7537_v4  ;;  %v8382_v33 = vld [vmem:[#allocation4 + $0x4] sm:$0xf]  ;;  %v7896_v34 = vld [vmem:[#allocation7 + $0x2f0] sm:$0xf]  ;;  %v8533_v35 = vld [vmem:[#allocation7 + $0x2f4] sm:$0xf0]  ;;  %v7713_v41 = vor.u32 %v8487_v27, %v7712_v26  ;;  %v7833_v42 = vor.u32 %v8517_v31, %v7832_v30  ;;  %v9084_v45 = vor.u32 %v8385_v29, %v7296_v28 }
  0x2f   :  { %1203 = vmatpush.bf16.msra.mxu1 %v7601_v5  ;;  %v7298_v38 = vld [vmem:[#allocation4 + $0x1c] sm:$0xf0]  ;;  %v7304_v39 = vld [vmem:[#allocation4 + $0x8] sm:$0xf]  ;;  %v8386_v40 = vld [vmem:[#allocation4 + $0x20] sm:$0xf0]  ;;  %v7897_v46 = vor.u32 %v8533_v35, %v7896_v34 }
  0x30   :  { %1252 = vmatpush.bf16.msra.mxu2 %v7665_v6  ;;  %v8383_v43 = vld [vmem:[#allocation4 + $0xc] sm:$0xf]  ;;  %v7306_v44 = vld [vmem:[#allocation4 + $0x24] sm:$0xf0]  ;;  %v7824_v47 = vld [vmem:[#allocation7 + $0x260] sm:$0xf]  ;;  %v9086_v49 = vor.u32 %v8382_v33, %v7298_v38  ;;  %v9088_v50 = vor.u32 %v8386_v40, %v7304_v39 }
  0x31   :  { %1301 = vmatpush.bf16.msra.mxu3 %v7729_v10  ;;  %v8515_v48 = vld [vmem:[#allocation7 + $0x264] sm:$0xf0]  ;;  %v7888_v51 = vld [vmem:[#allocation7 + $0x2e0] sm:$0xf]  ;;  %v9090_v53 = vor.u32 %v8383_v43, %v7306_v44  ;;  %v7816_v56 = vld [vmem:[#allocation7 + $0x250] sm:$0xf] }
  0x32   :  { %1155 = vmatpush.bf16.msra.mxu0 %v7529_v16  ;;  %v8531_v52 = vld [vmem:[#allocation7 + $0x2e4] sm:$0xf0]  ;;  %v7825_v54 = vor.u32 %v8515_v48, %v7824_v47  ;;  %v8513_v57 = vld [vmem:[#allocation7 + $0x254] sm:$0xf0]  ;;  %v7880_v58 = vld [vmem:[#allocation7 + $0x2d0] sm:$0xf] }
  0x33   :  { %1204 = vmatpush.bf16.msra.mxu1 %v7593_v20  ;;  %v7889_v55 = vor.u32 %v8531_v52, %v7888_v51  ;;  %v8529_v59 = vld [vmem:[#allocation7 + $0x2d4] sm:$0xf0]  ;;  %v7817_v60 = vor.u32 %v8513_v57, %v7816_v56  ;;  %v8392_v63 = vld [vmem:[#allocation4 + $0x50] sm:$0xf0]  ;;  %v8389_v0 = vld [vmem:[#allocation4 + $0x3c] sm:$0xf] }
  0x34   :  { %1253 = vmatpush.bf16.msra.mxu2 %v7657_v21  ;;  %v7881_v61 = vor.u32 %v8529_v59, %v7880_v58  ;;  %v7324_v62 = vld [vmem:[#allocation4 + $0x38] sm:$0xf]  ;;  %v7332_v2 = vld [vmem:[#allocation4 + $0x40] sm:$0xf]  ;;  %v8393_v3 = vld [vmem:[#allocation4 + $0x58] sm:$0xf0] }
  0x35   :  { %1302 = vmatpush.bf16.msra.mxu3 %v7721_v25  ;;  %v7326_v1 = vld [vmem:[#allocation4 + $0x54] sm:$0xf0]  ;;  %v8390_v4 = vld [vmem:[#allocation4 + $0x44] sm:$0xf]  ;;  %v7334_v5 = vld [vmem:[#allocation4 + $0x5c] sm:$0xf0]  ;;  %v9096_v6 = vor.u32 %v8392_v63, %v7324_v62  ;;  %v9100_v8 = vor.u32 %v8393_v3, %v7332_v2 }
  0x36   :  { %1156 = vmatpush.bf16.msra.mxu0 %v7521_v32  ;;  %v9098_v7 = vor.u32 %v8389_v0, %v7326_v1  ;;  %v9102_v9 = vor.u32 %v8390_v4, %v7334_v5  ;;  %v7808_v10 = vld [vmem:[#allocation7 + $0x240] sm:$0xf]  ;;  %v8511_v11 = vld [vmem:[#allocation7 + $0x244] sm:$0xf0]  ;;  %v7352_v16 = vld [vmem:[#allocation4 + $0x70] sm:$0xf] }
  0x37   :  { %1205 = vmatpush.bf16.msra.mxu1 %v7585_v36  ;;  %v7809_v12 = vor.u32 %v8511_v11, %v7808_v10  ;;  %v7872_v13 = vld [vmem:[#allocation7 + $0x2c0] sm:$0xf]  ;;  %v8527_v14 = vld [vmem:[#allocation7 + $0x2c4] sm:$0xf0]  ;;  %v8399_v17 = vld [vmem:[#allocation4 + $0x88] sm:$0xf0] }
  0x38   :  { %1254 = vmatpush.bf16.msra.mxu2 %v7649_v37  ;;  %v7873_v15 = vor.u32 %v8527_v14, %v7872_v13  ;;  %v8396_v18 = vld [vmem:[#allocation4 + $0x74] sm:$0xf]  ;;  %v7354_v19 = vld [vmem:[#allocation4 + $0x8c] sm:$0xf0]  ;;  %v7360_v20 = vld [vmem:[#allocation4 + $0x78] sm:$0xf]  ;;  %v9108_v24 = vor.u32 %v8399_v17, %v7352_v16 }
  0x39   :  { %1303 = vmatpush.bf16.msra.mxu3 %v7713_v41  ;;  %1157 = vmatmul.bf16.vlgmr.msra.gmra.mxu0 %v9084_v45  ;;  %v8400_v21 = vld [vmem:[#allocation4 + $0x90] sm:$0xf0]  ;;  %v8397_v22 = vld [vmem:[#allocation4 + $0x7c] sm:$0xf]  ;;  %v7362_v23 = vld [vmem:[#allocation4 + $0x94] sm:$0xf0]  ;;  %v9110_v25 = vor.u32 %v8396_v18, %v7354_v19 }
  0x3a   :  { %1345 = vmatpush.bf16.msrb.mxu0 %v7833_v42  ;;  %1206 = vmatmul.bf16.vlgmr.msra.gmra.mxu1 %v9086_v49  ;;  %v9112_v26 = vor.u32 %v8400_v21, %v7360_v20  ;;  %v9114_v27 = vor.u32 %v8397_v22, %v7362_v23  ;;  %v7800_v28 = vld [vmem:[#allocation7 + $0x230] sm:$0xf]  ;;  %v8509_v29 = vld [vmem:[#allocation7 + $0x234] sm:$0xf0]  ;;  %v7380_v34 = vld [vmem:[#allocation4 + $0xa8] sm:$0xf] }
  0x3b   :  { %1394 = vmatpush.bf16.msrb.mxu1 %v7897_v46  ;;  %1255 = vmatmul.bf16.vlgmr.msra.gmra.mxu2 %v9088_v50  ;;  %v7801_v30 = vor.u32 %v8509_v29, %v7800_v28  ;;  %v7864_v31 = vld [vmem:[#allocation7 + $0x2b0] sm:$0xf]  ;;  %v8525_v32 = vld [vmem:[#allocation7 + $0x2b4] sm:$0xf0]  ;;  %v8406_v35 = vld [vmem:[#allocation4 + $0xc0] sm:$0xf0] }
  0x3c   :  { %1304 = vmatmul.bf16.vlgmr.msra.gmra.mxu3 %v9090_v53  ;;  %v7865_v33 = vor.u32 %v8525_v32, %v7864_v31  ;;  %v8403_v36 = vld [vmem:[#allocation4 + $0xac] sm:$0xf]  ;;  %v7382_v37 = vld [vmem:[#allocation4 + $0xc4] sm:$0xf0]  ;;  %v7388_v38 = vld [vmem:[#allocation4 + $0xb0] sm:$0xf]  ;;  %v9120_v42 = vor.u32 %v8406_v35, %v7380_v34 }
  0x3d   :  { %v8407_v39 = vld [vmem:[#allocation4 + $0xc8] sm:$0xf0]  ;;  %v8404_v40 = vld [vmem:[#allocation4 + $0xb4] sm:$0xf]  ;;  %v7390_v41 = vld [vmem:[#allocation4 + $0xcc] sm:$0xf0]  ;;  %v9122_v43 = vor.u32 %v8403_v36, %v7382_v37 }
  0x3e   :  { %1346 = vmatpush.bf16.msrb.mxu0 %v7825_v54  ;;  %v9124_v44 = vor.u32 %v8407_v39, %v7388_v38  ;;  %v9126_v46 = vor.u32 %v8404_v40, %v7390_v41  ;;  %v7792_v47 = vld [vmem:[#allocation7 + $0x220] sm:$0xf]  ;;  %v8507_v48 = vld [vmem:[#allocation7 + $0x224] sm:$0xf0]  ;;  %v8413_v57 = vld [vmem:[#allocation4 + $0xf8] sm:$0xf0] }
  0x3f   :  { %1395 = vmatpush.bf16.msrb.mxu1 %v7889_v55  ;;  %v7793_v51 = vor.u32 %v8507_v48, %v7792_v47  ;;  %v7856_v52 = vld [vmem:[#allocation7 + $0x2a0] sm:$0xf]  ;;  %v8523_v54 = vld [vmem:[#allocation7 + $0x2a4] sm:$0xf0]  ;;  %v8410_v58 = vld [vmem:[#allocation4 + $0xe4] sm:$0xf] }
  0x40   :  { %v7857_v55 = vor.u32 %v8523_v54, %v7856_v52  ;;  %v7408_v56 = vld [vmem:[#allocation4 + $0xe0] sm:$0xf]  ;;  %v8411_v62 = vld [vmem:[#allocation4 + $0xec] sm:$0xf]  ;;  %v7418_v63 = vld [vmem:[#allocation4 + $0x104] sm:$0xf0] }
  0x41   :  { %v7410_v59 = vld [vmem:[#allocation4 + $0xfc] sm:$0xf0]  ;;  %v9132_v0 = vor.u32 %v8413_v57, %v7408_v56  ;;  %v9138_v3 = vor.u32 %v8411_v62, %v7418_v63  ;;  %v7960_v4 = vld [vmem:[#allocation7 + $0x370] sm:$0xf]  ;;  %v8549_v5 = vld [vmem:[#allocation7 + $0x374] sm:$0xf0] }
  0x42   :  { %1347 = vmatpush.bf16.msrb.mxu0 %v7817_v60  ;;  %v7416_v60 = vld [vmem:[#allocation4 + $0xe8] sm:$0xf]  ;;  %v9134_v1 = vor.u32 %v8410_v58, %v7410_v59  ;;  %v7961_v10 = vor.u32 %v8549_v5, %v7960_v4  ;;  %v7784_v11 = vld [vmem:[#allocation7 + $0x210] sm:$0xf]  ;;  %v8452_v13 = vld [vmem:[#allocation7 + $0x74] sm:$0xf] }
  0x43   :  { %1396 = vmatpush.bf16.msrb.mxu1 %v7881_v61  ;;  %v8414_v61 = vld [vmem:[#allocation4 + $0x100] sm:$0xf0]  ;;  %v8521_v16 = vld [vmem:[#allocation7 + $0x294] sm:$0xf0]  ;;  %v7578_v17 = vld [vmem:[#allocation7 + $0x78] sm:$0xf0] }
  0x44   :  { %v9136_v2 = vor.u32 %v8414_v61, %v7416_v60  ;;  %1443 = vmatpush.bf16.msrb.mxu2 %v7961_v10  ;;  %v7581_v19 = vor.u32 %v8452_v13, %v7578_v17  ;;  %v7952_v20 = vld [vmem:[#allocation7 + $0x360] sm:$0xf]  ;;  %v8547_v21 = vld [vmem:[#allocation7 + $0x364] sm:$0xf0]  ;;  %v8450_v22 = vld [vmem:[#allocation7 + $0x64] sm:$0xf] }
  0x45   :  { %v7953_v23 = vor.u32 %v8547_v21, %v7952_v20  ;;  %v7570_v28 = vld [vmem:[#allocation7 + $0x68] sm:$0xf0]  ;;  %v7944_v29 = vld [vmem:[#allocation7 + $0x350] sm:$0xf]  ;;  %v7562_v34 = vld [vmem:[#allocation7 + $0x58] sm:$0xf0] }
  0x46   :  { %1348 = vmatpush.bf16.msrb.mxu0 %v7809_v12  ;;  %v8505_v12 = vld [vmem:[#allocation7 + $0x214] sm:$0xf0]  ;;  %1492 = vmatpush.bf16.msrb.mxu3 %v7581_v19  ;;  %v7573_v31 = vor.u32 %v8450_v22, %v7570_v28  ;;  %v7936_v35 = vld [vmem:[#allocation7 + $0x340] sm:$0xf]  ;;  %v8543_v36 = vld [vmem:[#allocation7 + $0x344] sm:$0xf0] }
  0x47   :  { %1397 = vmatpush.bf16.msrb.mxu1 %v7873_v15  ;;  %v7785_v14 = vor.u32 %v8505_v12, %v7784_v11  ;;  %v7848_v15 = vld [vmem:[#allocation7 + $0x290] sm:$0xf]  ;;  %v7436_v37 = vld [vmem:[#allocation4 + $0x118] sm:$0xf]  ;;  %v8420_v38 = vld [vmem:[#allocation4 + $0x130] sm:$0xf0] }
  0x48   :  { %v7849_v18 = vor.u32 %v8521_v16, %v7848_v15  ;;  %1444 = vmatpush.bf16.msrb.mxu2 %v7953_v23  ;;  %v8417_v39 = vld [vmem:[#allocation4 + $0x11c] sm:$0xf]  ;;  %v7438_v41 = vld [vmem:[#allocation4 + $0x134] sm:$0xf0]  ;;  %v7444_v47 = vld [vmem:[#allocation4 + $0x120] sm:$0xf] }
  0x49   :  { %1162 = vmatmul.bf16.gmra.mxu0 %v9096_v6  ;;  %v8421_v48 = vld [vmem:[#allocation4 + $0x138] sm:$0xf0]  ;;  %v8418_v52 = vld [vmem:[#allocation4 + $0x124] sm:$0xf]  ;;  %v7446_v54 = vld [vmem:[#allocation4 + $0x13c] sm:$0xf0]  ;;  %v9146_v58 = vor.u32 %v8417_v39, %v7438_v41 }
  0x4a   :  { %1211 = vmatmul.bf16.gmra.mxu1 %v9098_v7  ;;  %1349 = vmatpush.bf16.msrb.mxu0 %v7801_v30  ;;  %v8545_v30 = vld [vmem:[#allocation7 + $0x354] sm:$0xf0]  ;;  %v8446_v56 = vld [vmem:[#allocation7 + $0x44] sm:$0xf]  ;;  %v7554_v57 = vld [vmem:[#allocation7 + $0x48] sm:$0xf0]  ;;  %v9148_v59 = vor.u32 %v8421_v48, %v7444_v47  ;;  %v9150_v60 = vor.u32 %v8418_v52, %v7446_v54 }
  0x4b   :  { %1260 = vmatmul.bf16.gmra.mxu2 %v9100_v8  ;;  %1398 = vmatpush.bf16.msrb.mxu1 %v7865_v33  ;;  %v7945_v32 = vor.u32 %v8545_v30, %v7944_v29  ;;  %v8448_v33 = vld [vmem:[#allocation7 + $0x54] sm:$0xf]  ;;  %v7557_v61 = vor.u32 %v8446_v56, %v7554_v57  ;;  %v7928_v62 = vld [vmem:[#allocation7 + $0x330] sm:$0xf]  ;;  %v8541_v63 = vld [vmem:[#allocation7 + $0x334] sm:$0xf0] }
  0x4c   :  { %1309 = vmatmul.bf16.gmra.mxu3 %v9102_v9  ;;  %v7565_v40 = vor.u32 %v8448_v33, %v7562_v34  ;;  %v7929_v4 = vor.u32 %v8541_v63, %v7928_v62  ;;  %v7776_v5 = vld [vmem:[#allocation7 + $0x200] sm:$0xf]  ;;  %v8503_v10 = vld [vmem:[#allocation7 + $0x204] sm:$0xf0]  ;;  %v8444_v11 = vld [vmem:[#allocation7 + $0x34] sm:$0xf] }
  0x4d   :  { %1493 = vmatpush.bf16.msrb.mxu3 %v7573_v31  ;;  %1445 = vmatpush.bf16.msrb.mxu2 %v7945_v32  ;;  %v7777_v12 = vor.u32 %v8503_v10, %v7776_v5  ;;  %v7840_v13 = vld [vmem:[#allocation7 + $0x280] sm:$0xf]  ;;  %v7546_v15 = vld [vmem:[#allocation7 + $0x38] sm:$0xf0]  ;;  %v8539_v19 = vld [vmem:[#allocation7 + $0x324] sm:$0xf0] }
  0x4e   :  { %1350 = vmatpush.bf16.msrb.mxu0 %v7793_v51  ;;  %v7937_v51 = vor.u32 %v8543_v36, %v7936_v35  ;;  %v7549_v17 = vor.u32 %v8444_v11, %v7546_v15  ;;  %v8442_v20 = vld [vmem:[#allocation7 + $0x24] sm:$0xf]  ;;  %v7538_v22 = vld [vmem:[#allocation7 + $0x28] sm:$0xf0]  ;;  %v7912_v23 = vld [vmem:[#allocation7 + $0x310] sm:$0xf] }
  0x4f   :  { %1399 = vmatpush.bf16.msrb.mxu1 %v7857_v55  ;;  %v9144_v55 = vor.u32 %v8420_v38, %v7436_v37  ;;  %v8537_v28 = vld [vmem:[#allocation7 + $0x314] sm:$0xf0]  ;;  %v7541_v30 = vor.u32 %v8442_v20, %v7538_v22  ;;  %v7464_v31 = vld [vmem:[#allocation4 + $0x150] sm:$0xf]  ;;  %v8440_v32 = vld [vmem:[#allocation7 + $0x14] sm:$0xf] }
  0x50   :  { %v7913_v29 = vor.u32 %v8537_v28, %v7912_v23  ;;  %v7530_v33 = vld [vmem:[#allocation7 + $0x18] sm:$0xf0]  ;;  %v8427_v34 = vld [vmem:[#allocation4 + $0x168] sm:$0xf0]  ;;  %v8424_v35 = vld [vmem:[#allocation4 + $0x154] sm:$0xf] }
  0x51   :  { %1494 = vmatpush.bf16.msrb.mxu3 %v7565_v40  ;;  %1446 = vmatpush.bf16.msrb.mxu2 %v7937_v51  ;;  %v7466_v36 = vld [vmem:[#allocation4 + $0x16c] sm:$0xf0]  ;;  %v7472_v37 = vld [vmem:[#allocation4 + $0x158] sm:$0xf]  ;;  %v8428_v38 = vld [vmem:[#allocation4 + $0x170] sm:$0xf0]  ;;  %v7533_v41 = vor.u32 %v8440_v32, %v7530_v33  ;;  %v9156_v51 = vor.u32 %v8427_v34, %v7464_v31 }
  0x52   :  { %1351 = vmatpush.bf16.msrb.mxu0 %v7785_v14  ;;  %v8519_v14 = vld [vmem:[#allocation7 + $0x284] sm:$0xf0]  ;;  %v8425_v39 = vld [vmem:[#allocation4 + $0x15c] sm:$0xf]  ;;  %v7474_v40 = vld [vmem:[#allocation4 + $0x174] sm:$0xf0]  ;;  %v9158_v54 = vor.u32 %v8424_v35, %v7466_v36  ;;  %v9160_v56 = vor.u32 %v8428_v38, %v7472_v37 }
  0x53   :  { %1400 = vmatpush.bf16.msrb.mxu1 %v7849_v18  ;;  %v7841_v16 = vor.u32 %v8519_v14, %v7840_v13  ;;  %v7920_v18 = vld [vmem:[#allocation7 + $0x320] sm:$0xf]  ;;  %v8535_v48 = vld [vmem:[#allocation7 + $0x304] sm:$0xf0]  ;;  %v8438_v57 = vld [vmem:[#allocation7 + $0x4] sm:$0xf]  ;;  %v9162_v62 = vor.u32 %v8425_v39, %v7474_v40 }
  0x54   :  { %v7921_v21 = vor.u32 %v8539_v19, %v7920_v18  ;;  %v7904_v47 = vld [vmem:[#allocation7 + $0x300] sm:$0xf]  ;;  %v7642_v5 = vld [vmem:[#allocation7 + $0xf8] sm:$0xf0]  ;;  %v8484_v11 = vld [vmem:[#allocation7 + $0x174] sm:$0xf] }
  0x55   :  { %1447 = vmatpush.bf16.msrb.mxu2 %v7929_v4  ;;  %1495 = vmatpush.bf16.msrb.mxu3 %v7557_v61  ;;  %v7905_v52 = vor.u32 %v8535_v48, %v7904_v47  ;;  %v7522_v61 = vld [vmem:[#allocation7 + $0x8] sm:$0xf0]  ;;  %13825 = vst [vmem:[#allocation18_spill] sm:$0xff] %v9162_v62  ;;  %v8468_v4 = vld [vmem:[#allocation7 + $0xf4] sm:$0xf]  ;;  %s7279_s17 = sshll.u32 %s13783_s11, 4  ;;  %s7280_s17 = int_to_ptr.hbm [resolvable:$true] %s7279_s17 }
  0x56   :  { %1352 = vmatpush.bf16.msrb.mxu0 %v7777_v12  ;;  %v7525_v63 = vor.u32 %v8438_v57, %v7522_v61  ;;  %v7645_v10 = vor.u32 %v8468_v4, %v7642_v5  ;;  %v7706_v12 = vld [vmem:[#allocation7 + $0x178] sm:$0xf0]  ;;  %v7492_v14 = vld [vmem:[#allocation4 + $0x188] sm:$0xf]  ;;  %v8434_v15 = vld [vmem:[#allocation4 + $0x1a0] sm:$0xf0] }
  0x57   :  { %1401 = vmatpush.bf16.msrb.mxu1 %v7841_v16  ;;  %v7709_v13 = vor.u32 %v8484_v11, %v7706_v12  ;;  %v8431_v16 = vld [vmem:[#allocation4 + $0x18c] sm:$0xf]  ;;  %v7500_v18 = vld [vmem:[#allocation4 + $0x190] sm:$0xf]  ;;  %v8432_v20 = vld [vmem:[#allocation4 + $0x194] sm:$0xf]  ;;  %v9168_v22 = vor.u32 %v8434_v15, %v7492_v14 }
  0x58   :  { %v8435_v19 = vld [vmem:[#allocation4 + $0x1a8] sm:$0xf0]  ;;  %v8482_v33 = vld [vmem:[#allocation7 + $0x164] sm:$0xf]  ;;  %v295_v36 = vld [vmem:[%s13776_s4] sm:$0x3] }
  0x59   :  { %1167 = vmatmul.bf16.gmra.mxu0 %v9108_v24  ;;  %1448 = vmatpush.bf16.msrb.mxu2 %v7921_v21  ;;  %v7502_v21 = vld [vmem:[#allocation4 + $0x1ac] sm:$0xf0]  ;;  %v9172_v28 = vor.u32 %v8435_v19, %v7500_v18  ;;  %v7634_v31 = vld [vmem:[#allocation7 + $0xe8] sm:$0xf0]  ;;  %v9183_v37 = vperm.slane %v295_v36, 0 }
  0x5a   :  { %1216 = vmatmul.bf16.gmra.mxu1 %v9110_v25  ;;  %1496 = vmatpush.bf16.msrb.mxu3 %v7549_v17  ;;  %v7494_v17 = vld [vmem:[#allocation4 + $0x1a4] sm:$0xf0]  ;;  %v7698_v34 = vld [vmem:[#allocation7 + $0x168] sm:$0xf0]  ;;  %v7312_v38 = vld [vmem:[#allocation4 + $0x10] sm:$0xf] }
  0x5b   :  { %1265 = vmatmul.bf16.gmra.mxu2 %v9112_v26  ;;  %1541 = vmatpush.bf16.msra.mxu0 %v7645_v10  ;;  %v9170_v23 = vor.u32 %v8431_v16, %v7494_v17  ;;  %13827 = vst [vmem:[#allocation20_spill] sm:$0xff] %v9172_v28  ;;  %v7701_v35 = vor.u32 %v8482_v33, %v7698_v34  ;;  %v8387_v39 = vld [vmem:[#allocation4 + $0x28] sm:$0xf0]  ;;  %v8384_v40 = vld [vmem:[#allocation4 + $0x14] sm:$0xf] }
  0x5c   :  { %1314 = vmatmul.bf16.gmra.mxu3 %v9114_v27  ;;  %1590 = vmatpush.bf16.msra.mxu1 %v7709_v13  ;;  %v7320_v47 = vld [vmem:[#allocation4 + $0x18] sm:$0xf]  ;;  %v8388_v48 = vld [vmem:[#allocation4 + $0x30] sm:$0xf0]  ;;  %v7626_v12 = vld [vmem:[#allocation7 + $0xd8] sm:$0xf0] }
  0x5d   :  { %1449 = vmatpush.bf16.msrb.mxu2 %v7913_v29  ;;  %13826 = vst [vmem:[#allocation19_spill] sm:$0xff] %v9170_v23  ;;  %v9174_v29 = vor.u32 %v8432_v20, %v7502_v21  ;;  %v8464_v11 = vld [vmem:[#allocation7 + $0xd4] sm:$0xf]  ;;  %v7690_v15 = vld [vmem:[#allocation7 + $0x158] sm:$0xf0] }
  0x5e   :  { %1497 = vmatpush.bf16.msrb.mxu3 %v7541_v30  ;;  %v8466_v30 = vld [vmem:[#allocation7 + $0xe4] sm:$0xf]  ;;  %v7629_v13 = vor.u32 %v8464_v11, %v7626_v12  ;;  %v8480_v14 = vld [vmem:[#allocation7 + $0x154] sm:$0xf]  ;;  %v7340_v33 = vld [vmem:[#allocation4 + $0x48] sm:$0xf] }
  0x5f   :  { %13828 = vst [vmem:[#allocation21_spill] sm:$0xff] %v9174_v29  ;;  %v7637_v32 = vor.u32 %v8466_v30, %v7634_v31  ;;  %v7693_v16 = vor.u32 %v8480_v14, %v7690_v15  ;;  %v8394_v34 = vld [vmem:[#allocation4 + $0x60] sm:$0xf0]  ;;  %v7348_v36 = vld [vmem:[#allocation4 + $0x50] sm:$0xf] }
  0x60   :  { %1591 = vmatpush.bf16.msra.mxu1 %v7701_v35  ;;  %v8391_v35 = vld [vmem:[#allocation4 + $0x4c] sm:$0xf] }
  0x61   :  { %1450 = vmatpush.bf16.msrb.mxu2 %v7905_v52  ;;  %1542 = vmatpush.bf16.msra.mxu0 %v7637_v32  ;;  %v9185_v52 = vor.u32 %v8387_v39, %v7312_v38  ;;  %v8395_v38 = vld [vmem:[#allocation4 + $0x68] sm:$0xf0] }
  0x62   :  { %1498 = vmatpush.bf16.msrb.mxu3 %v7533_v41  ;;  %v7314_v41 = vld [vmem:[#allocation4 + $0x2c] sm:$0xf0]  ;;  %v7618_v14 = vld [vmem:[#allocation7 + $0xc8] sm:$0xf0] }
  0x63   :  { %v9187_v61 = vor.u32 %v8384_v40, %v7314_v41  ;;  %v9199_v40 = vor.u32 %v8394_v34, %v7340_v33 }
  0x64   :  { %1592 = vmatpush.bf16.msra.mxu1 %v7693_v16  ;;  %v8478_v16 = vld [vmem:[#allocation7 + $0x144] sm:$0xf] }
  0x65   :  { %13829 = vst [vmem:[#allocation22_spill] sm:$0xff] %v9187_v61  ;;  %1543 = vmatpush.bf16.msra.mxu0 %v7629_v13  ;;  %v8462_v13 = vld [vmem:[#allocation7 + $0xc4] sm:$0xf] }
  0x66   :  { %1499 = vmatpush.bf16.msrb.mxu3 %v7525_v63  ;;  %v9189_v63 = vor.u32 %v8388_v48, %v7320_v47  ;;  %v7621_v15 = vor.u32 %v8462_v13, %v7618_v14 }
  0x68   :  { %13830 = vst [vmem:[#allocation23_spill] sm:$0xff] %v9189_v63 }
  0x69   :  { %1172 = vmatmul.bf16.gmra.mxu0 %v9120_v42 }
  0x6a   :  { %1221 = vmatmul.bf16.gmra.mxu1 %v9122_v43  ;;  %1544 = vmatpush.bf16.msra.mxu0 %v7621_v15 }
  0x6b   :  { %1270 = vmatmul.bf16.gmra.mxu2 %v9124_v44 }
  0x6c   :  { %1319 = vmatmul.bf16.gmra.mxu3 %v9126_v46 }
  0x79   :  { %1177 = vmatmul.bf16.gmra.mxu0 %v9132_v0 }
  0x7a   :  { %1226 = vmatmul.bf16.gmra.mxu1 %v9134_v1 }
  0x7b   :  { %1275 = vmatmul.bf16.gmra.mxu2 %v9136_v2 }
  0x7c   :  { %1324 = vmatmul.bf16.gmra.mxu3 %v9138_v3 }
  0x89   :  { %1182 = vmatmul.bf16.gmra.mxu0 %v9144_v55 }
  0x8a   :  { %1231 = vmatmul.bf16.gmra.mxu1 %v9146_v58 }
  0x8b   :  { %1280 = vmatmul.bf16.gmra.mxu2 %v9148_v59 }
  0x8c   :  { %1329 = vmatmul.bf16.gmra.mxu3 %v9150_v60 }
  0x99   :  { %1187 = vmatmul.bf16.gmra.mxu0 %v9156_v51 }
  0x9a   :  { %1236 = vmatmul.bf16.gmra.mxu1 %v9158_v54 }
  0x9b   :  { %1285 = vmatmul.bf16.gmra.mxu2 %v9160_v56 }
  0x9c   :  { %1334 = vmatmul.bf16.gmra.mxu3 %v9162_v62 }
  0xa9   :  { %1192 = vmatmul.bf16.gmra.mxu0 %v9168_v22 }
  0xaa   :  { %1241 = vmatmul.bf16.gmra.mxu1 %v9170_v23 }
  0xab   :  { %1290 = vmatmul.bf16.gmra.mxu2 %v9172_v28 }
  0xac   :  { %1339 = vmatmul.bf16.gmra.mxu3 %v9174_v29 }
  0xb6   :  { %v1158_v57 = vpop.f32.mrf.mxu0 }
  0xb7   :  { %v1159_v4 = vadd.f32 %v1158_v57, %v9183_v37  ;;  %v1207_v5 = vpop.f32.mrf.mxu1 }
  0xb9   :  { %v1208_v10 = vadd.f32 %v1207_v5, %v1159_v4  ;;  %1353 = vmatmul.bf16.vlgmr.msrb.gmra.mxu0 %v9185_v52  ;;  %v9203_v4 = vor.u32 %v8395_v38, %v7348_v36  ;;  %v8401_v36 = vld [vmem:[#allocation4 + $0x98] sm:$0xf0]  ;;  %v8398_v38 = vld [vmem:[#allocation4 + $0x84] sm:$0xf] }
  0xba   :  { %1402 = vmatmul.bf16.vlgmr.msrb.gmra.mxu1 %v9187_v61 }
  0xbb   :  { %1451 = vmatmul.bf16.vlgmr.msrb.gmra.mxu2 %v9189_v63  ;;  %13832 = vst [vmem:[#allocation25_spill] sm:$0xff] %v9203_v4 }
  0xbc   :  { %1500 = vmatmul.bf16.vlgmr.msrb.gmra.mxu3 %v9084_v45  ;;  %v7342_v45 = vld [vmem:[#allocation4 + $0x64] sm:$0xf0] }
  0xbd   :  { %v9201_v57 = vor.u32 %v8391_v35, %v7342_v45  ;;  %v7368_v45 = vld [vmem:[#allocation4 + $0x80] sm:$0xf] }
  0xbe   :  { %v1256_v17 = vpop.f32.mrf.mxu2  ;;  %v1160_v19 = vpop.f32.mrf.mxu0 }
  0xbf   :  { %v1257_v18 = vadd.f32 %v1256_v17, %v1208_v10  ;;  %v1305_v20 = vpop.f32.mrf.mxu3  ;;  %v1161_v21 = vadd.f32 %v1160_v19, %v9183_v37  ;;  %v1209_v30 = vpop.f32.mrf.mxu1  ;;  %13831 = vst [vmem:[#allocation24_spill] sm:$0xff] %v9201_v57  ;;  %v7682_v17 = vld [vmem:[#allocation7 + $0x148] sm:$0xf0] }
  0xc1   :  { %v9197_v31 = vadd.f32 %v1305_v20, %v1257_v18  ;;  %v1210_v32 = vadd.f32 %v1209_v30, %v1161_v21  ;;  %v7685_v18 = vor.u32 %v8478_v16, %v7682_v17 }
  0xc3   :  { %1593 = vmatpush.bf16.msra.mxu1 %v7685_v18 }
  0xc6   :  { %v1258_v39 = vpop.f32.mrf.mxu2  ;;  %v1163_v47 = vpop.f32.mrf.mxu0 }
  0xc7   :  { %v1259_v41 = vadd.f32 %v1258_v39, %v1210_v32  ;;  %v1307_v48 = vpop.f32.mrf.mxu3  ;;  %v1164_v5 = vadd.f32 %v1163_v47, %v9183_v37  ;;  %v1212_v10 = vpop.f32.mrf.mxu1  ;;  %v7376_v39 = vld [vmem:[#allocation4 + $0x88] sm:$0xf] }
  0xc9   :  { %v9206_v11 = vadd.f32 %v1307_v48, %v1259_v41  ;;  %v1213_v12 = vadd.f32 %v1212_v10, %v1164_v5  ;;  %1358 = vmatmul.bf16.gmra.mxu0 %v9199_v40  ;;  %v8402_v41 = vld [vmem:[#allocation4 + $0xa0] sm:$0xf0]  ;;  %v9215_v48 = vor.u32 %v8401_v36, %v7368_v45 }
  0xca   :  { %1407 = vmatmul.bf16.gmra.mxu1 %v9201_v57  ;;  %v9219_v14 = vor.u32 %v8402_v41, %v7376_v39 }
  0xcb   :  { %1456 = vmatmul.bf16.gmra.mxu2 %v9203_v4 }
  0xcc   :  { %1505 = vmatmul.bf16.gmra.mxu3 %v9096_v6  ;;  %v7370_v6 = vld [vmem:[#allocation4 + $0x9c] sm:$0xf0]  ;;  %13834 = vst [vmem:[#allocation27_spill] sm:$0xff] %v9219_v14 }
  0xcd   :  { %v9217_v13 = vor.u32 %v8398_v38, %v7370_v6 }
  0xce   :  { %v1261_v19 = vpop.f32.mrf.mxu2  ;;  %v1165_v21 = vpop.f32.mrf.mxu0 }
  0xcf   :  { %v1262_v20 = vadd.f32 %v1261_v19, %v1213_v12  ;;  %v1310_v30 = vpop.f32.mrf.mxu3  ;;  %v1166_v32 = vadd.f32 %v1165_v21, %v9183_v37  ;;  %v1214_v33 = vpop.f32.mrf.mxu1  ;;  %13833 = vst [vmem:[#allocation26_spill] sm:$0xff] %v9217_v13  ;;  %v8460_v19 = vld [vmem:[#allocation7 + $0xb4] sm:$0xf] }
  0xd1   :  { %v9213_v34 = vadd.f32 %v1310_v30, %v1262_v20  ;;  %v1215_v35 = vadd.f32 %v1214_v33, %v1166_v32  ;;  %v7610_v20 = vld [vmem:[#allocation7 + $0xb8] sm:$0xf0]  ;;  %v8476_v30 = vld [vmem:[#allocation7 + $0x134] sm:$0xf] }
  0xd2   :  { %v7613_v21 = vor.u32 %v8460_v19, %v7610_v20  ;;  %v7674_v32 = vld [vmem:[#allocation7 + $0x138] sm:$0xf0] }
  0xd3   :  { %v7677_v33 = vor.u32 %v8476_v30, %v7674_v32 }
  0xd4   :  { %1545 = vmatpush.bf16.msra.mxu0 %v7613_v21 }
  0xd5   :  { %1594 = vmatpush.bf16.msra.mxu1 %v7677_v33 }
  0xd6   :  { %v1263_v47 = vpop.f32.mrf.mxu2  ;;  %v1168_v10 = vpop.f32.mrf.mxu0 }
  0xd7   :  { %v1264_v5 = vadd.f32 %v1263_v47, %v1215_v35  ;;  %v1312_v12 = vpop.f32.mrf.mxu3  ;;  %v1169_v15 = vadd.f32 %v1168_v10, %v9183_v37  ;;  %v1217_v16 = vpop.f32.mrf.mxu1  ;;  %v8408_v10 = vld [vmem:[#allocation4 + $0xd0] sm:$0xf0] }
  0xd9   :  { %v9222_v17 = vadd.f32 %v1312_v12, %v1264_v5  ;;  %v1218_v18 = vadd.f32 %v1217_v16, %v1169_v15  ;;  %1363 = vmatmul.bf16.gmra.mxu0 %v9215_v48  ;;  %v7396_v5 = vld [vmem:[#allocation4 + $0xb8] sm:$0xf]  ;;  %v8405_v12 = vld [vmem:[#allocation4 + $0xbc] sm:$0xf]  ;;  %v7404_v15 = vld [vmem:[#allocation4 + $0xc0] sm:$0xf] }
  0xda   :  { %1412 = vmatmul.bf16.gmra.mxu1 %v9217_v13  ;;  %v8409_v16 = vld [vmem:[#allocation4 + $0xd8] sm:$0xf0]  ;;  %v9231_v20 = vor.u32 %v8408_v10, %v7396_v5  ;;  %v8474_v5 = vld [vmem:[#allocation7 + $0x124] sm:$0xf]  ;;  %v7666_v10 = vld [vmem:[#allocation7 + $0x128] sm:$0xf0] }
  0xdb   :  { %1461 = vmatmul.bf16.gmra.mxu2 %v9219_v14  ;;  %v9235_v33 = vor.u32 %v8409_v16, %v7404_v15  ;;  %v7770_v13 = vld [vmem:[#allocation7 + $0x1f8] sm:$0xf0] }
  0xdc   :  { %1510 = vmatmul.bf16.gmra.mxu3 %v9108_v24  ;;  %v7398_v24 = vld [vmem:[#allocation4 + $0xd4] sm:$0xf0] }
  0xdd   :  { %v9233_v32 = vor.u32 %v8405_v12, %v7398_v24  ;;  %13836 = vst [vmem:[#allocation29_spill] sm:$0xff] %v9235_v33  ;;  %v7669_v12 = vor.u32 %v8474_v5, %v7666_v10 }
  0xde   :  { %v1266_v35 = vpop.f32.mrf.mxu2  ;;  %v1170_v36 = vpop.f32.mrf.mxu0 }
  0xdf   :  { %v1267_v45 = vadd.f32 %v1266_v35, %v1218_v18  ;;  %v1315_v38 = vpop.f32.mrf.mxu3  ;;  %v1171_v6 = vadd.f32 %v1170_v36, %v9183_v37  ;;  %v1219_v39 = vpop.f32.mrf.mxu1  ;;  %13835 = vst [vmem:[#allocation28_spill] sm:$0xff] %v9233_v32  ;;  %1595 = vmatpush.bf16.msra.mxu1 %v7669_v12 }
  0xe1   :  { %v9229_v41 = vadd.f32 %v1315_v38, %v1267_v45  ;;  %v1220_v47 = vadd.f32 %v1219_v39, %v1171_v6  ;;  %v8458_v6 = vld [vmem:[#allocation7 + $0xa4] sm:$0xf]  ;;  %v7602_v39 = vld [vmem:[#allocation7 + $0xa8] sm:$0xf0] }
  0xe6   :  { %v1268_v19 = vpop.f32.mrf.mxu2  ;;  %v1173_v18 = vpop.f32.mrf.mxu0 }
  0xe7   :  { %v1269_v21 = vadd.f32 %v1268_v19, %v1220_v47  ;;  %v1317_v30 = vpop.f32.mrf.mxu3  ;;  %v1174_v35 = vadd.f32 %v1173_v18, %v9183_v37  ;;  %v1222_v45 = vpop.f32.mrf.mxu1  ;;  %v7605_v47 = vor.u32 %v8458_v6, %v7602_v39  ;;  %v7432_v6 = vld [vmem:[#allocation4 + $0xf8] sm:$0xf]  ;;  %v8416_v39 = vld [vmem:[#allocation4 + $0x110] sm:$0xf0] }
  0xe8   :  { %v9251_v12 = vor.u32 %v8416_v39, %v7432_v6  ;;  %v7658_v6 = vld [vmem:[#allocation7 + $0x118] sm:$0xf0] }
  0xe9   :  { %v9238_v36 = vadd.f32 %v1317_v30, %v1269_v21  ;;  %v1223_v38 = vadd.f32 %v1222_v45, %v1174_v35  ;;  %1368 = vmatmul.bf16.gmra.mxu0 %v9231_v20  ;;  %v7424_v45 = vld [vmem:[#allocation4 + $0xf0] sm:$0xf]  ;;  %v7834_v39 = vld [vmem:[#allocation7 + $0x278] sm:$0xf0] }
  0xea   :  { %1417 = vmatmul.bf16.gmra.mxu1 %v9233_v32  ;;  %1546 = vmatpush.bf16.msra.mxu0 %v7605_v47  ;;  %v8412_v32 = vld [vmem:[#allocation4 + $0xf4] sm:$0xf]  ;;  %13838 = vst [vmem:[#allocation31_spill] sm:$0xff] %v9251_v12 }
  0xeb   :  { %1466 = vmatmul.bf16.gmra.mxu2 %v9235_v33  ;;  %v8415_v33 = vld [vmem:[#allocation4 + $0x108] sm:$0xf0] }
  0xec   :  { %1515 = vmatmul.bf16.gmra.mxu3 %v9120_v42  ;;  %v7426_v42 = vld [vmem:[#allocation4 + $0x10c] sm:$0xf0]  ;;  %v9247_v5 = vor.u32 %v8415_v33, %v7424_v45  ;;  %v7594_v33 = vld [vmem:[#allocation7 + $0x98] sm:$0xf0] }
  0xee   :  { %v1271_v24 = vpop.f32.mrf.mxu2  ;;  %v1175_v16 = vpop.f32.mrf.mxu0 }
  0xef   :  { %v1272_v15 = vadd.f32 %v1271_v24, %v1223_v38  ;;  %v1320_v19 = vpop.f32.mrf.mxu3  ;;  %v1176_v21 = vadd.f32 %v1175_v16, %v9183_v37  ;;  %v1224_v18 = vpop.f32.mrf.mxu1  ;;  %v9249_v24 = vor.u32 %v8412_v32, %v7426_v42  ;;  %v8472_v42 = vld [vmem:[#allocation7 + $0x114] sm:$0xf] }
  0xf1   :  { %v9245_v30 = vadd.f32 %v1320_v19, %v1272_v15  ;;  %v1225_v35 = vadd.f32 %v1224_v18, %v1176_v21  ;;  %13837 = vst [vmem:[#allocation30_spill] sm:$0xff] %v9249_v24  ;;  %v8500_v18 = vld [vmem:[#allocation7 + $0x1f4] sm:$0xf] }
  0xf2   :  { %v7773_v32 = vor.u32 %v8500_v18, %v7770_v13  ;;  %v8514_v13 = vld [vmem:[#allocation7 + $0x264] sm:$0xf]  ;;  %v7826_v18 = vld [vmem:[#allocation7 + $0x268] sm:$0xf0] }
  0xf4   :  { %1639 = vmatpush.bf16.msra.mxu2 %v7773_v32  ;;  %v8496_v32 = vld [vmem:[#allocation7 + $0x1d4] sm:$0xf] }
  0xf6   :  { %v1273_v14 = vpop.f32.mrf.mxu2  ;;  %v1178_v38 = vpop.f32.mrf.mxu0 }
  0xf7   :  { %v1274_v47 = vadd.f32 %v1273_v14, %v1225_v35  ;;  %v1322_v10 = vpop.f32.mrf.mxu3  ;;  %v1179_v15 = vadd.f32 %v1178_v38, %v9183_v37  ;;  %v1227_v16 = vpop.f32.mrf.mxu1  ;;  %v8456_v14 = vld [vmem:[#allocation7 + $0x94] sm:$0xf] }
  0xf8   :  { %v8516_v35 = vld [vmem:[#allocation7 + $0x274] sm:$0xf]  ;;  %v7597_v45 = vor.u32 %v8456_v14, %v7594_v33  ;;  %v7829_v33 = vor.u32 %v8514_v13, %v7826_v18  ;;  %v7746_v13 = vld [vmem:[#allocation7 + $0x1c8] sm:$0xf0] }
  0xf9   :  { %v9254_v19 = vadd.f32 %v1322_v10, %v1274_v47  ;;  %v1228_v21 = vadd.f32 %v1227_v16, %v1179_v15  ;;  %1373 = vmatmul.bf16.gmra.mxu0 %v9247_v5  ;;  %v7661_v47 = vor.u32 %v8472_v42, %v7658_v6  ;;  %v7837_v38 = vor.u32 %v8516_v35, %v7834_v39  ;;  %v8498_v10 = vld [vmem:[#allocation7 + $0x1e4] sm:$0xf]  ;;  %v7762_v15 = vld [vmem:[#allocation7 + $0x1e8] sm:$0xf0]  ;;  %v7754_v35 = vld [vmem:[#allocation7 + $0x1d8] sm:$0xf0] }
  0xfa   :  { %1422 = vmatmul.bf16.gmra.mxu1 %v9249_v24  ;;  %1547 = vmatpush.bf16.msra.mxu0 %v7597_v45  ;;  %v7765_v24 = vor.u32 %v8498_v10, %v7762_v15  ;;  %v7452_v6 = vld [vmem:[#allocation4 + $0x128] sm:$0xf]  ;;  %v8422_v45 = vld [vmem:[#allocation4 + $0x140] sm:$0xf0]  ;;  %v7757_v39 = vor.u32 %v8496_v32, %v7754_v35  ;;  %v8512_v10 = vld [vmem:[#allocation7 + $0x254] sm:$0xf] }
  0xfb   :  { %1471 = vmatmul.bf16.gmra.mxu2 %v9251_v12  ;;  %1596 = vmatpush.bf16.msra.mxu1 %v7661_v47  ;;  %v7818_v47 = vld [vmem:[#allocation7 + $0x258] sm:$0xf0]  ;;  %v7460_v15 = vld [vmem:[#allocation4 + $0x130] sm:$0xf]  ;;  %v7810_v35 = vld [vmem:[#allocation7 + $0x248] sm:$0xf0] }
  0xfc   :  { %1520 = vmatmul.bf16.gmra.mxu3 %v9132_v0  ;;  %1640 = vmatpush.bf16.msra.mxu2 %v7765_v24  ;;  %v7821_v61 = vor.u32 %v8512_v10, %v7818_v47 }
  0xfd   :  { %1688 = vmatpush.bf16.msra.mxu3 %v7837_v38  ;;  %v7454_v38 = vld [vmem:[#allocation4 + $0x144] sm:$0xf0] }
  0xfe   :  { %v1276_v16 = vpop.f32.mrf.mxu2  ;;  %v1180_v12 = vpop.f32.mrf.mxu0 }
  0xff   :  { %v1277_v4 = vadd.f32 %v1276_v16, %v1228_v21  ;;  %v1325_v57 = vpop.f32.mrf.mxu3  ;;  %v1181_v0 = vadd.f32 %v1180_v12, %v9183_v37  ;;  %v1229_v14 = vpop.f32.mrf.mxu1  ;;  %v8419_v21 = vld [vmem:[#allocation4 + $0x12c] sm:$0xf]  ;;  %v8494_v12 = vld [vmem:[#allocation7 + $0x1c4] sm:$0xf] }
 0x100   :  { %v8423_v16 = vld [vmem:[#allocation4 + $0x148] sm:$0xf0]  ;;  %1641 = vmatpush.bf16.msra.mxu2 %v7757_v39  ;;  %v7749_v24 = vor.u32 %v8494_v12, %v7746_v13  ;;  %v9265_v29 = vor.u32 %v8419_v21, %v7454_v38  ;;  %v8454_v21 = vld [vmem:[#allocation7 + $0x84] sm:$0xf] }
 0x101   :  { %v9261_v63 = vadd.f32 %v1325_v57, %v1277_v4  ;;  %v1230_v42 = vadd.f32 %v1229_v14, %v1181_v0  ;;  %1689 = vmatpush.bf16.msra.mxu3 %v7829_v33  ;;  %v9263_v4 = vor.u32 %v8422_v45, %v7452_v6  ;;  %v9267_v32 = vor.u32 %v8423_v16, %v7460_v15  ;;  %v8510_v33 = vld [vmem:[#allocation7 + $0x244] sm:$0xf]  ;;  %v7738_v45 = vld [vmem:[#allocation7 + $0x1b8] sm:$0xf0]  ;;  %v8508_v15 = vld [vmem:[#allocation7 + $0x234] sm:$0xf] }
 0x102   :  { %13839 = vst [vmem:[#allocation32_spill] sm:$0xff] %v9265_v29  ;;  %v7813_v47 = vor.u32 %v8510_v33, %v7810_v35  ;;  %v8470_v12 = vld [vmem:[#allocation7 + $0x104] sm:$0xf]  ;;  %v7650_v13 = vld [vmem:[#allocation7 + $0x108] sm:$0xf0] }
 0x103   :  { %13840 = vst [vmem:[#allocation33_spill] sm:$0xff] %v9267_v32 }
 0x104   :  { %1642 = vmatpush.bf16.msra.mxu2 %v7749_v24 }
 0x105   :  { %1690 = vmatpush.bf16.msra.mxu3 %v7821_v61  ;;  %v7586_v61 = vld [vmem:[#allocation7 + $0x88] sm:$0xf0] }
 0x106   :  { %v1278_v57 = vpop.f32.mrf.mxu2  ;;  %v1183_v0 = vpop.f32.mrf.mxu0  ;;  %v7589_v16 = vor.u32 %v8454_v21, %v7586_v61 }
 0x107   :  { %v1279_v18 = vadd.f32 %v1278_v57, %v1230_v42  ;;  %v1327_v14 = vpop.f32.mrf.mxu3  ;;  %v1184_v28 = vadd.f32 %v1183_v0, %v9183_v37  ;;  %v1232_v10 = vpop.f32.mrf.mxu1  ;;  %v8492_v42 = vld [vmem:[#allocation7 + $0x1b4] sm:$0xf]  ;;  %v7802_v57 = vld [vmem:[#allocation7 + $0x238] sm:$0xf0]  ;;  %v7730_v0 = vld [vmem:[#allocation7 + $0x1a8] sm:$0xf0] }
 0x108   :  { %v7741_v38 = vor.u32 %v8492_v42, %v7738_v45  ;;  %v7805_v24 = vor.u32 %v8508_v15, %v7802_v57  ;;  %1548 = vmatpush.bf16.msra.mxu0 %v7589_v16  ;;  %v8506_v42 = vld [vmem:[#allocation7 + $0x224] sm:$0xf]  ;;  %v7794_v45 = vld [vmem:[#allocation7 + $0x228] sm:$0xf0]  ;;  %v7722_v15 = vld [vmem:[#allocation7 + $0x198] sm:$0xf0] }
 0x109   :  { %v9270_v39 = vadd.f32 %v1327_v14, %v1279_v18  ;;  %v1233_v6 = vadd.f32 %v1232_v10, %v1184_v28  ;;  %1378 = vmatmul.bf16.gmra.mxu0 %v9263_v4  ;;  %1691 = vmatpush.bf16.msra.mxu3 %v7813_v47  ;;  %v7653_v28 = vor.u32 %v8470_v12, %v7650_v13  ;;  %v8490_v18 = vld [vmem:[#allocation7 + $0x1a4] sm:$0xf]  ;;  %v7480_v13 = vld [vmem:[#allocation4 + $0x160] sm:$0xf]  ;;  %v8429_v16 = vld [vmem:[#allocation4 + $0x178] sm:$0xf0] }
 0x10a   :  { %1427 = vmatmul.bf16.gmra.mxu1 %v9265_v29  ;;  %1643 = vmatpush.bf16.msra.mxu2 %v7741_v38  ;;  %v7733_v33 = vor.u32 %v8490_v18, %v7730_v0  ;;  %v7797_v47 = vor.u32 %v8506_v42, %v7794_v45  ;;  %v8488_v38 = vld [vmem:[#allocation7 + $0x194] sm:$0xf]  ;;  %v7786_v0 = vld [vmem:[#allocation7 + $0x218] sm:$0xf0]  ;;  %v8430_v29 = vld [vmem:[#allocation4 + $0x180] sm:$0xf0] }
 0x10b   :  { %1476 = vmatmul.bf16.gmra.mxu2 %v9267_v32  ;;  %1597 = vmatpush.bf16.msra.mxu1 %v7653_v28  ;;  %v7725_v57 = vor.u32 %v8488_v38, %v7722_v15  ;;  %v8504_v18 = vld [vmem:[#allocation7 + $0x214] sm:$0xf]  ;;  %v7482_v28 = vld [vmem:[#allocation4 + $0x17c] sm:$0xf0]  ;;  %v8502_v15 = vld [vmem:[#allocation7 + $0x204] sm:$0xf] }
 0x10c   :  { %1525 = vmatmul.bf16.gmra.mxu3 %v9144_v55 }
 0x10d   :  { %1692 = vmatpush.bf16.msra.mxu3 %v7805_v24 }
 0x10e   :  { %v1281_v14 = vpop.f32.mrf.mxu2  ;;  %v1185_v10 = vpop.f32.mrf.mxu0  ;;  %1644 = vmatpush.bf16.msra.mxu2 %v7733_v33  ;;  %v9279_v33 = vor.u32 %v8429_v16, %v7480_v13 }
 0x10f   :  { %v1282_v35 = vadd.f32 %v1281_v14, %v1233_v6  ;;  %v1330_v32 = vpop.f32.mrf.mxu3  ;;  %v1186_v55 = vadd.f32 %v1185_v10, %v9183_v37  ;;  %v1234_v21 = vpop.f32.mrf.mxu1  ;;  %v8426_v6 = vld [vmem:[#allocation4 + $0x164] sm:$0xf]  ;;  %v7488_v14 = vld [vmem:[#allocation4 + $0x168] sm:$0xf]  ;;  %v7789_v10 = vor.u32 %v8504_v18, %v7786_v0  ;;  %v7962_v0 = vld [vmem:[#allocation7 + $0x378] sm:$0xf0] }
 0x110   :  { %v9281_v23 = vor.u32 %v8426_v6, %v7482_v28  ;;  %v9283_v38 = vor.u32 %v8430_v29, %v7488_v14  ;;  %v7898_v29 = vld [vmem:[#allocation7 + $0x2f8] sm:$0xf0]  ;;  %v8548_v6 = vld [vmem:[#allocation7 + $0x374] sm:$0xf] }
 0x111   :  { %v9277_v61 = vadd.f32 %v1330_v32, %v1282_v35  ;;  %v1235_v12 = vadd.f32 %v1234_v21, %v1186_v55  ;;  %1693 = vmatpush.bf16.msra.mxu3 %v7797_v47  ;;  %v8486_v32 = vld [vmem:[#allocation7 + $0x184] sm:$0xf]  ;;  %v7714_v35 = vld [vmem:[#allocation7 + $0x188] sm:$0xf0]  ;;  %v7965_v28 = vor.u32 %v8548_v6, %v7962_v0 }
 0x112   :  { %1645 = vmatpush.bf16.msra.mxu2 %v7725_v57  ;;  %v7717_v42 = vor.u32 %v8486_v32, %v7714_v35  ;;  %13842 = vst [vmem:[#allocation35_spill] sm:$0xff] %v9281_v23 }
 0x113   :  { %13841 = vst [vmem:[#allocation34_spill] sm:$0xff] %v9277_v61  ;;  %v7778_v61 = vld [vmem:[#allocation7 + $0x208] sm:$0xf0]  ;;  %1786 = vmatpush.bf16.msrb.mxu1 %v7965_v28 }
 0x114   :  { %13843 = vst [vmem:[#allocation36_spill] sm:$0xff] %v9283_v38  ;;  %v7781_v18 = vor.u32 %v8502_v15, %v7778_v61  ;;  %v7516_v15 = vld [vmem:[#allocation4 + $0x1a0] sm:$0xf] }
 0x115   :  { %1694 = vmatpush.bf16.msra.mxu3 %v7789_v10 }
 0x116   :  { %v1283_v24 = vpop.f32.mrf.mxu2  ;;  %v1188_v55 = vpop.f32.mrf.mxu0  ;;  %1646 = vmatpush.bf16.msra.mxu2 %v7717_v42 }
 0x117   :  { %v1284_v45 = vadd.f32 %v1283_v24, %v1235_v12  ;;  %v1332_v21 = vpop.f32.mrf.mxu3  ;;  %v1189_v62 = vadd.f32 %v1188_v55, %v9183_v37  ;;  %v1237_v47 = vpop.f32.mrf.mxu1  ;;  %v8532_v12 = vld [vmem:[#allocation7 + $0x2f4] sm:$0xf] }
 0x118   :  { %v7901_v16 = vor.u32 %v8532_v12, %v7898_v29  ;;  %v8436_v55 = vld [vmem:[#allocation4 + $0x1b0] sm:$0xf0] }
 0x119   :  { %v9286_v57 = vadd.f32 %v1332_v21, %v1284_v45  ;;  %v1238_v13 = vadd.f32 %v1237_v47, %v1189_v62  ;;  %1383 = vmatmul.bf16.gmra.mxu0 %v9279_v33  ;;  %1695 = vmatpush.bf16.msra.mxu3 %v7781_v18  ;;  %v7508_v45 = vld [vmem:[#allocation4 + $0x198] sm:$0xf]  ;;  %v8437_v47 = vld [vmem:[#allocation4 + $0x1b8] sm:$0xf0] }
 0x11a   :  { %1432 = vmatmul.bf16.gmra.mxu1 %v9281_v23  ;;  %1737 = vmatpush.bf16.msrb.mxu0 %v7901_v16  ;;  %v7510_v21 = vld [vmem:[#allocation4 + $0x1b4] sm:$0xf0]  ;;  %v9295_v12 = vor.u32 %v8436_v55, %v7508_v45  ;;  %v9299_v0 = vor.u32 %v8437_v47, %v7516_v15 }
 0x11b   :  { %1481 = vmatmul.bf16.gmra.mxu2 %v9283_v38 }
 0x11c   :  { %1530 = vmatmul.bf16.gmra.mxu3 %v9156_v51  ;;  %v8433_v51 = vld [vmem:[#allocation4 + $0x19c] sm:$0xf]  ;;  %13845 = vst [vmem:[#allocation38_spill] sm:$0xff] %v9299_v0 }
 0x11d   :  { %v9297_v6 = vor.u32 %v8433_v51, %v7510_v21 }
 0x11e   :  { %v1286_v14 = vpop.f32.mrf.mxu2  ;;  %v1190_v61 = vpop.f32.mrf.mxu0 }
 0x11f   :  { %v1287_v10 = vadd.f32 %v1286_v14, %v1238_v13  ;;  %v1335_v62 = vpop.f32.mrf.mxu3  ;;  %v1191_v32 = vadd.f32 %v1190_v61, %v9183_v37  ;;  %v1239_v35 = vpop.f32.mrf.mxu1  ;;  %13844 = vst [vmem:[#allocation37_spill] sm:$0xff] %v9297_v6 }
 0x121   :  { %v9293_v24 = vadd.f32 %v1335_v62, %v1287_v10  ;;  %v1240_v42 = vadd.f32 %v1239_v35, %v1191_v32 }
 0x126   :  { %v1288_v18 = vpop.f32.mrf.mxu2  ;;  %v1193_v13 = vpop.f32.mrf.mxu0 }
 0x127   :  { %v1289_v29 = vadd.f32 %v1288_v18, %v1240_v42  ;;  %v1337_v16 = vpop.f32.mrf.mxu3  ;;  %v1194_v28 = vadd.f32 %v1193_v13, %v9183_v37  ;;  %v1242_v14 = vpop.f32.mrf.mxu1 }
 0x129   :  { %v9302_v10 = vadd.f32 %v1337_v16, %v1289_v29  ;;  %v1243_v61 = vadd.f32 %v1242_v14, %v1194_v28  ;;  %1388 = vmatmul.bf16.gmra.mxu0 %v9295_v12 }
 0x12a   :  { %1437 = vmatmul.bf16.gmra.mxu1 %v9297_v6 }
 0x12b   :  { %1486 = vmatmul.bf16.gmra.mxu2 %v9299_v0 }
 0x12c   :  { %1535 = vmatmul.bf16.gmra.mxu3 %v9168_v22 }
 0x12e   :  { %v1291_v62 = vpop.f32.mrf.mxu2  ;;  %v1195_v35 = vpop.f32.mrf.mxu0 }
 0x12f   :  { %v1292_v32 = vadd.f32 %v1291_v62, %v1243_v61  ;;  %v1340_v42 = vpop.f32.mrf.mxu3  ;;  %v1196_v45 = vadd.f32 %v1195_v35, %v9183_v37  ;;  %v1244_v55 = vpop.f32.mrf.mxu1 }
 0x131   :  { %v9309_v51 = vadd.f32 %v1340_v42, %v1292_v32  ;;  %v1245_v21 = vadd.f32 %v1244_v55, %v1196_v45 }
 0x136   :  { %v1293_v15 = vpop.f32.mrf.mxu2  ;;  %v1354_v29 = vpop.f32.mrf.mxu0 }
 0x137   :  { %v1294_v47 = vadd.f32 %v1293_v15, %v1245_v21  ;;  %v1342_v18 = vpop.f32.mrf.mxu3  ;;  %v1355_v13 = vadd.f32 %v1354_v29, %v9197_v31  ;;  %v1403_v16 = vpop.f32.mrf.mxu1 }
 0x139   :  { %v9312_v28 = vadd.f32 %v1342_v18, %v1294_v47  ;;  %v1404_v22 = vadd.f32 %v1403_v16, %v1355_v13  ;;  %1549 = vmatmul.bf16.vlgmr.msra.gmra.mxu0 %v9086_v49 }
 0x13a   :  { %1598 = vmatmul.bf16.vlgmr.msra.gmra.mxu1 %v9088_v50 }
 0x13b   :  { %1647 = vmatmul.bf16.vlgmr.msra.gmra.mxu2 %v9090_v53 }
 0x13c   :  { %1696 = vmatmul.bf16.vlgmr.msra.gmra.mxu3 %v9185_v52 }
 0x13e   :  { %v1452_v37 = vpop.f32.mrf.mxu2  ;;  %v1356_v61 = vpop.f32.mrf.mxu0 }
 0x13f   :  { %v9318_v14 = vadd.f32 %v1452_v37, %v1404_v22  ;;  %v1357_v62 = vadd.f32 %v1356_v61, %v9206_v11  ;;  %v1405_v32 = vpop.f32.mrf.mxu1 }
 0x141   :  { %v9322_v31 = vmul.f32 0.70710677, %v9318_v14  ;;  %v1406_v35 = vadd.f32 %v1405_v32, %v1357_v62 }
 0x143   :  { %v1899_v49 = vmul.f32 %v9322_v31, %v9322_v31 }
 0x145   :  { %v9326_v42 = vmin.f32 %v1899_v49, 16.0 }
 0x146   :  { %v1454_v50 = vpop.f32.mrf.mxu2  ;;  %v1359_v55 = vpop.f32.mrf.mxu0 }
 0x147   :  { %v1901_v53 = vmul.f32 2.1237322e-06, %v9326_v42  ;;  %v1912_v52 = vmul.f32 3.8918573e-05, %v9326_v42  ;;  %v9330_v45 = vadd.f32 %v1454_v50, %v1406_v35  ;;  %v1360_v11 = vadd.f32 %v1359_v55, %v9213_v34  ;;  %v1408_v21 = vpop.f32.mrf.mxu1 }
 0x149   :  { %v1902_v15 = vadd.f32 0.00028619796, %v1901_v53  ;;  %v1913_v47 = vadd.f32 0.001143296, %v1912_v52  ;;  %v9334_v18 = vmul.f32 0.70710677, %v9330_v45  ;;  %v1409_v29 = vadd.f32 %v1408_v21, %v1360_v11  ;;  %1554 = vmatmul.bf16.gmra.mxu0 %v9098_v7 }
 0x14a   :  { %1603 = vmatmul.bf16.gmra.mxu1 %v9100_v8 }
 0x14b   :  { %v1914_v13 = vmul.f32 %v1913_v47, %v9326_v42  ;;  %1652 = vmatmul.bf16.gmra.mxu2 %v9102_v9  ;;  %v1979_v16 = vmul.f32 %v9334_v18, %v9334_v18  ;;  %v1903_v34 = vmul.f32 %v1902_v15, %v9326_v42 }
 0x14c   :  { %1701 = vmatmul.bf16.gmra.mxu3 %v9199_v40 }
 0x14d   :  { %v1915_v22 = vadd.f32 0.014752088, %v1914_v13  ;;  %v9344_v37 = vmin.f32 %v1979_v16, 16.0  ;;  %v1904_v50 = vadd.f32 0.0036580483, %v1903_v34 }
 0x14e   :  { %v1457_v61 = vpop.f32.mrf.mxu2  ;;  %v1361_v32 = vpop.f32.mrf.mxu0 }
 0x14f   :  { %v1916_v62 = vmul.f32 %v1915_v22, %v9326_v42  ;;  %v9347_v7 = vadd.f32 %v1457_v61, %v1409_v29  ;;  %v1981_v8 = vmul.f32 2.1237322e-06, %v9344_v37  ;;  %v1992_v9 = vmul.f32 3.8918573e-05, %v9344_v37  ;;  %v1410_v49 = vpop.f32.mrf.mxu1 }
 0x150   :  { %v1362_v35 = vadd.f32 %v1361_v32, %v9222_v17  ;;  %v1905_v47 = vmul.f32 %v1904_v50, %v9326_v42 }
 0x151   :  { %v1917_v40 = vadd.f32 0.112945676, %v1916_v62  ;;  %v1982_v53 = vadd.f32 0.00028619796, %v1981_v8  ;;  %v1993_v52 = vadd.f32 0.001143296, %v1992_v9 }
 0x152   :  { %v1411_v55 = vadd.f32 %v1410_v49, %v1362_v35  ;;  %v1906_v8 = vadd.f32 0.05243302, %v1905_v47 }
 0x153   :  { %v1918_v11 = vmul.f32 %v1917_v40, %v9326_v42  ;;  %v1983_v21 = vmul.f32 %v1982_v53, %v9344_v37  ;;  %v1994_v15 = vmul.f32 %v1993_v52, %v9344_v37  ;;  %v9367_v52 = vmul.f32 0.70710677, %v9347_v7 }
 0x155   :  { %v1919_v29 = vadd.f32 0.4994258, %v1918_v11  ;;  %v1984_v13 = vadd.f32 0.0036580483, %v1983_v21  ;;  %v1995_v16 = vadd.f32 0.014752088, %v1994_v15 }
 0x156   :  { %v1459_v22 = vpop.f32.mrf.mxu2  ;;  %v1364_v34 = vpop.f32.mrf.mxu0  ;;  %v8530_v11 = vld [vmem:[#allocation7 + $0x2e4] sm:$0xf]  ;;  %v7890_v21 = vld [vmem:[#allocation7 + $0x2e8] sm:$0xf0] }
 0x157   :  { %v1920_v17 = vmul.f32 %v1919_v29, %v9326_v42  ;;  %v9357_v61 = vadd.f32 %v1459_v22, %v1411_v55  ;;  %v1996_v62 = vmul.f32 %v1995_v16, %v9344_v37  ;;  %v1365_v32 = vadd.f32 %v1364_v34, %v9229_v41  ;;  %v1413_v49 = vpop.f32.mrf.mxu1  ;;  %v8546_v29 = vld [vmem:[#allocation7 + $0x364] sm:$0xf] }
 0x158   :  { %v1985_v35 = vmul.f32 %v1984_v13, %v9344_v37  ;;  %v1907_v41 = vmul.f32 %v1906_v8, %v9326_v42  ;;  %v7893_v47 = vor.u32 %v8530_v11, %v7890_v21  ;;  %v7954_v13 = vld [vmem:[#allocation7 + $0x368] sm:$0xf0]  ;;  %v2059_v22 = vmul.f32 %v9367_v52, %v9367_v52 }
 0x159   :  { %v1921_v9 = vadd.f32 1.0, %v1920_v17  ;;  %v1997_v40 = vadd.f32 0.112945676, %v1996_v62  ;;  %v1414_v50 = vadd.f32 %v1413_v49, %v1365_v32  ;;  %1559 = vmatmul.bf16.gmra.mxu0 %v9110_v25  ;;  %v7957_v16 = vor.u32 %v8546_v29, %v7954_v13 }
 0x15a   :  { %1608 = vmatmul.bf16.gmra.mxu1 %v9112_v26  ;;  %v1986_v55 = vadd.f32 0.05243302, %v1985_v35  ;;  %1738 = vmatpush.bf16.msrb.mxu0 %v7893_v47  ;;  %v1908_v34 = vadd.f32 0.18741608, %v1907_v41 }
 0x15b   :  { %8643 = vrcp.f32 %v1921_v9  ;;  %1657 = vmatmul.bf16.gmra.mxu2 %v9114_v27  ;;  %v1998_v53 = vmul.f32 %v1997_v40, %v9344_v37  ;;  %1787 = vmatpush.bf16.msrb.mxu1 %v7957_v16  ;;  %v1933_v11 = vand.u32 2147483648, %v1921_v9  ;;  %v1931_v29 = vand.u32 2147483647, %v1921_v9 }
 0x15c   :  { %1706 = vmatmul.bf16.gmra.mxu3 %v9215_v48  ;;  %v9377_v48 = vmul.f32 0.70710677, %v9357_v61  ;;  %v1987_v62 = vmul.f32 %v1986_v55, %v9344_v37  ;;  %v1909_v41 = vmul.f32 %v1908_v34, %v9326_v42  ;;  %vm1927_vm1 = vweird.f32 %v1921_v9 }
 0x15d   :  { %v1999_v15 = vadd.f32 0.4994258, %v1998_v53  ;;  %v9387_v53 = vmin.f32 %v2059_v22, 16.0  ;;  %vm1932_vm3 = vcmp.eq.f32.partialorder %v1931_v29, 8.507059e+37 }
 0x15e   :  { %v1462_v25 = vpop.f32.mrf.mxu2  ;;  %v2139_v49 = vmul.f32 %v9377_v48, %v9377_v48  ;;  %v1988_v55 = vadd.f32 0.18741608, %v1987_v62  ;;  %v1910_v22 = vadd.f32 1.1283791, %v1909_v41  ;;  %v1366_v42 = vpop.f32.mrf.mxu0 }
 0x15f   :  { %v9371_v26 = vadd.f32 %v1462_v25, %v1414_v50  ;;  %v2000_v27 = vmul.f32 %v1999_v15, %v9344_v37  ;;  %v9390_v15 = vpop.f32.mrf.mxu3 }
 0x160   :  { %v9392_v47 = vmin.f32 %v2139_v49, 16.0 }
 0x161   :  { %v8644_v17 = vpop.eup %8643  ;;  %v9381_v32 = vmul.f32 0.70710677, %v9371_v26  ;;  %v2001_v35 = vadd.f32 1.0, %v2000_v27  ;;  %v2072_v27 = vmul.f32 3.8918573e-05, %v9387_v53 }
 0x162   :  { %v1923_v8 = vmul.f32 %v8644_v17, %v1921_v9  ;;  %vm1928_vm0 = vweird.f32 %v8644_v17  ;;  %v2152_v16 = vmul.f32 3.8918573e-05, %v9392_v47 }
 0x163   :  { %v2219_v40 = vmul.f32 %v9381_v32, %v9381_v32  ;;  %8645 = vrcp.f32 %v2001_v35  ;;  %vm1929_vm2 = vmor %vm1927_vm1, %vm1928_vm0  ;;  %vm2007_vm5 = vweird.f32 %v2001_v35 }
 0x164   :  { %v1924_v50 = vsub.f32 1.0, %v1923_v8  ;;  %v1934_v8 = vor.u32 1.1754944e-38, %v1933_v11  ;;  %v2153_v41 = vadd.f32 0.001143296, %v2152_v16 }
 0x165   :  { %v9394_v25 = vmin.f32 %v2219_v40, 16.0 }
 0x166   :  { %v1925_v21 = vmul.f32 %v8644_v17, %v1924_v50  ;;  %v1989_v50 = vmul.f32 %v1988_v55, %v9344_v37  ;;  %v1367_v37 = vadd.f32 %v1366_v42, %v9238_v36  ;;  %v1464_v38 = vpop.f32.mrf.mxu2 }
 0x167   :  { %v2232_v49 = vmul.f32 3.8918573e-05, %v9394_v25 }
 0x168   :  { %v1926_v13 = vadd.f32 %v8644_v17, %v1925_v21  ;;  %v2073_v21 = vadd.f32 0.001143296, %v2072_v27  ;;  %v1990_v55 = vadd.f32 1.1283791, %v1989_v50  ;;  %v1369_v50 = vpop.f32.mrf.mxu0 }
 0x169   :  { %v8646_v34 = vpop.eup %8645  ;;  %1564 = vmatmul.bf16.gmra.mxu0 %v9122_v43  ;;  %v2233_v0 = vadd.f32 0.001143296, %v2232_v49  ;;  %v1415_v43 = vpop.f32.mrf.mxu1 }
 0x16a   :  { %v1930_v62 = vsel %vm1929_vm2, %v8644_v17, %v1926_v13  ;;  %v2003_v40 = vmul.f32 %v8646_v34, %v2001_v35  ;;  %1613 = vmatmul.bf16.gmra.mxu1 %v9124_v44  ;;  %v1911_v17 = vmul.f32 %v1910_v22, %v9322_v31  ;;  %v2013_v13 = vand.u32 2147483648, %v2001_v35 }
 0x16b   :  { %1662 = vmatmul.bf16.gmra.mxu2 %v9126_v46  ;;  %v1935_v9 = vsel %vm1932_vm3, %v1934_v8, %v1930_v62  ;;  %vm2008_vm4 = vweird.f32 %v8646_v34  ;;  %v2011_v44 = vand.u32 2147483647, %v2001_v35  ;;  %v9406_v46 = vpop.f32.mrf.mxu3  ;;  %v2074_v27 = vmul.f32 %v2073_v21, %v9387_v53  ;;  %v8528_v21 = vld [vmem:[#allocation7 + $0x2d4] sm:$0xf]  ;;  %v7946_v35 = vld [vmem:[#allocation7 + $0x358] sm:$0xf0] }
 0x16c   :  { %1711 = vmatmul.bf16.gmra.mxu3 %v9231_v20  ;;  %v2004_v11 = vsub.f32 1.0, %v2003_v40  ;;  %v1936_v29 = vmul.f32 %v1935_v9, %v1911_v17  ;;  %v2154_v20 = vmul.f32 %v2153_v41, %v9392_v47  ;;  %v1416_v31 = vadd.f32 %v1415_v43, %v1367_v37  ;;  %vm2009_vm6 = vmor %vm2007_vm5, %vm2008_vm4 }
 0x16d   :  { %v2014_v36 = vor.u32 1.1754944e-38, %v2013_v13  ;;  %v2234_v22 = vmul.f32 %v2233_v0, %v9394_v25  ;;  %v1991_v62 = vmul.f32 %v1990_v55, %v9334_v18  ;;  %vm2012_vm7 = vcmp.eq.f32.partialorder %v2011_v44, 8.507059e+37 }
 0x16e   :  { %v2005_v6 = vmul.f32 %v8646_v34, %v2004_v11  ;;  %v7966_v42 = vclamps-f32 %v1936_v29, 1.0  ;;  %v2075_v40 = vadd.f32 0.014752088, %v2074_v27  ;;  %v2155_v9 = vadd.f32 0.014752088, %v2154_v20 }
 0x16f   :  { %v7882_v11 = vld [vmem:[#allocation7 + $0x2d8] sm:$0xf0]  ;;  %v2235_v37 = vadd.f32 0.014752088, %v2234_v22  ;;  %v2061_v0 = vmul.f32 2.1237322e-06, %v9387_v53  ;;  %v9415_v55 = vadd.f32 %v1464_v38, %v1416_v31 }
 0x170   :  { %v2006_v16 = vadd.f32 %v8646_v34, %v2005_v6  ;;  %v7885_v41 = vor.u32 %v8528_v21, %v7882_v11  ;;  %v8544_v6 = vld [vmem:[#allocation7 + $0x354] sm:$0xf]  ;;  %v3179_v43 = vadd.f32 1.0, %v7966_v42  ;;  %v2076_v18 = vmul.f32 %v2075_v40, %v9387_v53  ;;  %v1371_v21 = vpop.f32.mrf.mxu0 }
 0x171   :  { %v7949_v29 = vor.u32 %v8544_v6, %v7946_v35  ;;  %v1418_v44 = vpop.f32.mrf.mxu1  ;;  %v1835_v27 = vmul.f32 0.5, %v9318_v14  ;;  %v1837_v20 = vmul.f32 0.5, %v9330_v45  ;;  %v2141_v42 = vmul.f32 2.1237322e-06, %v9392_v47 }
 0x172   :  { %v2010_v8 = vsel %vm2009_vm6, %v8646_v34, %v2006_v16  ;;  %v2156_v34 = vmul.f32 %v2155_v9, %v9392_v47  ;;  %1739 = vmatpush.bf16.msrb.mxu0 %v7885_v41  ;;  %v2062_v38 = vadd.f32 0.00028619796, %v2061_v0  ;;  %v9425_v31 = vmul.f32 0.70710677, %v9415_v55 }
 0x173   :  { %v2015_v49 = vsel %vm2012_vm7, %v2014_v36, %v2010_v8  ;;  %1788 = vmatpush.bf16.msrb.mxu1 %v7949_v29  ;;  %v1467_v36 = vpop.f32.mrf.mxu2  ;;  %v9419_v22 = vpop.f32.mrf.mxu3  ;;  %v3211_v8 = vmul.f32 %v3179_v43, %v1835_v27  ;;  %v2077_v14 = vadd.f32 0.112945676, %v2076_v18  ;;  %v1370_v40 = vadd.f32 %v1369_v50, %v9245_v30 }
 0x174   :  { %v2016_v17 = vmul.f32 %v2015_v49, %v1991_v62  ;;  %v2236_v62 = vmul.f32 %v2235_v37, %v9394_v25  ;;  %v2157_v45 = vadd.f32 0.112945676, %v2156_v34  ;;  %v2142_v11 = vadd.f32 0.00028619796, %v2141_v42 }
 0x175   :  { %v1419_v35 = vadd.f32 %v1418_v44, %v1370_v40  ;;  %v1372_v30 = vadd.f32 %v1371_v21, %v9254_v19 }
 0x176   :  { %v7968_v13 = vclamps-f32 %v2016_v17, 1.0  ;;  %v2299_v17 = vmul.f32 %v9425_v31, %v9425_v31  ;;  %v2237_v41 = vadd.f32 0.112945676, %v2236_v62  ;;  %v2158_v6 = vmul.f32 %v2157_v45, %v9392_v47 }
 0x177   :  { %v2143_v37 = vmul.f32 %v2142_v11, %v9392_v47  ;;  %v9444_v29 = vadd.f32 %v1467_v36, %v1419_v35 }
 0x178   :  { %v3181_v16 = vadd.f32 1.0, %v7968_v13  ;;  %v9440_v50 = vmin.f32 %v2299_v17, 16.0  ;;  %v2238_v43 = vmul.f32 %v2237_v41, %v9394_v25 }
 0x179   :  { %1569 = vmatmul.bf16.gmra.mxu0 %v9134_v1  ;;  %v2221_v1 = vmul.f32 2.1237322e-06, %v9394_v25  ;;  %v1420_v13 = vpop.f32.mrf.mxu1  ;;  %v2144_v42 = vadd.f32 0.0036580483, %v2143_v37  ;;  %v1374_v37 = vpop.f32.mrf.mxu0 }
 0x17a   :  { %v3213_v49 = vmul.f32 %v3181_v16, %v1837_v20  ;;  %1618 = vmatmul.bf16.gmra.mxu1 %v9136_v2  ;;  %v2063_v2 = vmul.f32 %v2062_v38, %v9387_v53  ;;  %v1421_v18 = vadd.f32 %v1420_v13, %v1372_v30  ;;  %v2159_v20 = vadd.f32 0.4994258, %v2158_v6  ;;  %v8526_v30 = vld [vmem:[#allocation7 + $0x2c4] sm:$0xf] }
 0x17b   :  { %1667 = vmatmul.bf16.gmra.mxu2 %v9138_v3  ;;  %v2078_v3 = vmul.f32 %v2077_v14, %v9387_v53  ;;  %v1469_v34 = vpop.f32.mrf.mxu2  ;;  %v9446_v16 = vpop.f32.mrf.mxu3  ;;  %v2312_v19 = vmul.f32 3.8918573e-05, %v9440_v50  ;;  %v2239_v62 = vadd.f32 0.4994258, %v2238_v43  ;;  %v2145_v17 = vmul.f32 %v2144_v42, %v9392_v47 }
 0x17c   :  { %1716 = vmatmul.bf16.gmra.mxu3 %v9247_v5  ;;  %v9431_v9 = vpack.c.bf16 %v3213_v49, %v3211_v8  ;;  %v2222_v5 = vadd.f32 0.00028619796, %v2221_v1  ;;  %v2064_v0 = vadd.f32 0.0036580483, %v2063_v2  ;;  %v9451_v8 = vmul.f32 0.70710677, %v9444_v29 }
 0x17d   :  { %v2079_v27 = vadd.f32 0.4994258, %v2078_v3  ;;  %v9453_v49 = vadd.f32 %v1469_v34, %v1421_v18  ;;  %v2160_v14 = vmul.f32 %v2159_v20, %v9392_v47  ;;  %v2313_v40 = vadd.f32 0.001143296, %v2312_v19 }
 0x17e   :  { %13846 = vst [vmem:[#allocation39_spill] sm:$0xff] %v9431_v9  ;;  %v2223_v44 = vmul.f32 %v2222_v5, %v9394_v25  ;;  %v2065_v36 = vmul.f32 %v2064_v0, %v9387_v53  ;;  %v2379_v1 = vmul.f32 %v9451_v8, %v9451_v8  ;;  %v2240_v21 = vmul.f32 %v2239_v62, %v9394_v25  ;;  %v7874_v5 = vld [vmem:[#allocation7 + $0x2c8] sm:$0xf0] }
 0x17f   :  { %v2080_v38 = vmul.f32 %v2079_v27, %v9387_v53  ;;  %v9467_v2 = vadd.f32 1.0, %v2160_v14  ;;  %v9472_v6 = vmul.f32 0.70710677, %v9453_v49  ;;  %v7938_v0 = vld [vmem:[#allocation7 + $0x348] sm:$0xf0]  ;;  %v7877_v18 = vor.u32 %v8526_v30, %v7874_v5 }
 0x180   :  { %v2224_v45 = vadd.f32 0.0036580483, %v2223_v44  ;;  %v2066_v11 = vadd.f32 0.05243302, %v2065_v36  ;;  %v9469_v3 = vmin.f32 %v2379_v1, 16.0  ;;  %v9477_v43 = vadd.f32 1.0, %v2240_v21 }
 0x181   :  { %v9465_v41 = vadd.f32 1.0, %v2080_v38  ;;  %v2459_v20 = vmul.f32 %v9472_v6, %v9472_v6  ;;  %1740 = vmatpush.bf16.msrb.mxu0 %v7877_v18  ;;  %v1375_v42 = vadd.f32 %v1374_v37, %v9261_v63  ;;  %v1423_v38 = vpop.f32.mrf.mxu1  ;;  %v2301_v30 = vmul.f32 2.1237322e-06, %v9440_v50 }
 0x182   :  { %v2225_v35 = vmul.f32 %v2224_v45, %v9394_v25  ;;  %v2067_v27 = vmul.f32 %v2066_v11, %v9387_v53  ;;  %v8835_v45 = vld [vmem:[%s13776_s4] sm:$0x3]  ;;  %vm2167_vm11 = vweird.f32 %v9467_v2  ;;  %vm2247_vm1 = vweird.f32 %v9477_v43 }
 0x183   :  { %v9479_v13 = vpop.f32.mrf.mxu3  ;;  %8647 = vrcp.f32 %v9465_v41  ;;  %v1472_v14 = vpop.f32.mrf.mxu2  ;;  %v1424_v11 = vadd.f32 %v1423_v38, %v1375_v42  ;;  %vm2087_vm8 = vweird.f32 %v9465_v41 }
 0x184   :  { %8649 = vrcp.f32 %v9467_v2  ;;  %v2226_v44 = vadd.f32 0.05243302, %v2225_v35  ;;  %v2068_v1 = vadd.f32 0.18741608, %v2067_v27 }
 0x185   :  { %8651 = vrcp.f32 %v9477_v43  ;;  %v9505_v37 = vadd.f32 %v1472_v14, %v1424_v11 }
 0x186   :  { %v2227_v21 = vmul.f32 %v2226_v44, %v9394_v25  ;;  %v2069_v27 = vmul.f32 %v2068_v1, %v9387_v53  ;;  %v9529_v53 = vmul.f32 0.5, %v9357_v61 }
 0x187   :  { %13848 = vst [vmem:[#allocation41_spill] sm:$0xff] %v9505_v37  ;;  %v9534_v1 = vmul.f32 0.70710677, %v9505_v37 }
 0x188   :  { %v2228_v42 = vadd.f32 0.18741608, %v2227_v21 }
 0x189   :  { %1574 = vmatmul.bf16.gmra.mxu0 %v9146_v58  ;;  %v2314_v58 = vmul.f32 %v2313_v40, %v9440_v50  ;;  %v9493_v40 = vperm.slane %v8835_v45, 1  ;;  %v9499_v35 = vpop.eup %8647 }
 0x18a   :  { %1623 = vmatmul.bf16.gmra.mxu1 %v9148_v59  ;;  %v8542_v59 = vld [vmem:[#allocation7 + $0x344] sm:$0xf]  ;;  %v9502_v5 = vpop.eup %8649  ;;  %v2083_v44 = vmul.f32 %v9499_v35, %v9465_v41  ;;  %vm2088_vm9 = vweird.f32 %v9499_v35 }
 0x18b   :  { %1672 = vmatmul.bf16.gmra.mxu2 %v9150_v60  ;;  %v2146_v60 = vadd.f32 0.05243302, %v2145_v17  ;;  %v7941_v34 = vor.u32 %v8542_v59, %v7938_v0  ;;  %v2315_v19 = vadd.f32 0.014752088, %v2314_v58  ;;  %13847 = vst [vmem:[#allocation40_spill] sm:$0xff] %v9493_v40  ;;  %v9495_v17 = vmin.f32 %v2459_v20, 16.0  ;;  %v9507_v0 = vpop.eup %8651  ;;  %vm9605_vm15 = vmor %vm2087_vm8, %vm2088_vm9 }
 0x18c   :  { %1721 = vmatmul.bf16.gmra.mxu3 %v9263_v4  ;;  %v2392_v4 = vmul.f32 3.8918573e-05, %v9469_v3  ;;  %v9511_v18 = vadd.f32 %v9390_v15, %v9493_v40  ;;  %v2163_v15 = vmul.f32 %v9502_v5, %v9467_v2  ;;  %v2243_v14 = vmul.f32 %v9507_v0, %v9477_v43 }
 0x18d   :  { %1789 = vmatpush.bf16.msrb.mxu1 %v7941_v34  ;;  %v2147_v62 = vmul.f32 %v2146_v60, %v9392_v47  ;;  %v2316_v63 = vmul.f32 %v2315_v19, %v9440_v50  ;;  %v1376_v60 = vpop.f32.mrf.mxu0  ;;  %v9514_v34 = vmul.f32 0.5, %v9347_v7  ;;  %v2472_v20 = vmul.f32 3.8918573e-05, %v9495_v17 }
 0x18e   :  { %v2393_v36 = vadd.f32 0.001143296, %v2392_v4  ;;  %v9517_v4 = vpop.f32.mrf.mxu3  ;;  %v2093_v19 = vand.u32 2147483648, %v9465_v41  ;;  %v2302_v7 = vadd.f32 0.00028619796, %v2301_v30  ;;  %v1377_v38 = vadd.f32 %v1376_v60, %v9270_v39 }
 0x18f   :  { %v2148_v58 = vadd.f32 0.18741608, %v2147_v62  ;;  %13849 = vst [vmem:[#allocation42_spill] sm:$0xff] %v9517_v4  ;;  %v2317_v62 = vadd.f32 0.112945676, %v2316_v63  ;;  %v9540_v21 = vadd.f32 %v9406_v46, %v9493_v40  ;;  %v2084_v63 = vsub.f32 1.0, %v2083_v44 }
 0x190   :  { %v2394_v59 = vmul.f32 %v2393_v36, %v9469_v3  ;;  %v2070_v39 = vadd.f32 1.1283791, %v2069_v27  ;;  %v2473_v61 = vadd.f32 0.001143296, %v2472_v20  ;;  %v9544_v11 = vor.u32 1.1754944e-38, %v2093_v19 }
 0x191   :  { %v2149_v36 = vmul.f32 %v2148_v58, %v9392_v47  ;;  %v13850_v47 = vld [vmem:[#allocation18_spill] sm:$0xff]  ;;  %v2229_v58 = vmul.f32 %v2228_v42, %v9394_v25  ;;  %v2318_v30 = vmul.f32 %v2317_v62, %v9440_v50  ;;  %v2303_v46 = vmul.f32 %v2302_v7, %v9440_v50  ;;  %v7866_v42 = vld [vmem:[#allocation7 + $0x2b8] sm:$0xf0]  ;;  %v8540_v62 = vld [vmem:[#allocation7 + $0x334] sm:$0xf] }
 0x192   :  { %v2395_v45 = vadd.f32 0.014752088, %v2394_v59  ;;  %v1474_v59 = vpop.f32.mrf.mxu2  ;;  %v2244_v27 = vsub.f32 1.0, %v2243_v14  ;;  %v2381_v4 = vmul.f32 2.1237322e-06, %v9469_v3  ;;  %v2539_v44 = vmul.f32 %v9534_v1, %v9534_v1 }
 0x193   :  { %v2150_v60 = vadd.f32 1.1283791, %v2149_v36  ;;  %v9554_v25 = vmul.f32 %v2070_v39, %v9367_v52  ;;  %v2474_v19 = vmul.f32 %v2473_v61, %v9495_v17  ;;  %v7930_v36 = vld [vmem:[#allocation7 + $0x338] sm:$0xf0]  ;;  %v2085_v7 = vmul.f32 %v9499_v35, %v2084_v63 }
 0x194   :  { %v2396_v20 = vmul.f32 %v2395_v45, %v9469_v3  ;;  %v2171_v45 = vand.u32 2147483647, %v9467_v2  ;;  %v2304_v52 = vadd.f32 0.0036580483, %v2303_v46  ;;  %v7933_v37 = vor.u32 %v8540_v62, %v7930_v36 }
 0x195   :  { %v9566_v61 = vmul.f32 %v2150_v60, %v9377_v48  ;;  %v2245_v63 = vmul.f32 %v9507_v0, %v2244_v27  ;;  %v2086_v46 = vadd.f32 %v9499_v35, %v2085_v7  ;;  %v2173_v48 = vand.u32 2147483648, %v9467_v2 }
 0x196   :  { %v9563_v39 = vpop.f32.mrf.mxu3  ;;  %1790 = vmatpush.bf16.msrb.mxu1 %v7933_v37  ;;  %vm2168_vm12 = vweird.f32 %v9502_v5  ;;  %vm9584_vm13 = vcmp.eq.f32.partialorder %v2171_v45, 8.507059e+37  ;;  %vm2248_vm14 = vweird.f32 %v9507_v0  ;;  %v2253_v7 = vand.u32 2147483648, %v9477_v43  ;;  %v13858_v45 = vld [vmem:[#allocation34_spill] sm:$0xff] }
 0x197   :  { %13851 = vst [vmem:[#allocation18_spill] sm:$0xff] %v9563_v39  ;;  %vm9618_vm0 = vmor %vm2167_vm11, %vm2168_vm12  ;;  %v8048_v39 = vld [vmem:[#allocation9 + $0x60] sm:$0xf] }
 0x198   :  { %vm9633_vm2 = vmor %vm2247_vm1, %vm2248_vm14 }
 0x199   :  { %1579 = vmatmul.bf16.gmra.mxu0 %v9158_v54  ;;  %v2091_v54 = vand.u32 2147483647, %v9465_v41  ;;  %v2174_v41 = vor.u32 1.1754944e-38, %v2173_v48 }
 0x19a   :  { %1628 = vmatmul.bf16.gmra.mxu1 %v9160_v56  ;;  %v1425_v56 = vpop.f32.mrf.mxu1 }
 0x19b   :  { %1677 = vmatmul.bf16.gmra.mxu2 %v13850_v47  ;;  %v2164_v47 = vsub.f32 1.0, %v2163_v15  ;;  %v1426_v23 = vadd.f32 %v1425_v56, %v1377_v38  ;;  %v2319_v38 = vadd.f32 0.4994258, %v2318_v30  ;;  %v2230_v56 = vadd.f32 1.1283791, %v2229_v58 }
 0x19c   :  { %1726 = vmatmul.bf16.gmra.mxu3 %v9279_v33  ;;  %v8524_v33 = vld [vmem:[#allocation7 + $0x2b4] sm:$0xf]  ;;  %v2382_v30 = vadd.f32 0.00028619796, %v2381_v4  ;;  %vm9576_vm10 = vcmp.eq.f32.partialorder %v2091_v54, 8.507059e+37  ;;  %v2305_v54 = vmul.f32 %v2304_v52, %v9440_v50 }
 0x19d   :  { %v9558_v15 = vadd.f32 %v1474_v59, %v1426_v23  ;;  %v7869_v14 = vor.u32 %v8524_v33, %v7866_v42  ;;  %v2165_v9 = vmul.f32 %v9502_v5, %v2164_v47  ;;  %v2397_v23 = vadd.f32 0.112945676, %v2396_v20  ;;  %v1379_v47 = vpop.f32.mrf.mxu0 }
 0x19e   :  { %v9569_v59 = vmin.f32 %v2539_v44, 16.0  ;;  %v2475_v33 = vadd.f32 0.014752088, %v2474_v19  ;;  %v2320_v60 = vmul.f32 %v2319_v38, %v9440_v50  ;;  %v9589_v37 = vmul.f32 %v2230_v56, %v9381_v32  ;;  %v9642_v52 = vpop.f32.mrf.mxu3 }
 0x19f   :  { %1741 = vmatpush.bf16.msrb.mxu0 %v7869_v14  ;;  %v9573_v58 = vmul.f32 0.70710677, %v9558_v15  ;;  %v2166_v27 = vadd.f32 %v9502_v5, %v2165_v9  ;;  %v2398_v20 = vmul.f32 %v2397_v23, %v9469_v3  ;;  %v2246_v19 = vadd.f32 %v9507_v0, %v2245_v63  ;;  %13866 = vst [vmem:[#allocation34_spill] sm:$0xff] %v9642_v52 }
 0x1a0   :  { %v2552_v44 = vmul.f32 3.8918573e-05, %v9569_v59  ;;  %v2383_v62 = vmul.f32 %v2382_v30, %v9469_v3  ;;  %v2476_v36 = vmul.f32 %v2475_v33, %v9495_v17  ;;  %v9610_v38 = vadd.f32 1.0, %v2320_v60  ;;  %v13861_v33 = vld [vmem:[#allocation19_spill] sm:$0xff] }
 0x1a1   :  { %v2619_v32 = vmul.f32 %v9573_v58, %v9573_v58  ;;  %v2461_v14 = vmul.f32 2.1237322e-06, %v9495_v17  ;;  %v1380_v56 = vadd.f32 %v1379_v47, %v13858_v45  ;;  %v2251_v23 = vand.u32 2147483647, %v9477_v43  ;;  %v13865_v45 = vld [vmem:[#allocation21_spill] sm:$0xff] }
 0x1a2   :  { %v2306_v63 = vadd.f32 0.05243302, %v2305_v54  ;;  %v1428_v30 = vpop.f32.mrf.mxu1  ;;  %v2090_v60 = vsel %vm9605_vm15, %v9499_v35, %v2086_v46  ;;  %v2170_v2 = vsel %vm9618_vm0, %v9502_v5, %v2166_v27  ;;  %v2399_v47 = vadd.f32 0.4994258, %v2398_v20  ;;  %v13864_v54 = vld [vmem:[#allocation20_spill] sm:$0xff]  ;;  %v1477_v27 = vpop.f32.mrf.mxu2 }
 0x1a3   :  { %v2553_v43 = vadd.f32 0.001143296, %v2552_v44  ;;  %v2250_v35 = vsel %vm9633_vm2, %v9507_v0, %v2246_v19  ;;  %v2384_v46 = vadd.f32 0.0036580483, %v2383_v62  ;;  %v2477_v9 = vadd.f32 0.112945676, %v2476_v36 }
 0x1a4   :  { %v9644_v5 = vmin.f32 %v2619_v32, 16.0  ;;  %8653 = vrcp.f32 %v9610_v38  ;;  %v2462_v20 = vadd.f32 0.00028619796, %v2461_v14  ;;  %v1429_v44 = vadd.f32 %v1428_v30, %v1380_v56  ;;  %v7858_v62 = vld [vmem:[#allocation7 + $0x2a8] sm:$0xf0] }
 0x1a5   :  { %v2095_v48 = vsel %vm9576_vm10, %v9544_v11, %v2090_v60  ;;  %v2175_v0 = vsel %vm9584_vm13, %v2174_v41, %v2170_v2  ;;  %vm2252_vm3 = vcmp.eq.f32.partialorder %v2251_v23, 8.507059e+37  ;;  %v2307_v19 = vmul.f32 %v2306_v63, %v9440_v50  ;;  %v7922_v14 = vld [vmem:[#allocation7 + $0x328] sm:$0xf0]  ;;  %v1381_v2 = vpop.f32.mrf.mxu0 }
 0x1a6   :  { %v2554_v32 = vmul.f32 %v2553_v43, %v9569_v59  ;;  %v9656_v56 = vadd.f32 %v1477_v27, %v1429_v44  ;;  %v2385_v30 = vmul.f32 %v2384_v46, %v9469_v3  ;;  %v2478_v11 = vmul.f32 %v2477_v9, %v9495_v17 }
 0x1a7   :  { %v2632_v42 = vmul.f32 3.8918573e-05, %v9644_v5  ;;  %v2096_v41 = vmul.f32 %v2095_v48, %v9554_v25  ;;  %v2176_v23 = vmul.f32 %v2175_v0, %v9566_v61  ;;  %v2463_v63 = vmul.f32 %v2462_v20, %v9495_v17 }
 0x1a8   :  { %13867 = vst [vmem:[#allocation19_spill] sm:$0xff] %v9656_v56  ;;  %v2541_v60 = vmul.f32 2.1237322e-06, %v9569_v59  ;;  %v9670_v43 = vmul.f32 0.5, %v9371_v26  ;;  %v2555_v9 = vadd.f32 0.014752088, %v2554_v32  ;;  %v1382_v26 = vadd.f32 %v1381_v2, %v9286_v57 }
 0x1a9   :  { %1584 = vmatmul.bf16.gmra.mxu0 %v13861_v33  ;;  %v2254_v33 = vor.u32 1.1754944e-38, %v2253_v7  ;;  %v8538_v7 = vld [vmem:[#allocation7 + $0x324] sm:$0xf]  ;;  %v9678_v27 = vmul.f32 0.70710677, %v9656_v56  ;;  %v7972_v48 = vclamps-f32 %v2176_v23, 1.0  ;;  %vm2327_vm4 = vweird.f32 %v9610_v38 }
 0x1aa   :  { %1633 = vmatmul.bf16.gmra.mxu1 %v13864_v54  ;;  %v8522_v54 = vld [vmem:[#allocation7 + $0x2a4] sm:$0xf]  ;;  %v9672_v46 = vpop.eup %8653  ;;  %v2479_v20 = vadd.f32 0.4994258, %v2478_v11  ;;  %v1430_v44 = vpop.f32.mrf.mxu1  ;;  %v2464_v0 = vadd.f32 0.0036580483, %v2463_v63  ;;  %v2556_v57 = vmul.f32 %v2555_v9, %v9569_v59 }
 0x1ab   :  { %1682 = vmatmul.bf16.gmra.mxu2 %v13865_v45  ;;  %v2255_v36 = vsel %vm2252_vm3, %v2254_v33, %v2250_v35  ;;  %v7861_v4 = vor.u32 %v8522_v54, %v7858_v62  ;;  %v2308_v45 = vadd.f32 0.18741608, %v2307_v19  ;;  %v7925_v35 = vor.u32 %v8538_v7, %v7922_v14  ;;  %v1479_v14 = vpop.f32.mrf.mxu2 }
 0x1ac   :  { %1731 = vmatmul.bf16.gmra.mxu3 %v9295_v12  ;;  %v2400_v12 = vmul.f32 %v2399_v47, %v9469_v3  ;;  %v9667_v47 = vadd.f32 %v9419_v22, %v9493_v40  ;;  %v2256_v25 = vmul.f32 %v2255_v36, %v9589_v37  ;;  %v2386_v33 = vadd.f32 0.05243302, %v2385_v30 }
 0x1ad   :  { %1742 = vmatpush.bf16.msrb.mxu0 %v7861_v4  ;;  %v2633_v22 = vadd.f32 0.001143296, %v2632_v42  ;;  %1791 = vmatpush.bf16.msrb.mxu1 %v7925_v35  ;;  %v7970_v54 = vclamps-f32 %v2096_v41, 1.0  ;;  %v2542_v19 = vadd.f32 0.00028619796, %v2541_v60  ;;  %v9683_v37 = vadd.f32 %v9446_v16, %v9493_v40 }
 0x1ae   :  { %v9675_v61 = vadd.f32 1.0, %v2400_v12  ;;  %v9687_v62 = vadd.f32 %v9479_v13, %v9493_v40  ;;  %v2309_v36 = vmul.f32 %v2308_v45, %v9440_v50  ;;  %v2323_v12 = vmul.f32 %v9672_v46, %v9610_v38 }
 0x1af   :  { %v7974_v32 = vclamps-f32 %v2256_v25, 1.0  ;;  %v2699_v7 = vmul.f32 %v9678_v27, %v9678_v27  ;;  %v2387_v16 = vmul.f32 %v2386_v33, %v9469_v3  ;;  %v2480_v30 = vmul.f32 %v2479_v20, %v9495_v17  ;;  %v1384_v33 = vpop.f32.mrf.mxu0 }
 0x1b0   :  { %13868 = vst [vmem:[#allocation20_spill] sm:$0xff] %v9687_v62  ;;  %8655 = vrcp.f32 %v9675_v61  ;;  %v2634_v13 = vmul.f32 %v2633_v22, %v9644_v5  ;;  %v1431_v11 = vadd.f32 %v1430_v44, %v1382_v26  ;;  %v3183_v50 = vadd.f32 1.0, %v7970_v54 }
 0x1b1   :  { %v3185_v42 = vadd.f32 1.0, %v7972_v48  ;;  %v2465_v4 = vmul.f32 %v2464_v0, %v9495_v17  ;;  %v2543_v41 = vmul.f32 %v2542_v19, %v9569_v59  ;;  %v2310_v23 = vadd.f32 1.1283791, %v2309_v36  ;;  %v8520_v19 = vld [vmem:[#allocation7 + $0x294] sm:$0xf] }
 0x1b2   :  { %v2324_v63 = vsub.f32 1.0, %v2323_v12  ;;  %v9701_v60 = vmin.f32 %v2699_v7, 16.0  ;;  %v9703_v2 = vadd.f32 %v1479_v14, %v1431_v11  ;;  %v9706_v45 = vmul.f32 0.5, %v9415_v55  ;;  %v7850_v7 = vld [vmem:[#allocation7 + $0x298] sm:$0xf0] }
 0x1b3   :  { %v9709_v35 = vmul.f32 0.5, %v9444_v29  ;;  %v9712_v25 = vmul.f32 0.5, %v9453_v49  ;;  %v2557_v9 = vadd.f32 0.112945676, %v2556_v57  ;;  %v3187_v20 = vadd.f32 1.0, %v7974_v32  ;;  %v1433_v57 = vpop.f32.mrf.mxu1  ;;  %v1482_v56 = vpop.f32.mrf.mxu2 }
 0x1b4   :  { %13869 = vst [vmem:[#allocation21_spill] sm:$0xff] %v9703_v2  ;;  %v2388_v22 = vadd.f32 0.18741608, %v2387_v16  ;;  %v9714_v26 = vadd.f32 1.0, %v2480_v30  ;;  %v2635_v44 = vadd.f32 0.014752088, %v2634_v13  ;;  %v9719_v48 = vmul.f32 %v3183_v50, %v9514_v34 }
 0x1b5   :  { %v9722_v55 = vmul.f32 %v3185_v42, %v9529_v53  ;;  %v2466_v29 = vadd.f32 0.05243302, %v2465_v4  ;;  %v2544_v0 = vadd.f32 0.0036580483, %v2543_v41  ;;  %v9725_v49 = vmul.f32 %v2310_v23, %v9425_v31  ;;  %v8056_v14 = vld [vmem:[#allocation9 + $0x70] sm:$0xf] }
 0x1b6   :  { %v9716_v54 = vpop.eup %8655  ;;  %v2325_v36 = vmul.f32 %v9672_v46, %v2324_v63  ;;  %v2712_v12 = vmul.f32 3.8918573e-05, %v9701_v60  ;;  %v9730_v32 = vmul.f32 0.70710677, %v9703_v2  ;;  %vm2328_vm5 = vweird.f32 %v9672_v46  ;;  %v8565_v13 = vld [vmem:[#allocation9 + $0x74] sm:$0xf0] }
 0x1b7   :  { %v2331_v34 = vand.u32 2147483647, %v9610_v38  ;;  %v2558_v53 = vmul.f32 %v2557_v9, %v9569_v59  ;;  %v2403_v31 = vmul.f32 %v9716_v54, %v9675_v61  ;;  %8657 = vrcp.f32 %v9714_v26  ;;  %v8536_v11 = vld [vmem:[#allocation7 + $0x314] sm:$0xf]  ;;  %v7914_v50 = vld [vmem:[#allocation7 + $0x318] sm:$0xf0]  ;;  %vm9761_vm6 = vmor %vm2327_vm4, %vm2328_vm5 }
 0x1b8   :  { %13870 = vst [vmem:[#allocation43_spill] sm:$0xff] %v9730_v32  ;;  %v2636_v16 = vmul.f32 %v2635_v44, %v9644_v5  ;;  %v1385_v30 = vadd.f32 %v1384_v33, %v9293_v24  ;;  %v2389_v42 = vmul.f32 %v2388_v22, %v9469_v3  ;;  %v2621_v4 = vmul.f32 2.1237322e-06, %v9644_v5  ;;  %v8563_v24 = vld [vmem:[#allocation9 + $0x64] sm:$0xf0] }
 0x1b9   :  { %v2779_v41 = vmul.f32 %v9730_v32, %v9730_v32  ;;  %v7853_v23 = vor.u32 %v8520_v19, %v7850_v7  ;;  %v2326_v63 = vadd.f32 %v9672_v46, %v2325_v36  ;;  %v2467_v9 = vmul.f32 %v2466_v29, %v9495_v17 }
 0x1ba   :  { %v2545_v52 = vmul.f32 %v2544_v0, %v9569_v59  ;;  %v2713_v44 = vadd.f32 0.001143296, %v2712_v12  ;;  %v2559_v33 = vadd.f32 0.4994258, %v2558_v53  ;;  %v8057_v3 = vor.u32 %v8565_v13, %v8056_v14  ;;  %v1386_v0 = vpop.f32.mrf.mxu0 }
 0x1bb   :  { %v9748_v2 = vmin.f32 %v2779_v41, 16.0  ;;  %1743 = vmatpush.bf16.msrb.mxu0 %v7853_v23  ;;  %v7917_v22 = vor.u32 %v8536_v11, %v7914_v50  ;;  %v2333_v62 = vand.u32 2147483648, %v9610_v38  ;;  %v2404_v40 = vsub.f32 1.0, %v2403_v31  ;;  %v1435_v50 = vpop.f32.mrf.mxu1 }
 0x1bc   :  { %v2637_v19 = vadd.f32 0.112945676, %v2636_v16  ;;  %v1434_v7 = vadd.f32 %v1433_v57, %v1385_v30  ;;  %v2390_v36 = vadd.f32 1.1283791, %v2389_v42  ;;  %v2622_v32 = vadd.f32 0.00028619796, %v2621_v4  ;;  %3451 = vmatpush.bf16.msrb.mxu2 %v8057_v3 }
 0x1bd   :  { %v2792_v29 = vmul.f32 3.8918573e-05, %v9748_v2  ;;  %1792 = vmatpush.bf16.msrb.mxu1 %v7917_v22  ;;  %v8049_v12 = vor.u32 %v8563_v24, %v8048_v39  ;;  %v9752_v53 = vpop.eup %8657  ;;  %v9755_v41 = vmul.f32 %v3187_v20, %v9670_v43  ;;  %vm9765_vm7 = vcmp.eq.f32.partialorder %v2331_v34, 8.507059e+37 }
 0x1be   :  { %v2714_v31 = vmul.f32 %v2713_v44, %v9701_v60  ;;  %v9770_v39 = vadd.f32 %v1482_v56, %v1434_v7  ;;  %v2330_v43 = vsel %vm9761_vm6, %v9672_v46, %v2326_v63  ;;  %v2468_v20 = vadd.f32 0.18741608, %v2467_v9  ;;  %v8040_v9 = vld [vmem:[#allocation9 + $0x50] sm:$0xf] }
 0x1bf   :  { %v2546_v16 = vadd.f32 0.05243302, %v2545_v52  ;;  %v2560_v38 = vmul.f32 %v2559_v33, %v9569_v59  ;;  %v2334_v30 = vor.u32 1.1754944e-38, %v2333_v62  ;;  %v2405_v13 = vmul.f32 %v9716_v54, %v2404_v40 }
 0x1c0   :  { %v2638_v34 = vmul.f32 %v2637_v19, %v9644_v5  ;;  %v2793_v11 = vadd.f32 0.001143296, %v2792_v29  ;;  %v9779_v42 = vmul.f32 %v2390_v36, %v9451_v8  ;;  %v2483_v56 = vmul.f32 %v9752_v53, %v9714_v26  ;;  %3452 = vmatpush.bf16.msrb.mxu2 %v8049_v12 }
 0x1c1   :  { %v9784_v4 = vmul.f32 0.5, %v9558_v15  ;;  %v2623_v52 = vmul.f32 %v2622_v32, %v9644_v5  ;;  %v2335_v46 = vsel %vm9765_vm7, %v2334_v30, %v2330_v43  ;;  %v2411_v40 = vand.u32 2147483647, %v9675_v61  ;;  %v8561_v32 = vld [vmem:[#allocation9 + $0x54] sm:$0xf0] }
 0x1c2   :  { %v2715_v62 = vadd.f32 0.014752088, %v2714_v31  ;;  %v9791_v23 = vmul.f32 0.70710677, %v9770_v39  ;;  %vm2407_vm8 = vweird.f32 %v9675_v61  ;;  %v2469_v8 = vmul.f32 %v2468_v20, %v9495_v17  ;;  %v1389_v43 = vpop.f32.mrf.mxu0 }
 0x1c3   :  { %v2547_v63 = vmul.f32 %v2546_v16, %v9569_v59  ;;  %v9796_v15 = vadd.f32 1.0, %v2560_v38  ;;  %v2406_v44 = vadd.f32 %v9716_v54, %v2405_v13  ;;  %vm2408_vm9 = vweird.f32 %v9716_v54 }
 0x1c4   :  { %v2639_v24 = vadd.f32 0.4994258, %v2638_v34  ;;  %v2794_v33 = vmul.f32 %v2793_v11, %v9748_v2  ;;  %v2336_v3 = vmul.f32 %v2335_v46, %v9725_v49  ;;  %v2413_v22 = vand.u32 2147483648, %v9675_v61  ;;  %vm9809_vm10 = vmor %vm2407_vm8, %vm2408_vm9  ;;  %v1484_v34 = vpop.f32.mrf.mxu2  ;;  %v8032_v11 = vld [vmem:[#allocation9 + $0x40] sm:$0xf] }
 0x1c5   :  { %v2484_v19 = vsub.f32 1.0, %v2483_v56  ;;  %v2624_v7 = vadd.f32 0.0036580483, %v2623_v52  ;;  %v2716_v17 = vmul.f32 %v2715_v62, %v9701_v60  ;;  %v2859_v36 = vmul.f32 %v9791_v23, %v9791_v23  ;;  %v8559_v62 = vld [vmem:[#allocation9 + $0x44] sm:$0xf0] }
 0x1c6   :  { %v1387_v29 = vadd.f32 %v1386_v0, %v9302_v10  ;;  %v8041_v12 = vor.u32 %v8561_v32, %v8040_v9  ;;  %v2470_v57 = vadd.f32 1.1283791, %v2469_v8  ;;  %v2548_v49 = vadd.f32 0.18741608, %v2547_v63 }
 0x1c7   :  { %8659 = vrcp.f32 %v9796_v15  ;;  %v2701_v31 = vmul.f32 2.1237322e-06, %v9701_v60  ;;  %v2410_v20 = vsel %vm9809_vm10, %v9716_v54, %v2406_v44  ;;  %vm9818_vm11 = vcmp.eq.f32.partialorder %v2411_v40, 8.507059e+37  ;;  %v1438_v40 = vpop.f32.mrf.mxu1 }
 0x1c8   :  { %v2640_v61 = vmul.f32 %v2639_v24, %v9644_v5  ;;  %v2795_v0 = vadd.f32 0.014752088, %v2794_v33  ;;  %3453 = vmatpush.bf16.msrb.mxu2 %v8041_v12  ;;  %v7976_v16 = vclamps-f32 %v2336_v3, 1.0  ;;  %v2414_v38 = vor.u32 1.1754944e-38, %v2413_v22  ;;  %v7842_v12 = vld [vmem:[#allocation7 + $0x288] sm:$0xf0] }
 0x1c9   :  { %v2491_v30 = vand.u32 2147483647, %v9714_v26  ;;  %v2625_v13 = vmul.f32 %v2624_v7, %v9644_v5  ;;  %v2485_v56 = vmul.f32 %v9752_v53, %v2484_v19  ;;  %v2717_v52 = vadd.f32 0.112945676, %v2716_v17 }
 0x1ca   :  { %v9826_v54 = vmin.f32 %v2859_v36, 16.0  ;;  %v1436_v46 = vadd.f32 %v1435_v50, %v1387_v29  ;;  %v2415_v8 = vsel %vm9818_vm11, %v2414_v38, %v2410_v20  ;;  %v2493_v63 = vand.u32 2147483648, %v9714_v26  ;;  %v8518_v29 = vld [vmem:[#allocation7 + $0x284] sm:$0xf] }
 0x1cb   :  { %v2549_v9 = vmul.f32 %v2548_v49, %v9569_v59  ;;  %v2702_v32 = vadd.f32 0.00028619796, %v2701_v31  ;;  %vm2487_vm12 = vweird.f32 %v9714_v26  ;;  %v9833_v44 = vadd.f32 1.0, %v2640_v61 }
 0x1cc   :  { %v2796_v24 = vmul.f32 %v2795_v0, %v9748_v2  ;;  %v9836_v33 = vadd.f32 %v1484_v34, %v1436_v46  ;;  %v3189_v50 = vadd.f32 1.0, %v7976_v16  ;;  %vm2488_vm13 = vweird.f32 %v9752_v53  ;;  %v8024_v16 = vld [vmem:[#allocation9 + $0x30] sm:$0xf]  ;;  %v8557_v34 = vld [vmem:[#allocation9 + $0x34] sm:$0xf0] }
 0x1cd   :  { %v9838_v3 = vpop.eup %8659  ;;  %v2626_v22 = vadd.f32 0.05243302, %v2625_v13  ;;  %v8033_v19 = vor.u32 %v8559_v62, %v8032_v11  ;;  %v2416_v7 = vmul.f32 %v2415_v8, %v9779_v42  ;;  %v2486_v59 = vadd.f32 %v9752_v53, %v2485_v56  ;;  %vm9852_vm15 = vmor %vm2487_vm12, %vm2488_vm13  ;;  %v8534_v11 = vld [vmem:[#allocation7 + $0x304] sm:$0xf]  ;;  %v7906_v56 = vld [vmem:[#allocation7 + $0x308] sm:$0xf0] }
 0x1ce   :  { %v2718_v17 = vmul.f32 %v2717_v52, %v9701_v60  ;;  %v2872_v36 = vmul.f32 3.8918573e-05, %v9826_v54  ;;  %vm9845_vm14 = vcmp.eq.f32.partialorder %v2491_v30, 8.507059e+37  ;;  %v2494_v49 = vor.u32 1.1754944e-38, %v2493_v63  ;;  %v1391_v52 = vpop.f32.mrf.mxu0 }
 0x1cf   :  { %v2550_v31 = vadd.f32 1.1283791, %v2549_v9  ;;  %v2703_v20 = vmul.f32 %v2702_v32, %v9701_v60  ;;  %3454 = vmatpush.bf16.msrb.mxu2 %v8033_v19  ;;  %v2563_v10 = vmul.f32 %v9838_v3, %v9796_v15  ;;  %8661 = vrcp.f32 %v9833_v44  ;;  %v8016_v32 = vld [vmem:[#allocation9 + $0x20] sm:$0xf] }
 0x1d0   :  { %v2797_v61 = vadd.f32 0.112945676, %v2796_v24  ;;  %v9860_v0 = vmul.f32 0.70710677, %v9836_v33  ;;  %v2471_v38 = vmul.f32 %v2470_v57, %v9472_v6  ;;  %v2627_v30 = vmul.f32 %v2626_v22, %v9644_v5  ;;  %v8555_v24 = vld [vmem:[#allocation9 + $0x24] sm:$0xf0] }
 0x1d1   :  { %v1390_v26 = vadd.f32 %v1389_v43, %v9309_v51  ;;  %v7845_v13 = vor.u32 %v8518_v29, %v7842_v12  ;;  %v7978_v46 = vclamps-f32 %v2416_v7, 1.0  ;;  %v2490_v62 = vsel %vm9852_vm15, %v9752_v53, %v2486_v59  ;;  %v1487_v43 = vpop.f32.mrf.mxu2  ;;  %v1440_v59 = vpop.f32.mrf.mxu1 }
 0x1d2   :  { %v2719_v8 = vadd.f32 0.4994258, %v2718_v17  ;;  %v2873_v63 = vadd.f32 0.001143296, %v2872_v36  ;;  %v9869_v9 = vmul.f32 %v3189_v50, %v9706_v45  ;;  %v9872_v6 = vmul.f32 %v2550_v31, %v9534_v1 }
 0x1d3   :  { %v2704_v57 = vadd.f32 0.0036580483, %v2703_v20  ;;  %v2939_v51 = vmul.f32 %v9860_v0, %v9860_v0  ;;  %1744 = vmatpush.bf16.msrb.mxu0 %v7845_v13  ;;  %v2564_v22 = vsub.f32 1.0, %v2563_v10  ;;  %v2798_v19 = vmul.f32 %v2797_v61, %v9748_v2  ;;  %v13883_v61 = vld [vmem:[#allocation22_spill] sm:$0xff] }
 0x1d4   :  { %v8025_v53 = vor.u32 %v8557_v34, %v8024_v16  ;;  %v7909_v7 = vor.u32 %v8534_v11, %v7906_v56  ;;  %v2495_v45 = vsel %vm9845_vm14, %v2494_v49, %v2490_v62  ;;  %v2781_v1 = vmul.f32 2.1237322e-06, %v9748_v2  ;;  %v8008_v56 = vld [vmem:[#allocation9 + $0x10] sm:$0xf]  ;;  %v13884_v62 = vld [vmem:[#allocation23_spill] sm:$0xff] }
 0x1d5   :  { %v9880_v50 = vmin.f32 %v2939_v51, 16.0  ;;  %v1439_v17 = vadd.f32 %v1438_v40, %v1390_v26  ;;  %v9882_v36 = vpop.eup %8661  ;;  %v2628_v29 = vadd.f32 0.18741608, %v2627_v30  ;;  %v2720_v12 = vmul.f32 %v2719_v8, %v9701_v60 }
 0x1d6   :  { %v2874_v31 = vmul.f32 %v2873_v63, %v9826_v54  ;;  %3455 = vmatpush.bf16.msrb.mxu2 %v8025_v53  ;;  %1793 = vmatpush.bf16.msrb.mxu1 %v7909_v7  ;;  %v8017_v20 = vor.u32 %v8555_v24, %v8016_v32  ;;  %v9886_v42 = vadd.f32 1.0, %v7978_v46  ;;  %v2571_v14 = vand.u32 2147483647, %v9796_v15  ;;  %v8553_v46 = vld [vmem:[#allocation9 + $0x14] sm:$0xf0]  ;;  %v1550_v24 = vpop.f32.mrf.mxu0 }
 0x1d7   :  { %v2705_v49 = vmul.f32 %v2704_v57, %v9701_v60  ;;  %v9890_v10 = vadd.f32 %v1487_v43, %v1439_v17  ;;  %1745 = vmatmul.bf16.vlgmr.msrb.gmra.mxu0 %v13883_v61  ;;  %v2565_v40 = vmul.f32 %v9838_v3, %v2564_v22  ;;  %v2573_v16 = vand.u32 2147483648, %v9796_v15 }
 0x1d8   :  { %v2799_v30 = vadd.f32 0.4994258, %v2798_v19  ;;  %v2952_v26 = vmul.f32 3.8918573e-05, %v9880_v50  ;;  %v2496_v13 = vmul.f32 %v2495_v45, %v2471_v38  ;;  %vm2567_vm0 = vweird.f32 %v9796_v15 }
 0x1d9   :  { %v2643_v34 = vmul.f32 %v9882_v36, %v9833_v44  ;;  %v2782_v11 = vadd.f32 0.00028619796, %v2781_v1  ;;  %1794 = vmatmul.bf16.vlgmr.msrb.gmra.mxu1 %v13884_v62  ;;  %v9900_v8 = vadd.f32 1.0, %v2720_v12  ;;  %v2875_v63 = vadd.f32 0.014752088, %v2874_v31  ;;  %v1599_v31 = vpop.f32.mrf.mxu1 }
 0x1da   :  { %v2953_v57 = vadd.f32 0.001143296, %v2952_v26  ;;  %v1392_v51 = vadd.f32 %v1391_v52, %v9312_v28  ;;  %3456 = vmatpush.bf16.msrb.mxu2 %v8017_v20  ;;  %vm2568_vm1 = vweird.f32 %v9838_v3  ;;  %v2629_v38 = vmul.f32 %v2628_v29, %v9644_v5  ;;  %v1489_v5 = vpop.f32.mrf.mxu2  ;;  %v9934_v26 = vpop.f32.mrf.mxu3 }
 0x1db   :  { %v2706_v43 = vadd.f32 0.05243302, %v2705_v49  ;;  %v9906_v32 = vmul.f32 0.70710677, %v9890_v10  ;;  %v2566_v22 = vadd.f32 %v9838_v3, %v2565_v40  ;;  %v2800_v19 = vmul.f32 %v2799_v30, %v9748_v2  ;;  %vm9920_vm2 = vmor %vm2567_vm0, %vm2568_vm1 }
 0x1dc   :  { %v2954_v53 = vmul.f32 %v2953_v57, %v9880_v50  ;;  %v8009_v7 = vor.u32 %v8553_v46, %v8008_v56  ;;  %v7980_v45 = vclamps-f32 %v2496_v13, 1.0  ;;  %v2644_v1 = vsub.f32 1.0, %v2643_v34 }
 0x1dd   :  { %v2783_v28 = vmul.f32 %v2782_v11, %v9748_v2  ;;  %v3019_v52 = vmul.f32 %v9906_v32, %v9906_v32  ;;  %8663 = vrcp.f32 %v9900_v8  ;;  %v2876_v17 = vmul.f32 %v2875_v63, %v9826_v54 }
 0x1de   :  { %v2955_v29 = vadd.f32 0.014752088, %v2954_v53  ;;  %v1441_v12 = vadd.f32 %v1440_v59, %v1392_v51  ;;  %3457 = vmatpush.bf16.msrb.mxu2 %v8009_v7  ;;  %vm9924_vm3 = vcmp.eq.f32.partialorder %v2571_v14, 8.507059e+37  ;;  %v2574_v61 = vor.u32 1.1754944e-38, %v2573_v16 }
 0x1df   :  { %v2707_v40 = vmul.f32 %v2706_v43, %v9701_v60  ;;  %v9929_v30 = vmin.f32 %v3019_v52, 16.0  ;;  %v2570_v59 = vsel %vm9920_vm2, %v9838_v3, %v2566_v22  ;;  %v9936_v15 = vadd.f32 1.1283791, %v2629_v38  ;;  %v8000_v52 = vld [vmem:[#allocation9] sm:$0xf] }
 0x1e0   :  { %v9938_v13 = vadd.f32 1.0, %v2800_v19  ;;  %v9940_v34 = vadd.f32 %v1489_v5, %v1441_v12  ;;  %v2645_v14 = vmul.f32 %v9882_v36, %v2644_v1  ;;  %v2651_v16 = vand.u32 2147483647, %v9833_v44  ;;  %v8551_v5 = vld [vmem:[#allocation9 + $0x4] sm:$0xf0] }
 0x1e1   :  { %v2784_v11 = vadd.f32 0.0036580483, %v2783_v28  ;;  %v2956_v56 = vmul.f32 %v2955_v29, %v9880_v50  ;;  %v3193_v46 = vadd.f32 1.0, %v7980_v45  ;;  %v2653_v62 = vand.u32 2147483648, %v9833_v44 }
 0x1e2   :  { %v2877_v63 = vadd.f32 0.112945676, %v2876_v17  ;;  %v3032_v3 = vmul.f32 3.8918573e-05, %v9929_v30  ;;  %v2575_v57 = vsel %vm9924_vm3, %v2574_v61, %v2570_v59  ;;  %vm2648_vm4 = vweird.f32 %v9882_v36  ;;  %v1552_v17 = vpop.f32.mrf.mxu0  ;;  %v13889_v59 = vld [vmem:[#allocation24_spill] sm:$0xff] }
 0x1e3   :  { %v2708_v51 = vadd.f32 0.18741608, %v2707_v40  ;;  %v2957_v38 = vadd.f32 0.112945676, %v2956_v56  ;;  %v9950_v43 = vpop.eup %8663  ;;  %8665 = vrcp.f32 %v9938_v13  ;;  %v9954_v19 = vmul.f32 0.70710677, %v9940_v34  ;;  %v1648_v40 = vpop.f32.mrf.mxu2 }
 0x1e4   :  { %v3033_v22 = vadd.f32 0.001143296, %v3032_v3  ;;  %v1551_v53 = vadd.f32 %v1550_v24, %v9511_v18  ;;  %v2646_v7 = vadd.f32 %v9882_v36, %v2645_v14  ;;  %v2785_v45 = vmul.f32 %v2784_v11, %v9748_v2  ;;  %v1601_v56 = vpop.f32.mrf.mxu1 }
 0x1e5   :  { %v2861_v1 = vmul.f32 2.1237322e-06, %v9826_v54  ;;  %v2958_v28 = vmul.f32 %v2957_v38, %v9880_v50  ;;  %v2878_v29 = vmul.f32 %v2877_v63, %v9826_v54  ;;  %v3099_v20 = vmul.f32 %v9954_v19, %v9954_v19 }
 0x1e6   :  { %v3034_v12 = vmul.f32 %v3033_v22, %v9929_v30  ;;  %v1600_v49 = vadd.f32 %v1599_v31, %v1551_v53  ;;  %v2576_v18 = vmul.f32 %v2575_v57, %v9872_v6  ;;  %vm2647_vm5 = vweird.f32 %v9833_v44  ;;  %v13894_v22 = vld [vmem:[#allocation25_spill] sm:$0xff] }
 0x1e7   :  { %v2723_v24 = vmul.f32 %v9950_v43, %v9900_v8  ;;  %v2941_v61 = vmul.f32 2.1237322e-06, %v9880_v50  ;;  %1750 = vmatmul.bf16.gmra.mxu0 %v13889_v59  ;;  %vm9973_vm6 = vmor %vm2647_vm5, %vm2648_vm4  ;;  %vm9977_vm7 = vcmp.eq.f32.partialorder %v2651_v16, 8.507059e+37  ;;  %v2654_v6 = vor.u32 1.1754944e-38, %v2653_v62  ;;  %v9989_v16 = vpop.f32.mrf.mxu3 }
 0x1e8   :  { %v2959_v44 = vadd.f32 0.4994258, %v2958_v28  ;;  %v8001_v11 = vor.u32 %v8551_v5, %v8000_v52  ;;  %v2650_v63 = vsel %vm9973_vm6, %v9882_v36, %v2646_v7  ;;  %v2786_v3 = vadd.f32 0.05243302, %v2785_v45 }
 0x1e9   :  { %v2862_v57 = vadd.f32 0.00028619796, %v2861_v1  ;;  %v9984_v38 = vmin.f32 %v3099_v20, 16.0  ;;  %1799 = vmatmul.bf16.gmra.mxu1 %v13894_v22  ;;  %v9987_v53 = vpop.eup %8665  ;;  %v2709_v59 = vmul.f32 %v2708_v51, %v9701_v60  ;;  %v2879_v62 = vadd.f32 0.4994258, %v2878_v29 }
 0x1ea   :  { %v3035_v28 = vadd.f32 0.014752088, %v3034_v12  ;;  %3458 = vmatpush.bf16.msrb.mxu2 %v8001_v11  ;;  %v9992_v52 = vadd.f32 %v1648_v40, %v1600_v49  ;;  %v7982_v5 = vclamps-f32 %v2576_v18, 1.0  ;;  %v2724_v14 = vsub.f32 1.0, %v2723_v24  ;;  %v13895_v18 = vld [vmem:[#allocation39_spill] sm:$0xff] }
 0x1eb   :  { %v2942_v36 = vadd.f32 0.00028619796, %v2941_v61  ;;  %v3112_v7 = vmul.f32 3.8918573e-05, %v9984_v38  ;;  %v9997_v45 = vmul.f32 %v9886_v42, %v9709_v35  ;;  %v2655_v1 = vsel %vm9977_vm7, %v2654_v6, %v2650_v63  ;;  %v1555_v6 = vpop.f32.mrf.mxu0 }
 0x1ec   :  { %v2960_v20 = vmul.f32 %v2959_v44, %v9880_v50  ;;  %v1553_v60 = vadd.f32 %v1552_v17, %v9540_v21  ;;  %v2787_v51 = vmul.f32 %v2786_v3, %v9748_v2  ;;  %v2803_v29 = vmul.f32 %v9987_v53, %v9938_v13 }
 0x1ed   :  { %v2863_v12 = vmul.f32 %v2862_v57, %v9826_v54  ;;  %v3113_v49 = vadd.f32 0.001143296, %v3112_v7  ;;  %3459 = vmatmul.bf16.vlgmr.msrb.gmra.mxu2 %v13895_v18  ;;  %v3225_v35 = vmul.f32 %v3193_v46, %v9712_v25  ;;  %v2631_v42 = vmul.f32 %v9936_v15, %v9573_v58  ;;  %v1650_v57 = vpop.f32.mrf.mxu2 }
 0x1ee   :  { %v2880_v24 = vmul.f32 %v2879_v62, %v9826_v54  ;;  %v3036_v61 = vmul.f32 %v3035_v28, %v9929_v30  ;;  %v10013_v21 = vadd.f32 1.0, %v7982_v5  ;;  %v2710_v17 = vadd.f32 1.1283791, %v2709_v59  ;;  %v1604_v5 = vpop.f32.mrf.mxu1 }
 0x1ef   :  { %v2725_v40 = vmul.f32 %v9950_v43, %v2724_v14  ;;  %v2943_v31 = vmul.f32 %v2942_v36, %v9880_v50  ;;  %v10017_v44 = vmul.f32 %v2655_v1, %v2631_v42  ;;  %v2731_v11 = vand.u32 2147483647, %v9900_v8  ;;  %v10029_v1 = vpop.f32.mrf.mxu3 }
 0x1f0   :  { %v2733_v25 = vand.u32 2147483648, %v9900_v8  ;;  %v10021_v46 = vadd.f32 1.0, %v2960_v20  ;;  %v2788_v58 = vadd.f32 0.18741608, %v2787_v51  ;;  %v2804_v15 = vsub.f32 1.0, %v2803_v29 }
 0x1f1   :  { %v2864_v63 = vadd.f32 0.0036580483, %v2863_v12  ;;  %v3114_v3 = vmul.f32 %v3113_v49, %v9984_v38  ;;  %v10024_v22 = vadd.f32 1.0, %v2880_v24  ;;  %v3037_v59 = vadd.f32 0.112945676, %v3036_v61  ;;  %v13900_v24 = vld [vmem:[#allocation26_spill] sm:$0xff] }
 0x1f2   :  { %v1602_v62 = vadd.f32 %v1601_v56, %v1553_v60  ;;  %v1556_v28 = vadd.f32 %v1555_v6, %v9667_v47  ;;  %v2726_v14 = vadd.f32 %v9950_v43, %v2725_v40  ;;  %vm2728_vm8 = vweird.f32 %v9950_v43 }
 0x1f3   :  { %v2944_v36 = vadd.f32 0.0036580483, %v2943_v31  ;;  %v3115_v7 = vadd.f32 0.014752088, %v3114_v3  ;;  %8667 = vrcp.f32 %v10021_v46  ;;  %v10036_v29 = vpack.c.bf16 %v9722_v55, %v9719_v48 }
 0x1f4   :  { %v10032_v20 = vadd.f32 %v1650_v57, %v1602_v62  ;;  %v1605_v51 = vadd.f32 %v1604_v5, %v1556_v28  ;;  %v7984_v47 = vclamps-f32 %v10017_v44, 1.0  ;;  %v2711_v56 = vmul.f32 %v2710_v17, %v9678_v27  ;;  %v1557_v62 = vpop.f32.mrf.mxu0 }
 0x1f5   :  { %vm2727_vm9 = vweird.f32 %v9900_v8  ;;  %v2865_v60 = vmul.f32 %v2864_v63, %v9826_v54  ;;  %v2805_v12 = vmul.f32 %v9987_v53, %v2804_v15  ;;  %8669 = vrcp.f32 %v10024_v22 }
 0x1f6   :  { %v3038_v49 = vmul.f32 %v3037_v59, %v9929_v30  ;;  %v3116_v42 = vmul.f32 %v3115_v7, %v9984_v38  ;;  %vm10048_vm10 = vmor %vm2727_vm9, %vm2728_vm8  ;;  %vm10052_vm11 = vcmp.eq.f32.partialorder %v2731_v11, 8.507059e+37  ;;  %v2734_v55 = vor.u32 1.1754944e-38, %v2733_v25  ;;  %v13901_v25 = vld [vmem:[#allocation27_spill] sm:$0xff]  ;;  %v1653_v59 = vpop.f32.mrf.mxu2 }
 0x1f7   :  { %v2945_v8 = vmul.f32 %v2944_v36, %v9880_v50  ;;  %1755 = vmatmul.bf16.gmra.mxu0 %v13900_v24  ;;  %v10060_v61 = vpack.c.bf16 %v9869_v9, %v9755_v41  ;;  %v2730_v17 = vsel %vm10048_vm10, %v9950_v43, %v2726_v14  ;;  %v2789_v40 = vmul.f32 %v2788_v58, %v9748_v2  ;;  %v1606_v36 = vpop.f32.mrf.mxu1 }
 0x1f8   :  { %v3021_v31 = vmul.f32 2.1237322e-06, %v9929_v30  ;;  %v3101_v6 = vmul.f32 2.1237322e-06, %v9984_v38  ;;  %vm2807_vm12 = vweird.f32 %v9938_v13  ;;  %v2811_v44 = vand.u32 2147483647, %v9938_v13 }
 0x1f9   :  { %v3117_v11 = vadd.f32 0.112945676, %v3116_v42  ;;  %1804 = vmatmul.bf16.gmra.mxu1 %v13901_v25  ;;  %v10072_v41 = vpack.c.bf16 %v3225_v35, %v9997_v45  ;;  %v10074_v9 = vpop.eup %8667  ;;  %v2806_v43 = vadd.f32 %v9987_v53, %v2805_v12  ;;  %vm2808_vm13 = vweird.f32 %v9987_v53 }
 0x1fa   :  { %v2866_v2 = vadd.f32 0.05243302, %v2865_v60  ;;  %v3039_v58 = vadd.f32 0.4994258, %v3038_v49  ;;  %v2735_v15 = vsel %vm10052_vm11, %v2734_v55, %v2730_v17  ;;  %v2813_v63 = vand.u32 2147483648, %v9938_v13  ;;  %vm10091_vm14 = vmor %vm2807_vm12, %vm2808_vm13 }
 0x1fb   :  { %v2946_v3 = vadd.f32 0.05243302, %v2945_v8  ;;  %v3118_v57 = vmul.f32 %v3117_v11, %v9984_v38  ;;  %v10082_v45 = vpop.eup %8669  ;;  %v3022_v35 = vadd.f32 0.00028619796, %v3021_v31  ;;  %v3102_v28 = vadd.f32 0.00028619796, %v3101_v6 }
 0x1fc   :  { %v10084_v5 = vadd.f32 %v1653_v59, %v1605_v51  ;;  %v1558_v14 = vadd.f32 %v1557_v62, %v9683_v37  ;;  %v3197_v7 = vadd.f32 1.0, %v7984_v47  ;;  %v2790_v60 = vadd.f32 1.1283791, %v2789_v40  ;;  %v10101_v51 = vpop.f32.mrf.mxu3  ;;  %v13904_v31 = vld [vmem:[#allocation41_spill] sm:$0xff] }
 0x1fd   :  { %v2963_v49 = vmul.f32 %v10074_v9, %v10021_v46  ;;  %v3119_v42 = vadd.f32 0.4994258, %v3118_v57  ;;  %3464 = vmatmul.bf16.gmra.mxu2 %v10036_v29  ;;  %v2810_v37 = vsel %vm10091_vm14, %v9987_v53, %v2806_v43  ;;  %v2867_v47 = vmul.f32 %v2866_v2, %v9826_v54 }
 0x1fe   :  { %v3040_v13 = vmul.f32 %v3039_v58, %v9929_v30  ;;  %v1607_v48 = vadd.f32 %v1606_v36, %v1558_v14  ;;  %v2736_v27 = vmul.f32 %v2735_v15, %v2711_v56  ;;  %vm2812_vm15 = vcmp.eq.f32.partialorder %v2811_v44, 8.507059e+37  ;;  %v13905_v56 = vld [vmem:[#allocation43_spill] sm:$0xff]  ;;  %v1560_v14 = vpop.f32.mrf.mxu0 }
 0x1ff   :  { %v2814_v55 = vor.u32 1.1754944e-38, %v2813_v63  ;;  %v2883_v8 = vmul.f32 %v10082_v45, %v10024_v22  ;;  %v2947_v24 = vmul.f32 %v2946_v3, %v9880_v50  ;;  %v3023_v17 = vmul.f32 %v3022_v35, %v9929_v30  ;;  %v13906_v63 = vld [vmem:[#allocation40_spill] sm:$0xff]  ;;  %v13907_v3 = vld [vmem:[#allocation42_spill] sm:$0xff] }
 0x200   :  { %v3103_v40 = vmul.f32 %v3102_v28, %v9984_v38  ;;  %v3120_v53 = vmul.f32 %v3119_v42, %v9984_v38  ;;  %v1851_v6 = vmul.f32 0.5, %v13904_v31  ;;  %v3229_v11 = vmul.f32 %v3197_v7, %v9784_v4  ;;  %v1655_v28 = vpop.f32.mrf.mxu2 }
 0x201   :  { %v2815_v25 = vsel %vm2812_vm15, %v2814_v55, %v2810_v37  ;;  %v2964_v43 = vsub.f32 1.0, %v2963_v49  ;;  %v2791_v44 = vmul.f32 %v2790_v60, %v13905_v56  ;;  %v2868_v2 = vadd.f32 0.18741608, %v2867_v47  ;;  %v1609_v49 = vpop.f32.mrf.mxu1  ;;  %v13908_v37 = vld [vmem:[#allocation20_spill] sm:$0xff] }
 0x202   :  { %v10114_v58 = vadd.f32 1.0, %v3040_v13  ;;  %v10116_v15 = vadd.f32 1.0, %v3120_v53  ;;  %v1514_v57 = vadd.f32 %v13907_v3, %v13906_v63  ;;  %v3227_v59 = vmul.f32 %v10013_v21, %v1851_v6  ;;  %v13909_v13 = vld [vmem:[#allocation19_spill] sm:$0xff] }
 0x203   :  { %v7986_v62 = vclamps-f32 %v2736_v27, 1.0  ;;  %v2884_v35 = vsub.f32 1.0, %v2883_v8  ;;  %v2816_v36 = vmul.f32 %v2815_v25, %v2791_v44  ;;  %v2948_v4 = vadd.f32 0.18741608, %v2947_v24  ;;  %v8120_v27 = vld [vmem:[#allocation9 + $0xf0] sm:$0xf] }
 0x204   :  { %v3024_v7 = vadd.f32 0.0036580483, %v3023_v17  ;;  %v3104_v12 = vadd.f32 0.0036580483, %v3103_v40  ;;  %v2965_v60 = vmul.f32 %v10074_v9, %v2964_v43  ;;  %8671 = vrcp.f32 %v10116_v15  ;;  %v8581_v8 = vld [vmem:[#allocation9 + $0xf4] sm:$0xf0]  ;;  %v10136_v56 = vpop.f32.mrf.mxu3 }
 0x205   :  { %v10123_v42 = vadd.f32 %v1655_v28, %v1607_v48  ;;  %v1561_v47 = vadd.f32 %v1560_v14, %v13908_v37  ;;  %v10127_v55 = vmul.f32 0.5, %v13909_v13  ;;  %v2869_v21 = vmul.f32 %v2868_v2, %v9826_v54  ;;  %v13910_v17 = vld [vmem:[#allocation21_spill] sm:$0xff]  ;;  %v13911_v48 = vld [vmem:[#allocation28_spill] sm:$0xff] }
 0x206   :  { %8673 = vrcp.f32 %v10114_v58  ;;  %v10131_v24 = vpack.c.bf16 %v3229_v11, %v3227_v59  ;;  %v1857_v40 = vmul.f32 0.5, %v13910_v17  ;;  %v2885_v53 = vmul.f32 %v10082_v45, %v2884_v35  ;;  %v13912_v59 = vld [vmem:[#allocation29_spill] sm:$0xff] }
 0x207   :  { %v1610_v31 = vadd.f32 %v1609_v49, %v1561_v47  ;;  %1760 = vmatmul.bf16.gmra.mxu0 %v13911_v48  ;;  %v8121_v6 = vor.u32 %v8581_v8, %v8120_v27  ;;  %v3199_v25 = vadd.f32 1.0, %v7986_v62  ;;  %v7988_v43 = vclamps-f32 %v2816_v36, 1.0 }
 0x208   :  { %v2949_v54 = vmul.f32 %v2948_v4, %v9880_v50  ;;  %v3025_v44 = vmul.f32 %v3024_v7, %v9929_v30  ;;  %v2966_v2 = vadd.f32 %v10074_v9, %v2965_v60  ;;  %vm2968_vm0 = vweird.f32 %v10074_v9  ;;  %v1658_v4 = vpop.f32.mrf.mxu2  ;;  %v1562_v7 = vpop.f32.mrf.mxu0 }
 0x209   :  { %v2973_v11 = vand.u32 2147483648, %v10021_v46  ;;  %v3105_v3 = vmul.f32 %v3104_v12, %v9984_v38  ;;  %1809 = vmatmul.bf16.gmra.mxu1 %v13912_v59  ;;  %3500 = vmatpush.bf16.msrb.mxu3 %v8121_v6  ;;  %v2870_v35 = vadd.f32 1.1283791, %v2869_v21  ;;  %vm2887_vm1 = vweird.f32 %v10024_v22  ;;  %v1611_v21 = vpop.f32.mrf.mxu1  ;;  %v8564_v6 = vld [vmem:[#allocation9 + $0x74] sm:$0xf] }
 0x20a   :  { %vm2888_vm2 = vweird.f32 %v10082_v45  ;;  %v2891_v50 = vand.u32 2147483647, %v10024_v22  ;;  %v10148_v62 = vpop.eup %8671  ;;  %v2886_v28 = vadd.f32 %v10082_v45, %v2885_v53  ;;  %v2893_v14 = vand.u32 2147483648, %v10024_v22 }
 0x20b   :  { %vm2967_vm3 = vweird.f32 %v10021_v46  ;;  %v2971_v36 = vand.u32 2147483647, %v10021_v46  ;;  %v3201_v49 = vadd.f32 1.0, %v7988_v43  ;;  %v2950_v60 = vadd.f32 1.1283791, %v2949_v54  ;;  %vm10168_vm5 = vmor %vm2887_vm1, %vm2888_vm2 }
 0x20c   :  { %v10154_v12 = vpop.eup %8673  ;;  %vm10158_vm4 = vmor %vm2967_vm3, %vm2968_vm0  ;;  %v10162_v47 = vadd.f32 %v1658_v4, %v1610_v31  ;;  %v1563_v13 = vadd.f32 %v1562_v7, %v1514_v57  ;;  %v2974_v8 = vor.u32 1.1754944e-38, %v2973_v11  ;;  %v3026_v17 = vadd.f32 0.05243302, %v3025_v44  ;;  %v13917_v57 = vld [vmem:[#allocation18_spill] sm:$0xff]  ;;  %v8058_v43 = vld [vmem:[#allocation9 + $0x78] sm:$0xf0] }
 0x20d   :  { %v2970_v27 = vsel %vm10158_vm4, %v10074_v9, %v2966_v2  ;;  %v3106_v53 = vadd.f32 0.05243302, %v3105_v3  ;;  %3469 = vmatmul.bf16.gmra.mxu2 %v10060_v61  ;;  %v1517_v31 = vadd.f32 %v13917_v57, %v13906_v63  ;;  %v3123_v48 = vmul.f32 %v10148_v62, %v10116_v15  ;;  %v8580_v54 = vld [vmem:[#allocation9 + $0xf4] sm:$0xf]  ;;  %v8122_v2 = vld [vmem:[#allocation9 + $0xf8] sm:$0xf0] }
 0x20e   :  { %v1612_v22 = vadd.f32 %v1611_v21, %v1563_v13  ;;  %v2890_v59 = vsel %vm10168_vm5, %v10082_v45, %v2886_v28  ;;  %vm2972_vm6 = vcmp.eq.f32.partialorder %v2971_v36, 8.507059e+37  ;;  %v3043_v9 = vmul.f32 %v10154_v12, %v10114_v58  ;;  %v10188_v45 = vpop.f32.mrf.mxu3 }
 0x20f   :  { %v8061_v44 = vor.u32 %v8564_v6, %v8058_v43  ;;  %v3233_v11 = vmul.f32 %v3201_v49, %v1857_v40  ;;  %v2894_v3 = vor.u32 1.1754944e-38, %v2893_v14  ;;  %v2975_v4 = vsel %vm2972_vm6, %v2974_v8, %v2970_v27  ;;  %v8579_v43 = vld [vmem:[#allocation9 + $0xe4] sm:$0xf0] }
 0x210   :  { %v8125_v7 = vor.u32 %v8580_v54, %v8122_v2  ;;  %vm2892_vm7 = vcmp.eq.f32.partialorder %v2891_v50, 8.507059e+37  ;;  %v2951_v37 = vmul.f32 %v2950_v60, %v9860_v0  ;;  %v3107_v13 = vmul.f32 %v3106_v53, %v9984_v38  ;;  %v1660_v27 = vpop.f32.mrf.mxu2  ;;  %v1565_v50 = vpop.f32.mrf.mxu0 }
 0x211   :  { %3549 = vmatpush.bf16.msra.mxu0 %v8061_v44  ;;  %v3231_v21 = vmul.f32 %v3199_v25, %v10127_v55  ;;  %v2895_v46 = vsel %vm2892_vm7, %v2894_v3, %v2890_v59  ;;  %v3027_v28 = vmul.f32 %v3026_v17, %v9929_v30  ;;  %v3124_v36 = vsub.f32 1.0, %v3123_v48  ;;  %v1614_v60 = vpop.f32.mrf.mxu1  ;;  %v8112_v48 = vld [vmem:[#allocation9 + $0xe0] sm:$0xf] }
 0x212   :  { %3598 = vmatpush.bf16.msra.mxu1 %v8125_v7  ;;  %v2871_v40 = vmul.f32 %v2870_v35, %v9791_v23  ;;  %v2976_v14 = vmul.f32 %v2975_v4, %v2951_v37  ;;  %v3044_v49 = vsub.f32 1.0, %v3043_v9  ;;  %v10192_v8 = vadd.f32 %v1660_v27, %v1612_v22  ;;  %v13918_v35 = vld [vmem:[#allocation30_spill] sm:$0xff] }
 0x213   :  { %v1566_v0 = vadd.f32 %v1565_v50, %v1517_v31  ;;  %v10194_v53 = vpack.c.bf16 %v3233_v11, %v3231_v21  ;;  %v3108_v25 = vadd.f32 0.18741608, %v3107_v13  ;;  %v3028_v57 = vadd.f32 0.18741608, %v3027_v28  ;;  %v13919_v22 = vld [vmem:[#allocation34_spill] sm:$0xff]  ;;  %v13920_v11 = vld [vmem:[#allocation31_spill] sm:$0xff] }
 0x214   :  { %v2896_v55 = vmul.f32 %v2895_v46, %v2871_v40  ;;  %v3125_v6 = vmul.f32 %v10148_v62, %v3124_v36  ;;  %v7992_v54 = vclamps-f32 %v2976_v14, 1.0  ;;  %v3045_v23 = vmul.f32 %v10154_v12, %v3044_v49 }
 0x215   :  { %v1615_v17 = vadd.f32 %v1614_v60, %v1566_v0  ;;  %v8113_v59 = vor.u32 %v8579_v43, %v8112_v48  ;;  %v1519_v31 = vadd.f32 %v13919_v22, %v13906_v63  ;;  %v1859_v9 = vmul.f32 0.5, %v9770_v39  ;;  %v8560_v60 = vld [vmem:[#allocation9 + $0x54] sm:$0xf] }
 0x216   :  { %v7990_v44 = vclamps-f32 %v2896_v55, 1.0  ;;  %vm3048_vm8 = vweird.f32 %v10154_v12  ;;  %v3109_v2 = vmul.f32 %v3108_v25, %v9984_v38  ;;  %v3029_v3 = vmul.f32 %v3028_v57, %v9929_v30  ;;  %v10216_v30 = vpop.f32.mrf.mxu3  ;;  %v8050_v57 = vld [vmem:[#allocation9 + $0x68] sm:$0xf0] }
 0x217   :  { %1765 = vmatmul.bf16.gmra.mxu0 %v13918_v35  ;;  %3501 = vmatpush.bf16.msrb.mxu3 %v8113_v59  ;;  %vm3047_vm9 = vweird.f32 %v10114_v58  ;;  %v3126_v4 = vadd.f32 %v10148_v62, %v3125_v6  ;;  %vm3128_vm10 = vweird.f32 %v10148_v62  ;;  %v3205_v7 = vadd.f32 1.0, %v7992_v54  ;;  %v8114_v54 = vld [vmem:[#allocation9 + $0xe8] sm:$0xf0] }
 0x218   :  { %v3046_v37 = vadd.f32 %v10154_v12, %v3045_v23  ;;  %v3053_v39 = vand.u32 2147483648, %v10114_v58  ;;  %v3133_v13 = vand.u32 2147483648, %v10116_v15  ;;  %v1663_v21 = vpop.f32.mrf.mxu2  ;;  %v1567_v38 = vpop.f32.mrf.mxu0  ;;  %vm10212_vm11 = vmor %vm3047_vm9, %vm3048_vm8  ;;  %vm3127_vm12 = vweird.f32 %v10116_v15 }
 0x219   :  { %1814 = vmatmul.bf16.gmra.mxu1 %v13920_v11  ;;  %v3131_v28 = vand.u32 2147483647, %v10116_v15  ;;  %v10220_v36 = vadd.f32 %v1663_v21, %v1615_v17  ;;  %v1568_v40 = vadd.f32 %v1567_v38, %v1519_v31  ;;  %v1616_v14 = vpop.f32.mrf.mxu1  ;;  %v3203_v49 = vadd.f32 1.0, %v7990_v44  ;;  %vm10226_vm13 = vmor %vm3127_vm12, %vm3128_vm10  ;;  %v8577_v38 = vld [vmem:[#allocation9 + $0xd4] sm:$0xf0] }
 0x21a   :  { %v1861_v27 = vmul.f32 0.5, %v9836_v33  ;;  %v3051_v50 = vand.u32 2147483647, %v10114_v58  ;;  %v3110_v0 = vadd.f32 1.1283791, %v3109_v2  ;;  %v1522_v15 = vadd.f32 %v9934_v26, %v13906_v63 }
 0x21b   :  { %v3130_v55 = vsel %vm10226_vm13, %v10148_v62, %v3126_v4  ;;  %v1617_v25 = vadd.f32 %v1616_v14, %v1568_v40  ;;  %v8562_v33 = vld [vmem:[#allocation9 + $0x64] sm:$0xf]  ;;  %v3030_v6 = vadd.f32 1.1283791, %v3029_v3  ;;  %v3050_v17 = vsel %vm10212_vm11, %v10154_v12, %v3046_v37  ;;  %v13927_v40 = vld [vmem:[#allocation33_spill] sm:$0xff] }
 0x21c   :  { %v8578_v58 = vld [vmem:[#allocation9 + $0xe4] sm:$0xf]  ;;  %v3134_v48 = vor.u32 1.1754944e-38, %v3133_v13  ;;  %v8053_v43 = vor.u32 %v8562_v33, %v8050_v57  ;;  %v3237_v23 = vmul.f32 %v3205_v7, %v1861_v27  ;;  %v3054_v35 = vor.u32 1.1754944e-38, %v3053_v39  ;;  %v8106_v33 = vld [vmem:[#allocation9 + $0xd8] sm:$0xf0] }
 0x21d   :  { %3474 = vmatmul.bf16.gmra.mxu2 %v10072_v41  ;;  %vm3132_vm14 = vcmp.eq.f32.partialorder %v3131_v28, 8.507059e+37  ;;  %v8117_v26 = vor.u32 %v8578_v58, %v8114_v54  ;;  %vm3052_vm15 = vcmp.eq.f32.partialorder %v3051_v50, 8.507059e+37  ;;  %v3235_v62 = vmul.f32 %v3203_v49, %v1859_v9  ;;  %v8104_v9 = vld [vmem:[#allocation9 + $0xd0] sm:$0xf] }
 0x21e   :  { %v3135_v59 = vsel %vm3132_vm14, %v3134_v48, %v3130_v55  ;;  %3550 = vmatpush.bf16.msra.mxu0 %v8053_v43  ;;  %v3055_v22 = vsel %vm3052_vm15, %v3054_v35, %v3050_v17  ;;  %v3111_v31 = vmul.f32 %v3110_v0, %v9954_v19  ;;  %v3031_v44 = vmul.f32 %v3030_v6, %v9906_v32  ;;  %v10245_v13 = vpop.f32.mrf.mxu3  ;;  %v13926_v19 = vld [vmem:[#allocation32_spill] sm:$0xff] }
 0x21f   :  { %3599 = vmatpush.bf16.msra.mxu1 %v8117_v26  ;;  %v10243_v37 = vpack.c.bf16 %v3237_v23, %v3235_v62  ;;  %v8105_v46 = vor.u32 %v8577_v38, %v8104_v9  ;;  %v1865_v0 = vmul.f32 0.5, %v9940_v34  ;;  %v8576_v55 = vld [vmem:[#allocation9 + $0xd4] sm:$0xf]  ;;  %v1527_v57 = vadd.f32 %v10029_v1, %v13906_v63  ;;  %v8034_v62 = vld [vmem:[#allocation9 + $0x48] sm:$0xf0] }
 0x220   :  { %v1665_v2 = vpop.f32.mrf.mxu2  ;;  %v1570_v11 = vpop.f32.mrf.mxu0  ;;  %v3136_v12 = vmul.f32 %v3135_v59, %v3111_v31  ;;  %v3056_v39 = vmul.f32 %v3055_v22, %v3031_v44  ;;  %v1863_v58 = vmul.f32 0.5, %v9890_v10  ;;  %v8109_v48 = vor.u32 %v8576_v55, %v8106_v33  ;;  %v8558_v59 = vld [vmem:[#allocation9 + $0x44] sm:$0xf]  ;;  %v8096_v22 = vld [vmem:[#allocation9 + $0xc0] sm:$0xf]  ;;  %v13929_v31 = vld [vmem:[#allocation35_spill] sm:$0xff] }
 0x221   :  { %v10241_v3 = vadd.f32 %v1665_v2, %v1617_v25  ;;  %v1571_v4 = vadd.f32 %v1570_v11, %v1522_v15  ;;  %v1619_v7 = vpop.f32.mrf.mxu1  ;;  %13925 = vst [vmem:[#allocation22_spill] sm:$0xff] %v10243_v37  ;;  %3502 = vmatpush.bf16.msrb.mxu3 %v8105_v46  ;;  %v8042_v15 = vld [vmem:[#allocation9 + $0x58] sm:$0xf0]  ;;  %v8037_v1 = vor.u32 %v8558_v59, %v8034_v62  ;;  %v8575_v10 = vld [vmem:[#allocation9 + $0xc4] sm:$0xf0]  ;;  %v13930_v2 = vld [vmem:[#allocation36_spill] sm:$0xff] }
 0x222   :  { %v7996_v32 = vclamps-f32 %v3136_v12, 1.0  ;;  %v7994_v28 = vclamps-f32 %v3056_v39, 1.0  ;;  %v8045_v25 = vor.u32 %v8560_v60, %v8042_v15  ;;  %v8097_v44 = vor.u32 %v8575_v10, %v8096_v22  ;;  %v8026_v39 = vld [vmem:[#allocation9 + $0x38] sm:$0xf0]  ;;  %v8554_v38 = vld [vmem:[#allocation9 + $0x24] sm:$0xf] }
 0x223   :  { %v10247_v21 = vadd.f32 %v1619_v7, %v1571_v4  ;;  %3600 = vmatpush.bf16.msra.mxu1 %v8109_v48  ;;  %v8556_v7 = vld [vmem:[#allocation9 + $0x34] sm:$0xf]  ;;  %v8574_v46 = vld [vmem:[#allocation9 + $0xc4] sm:$0xf] }
 0x224   :  { %v3209_v49 = vadd.f32 1.0, %v7996_v32  ;;  %v3207_v50 = vadd.f32 1.0, %v7994_v28  ;;  %3551 = vmatpush.bf16.msra.mxu0 %v8045_v25  ;;  %v8029_v9 = vor.u32 %v8556_v7, %v8026_v39  ;;  %v8098_v32 = vld [vmem:[#allocation9 + $0xc8] sm:$0xf0]  ;;  %v1532_v28 = vadd.f32 %v10136_v56, %v13906_v63 }
 0x225   :  { %3503 = vmatpush.bf16.msrb.mxu3 %v8097_v44 }
 0x226   :  { %v3241_v6 = vmul.f32 %v3209_v49, %v1865_v0  ;;  %v1697_v17 = vpop.f32.mrf.mxu3  ;;  %v3239_v43 = vmul.f32 %v3207_v50, %v1863_v58  ;;  %v8101_v49 = vor.u32 %v8574_v46, %v8098_v32  ;;  %v8552_v50 = vld [vmem:[#allocation9 + $0x14] sm:$0xf]  ;;  %v8010_v0 = vld [vmem:[#allocation9 + $0x18] sm:$0xf0] }
 0x227   :  { %1770 = vmatmul.bf16.gmra.mxu0 %v13926_v19  ;;  %v8018_v19 = vld [vmem:[#allocation9 + $0x28] sm:$0xf0]  ;;  %v8013_v33 = vor.u32 %v8552_v50, %v8010_v0  ;;  %v13931_v58 = vld [vmem:[#allocation37_spill] sm:$0xff]  ;;  %v1698_v10 = vadd.f32 %v1697_v17, %v9992_v52 }
 0x228   :  { %v10251_v14 = vpop.f32.mrf.mxu0  ;;  %v10260_v35 = vpack.c.bf16 %v3241_v6, %v3239_v43  ;;  %3552 = vmatpush.bf16.msra.mxu0 %v8037_v1  ;;  %3601 = vmatpush.bf16.msra.mxu1 %v8101_v49  ;;  %v13932_v6 = vld [vmem:[#allocation38_spill] sm:$0xff]  ;;  %v10314_v49 = vpop.f32.mrf.mxu2 }
 0x229   :  { %1819 = vmatmul.bf16.gmra.mxu1 %v13927_v40  ;;  %v10253_v27 = vpop.f32.mrf.mxu1  ;;  %v8021_v40 = vor.u32 %v8554_v38, %v8018_v19 }
 0x22a   :  { %13928 = vst [vmem:[#allocation23_spill] sm:$0xff] %v10260_v35 }
 0x22c   :  { %3553 = vmatpush.bf16.msra.mxu0 %v8029_v9 }
 0x22d   :  { %3479 = vmatmul.bf16.gmra.mxu2 %v10131_v24 }
 0x22e   :  { %v1699_v11 = vpop.f32.mrf.mxu3 }
 0x230   :  { %v1575_v54 = vpop.f32.mrf.mxu0  ;;  %3554 = vmatpush.bf16.msra.mxu0 %v8021_v40 }
 0x231   :  { %v1576_v34 = vadd.f32 %v1575_v54, %v1527_v57  ;;  %v1624_v23 = vpop.f32.mrf.mxu1  ;;  %v1537_v54 = vadd.f32 %v10216_v30, %v13906_v63 }
 0x233   :  { %v10262_v26 = vadd.f32 %v1624_v23, %v1576_v34 }
 0x234   :  { %3555 = vmatpush.bf16.msra.mxu0 %v8013_v33  ;;  %v8550_v33 = vld [vmem:[#allocation9 + $0x4] sm:$0xf] }
 0x236   :  { %v10273_v15 = vpop.f32.mrf.mxu3 }
 0x237   :  { %1775 = vmatmul.bf16.gmra.mxu0 %v13929_v31 }
 0x238   :  { %v10266_v12 = vpop.f32.mrf.mxu0 }
 0x239   :  { %1824 = vmatmul.bf16.gmra.mxu1 %v13930_v2  ;;  %v10268_v4 = vpop.f32.mrf.mxu1 }
 0x23d   :  { %3484 = vmatmul.bf16.gmra.mxu2 %v10194_v53 }
 0x23e   :  { %v10284_v43 = vpop.f32.mrf.mxu3 }
 0x240   :  { %v1580_v60 = vpop.f32.mrf.mxu0 }
 0x241   :  { %v1581_v55 = vadd.f32 %v1580_v60, %v1532_v28  ;;  %v1629_v25 = vpop.f32.mrf.mxu1  ;;  %v1700_v60 = vadd.f32 %v1699_v11, %v10032_v20 }
 0x243   :  { %v10275_v57 = vadd.f32 %v1629_v25, %v1581_v55 }
 0x246   :  { %v10290_v22 = vpop.f32.mrf.mxu3 }
 0x247   :  { %1780 = vmatmul.bf16.gmra.mxu0 %v13931_v58  ;;  %v8002_v58 = vld [vmem:[#allocation9 + $0x8] sm:$0xf0] }
 0x248   :  { %v10279_v56 = vpop.f32.mrf.mxu0 }
 0x249   :  { %1829 = vmatmul.bf16.gmra.mxu1 %v13932_v6  ;;  %v10281_v48 = vpop.f32.mrf.mxu1  ;;  %v8088_v6 = vld [vmem:[#allocation9 + $0xb0] sm:$0xf] }
 0x24d   :  { %3489 = vmatmul.bf16.gmra.mxu2 %v10243_v37 }
 0x24e   :  { %v10298_v44 = vpop.f32.mrf.mxu3 }
 0x250   :  { %v1585_v34 = vpop.f32.mrf.mxu0 }
 0x251   :  { %v1586_v23 = vadd.f32 %v1585_v34, %v1537_v54  ;;  %v1634_v59 = vpop.f32.mrf.mxu1 }
 0x253   :  { %v10288_v62 = vadd.f32 %v1634_v59, %v1586_v23  ;;  %v8005_v23 = vor.u32 %v8550_v33, %v8002_v58  ;;  %v8573_v59 = vld [vmem:[#allocation9 + $0xb4] sm:$0xf0] }
 0x255   :  { %3556 = vmatpush.bf16.msra.mxu0 %v8005_v23 }
 0x256   :  { %v10307_v19 = vpop.f32.mrf.mxu3 }
 0x258   :  { %v10292_v31 = vpop.f32.mrf.mxu0  ;;  %3557 = vmatmul.bf16.vlgmr.msra.gmra.mxu0 %v13895_v18 }
 0x259   :  { %v10294_v1 = vpop.f32.mrf.mxu1 }
 0x25d   :  { %3494 = vmatmul.bf16.gmra.mxu2 %v10260_v35 }
 0x25e   :  { %v10316_v50 = vpop.f32.mrf.mxu3 }
 0x260   :  { %v1746_v2 = vpop.f32.mrf.mxu0 }
 0x261   :  { %v1747_v7 = vadd.f32 %v1746_v2, %v1698_v10  ;;  %v1795_v30 = vpop.f32.mrf.mxu1  ;;  %v8089_v2 = vor.u32 %v8573_v59, %v8088_v6 }
 0x263   :  { %v10300_v39 = vadd.f32 %v1795_v30, %v1747_v7  ;;  %3504 = vmatpush.bf16.msrb.mxu3 %v8089_v2 }
 0x265   :  { %v10303_v9 = vmul.f32 0.70710677, %v10300_v39 }
 0x267   :  { %v1939_v38 = vmul.f32 %v10303_v9, %v10303_v9 }
 0x268   :  { %v1748_v54 = vpop.f32.mrf.mxu0  ;;  %3562 = vmatmul.bf16.gmra.mxu0 %v10036_v29 }
 0x269   :  { %v10309_v46 = vmin.f32 %v1939_v38, 16.0  ;;  %v1749_v10 = vadd.f32 %v1748_v54, %v1700_v60  ;;  %v1797_v7 = vpop.f32.mrf.mxu1 }
 0x26b   :  { %v1952_v32 = vmul.f32 3.8918573e-05, %v10309_v46  ;;  %v1941_v28 = vmul.f32 2.1237322e-06, %v10309_v46 }
 0x26d   :  { %v1953_v52 = vadd.f32 0.001143296, %v1952_v32  ;;  %v1942_v55 = vadd.f32 0.00028619796, %v1941_v28  ;;  %v10322_v32 = vadd.f32 %v1797_v7, %v1749_v10 }
 0x26f   :  { %v1954_v17 = vmul.f32 %v1953_v52, %v10309_v46  ;;  %v1943_v30 = vmul.f32 %v1942_v55, %v10309_v46  ;;  %v10326_v11 = vmul.f32 0.70710677, %v10322_v32  ;;  %v10328_v52 = vpop.f32.mrf.mxu2 }
 0x271   :  { %v1955_v40 = vadd.f32 0.014752088, %v1954_v17  ;;  %v10331_v17 = vpop.f32.mrf.mxu3  ;;  %v1944_v28 = vadd.f32 0.0036580483, %v1943_v30  ;;  %v1800_v35 = vpop.f32.mrf.mxu1 }
 0x273   :  { %v1956_v0 = vmul.f32 %v1955_v40, %v10309_v46  ;;  %v1945_v55 = vmul.f32 %v1944_v28, %v10309_v46 }
 0x275   :  { %v1957_v25 = vadd.f32 0.112945676, %v1956_v0  ;;  %v2019_v0 = vmul.f32 %v10326_v11, %v10326_v11  ;;  %v1946_v54 = vadd.f32 0.05243302, %v1945_v55 }
 0x277   :  { %v1958_v34 = vmul.f32 %v1957_v25, %v10309_v46  ;;  %v10338_v60 = vmin.f32 %v2019_v0, 16.0  ;;  %v1703_v0 = vadd.f32 %v10273_v15, %v10084_v5 }
 0x278   :  { %3567 = vmatmul.bf16.gmra.mxu0 %v10060_v61 }
 0x279   :  { %v1959_v38 = vadd.f32 0.4994258, %v1958_v34  ;;  %v2021_v25 = vmul.f32 2.1237322e-06, %v10338_v60  ;;  %v2032_v33 = vmul.f32 3.8918573e-05, %v10338_v60  ;;  %v10345_v34 = vpop.f32.mrf.mxu2  ;;  %v10351_v2 = vpop.f32.mrf.mxu3 }
 0x27b   :  { %v1960_v20 = vmul.f32 %v1959_v38, %v10309_v46  ;;  %v2022_v58 = vadd.f32 0.00028619796, %v2021_v25  ;;  %v2033_v18 = vadd.f32 0.001143296, %v2032_v33  ;;  %v1947_v38 = vmul.f32 %v1946_v54, %v10309_v46 }
 0x27d   :  { %v10333_v40 = vadd.f32 1.0, %v1960_v20  ;;  %v2023_v59 = vmul.f32 %v2022_v58, %v10338_v60  ;;  %v2034_v10 = vmul.f32 %v2033_v18, %v10338_v60  ;;  %v1948_v33 = vadd.f32 0.18741608, %v1947_v38  ;;  %v1751_v18 = vpop.f32.mrf.mxu0 }
 0x27f   :  { %8675 = vrcp.f32 %v10333_v40  ;;  %v2024_v7 = vadd.f32 0.0036580483, %v2023_v59  ;;  %v2035_v30 = vadd.f32 0.014752088, %v2034_v10  ;;  %v1524_v59 = vadd.f32 %v9989_v16, %v13906_v63  ;;  %v8572_v10 = vld [vmem:[#allocation9 + $0xb4] sm:$0xf] }
 0x280   :  { %vm1967_vm1 = vweird.f32 %v10333_v40 }
 0x281   :  { %v2036_v28 = vmul.f32 %v2035_v30, %v10338_v60  ;;  %v2025_v55 = vmul.f32 %v2024_v7, %v10338_v60  ;;  %v8090_v30 = vld [vmem:[#allocation9 + $0xb8] sm:$0xf0]  ;;  %v1573_v5 = vadd.f32 %v10251_v14, %v1524_v59  ;;  %v10364_v15 = vpop.f32.mrf.mxu2  ;;  %v10366_v38 = vpop.f32.mrf.mxu3  ;;  %v1529_v14 = vadd.f32 %v10101_v51, %v13906_v63 }
 0x282   :  { %v8093_v29 = vor.u32 %v8572_v10, %v8090_v30  ;;  %v1669_v10 = vadd.f32 %v10314_v49, %v10247_v21 }
 0x283   :  { %v2037_v25 = vadd.f32 0.112945676, %v2036_v28  ;;  %v2026_v7 = vadd.f32 0.05243302, %v2025_v55  ;;  %v1971_v55 = vand.u32 2147483647, %v10333_v40  ;;  %v1622_v59 = vadd.f32 %v10253_v27, %v1573_v5 }
 0x284   :  { %3602 = vmatpush.bf16.msra.mxu1 %v8093_v29  ;;  %v10421_v29 = vadd.f32 %v10307_v19, %v10220_v36 }
 0x285   :  { %v10343_v6 = vpop.eup %8675  ;;  %v2038_v54 = vmul.f32 %v2037_v25, %v10338_v60  ;;  %v1671_v27 = vadd.f32 %v10328_v52, %v1622_v59  ;;  %vm1972_vm3 = vcmp.eq.f32.partialorder %v1971_v55, 8.507059e+37 }
 0x286   :  { %v1963_v23 = vmul.f32 %v10343_v6, %v10333_v40  ;;  %vm1968_vm0 = vweird.f32 %v10343_v6 }
 0x287   :  { %v2039_v28 = vadd.f32 0.4994258, %v2038_v54  ;;  %vm10386_vm2 = vmor %vm1967_vm1, %vm1968_vm0 }
 0x288   :  { %v1964_v20 = vsub.f32 1.0, %v1963_v23  ;;  %v1752_v23 = vadd.f32 %v1751_v18, %v1703_v0  ;;  %v1973_v0 = vand.u32 2147483648, %v10333_v40  ;;  %v2027_v18 = vmul.f32 %v2026_v7, %v10338_v60  ;;  %3572 = vmatmul.bf16.gmra.mxu0 %v10072_v41  ;;  %v8082_v41 = vld [vmem:[#allocation9 + $0xa8] sm:$0xf0] }
 0x289   :  { %v2040_v25 = vmul.f32 %v2039_v28, %v10338_v60  ;;  %v1578_v7 = vadd.f32 %v10266_v12, %v1529_v14  ;;  %v10428_v12 = vadd.f32 %v10331_v17, %v1669_v10 }
 0x28a   :  { %v1965_v58 = vmul.f32 %v10343_v6, %v1964_v20  ;;  %v1949_v20 = vmul.f32 %v1948_v33, %v10309_v46  ;;  %v10371_v16 = vadd.f32 %v1800_v35, %v1752_v23  ;;  %v1534_v33 = vadd.f32 %v10188_v45, %v13906_v63  ;;  %v1753_v23 = vpop.f32.mrf.mxu0 }
 0x28b   :  { %v1705_v35 = vadd.f32 %v10284_v43, %v10123_v42  ;;  %v10391_v51 = vadd.f32 1.0, %v2040_v25  ;;  %v1802_v42 = vpop.f32.mrf.mxu1  ;;  %v10401_v43 = vadd.f32 %v10245_v13, %v13906_v63  ;;  %v1974_v30 = vor.u32 1.1754944e-38, %v1973_v0 }
 0x28c   :  { %v1966_v37 = vadd.f32 %v10343_v6, %v1965_v58  ;;  %v10380_v46 = vmul.f32 0.70710677, %v10371_v16  ;;  %v1950_v40 = vadd.f32 1.1283791, %v1949_v20  ;;  %v2028_v63 = vadd.f32 0.18741608, %v2027_v18 }
 0x28d   :  { %8677 = vrcp.f32 %v10391_v51  ;;  %v10414_v13 = vadd.f32 %v10298_v44, %v10192_v8  ;;  %v10435_v44 = vadd.f32 %v10351_v2, %v1671_v27  ;;  %v1583_v2 = vadd.f32 %v10279_v56, %v1534_v33 }
 0x28e   :  { %v1970_v54 = vsel %vm10386_vm2, %v10343_v6, %v1966_v37  ;;  %v2099_v45 = vmul.f32 %v10380_v46, %v10380_v46  ;;  %v1754_v37 = vadd.f32 %v1753_v23, %v1705_v35  ;;  %v1708_v6 = vadd.f32 %v10290_v22, %v10162_v47  ;;  %v10430_v22 = vpop.f32.mrf.mxu2 }
 0x28f   :  { %v1975_v28 = vsel %vm1972_vm3, %v1974_v30, %v1970_v54  ;;  %v1951_v21 = vmul.f32 %v1950_v40, %v10303_v9  ;;  %v10425_v47 = vadd.f32 %v10316_v50, %v10241_v3  ;;  %v10437_v9 = vpop.f32.mrf.mxu3  ;;  %v1674_v3 = vadd.f32 %v10345_v34, %v10262_v26 }
 0x290   :  { %v10407_v5 = vmin.f32 %v2099_v45, 16.0  ;;  %v10432_v8 = vadd.f32 %v1802_v42, %v1754_v37  ;;  %v1627_v50 = vadd.f32 %v10268_v4, %v1578_v7  ;;  %v2029_v17 = vmul.f32 %v2028_v63, %v10338_v60 }
 0x291   :  { %v10439_v20 = vmul.f32 %v1975_v28, %v1951_v21  ;;  %v2051_v26 = vand.u32 2147483647, %v10391_v51  ;;  %v2053_v4 = vand.u32 2147483648, %v10391_v51  ;;  %vm2047_vm4 = vweird.f32 %v10391_v51 }
 0x292   :  { %v2101_v49 = vmul.f32 2.1237322e-06, %v10407_v5  ;;  %v2112_v52 = vmul.f32 3.8918573e-05, %v10407_v5  ;;  %v10446_v25 = vmul.f32 0.70710677, %v10432_v8  ;;  %v1756_v58 = vpop.f32.mrf.mxu0 }
 0x293   :  { %v8678_v0 = vpop.eup %8677  ;;  %v1757_v34 = vadd.f32 %v1756_v58, %v1708_v6  ;;  %v7967_v18 = vclamps-f32 %v10439_v20, 1.0  ;;  %v1805_v33 = vpop.f32.mrf.mxu1  ;;  %v2030_v40 = vadd.f32 1.1283791, %v2029_v17  ;;  %vm10465_vm6 = vcmp.eq.f32.partialorder %v2051_v26, 8.507059e+37  ;;  %v8571_v17 = vld [vmem:[#allocation9 + $0xa4] sm:$0xf0] }
 0x294   :  { %v2102_v36 = vadd.f32 0.00028619796, %v2101_v49  ;;  %v2113_v19 = vadd.f32 0.001143296, %v2112_v52  ;;  %v2043_v14 = vmul.f32 %v8678_v0, %v10391_v51  ;;  %v2179_v60 = vmul.f32 %v10446_v25, %v10446_v25 }
 0x295   :  { %v10461_v45 = vadd.f32 %v1805_v33, %v1757_v34  ;;  %vm2048_vm5 = vweird.f32 %v8678_v0  ;;  %v2054_v27 = vor.u32 1.1754944e-38, %v2053_v4  ;;  %v10475_v49 = vadd.f32 %v10366_v38, %v1674_v3 }
 0x296   :  { %v2103_v55 = vmul.f32 %v2102_v36, %v10407_v5  ;;  %v2114_v35 = vmul.f32 %v2113_v19, %v10407_v5  ;;  %v2044_v61 = vsub.f32 1.0, %v2043_v14  ;;  %v10459_v54 = vmin.f32 %v2179_v60, 16.0  ;;  %v1680_v20 = vpop.f32.mrf.mxu2  ;;  %vm2049_vm7 = vmor %vm2047_vm4, %vm2048_vm5  ;;  %v8080_v19 = vld [vmem:[#allocation9 + $0xa0] sm:$0xf] }
 0x297   :  { %v10472_v21 = vmul.f32 0.70710677, %v10461_v45  ;;  %v1676_v52 = vadd.f32 %v10364_v15, %v1627_v50  ;;  %v2031_v36 = vmul.f32 %v2030_v40, %v10326_v11  ;;  %v8081_v38 = vor.u32 %v8571_v17, %v8080_v19 }
 0x298   :  { %v2104_v59 = vadd.f32 0.0036580483, %v2103_v55  ;;  %v2115_v56 = vadd.f32 0.014752088, %v2114_v35  ;;  %v2045_v23 = vmul.f32 %v8678_v0, %v2044_v61  ;;  %v2181_v37 = vmul.f32 2.1237322e-06, %v10459_v54  ;;  %v1727_v55 = vpop.f32.mrf.mxu3  ;;  %3577 = vmatmul.bf16.gmra.mxu0 %v10131_v24 }
 0x299   :  { %v2192_v6 = vmul.f32 3.8918573e-05, %v10459_v54  ;;  %v2259_v51 = vmul.f32 %v10472_v21, %v10472_v21  ;;  %v1632_v4 = vadd.f32 %v10281_v48, %v1583_v2  ;;  %3505 = vmatpush.bf16.msrb.mxu3 %v8081_v38  ;;  %v1836_v61 = vmul.f32 0.5, %v10300_v39 }
 0x29a   :  { %v2105_v42 = vmul.f32 %v2104_v59, %v10407_v5  ;;  %v2116_v10 = vmul.f32 %v2115_v56, %v10407_v5  ;;  %v2046_v7 = vadd.f32 %v8678_v0, %v2045_v23  ;;  %v2182_v14 = vadd.f32 0.00028619796, %v2181_v37  ;;  %v1758_v3 = vpop.f32.mrf.mxu0 }
 0x29b   :  { %v2193_v50 = vadd.f32 0.001143296, %v2192_v6  ;;  %v10493_v33 = vmin.f32 %v2259_v51, 16.0  ;;  %v3180_v40 = vadd.f32 1.0, %v7967_v18  ;;  %v1838_v39 = vmul.f32 0.5, %v10322_v32 }
 0x29c   :  { %v2106_v28 = vadd.f32 0.05243302, %v2105_v42  ;;  %v2117_v63 = vadd.f32 0.112945676, %v2116_v10  ;;  %v2050_v35 = vsel %vm2049_vm7, %v8678_v0, %v2046_v7  ;;  %v2183_v11 = vmul.f32 %v2182_v14, %v10459_v54 }
 0x29d   :  { %v2055_v15 = vsel %vm10465_vm6, %v2054_v27, %v2050_v35  ;;  %v1759_v0 = vadd.f32 %v1758_v3, %v10414_v13  ;;  %v2194_v56 = vmul.f32 %v2193_v50, %v10459_v54  ;;  %v2261_v2 = vmul.f32 2.1237322e-06, %v10493_v33  ;;  %v1807_v13 = vpop.f32.mrf.mxu1 }
 0x29e   :  { %v2107_v58 = vmul.f32 %v2106_v28, %v10407_v5  ;;  %v2118_v26 = vmul.f32 %v2117_v63, %v10407_v5  ;;  %v2056_v60 = vmul.f32 %v2055_v15, %v2031_v36  ;;  %v2184_v59 = vadd.f32 0.0036580483, %v2183_v11  ;;  %v10509_v35 = vpop.f32.mrf.mxu2  ;;  %v8570_v11 = vld [vmem:[#allocation9 + $0xa4] sm:$0xf] }
 0x29f   :  { %v2195_v48 = vadd.f32 0.014752088, %v2194_v56  ;;  %v2272_v27 = vmul.f32 3.8918573e-05, %v10493_v33  ;;  %v10502_v7 = vadd.f32 %v1807_v13, %v1759_v0  ;;  %v2262_v63 = vadd.f32 0.00028619796, %v2261_v2 }
 0x2a0   :  { %v2119_v34 = vadd.f32 0.4994258, %v2118_v26  ;;  %v7969_v23 = vclamps-f32 %v2056_v60, 1.0  ;;  %v2108_v42 = vadd.f32 0.18741608, %v2107_v58  ;;  %v2185_v30 = vmul.f32 %v2184_v59, %v10459_v54  ;;  %v1729_v3 = vpop.f32.mrf.mxu3 }
 0x2a1   :  { %v2196_v28 = vmul.f32 %v2195_v48, %v10459_v54  ;;  %v2273_v36 = vadd.f32 0.001143296, %v2272_v27  ;;  %v1679_v19 = vadd.f32 %v10430_v22, %v10275_v57  ;;  %v3212_v17 = vmul.f32 %v3180_v40, %v1836_v61 }
 0x2a2   :  { %v2120_v10 = vmul.f32 %v2119_v34, %v10407_v5  ;;  %v3182_v37 = vadd.f32 1.0, %v7969_v23  ;;  %v2186_v18 = vadd.f32 0.05243302, %v2185_v30  ;;  %v1681_v32 = vadd.f32 %v1680_v20, %v1632_v4  ;;  %v1761_v59 = vpop.f32.mrf.mxu0 }
 0x2a3   :  { %v2109_v58 = vmul.f32 %v2108_v42, %v10407_v5  ;;  %v2197_v38 = vadd.f32 0.112945676, %v2196_v28  ;;  %v2263_v50 = vmul.f32 %v2262_v63, %v10493_v33  ;;  %v2274_v57 = vmul.f32 %v2273_v36, %v10493_v33  ;;  %v8569_v63 = vld [vmem:[#allocation9 + $0x94] sm:$0xf0] }
 0x2a4   :  { %v10500_v6 = vadd.f32 1.0, %v2120_v10  ;;  %v3214_v14 = vmul.f32 %v3182_v37, %v1838_v39  ;;  %v2187_v26 = vmul.f32 %v2186_v18, %v10459_v54  ;;  %v10518_v22 = vmul.f32 0.70710677, %v10502_v7  ;;  %v8072_v37 = vld [vmem:[#allocation9 + $0x90] sm:$0xf] }
 0x2a5   :  { %v10521_v20 = vadd.f32 %v10437_v9, %v1676_v52  ;;  %v1588_v5 = vadd.f32 %v10292_v31, %v10401_v43  ;;  %v2198_v4 = vmul.f32 %v2197_v38, %v10459_v54  ;;  %v8085_v60 = vor.u32 %v8570_v11, %v8082_v41 }
 0x2a6   :  { %8679 = vrcp.f32 %v10500_v6  ;;  %v10513_v15 = vpack.c.bf16 %v3214_v14, %v3212_v17  ;;  %v2188_v51 = vadd.f32 0.18741608, %v2187_v26  ;;  %v2264_v34 = vadd.f32 0.0036580483, %v2263_v50  ;;  %v8568_v14 = vld [vmem:[#allocation9 + $0x94] sm:$0xf] }
 0x2a7   :  { %v2275_v0 = vadd.f32 0.014752088, %v2274_v57  ;;  %v2339_v61 = vmul.f32 %v10518_v22, %v10518_v22  ;;  %v10528_v56 = vadd.f32 %v1727_v55, %v1679_v19  ;;  %v10530_v40 = vadd.f32 %v1729_v3, %v1681_v32  ;;  %3603 = vmatpush.bf16.msra.mxu1 %v8085_v60  ;;  %v1810_v32 = vpop.f32.mrf.mxu1 }
 0x2a8   :  { %v10533_v9 = vmul.f32 0.5, %v10371_v16  ;;  %v2199_v52 = vadd.f32 0.4994258, %v2198_v4  ;;  %v10537_v31 = vadd.f32 1.1283791, %v2109_v58  ;;  %v2265_v43 = vmul.f32 %v2264_v34, %v10493_v33  ;;  %v1685_v58 = vpop.f32.mrf.mxu2  ;;  %3582 = vmatmul.bf16.gmra.mxu0 %v10194_v53 }
 0x2a9   :  { %v2276_v42 = vmul.f32 %v2275_v0, %v10493_v33  ;;  %v10541_v10 = vmin.f32 %v2339_v61, 16.0  ;;  %v2131_v30 = vand.u32 2147483647, %v10500_v6  ;;  %v1762_v48 = vadd.f32 %v1761_v59, %v10421_v29 }
 0x2aa   :  { %v2200_v16 = vmul.f32 %v2199_v52, %v10459_v54  ;;  %v1637_v2 = vadd.f32 %v10294_v1, %v1588_v5  ;;  %v2189_v27 = vmul.f32 %v2188_v51, %v10459_v54  ;;  %v2266_v13 = vadd.f32 0.05243302, %v2265_v43  ;;  %v8074_v54 = vld [vmem:[#allocation9 + $0x98] sm:$0xf0]  ;;  %v8064_v52 = vld [vmem:[#allocation9 + $0x80] sm:$0xf] }
 0x2ab   :  { %v2277_v39 = vadd.f32 0.112945676, %v2276_v42  ;;  %vm2127_vm8 = vweird.f32 %v10500_v6  ;;  %v2341_v36 = vmul.f32 2.1237322e-06, %v10541_v10  ;;  %v8073_v29 = vor.u32 %v8569_v63, %v8072_v37  ;;  %v8567_v43 = vld [vmem:[#allocation9 + $0x84] sm:$0xf0]  ;;  %v1763_v42 = vpop.f32.mrf.mxu0 }
 0x2ac   :  { %v10535_v23 = vpop.eup %8679  ;;  %v10551_v28 = vadd.f32 1.0, %v2200_v16  ;;  %v2267_v19 = vmul.f32 %v2266_v13, %v10493_v33  ;;  %v2352_v1 = vmul.f32 3.8918573e-05, %v10541_v10  ;;  %v10560_v38 = vadd.f32 %v1810_v32, %v1762_v48 }
 0x2ad   :  { %v2123_v55 = vmul.f32 %v10535_v23, %v10500_v6  ;;  %v2278_v17 = vmul.f32 %v2277_v39, %v10493_v33  ;;  %vm2128_vm9 = vweird.f32 %v10535_v23  ;;  %v2133_v3 = vand.u32 2147483648, %v10500_v6  ;;  %3506 = vmatpush.bf16.msrb.mxu3 %v8073_v29 }
 0x2ae   :  { %8681 = vrcp.f32 %v10551_v28  ;;  %v2190_v11 = vadd.f32 1.1283791, %v2189_v27  ;;  %v8077_v50 = vor.u32 %v8568_v14, %v8074_v54  ;;  %v2211_v5 = vand.u32 2147483647, %v10551_v28  ;;  %vm10573_vm10 = vmor %vm2127_vm8, %vm2128_vm9  ;;  %v8566_v14 = vld [vmem:[#allocation9 + $0x84] sm:$0xf] }
 0x2af   :  { %v2124_v18 = vsub.f32 1.0, %v2123_v55  ;;  %v2279_v41 = vadd.f32 0.4994258, %v2278_v17  ;;  %v2342_v51 = vadd.f32 0.00028619796, %v2341_v36  ;;  %v10567_v60 = vadd.f32 %v10509_v35, %v10288_v62 }
 0x2b0   :  { %v2353_v4 = vadd.f32 0.001143296, %v2352_v1  ;;  %v10569_v34 = vadd.f32 %v1685_v58, %v1637_v2  ;;  %v2268_v61 = vadd.f32 0.18741608, %v2267_v19  ;;  %3604 = vmatpush.bf16.msra.mxu1 %v8077_v50  ;;  %v10584_v6 = vmul.f32 0.70710677, %v10560_v38  ;;  %v1812_v1 = vpop.f32.mrf.mxu1 }
 0x2b1   :  { %v2125_v26 = vmul.f32 %v10535_v23, %v2124_v18  ;;  %v2280_v59 = vmul.f32 %v2279_v41, %v10493_v33  ;;  %v2343_v35 = vmul.f32 %v2342_v51, %v10541_v10  ;;  %vm2132_vm11 = vcmp.eq.f32.partialorder %v2131_v30, 8.507059e+37  ;;  %v8066_v54 = vld [vmem:[#allocation9 + $0x88] sm:$0xf0] }
 0x2b2   :  { %v2354_v55 = vmul.f32 %v2353_v4, %v10541_v10  ;;  %v2134_v16 = vor.u32 1.1754944e-38, %v2133_v3  ;;  %v8065_v2 = vor.u32 %v8567_v43, %v8064_v52  ;;  %v2213_v13 = vand.u32 2147483648, %v10551_v28 }
 0x2b3   :  { %v2126_v57 = vadd.f32 %v10535_v23, %v2125_v26  ;;  %v10587_v48 = vadd.f32 1.0, %v2280_v59  ;;  %v2344_v39 = vadd.f32 0.0036580483, %v2343_v35  ;;  %v2111_v18 = vmul.f32 %v10537_v31, %v10380_v46  ;;  %v1766_v59 = vpop.f32.mrf.mxu0 }
 0x2b4   :  { %v8682_v27 = vpop.eup %8681  ;;  %v2355_v37 = vadd.f32 0.014752088, %v2354_v55  ;;  %3507 = vmatpush.bf16.msrb.mxu3 %v8065_v2  ;;  %v2191_v24 = vmul.f32 %v2190_v11, %v10446_v25  ;;  %vm2207_vm12 = vweird.f32 %v10551_v28  ;;  %vm10598_vm13 = vcmp.eq.f32.partialorder %v2211_v5, 8.507059e+37 }
 0x2b5   :  { %v2130_v62 = vsel %vm10573_vm10, %v10535_v23, %v2126_v57  ;;  %v2419_v23 = vmul.f32 %v10584_v6, %v10584_v6  ;;  %v2203_v36 = vmul.f32 %v8682_v27, %v10551_v28  ;;  %8683 = vrcp.f32 %v10587_v48 }
 0x2b6   :  { %v2135_v63 = vsel %vm2132_vm11, %v2134_v16, %v2130_v62  ;;  %v2269_v19 = vmul.f32 %v2268_v61, %v10493_v33  ;;  %v2345_v29 = vmul.f32 %v2344_v39, %v10541_v10  ;;  %v2356_v46 = vmul.f32 %v2355_v37, %v10541_v10 }
 0x2b7   :  { %v2204_v17 = vsub.f32 1.0, %v2203_v36  ;;  %v10605_v31 = vmin.f32 %v2419_v23, 16.0  ;;  %v2136_v32 = vmul.f32 %v2135_v63, %v2111_v18  ;;  %vm2208_vm14 = vweird.f32 %v8682_v27  ;;  %3508 = vmatmul.bf16.vlgmr.msrb.gmra.mxu3 %v10513_v15 }
 0x2b8   :  { %v2214_v25 = vor.u32 1.1754944e-38, %v2213_v13  ;;  %v1764_v58 = vadd.f32 %v1763_v42, %v10425_v47  ;;  %v2346_v3 = vadd.f32 0.05243302, %v2345_v29  ;;  %v2357_v33 = vadd.f32 0.112945676, %v2356_v46  ;;  %vm2209_vm15 = vmor %vm2207_vm12, %vm2208_vm14 }
 0x2b9   :  { %v2205_v26 = vmul.f32 %v8682_v27, %v2204_v17  ;;  %v2421_v11 = vmul.f32 2.1237322e-06, %v10605_v31  ;;  %v2270_v41 = vadd.f32 1.1283791, %v2269_v19  ;;  %v2432_v50 = vmul.f32 3.8918573e-05, %v10605_v31 }
 0x2ba   :  { %v10611_v57 = vadd.f32 %v1812_v1, %v1764_v58  ;;  %v8069_v5 = vor.u32 %v8566_v14, %v8066_v54  ;;  %v2347_v0 = vmul.f32 %v2346_v3, %v10541_v10  ;;  %v2358_v61 = vmul.f32 %v2357_v33, %v10541_v10  ;;  %v1815_v1 = vpop.f32.mrf.mxu1 }
 0x2bb   :  { %v8684_v51 = vpop.eup %8683  ;;  %v2206_v4 = vadd.f32 %v8682_v27, %v2205_v26  ;;  %v2422_v47 = vadd.f32 0.00028619796, %v2421_v11  ;;  %v7971_v52 = vclamps-f32 %v2136_v32, 1.0  ;;  %vm2287_vm0 = vweird.f32 %v10587_v48  ;;  %v1768_v11 = vpop.f32.mrf.mxu0 }
 0x2bc   :  { %v2283_v43 = vmul.f32 %v8684_v51, %v10587_v48  ;;  %v2433_v42 = vadd.f32 0.001143296, %v2432_v50  ;;  %3605 = vmatpush.bf16.msra.mxu1 %v8069_v5  ;;  %v2348_v35 = vadd.f32 0.18741608, %v2347_v0  ;;  %v2359_v55 = vadd.f32 0.4994258, %v2358_v61 }
 0x2bd   :  { %v2210_v62 = vsel %vm2209_vm15, %v8682_v27, %v2206_v4  ;;  %v2423_v16 = vmul.f32 %v2422_v47, %v10605_v31  ;;  %v10625_v28 = vmul.f32 0.70710677, %v10611_v57  ;;  %vm2288_vm1 = vweird.f32 %v8684_v51 }
 0x2be   :  { %v2215_v2 = vsel %vm10598_vm13, %v2214_v25, %v2210_v62  ;;  %v2284_v13 = vsub.f32 1.0, %v2283_v43  ;;  %v2434_v39 = vmul.f32 %v2433_v42, %v10605_v31  ;;  %v2291_v37 = vand.u32 2147483647, %v10587_v48  ;;  %vm10649_vm2 = vmor %vm2287_vm0, %vm2288_vm1 }
 0x2bf   :  { %v2360_v23 = vmul.f32 %v2359_v55, %v10541_v10  ;;  %v2424_v18 = vadd.f32 0.0036580483, %v2423_v16  ;;  %3606 = vmatmul.bf16.vlgmr.msra.gmra.mxu1 %v10513_v15  ;;  %v2499_v36 = vmul.f32 %v10625_v28, %v10625_v28  ;;  %v1767_v30 = vadd.f32 %v1766_v59, %v10428_v12 }
 0x2c0   :  { %v2285_v27 = vmul.f32 %v8684_v51, %v2284_v13  ;;  %v2435_v63 = vadd.f32 0.014752088, %v2434_v39  ;;  %v2216_v19 = vmul.f32 %v2215_v2, %v2191_v24  ;;  %v2293_v17 = vand.u32 2147483648, %v10587_v48 }
 0x2c1   :  { %v10634_v29 = vadd.f32 1.0, %v2360_v23  ;;  %v2425_v46 = vmul.f32 %v2424_v18, %v10605_v31  ;;  %v2349_v54 = vmul.f32 %v2348_v35, %v10541_v10  ;;  %v10639_v32 = vmin.f32 %v2499_v36, 16.0 }
 0x2c2   :  { %v2286_v14 = vadd.f32 %v8684_v51, %v2285_v27  ;;  %v2436_v15 = vmul.f32 %v2435_v63, %v10605_v31  ;;  %v1842_v25 = vmul.f32 0.5, %v10432_v8  ;;  %v10644_v12 = vmul.f32 0.5, %v10461_v45  ;;  %v1817_v23 = vpop.f32.mrf.mxu1 }
 0x2c3   :  { %v10654_v10 = vmul.f32 0.5, %v10502_v7  ;;  %8685 = vrcp.f32 %v10634_v29  ;;  %v3184_v58 = vadd.f32 1.0, %v7971_v52  ;;  %v2426_v8 = vadd.f32 0.05243302, %v2425_v46 }
 0x2c4   :  { %v2290_v53 = vsel %vm10649_vm2, %v8684_v51, %v2286_v14  ;;  %v10659_v26 = vadd.f32 %v1815_v1, %v1767_v30  ;;  %v7973_v45 = vclamps-f32 %v2216_v19, 1.0  ;;  %v2294_v3 = vor.u32 1.1754944e-38, %v2293_v17 }
 0x2c5   :  { %v2437_v33 = vadd.f32 0.112945676, %v2436_v15  ;;  %v2501_v48 = vmul.f32 2.1237322e-06, %v10639_v32  ;;  %v2271_v50 = vmul.f32 %v2270_v41, %v10472_v21  ;;  %vm2292_vm3 = vcmp.eq.f32.partialorder %v2291_v37, 8.507059e+37  ;;  %v1771_v15 = vpop.f32.mrf.mxu0 }
 0x2c6   :  { %v2350_v7 = vadd.f32 1.1283791, %v2349_v54  ;;  %v2427_v5 = vmul.f32 %v2426_v8, %v10605_v31  ;;  %v2295_v4 = vsel %vm2292_vm3, %v2294_v3, %v2290_v53  ;;  %v2512_v51 = vmul.f32 3.8918573e-05, %v10639_v32 }
 0x2c7   :  { %v2438_v0 = vmul.f32 %v2437_v33, %v10605_v31  ;;  %v2502_v61 = vadd.f32 0.00028619796, %v2501_v48  ;;  %v10667_v47 = vmul.f32 %v3184_v58, %v10533_v9  ;;  %v10670_v52 = vmul.f32 0.70710677, %v10659_v26 }
 0x2c8   :  { %v2428_v59 = vadd.f32 0.18741608, %v2427_v5  ;;  %v1769_v43 = vadd.f32 %v1768_v11, %v10435_v44  ;;  %v3186_v41 = vadd.f32 1.0, %v7973_v45  ;;  %v2513_v35 = vadd.f32 0.001143296, %v2512_v51 }
 0x2c9   :  { %v8686_v21 = vpop.eup %8685  ;;  %v2439_v42 = vadd.f32 0.4994258, %v2438_v0  ;;  %v2503_v62 = vmul.f32 %v2502_v61, %v10639_v32  ;;  %v2296_v55 = vmul.f32 %v2295_v4, %v2271_v50  ;;  %v2351_v16 = vmul.f32 %v2350_v7, %v10518_v22  ;;  %v13943_v50 = vld [vmem:[#allocation22_spill] sm:$0xff] }
 0x2ca   :  { %v2363_v2 = vmul.f32 %v8686_v21, %v10634_v29  ;;  %v2429_v9 = vmul.f32 %v2428_v59, %v10605_v31  ;;  %v2514_v37 = vmul.f32 %v2513_v35, %v10639_v32  ;;  %v2579_v44 = vmul.f32 %v10670_v52, %v10670_v52  ;;  %3587 = vmatmul.bf16.gmra.mxu0 %v13943_v50 }
 0x2cb   :  { %v2440_v13 = vmul.f32 %v2439_v42, %v10605_v31  ;;  %v2504_v39 = vadd.f32 0.0036580483, %v2503_v62  ;;  %v2371_v27 = vand.u32 2147483647, %v10634_v29  ;;  %v2373_v63 = vand.u32 2147483648, %v10634_v29 }
 0x2cc   :  { %v2364_v18 = vsub.f32 1.0, %v2363_v2  ;;  %v10683_v36 = vadd.f32 %v1817_v23, %v1769_v43  ;;  %v2515_v19 = vadd.f32 0.014752088, %v2514_v37  ;;  %v10688_v31 = vmin.f32 %v2579_v44, 16.0  ;;  %v1820_v2 = vpop.f32.mrf.mxu1 }
 0x2cd   :  { %v10685_v22 = vadd.f32 1.0, %v2440_v13  ;;  %v2505_v30 = vmul.f32 %v2504_v39, %v10639_v32  ;;  %vm2367_vm4 = vweird.f32 %v10634_v29  ;;  %vm2368_vm5 = vweird.f32 %v8686_v21 }
 0x2ce   :  { %v2365_v17 = vmul.f32 %v8686_v21, %v2364_v18  ;;  %v10692_v46 = vmul.f32 0.70710677, %v10683_v36  ;;  %v3218_v1 = vmul.f32 %v3186_v41, %v1842_v25  ;;  %v7975_v14 = vclamps-f32 %v2296_v55, 1.0  ;;  %vm2369_vm6 = vmor %vm2367_vm4, %vm2368_vm5 }
 0x2cf   :  { %v2430_v54 = vadd.f32 1.1283791, %v2429_v9  ;;  %8687 = vrcp.f32 %v10685_v22  ;;  %v2506_v58 = vadd.f32 0.05243302, %v2505_v30  ;;  %v2516_v53 = vmul.f32 %v2515_v19, %v10639_v32 }
 0x2d0   :  { %v2366_v24 = vadd.f32 %v8686_v21, %v2365_v17  ;;  %v2581_v8 = vmul.f32 2.1237322e-06, %v10688_v31  ;;  %vm2372_vm7 = vcmp.eq.f32.partialorder %v2371_v27, 8.507059e+37  ;;  %v2374_v45 = vor.u32 1.1754944e-38, %v2373_v63 }
 0x2d1   :  { %v2592_v29 = vmul.f32 3.8918573e-05, %v10688_v31  ;;  %v2659_v3 = vmul.f32 %v10692_v46, %v10692_v46  ;;  %v2517_v33 = vadd.f32 0.112945676, %v2516_v53  ;;  %v1772_v11 = vadd.f32 %v1771_v15, %v10475_v49 }
 0x2d2   :  { %v2370_v25 = vsel %vm2369_vm6, %v8686_v21, %v2366_v24  ;;  %v2582_v48 = vadd.f32 0.00028619796, %v2581_v8  ;;  %v10702_v7 = vadd.f32 1.0, %v7975_v14  ;;  %v2431_v61 = vmul.f32 %v2430_v54, %v10584_v6 }
 0x2d3   :  { %v2375_v5 = vsel %vm2372_vm7, %v2374_v45, %v2370_v25  ;;  %v2593_v4 = vadd.f32 0.001143296, %v2592_v29  ;;  %v10704_v0 = vmin.f32 %v2659_v3, 16.0  ;;  %v2507_v51 = vmul.f32 %v2506_v58, %v10639_v32 }
 0x2d4   :  { %v2518_v59 = vmul.f32 %v2517_v33, %v10639_v32  ;;  %v2583_v43 = vmul.f32 %v2582_v48, %v10688_v31  ;;  %vm2447_vm8 = vweird.f32 %v10685_v22  ;;  %v2376_v62 = vmul.f32 %v2375_v5, %v2351_v16 }
 0x2d5   :  { %v8688_v21 = vpop.eup %8687  ;;  %v2594_v49 = vmul.f32 %v2593_v4, %v10688_v31  ;;  %v2661_v41 = vmul.f32 2.1237322e-06, %v10704_v0  ;;  %v2672_v42 = vmul.f32 3.8918573e-05, %v10704_v0  ;;  %v2451_v6 = vand.u32 2147483647, %v10685_v22 }
 0x2d6   :  { %v2443_v35 = vmul.f32 %v8688_v21, %v10685_v22  ;;  %v2453_v55 = vand.u32 2147483648, %v10685_v22  ;;  %v2519_v9 = vadd.f32 0.4994258, %v2518_v59  ;;  %v2584_v13 = vadd.f32 0.0036580483, %v2583_v43 }
 0x2d7   :  { %v2595_v39 = vadd.f32 0.014752088, %v2594_v49  ;;  %v3246_v37 = vpack.c.bf16 %v3218_v1, %v10667_v47  ;;  %v2508_v23 = vadd.f32 0.18741608, %v2507_v51  ;;  %v2662_v18 = vadd.f32 0.00028619796, %v2661_v41  ;;  %v1773_v47 = vpop.f32.mrf.mxu0  ;;  %v1822_v41 = vpop.f32.mrf.mxu1 }
 0x2d8   :  { %v2444_v44 = vsub.f32 1.0, %v2443_v35  ;;  %v10718_v27 = vadd.f32 %v1820_v2, %v1772_v11  ;;  %v2520_v63 = vmul.f32 %v2519_v9, %v10639_v32  ;;  %v2585_v16 = vmul.f32 %v2584_v13, %v10688_v31 }
 0x2d9   :  { %v2596_v30 = vmul.f32 %v2595_v39, %v10688_v31  ;;  %v2673_v19 = vadd.f32 0.001143296, %v2672_v42  ;;  %3513 = vmatmul.bf16.gmra.mxu3 %v3246_v37  ;;  %3611 = vmatmul.bf16.gmra.mxu1 %v3246_v37  ;;  %v7977_v17 = vclamps-f32 %v2376_v62, 1.0  ;;  %vm2448_vm9 = vweird.f32 %v8688_v21 }
 0x2da   :  { %v2445_v14 = vmul.f32 %v8688_v21, %v2444_v44  ;;  %v2663_v54 = vmul.f32 %v2662_v18, %v10704_v0  ;;  %v10724_v1 = vadd.f32 1.0, %v2520_v63  ;;  %v2586_v15 = vadd.f32 0.05243302, %v2585_v16  ;;  %vm2449_vm11 = vmor %vm2447_vm8, %vm2448_vm9 }
 0x2db   :  { %v2597_v24 = vadd.f32 0.112945676, %v2596_v30  ;;  %v2674_v58 = vmul.f32 %v2673_v19, %v10704_v0  ;;  %vm2452_vm10 = vcmp.eq.f32.partialorder %v2451_v6, 8.507059e+37  ;;  %v2454_v8 = vor.u32 1.1754944e-38, %v2453_v55  ;;  %v13944_v55 = vld [vmem:[#allocation23_spill] sm:$0xff] }
 0x2dc   :  { %v2446_v53 = vadd.f32 %v8688_v21, %v2445_v14  ;;  %v2664_v45 = vadd.f32 0.0036580483, %v2663_v54  ;;  %v2509_v29 = vmul.f32 %v2508_v23, %v10639_v32  ;;  %8689 = vrcp.f32 %v10724_v1  ;;  %3592 = vmatmul.bf16.gmra.mxu0 %v13944_v55 }
 0x2dd   :  { %v10732_v3 = vmul.f32 0.70710677, %v10718_v27  ;;  %v1774_v25 = vadd.f32 %v1773_v47, %v10521_v20  ;;  %v2587_v48 = vmul.f32 %v2586_v15, %v10688_v31  ;;  %v2598_v11 = vmul.f32 %v2597_v24, %v10688_v31 }
 0x2de   :  { %v2450_v33 = vsel %vm2449_vm11, %v8688_v21, %v2446_v53  ;;  %v2665_v50 = vmul.f32 %v2664_v45, %v10704_v0  ;;  %v3190_v5 = vadd.f32 1.0, %v7977_v17  ;;  %v10739_v22 = vmul.f32 0.5, %v10560_v38 }
 0x2df   :  { %v2455_v4 = vsel %vm2452_vm10, %v2454_v8, %v2450_v33  ;;  %v2675_v32 = vadd.f32 0.014752088, %v2674_v58  ;;  %v2588_v59 = vadd.f32 0.18741608, %v2587_v48  ;;  %v2599_v43 = vadd.f32 0.4994258, %v2598_v11  ;;  %v1776_v23 = vpop.f32.mrf.mxu0 }
 0x2e0   :  { %v2456_v51 = vmul.f32 %v2455_v4, %v2431_v61  ;;  %v2666_v49 = vadd.f32 0.05243302, %v2665_v50  ;;  %v10742_v20 = vmul.f32 0.5, %v10611_v57  ;;  %v2739_v42 = vmul.f32 %v10732_v3, %v10732_v3 }
 0x2e1   :  { %v2676_v21 = vmul.f32 %v2675_v32, %v10704_v0  ;;  %v10747_v62 = vadd.f32 %v1822_v41, %v1774_v25  ;;  %v3220_v38 = vmul.f32 %v10702_v7, %v10644_v12  ;;  %v2510_v35 = vadd.f32 1.1283791, %v2509_v29 }
 0x2e2   :  { %v2531_v61 = vand.u32 2147483647, %v10724_v1  ;;  %v2600_v6 = vmul.f32 %v2599_v43, %v10688_v31  ;;  %v8690_v2 = vpop.eup %8689  ;;  %v2533_v57 = vand.u32 2147483648, %v10724_v1  ;;  %v2667_v9 = vmul.f32 %v2666_v49, %v10704_v0 }
 0x2e3   :  { %v2677_v13 = vadd.f32 0.112945676, %v2676_v21  ;;  %v10756_v39 = vmin.f32 %v2739_v42, 16.0  ;;  %v3222_v37 = vmul.f32 %v3190_v5, %v10654_v10  ;;  %v7979_v44 = vclamps-f32 %v2456_v51, 1.0 }
 0x2e4   :  { %v2523_v12 = vmul.f32 %v8690_v2, %v10724_v1  ;;  %v2589_v7 = vmul.f32 %v2588_v59, %v10688_v31  ;;  %v10761_v18 = vadd.f32 1.0, %v2600_v6  ;;  %v10766_v30 = vmul.f32 0.70710677, %v10747_v62  ;;  %v1825_v6 = vpop.f32.mrf.mxu1 }
 0x2e5   :  { %v2678_v63 = vmul.f32 %v2677_v13, %v10704_v0  ;;  %v2741_v16 = vmul.f32 2.1237322e-06, %v10756_v39  ;;  %vm2527_vm12 = vweird.f32 %v10724_v1  ;;  %vm10769_vm13 = vcmp.eq.f32.partialorder %v2531_v61, 8.507059e+37 }
 0x2e6   :  { %v2524_v19 = vsub.f32 1.0, %v2523_v12  ;;  %v2752_v17 = vmul.f32 3.8918573e-05, %v10756_v39  ;;  %v2534_v31 = vor.u32 1.1754944e-38, %v2533_v57  ;;  %8691 = vrcp.f32 %v10761_v18 }
 0x2e7   :  { %v2668_v14 = vadd.f32 0.18741608, %v2667_v9  ;;  %v1777_v54 = vadd.f32 %v1776_v23, %v10528_v56  ;;  %vm2528_vm14 = vweird.f32 %v8690_v2  ;;  %v2679_v15 = vadd.f32 0.4994258, %v2678_v63 }
 0x2e8   :  { %v2525_v47 = vmul.f32 %v8690_v2, %v2524_v19  ;;  %v2742_v24 = vadd.f32 0.00028619796, %v2741_v16  ;;  %v10776_v58 = vadd.f32 1.0, %v7979_v44  ;;  %v2590_v53 = vadd.f32 1.1283791, %v2589_v7  ;;  %vm10785_vm15 = vmor %vm2527_vm12, %vm2528_vm14  ;;  %v1732_v7 = vpop.f32.mrf.mxu3 }
 0x2e9   :  { %v2753_v8 = vadd.f32 0.001143296, %v2752_v17  ;;  %v2819_v45 = vmul.f32 %v10766_v30, %v10766_v30  ;;  %v2611_v25 = vand.u32 2147483647, %v10761_v18  ;;  %v2680_v33 = vmul.f32 %v2679_v15, %v10704_v0 }
 0x2ea   :  { %v2526_v29 = vadd.f32 %v8690_v2, %v2525_v47  ;;  %v2743_v48 = vmul.f32 %v2742_v24, %v10756_v39  ;;  %v2669_v11 = vmul.f32 %v2668_v14, %v10704_v0  ;;  %v3248_v4 = vpack.c.bf16 %v3222_v37, %v3220_v38 }
 0x2eb   :  { %v2754_v50 = vmul.f32 %v2753_v8, %v10756_v39  ;;  %v10791_v5 = vmin.f32 %v2819_v45, 16.0  ;;  %v2613_v51 = vand.u32 2147483648, %v10761_v18  ;;  %v10796_v59 = vadd.f32 1.0, %v2680_v33 }
 0x2ec   :  { %v2530_v32 = vsel %vm10785_vm15, %v8690_v2, %v2526_v29  ;;  %v2744_v43 = vadd.f32 0.0036580483, %v2743_v48  ;;  %v8692_v1 = vpop.eup %8691  ;;  %v2511_v49 = vmul.f32 %v2510_v35, %v10625_v28  ;;  %3518 = vmatmul.bf16.gmra.mxu3 %v3248_v4  ;;  %3616 = vmatmul.bf16.gmra.mxu1 %v3248_v4  ;;  %v2591_v38 = vmul.f32 %v2590_v53, %v10670_v52  ;;  %v1778_v53 = vpop.f32.mrf.mxu0 }
 0x2ed   :  { %v2755_v41 = vadd.f32 0.014752088, %v2754_v50  ;;  %v2821_v21 = vmul.f32 2.1237322e-06, %v10791_v5  ;;  %v2832_v0 = vmul.f32 3.8918573e-05, %v10791_v5  ;;  %v2535_v42 = vsel %vm10769_vm13, %v2534_v31, %v2530_v32 }
 0x2ee   :  { %v2603_v61 = vmul.f32 %v8692_v1, %v10761_v18  ;;  %8693 = vrcp.f32 %v10796_v59  ;;  %vm2607_vm0 = vweird.f32 %v10761_v18  ;;  %v2670_v28 = vadd.f32 1.1283791, %v2669_v11 }
 0x2ef   :  { %v2745_v35 = vmul.f32 %v2744_v43, %v10756_v39  ;;  %v10808_v55 = vadd.f32 %v1825_v6, %v1777_v54  ;;  %vm10810_vm1 = vcmp.eq.f32.partialorder %v2611_v25, 8.507059e+37  ;;  %v2756_v9 = vmul.f32 %v2755_v41, %v10756_v39  ;;  %v1827_v6 = vpop.f32.mrf.mxu1 }
 0x2f0   :  { %v2604_v2 = vsub.f32 1.0, %v2603_v61  ;;  %v2822_v52 = vadd.f32 0.00028619796, %v2821_v21  ;;  %v2536_v13 = vmul.f32 %v2535_v42, %v2511_v49  ;;  %v2614_v37 = vor.u32 1.1754944e-38, %v2613_v51 }
 0x2f1   :  { %v2746_v44 = vadd.f32 0.05243302, %v2745_v35  ;;  %v2833_v12 = vadd.f32 0.001143296, %v2832_v0  ;;  %vm2608_vm2 = vweird.f32 %v8692_v1  ;;  %v2757_v63 = vadd.f32 0.112945676, %v2756_v9  ;;  %v1734_v9 = vpop.f32.mrf.mxu3 }
 0x2f2   :  { %v2605_v23 = vmul.f32 %v8692_v1, %v2604_v2  ;;  %v2823_v16 = vmul.f32 %v2822_v52, %v10791_v5  ;;  %v2671_v19 = vmul.f32 %v2670_v28, %v10692_v46  ;;  %v10820_v31 = vmul.f32 0.70710677, %v10808_v55  ;;  %vm2609_vm3 = vmor %vm2607_vm0, %vm2608_vm2 }
 0x2f3   :  { %v2747_v10 = vmul.f32 %v2746_v44, %v10756_v39  ;;  %v2834_v17 = vmul.f32 %v2833_v12, %v10791_v5  ;;  %v2691_v47 = vand.u32 2147483647, %v10796_v59  ;;  %v2758_v15 = vmul.f32 %v2757_v63, %v10756_v39 }
 0x2f4   :  { %v8694_v14 = vpop.eup %8693  ;;  %v2606_v54 = vadd.f32 %v8692_v1, %v2605_v23  ;;  %v2824_v24 = vadd.f32 0.0036580483, %v2823_v16  ;;  %v7981_v8 = vclamps-f32 %v2536_v13, 1.0  ;;  %v2693_v45 = vand.u32 2147483648, %v10796_v59  ;;  %v1781_v16 = vpop.f32.mrf.mxu0 }
 0x2f5   :  { %v2683_v46 = vmul.f32 %v8694_v14, %v10796_v59  ;;  %v2835_v29 = vadd.f32 0.014752088, %v2834_v17  ;;  %v2759_v33 = vadd.f32 0.4994258, %v2758_v15  ;;  %v2899_v56 = vmul.f32 %v10820_v31, %v10820_v31 }
 0x2f6   :  { %v2610_v25 = vsel %vm2609_vm3, %v8692_v1, %v2606_v54  ;;  %v2825_v48 = vmul.f32 %v2824_v24, %v10791_v5  ;;  %v2748_v4 = vadd.f32 0.18741608, %v2747_v10  ;;  %vm2687_vm4 = vweird.f32 %v10796_v59 }
 0x2f7   :  { %v2615_v11 = vsel %vm10810_vm1, %v2614_v37, %v2610_v25  ;;  %v2684_v50 = vsub.f32 1.0, %v2683_v46  ;;  %v2836_v18 = vmul.f32 %v2835_v29, %v10791_v5  ;;  %v2760_v32 = vmul.f32 %v2759_v33, %v10756_v39 }
 0x2f8   :  { %v2826_v51 = vadd.f32 0.05243302, %v2825_v48  ;;  %v10836_v43 = vmin.f32 %v2899_v56, 16.0  ;;  %v3194_v1 = vadd.f32 1.0, %v7981_v8  ;;  %vm2688_vm5 = vweird.f32 %v8694_v14  ;;  %v1830_v56 = vpop.f32.mrf.mxu1 }
 0x2f9   :  { %v2685_v49 = vmul.f32 %v8694_v14, %v2684_v50  ;;  %v2837_v41 = vadd.f32 0.112945676, %v2836_v18  ;;  %v2616_v21 = vmul.f32 %v2615_v11, %v2591_v38  ;;  %vm10838_vm6 = vcmp.eq.f32.partialorder %v2691_v47, 8.507059e+37  ;;  %vm2689_vm7 = vmor %vm2687_vm4, %vm2688_vm5 }
 0x2fa   :  { %v10842_v42 = vadd.f32 1.0, %v2760_v32  ;;  %v2827_v61 = vmul.f32 %v2826_v51, %v10791_v5  ;;  %v2694_v35 = vor.u32 1.1754944e-38, %v2693_v45  ;;  %v2749_v2 = vmul.f32 %v2748_v4, %v10756_v39 }
 0x2fb   :  { %v2686_v28 = vadd.f32 %v8694_v14, %v2685_v49  ;;  %v2838_v57 = vmul.f32 %v2837_v41, %v10791_v5  ;;  %v2901_v38 = vmul.f32 2.1237322e-06, %v10836_v43  ;;  %v2912_v52 = vmul.f32 3.8918573e-05, %v10836_v43 }
 0x2fc   :  { %8695 = vrcp.f32 %v10842_v42  ;;  %v1779_v13 = vadd.f32 %v1778_v53, %v10530_v40  ;;  %v3226_v37 = vmul.f32 %v3194_v1, %v10742_v20  ;;  %v2828_v12 = vadd.f32 0.18741608, %v2827_v61  ;;  %v1783_v61 = vpop.f32.mrf.mxu0 }
 0x2fd   :  { %v2690_v44 = vsel %vm2689_vm7, %v8694_v14, %v2686_v28  ;;  %v2839_v23 = vadd.f32 0.4994258, %v2838_v57  ;;  %v1733_v39 = vadd.f32 %v1732_v7, %v10567_v60  ;;  %v7983_v63 = vclamps-f32 %v2616_v21, 1.0 }
 0x2fe   :  { %v2695_v59 = vsel %vm10838_vm6, %v2694_v35, %v2690_v44  ;;  %v1735_v10 = vadd.f32 %v1734_v9, %v10569_v34  ;;  %v3224_v17 = vmul.f32 %v10776_v58, %v10739_v22  ;;  %v2750_v47 = vadd.f32 1.1283791, %v2749_v2 }
 0x2ff   :  { %v2696_v54 = vmul.f32 %v2695_v59, %v2671_v19  ;;  %v2840_v40 = vmul.f32 %v2839_v23, %v10791_v5  ;;  %v2902_v20 = vadd.f32 0.00028619796, %v2901_v38  ;;  %v2913_v14 = vadd.f32 0.001143296, %v2912_v52 }
 0x300   :  { %v10861_v15 = vadd.f32 %v1827_v6, %v1779_v13  ;;  %v2829_v60 = vmul.f32 %v2828_v12, %v10791_v5  ;;  %v3250_v53 = vpack.c.bf16 %v3226_v37, %v3224_v17  ;;  %v3196_v46 = vadd.f32 1.0, %v7983_v63 }
 0x301   :  { %v7985_v24 = vclamps-f32 %v2696_v54, 1.0  ;;  %v10864_v7 = vadd.f32 1.0, %v2840_v40  ;;  %v2914_v34 = vmul.f32 %v2913_v14, %v10836_v43  ;;  %v1782_v58 = vadd.f32 %v1781_v16, %v1733_v39  ;;  %v1832_v14 = vpop.f32.mrf.mxu1 }
 0x302   :  { %v8696_v8 = vpop.eup %8695  ;;  %v10868_v22 = vmul.f32 0.70710677, %v10861_v15  ;;  %v1852_v19 = vmul.f32 0.5, %v10659_v26  ;;  %v1854_v45 = vmul.f32 0.5, %v10683_v36  ;;  %v2771_v25 = vand.u32 2147483647, %v10842_v42  ;;  %3523 = vmatmul.bf16.gmra.mxu3 %v3250_v53  ;;  %3621 = vmatmul.bf16.gmra.mxu1 %v3250_v53 }
 0x303   :  { %v2763_v29 = vmul.f32 %v8696_v8, %v10842_v42  ;;  %v2751_v5 = vmul.f32 %v2750_v47, %v10732_v3  ;;  %v2773_v33 = vand.u32 2147483648, %v10842_v42  ;;  %8697 = vrcp.f32 %v10864_v7 }
 0x304   :  { %v2903_v48 = vmul.f32 %v2902_v20, %v10836_v43  ;;  %v3198_v11 = vadd.f32 1.0, %v7985_v24  ;;  %v2830_v26 = vadd.f32 1.1283791, %v2829_v60  ;;  %v2915_v4 = vadd.f32 0.014752088, %v2914_v34 }
 0x305   :  { %v2764_v50 = vsub.f32 1.0, %v2763_v29  ;;  %v3228_v36 = vmul.f32 %v3196_v46, %v1852_v19  ;;  %vm2767_vm8 = vweird.f32 %v10842_v42  ;;  %v2979_v18 = vmul.f32 %v10868_v22, %v10868_v22 }
 0x306   :  { %v10881_v32 = vadd.f32 %v1830_v56, %v1782_v58  ;;  %vm2768_vm9 = vweird.f32 %v8696_v8  ;;  %vm10883_vm10 = vcmp.eq.f32.partialorder %v2771_v25, 8.507059e+37  ;;  %v2916_v1 = vmul.f32 %v2915_v4, %v10836_v43 }
 0x307   :  { %v2765_v3 = vmul.f32 %v8696_v8, %v2764_v50  ;;  %v2774_v49 = vor.u32 1.1754944e-38, %v2773_v33  ;;  %v2904_v41 = vadd.f32 0.0036580483, %v2903_v48  ;;  %v10888_v21 = vmin.f32 %v2979_v18, 16.0  ;;  %vm10896_vm11 = vmor %vm2767_vm8, %vm2768_vm9 }
 0x308   :  { %v10891_v0 = vmul.f32 0.70710677, %v10881_v32  ;;  %v3230_v6 = vmul.f32 %v3198_v11, %v1854_v45  ;;  %v2831_v35 = vmul.f32 %v2830_v26, %v10766_v30  ;;  %v2917_v2 = vadd.f32 0.112945676, %v2916_v1 }
 0x309   :  { %v2766_v28 = vadd.f32 %v8696_v8, %v2765_v3  ;;  %v8698_v57 = vpop.eup %8697  ;;  %vm2847_vm12 = vweird.f32 %v10864_v7  ;;  %v2981_v38 = vmul.f32 2.1237322e-06, %v10888_v21  ;;  %v2992_v52 = vmul.f32 3.8918573e-05, %v10888_v21 }
 0x30a   :  { %v3059_v13 = vmul.f32 %v10891_v0, %v10891_v0  ;;  %v2843_v37 = vmul.f32 %v8698_v57, %v10864_v7  ;;  %v2851_v42 = vand.u32 2147483647, %v10864_v7  ;;  %v1784_v44 = vadd.f32 %v1783_v61, %v1735_v10 }
 0x30b   :  { %v2770_v30 = vsel %vm10896_vm11, %v8696_v8, %v2766_v28  ;;  %v2853_v12 = vand.u32 2147483648, %v10864_v7  ;;  %v2918_v23 = vmul.f32 %v2917_v2, %v10836_v43  ;;  %v2982_v39 = vadd.f32 0.00028619796, %v2981_v38 }
 0x30c   :  { %v2993_v63 = vadd.f32 0.001143296, %v2992_v52  ;;  %v2844_v59 = vsub.f32 1.0, %v2843_v37  ;;  %v2905_v16 = vmul.f32 %v2904_v41, %v10836_v43  ;;  %v10912_v17 = vmin.f32 %v3059_v13, 16.0 }
 0x30d   :  { %v3252_v54 = vpack.c.bf16 %v3230_v6, %v3228_v36  ;;  %v2775_v40 = vsel %vm10883_vm10, %v2774_v49, %v2770_v30  ;;  %v2919_v47 = vadd.f32 0.4994258, %v2918_v23  ;;  %v2983_v20 = vmul.f32 %v2982_v39, %v10888_v21 }
 0x30e   :  { %v2994_v10 = vmul.f32 %v2993_v63, %v10888_v21  ;;  %v2845_v24 = vmul.f32 %v8698_v57, %v2844_v59  ;;  %vm2848_vm13 = vweird.f32 %v8698_v57  ;;  %v3061_v60 = vmul.f32 2.1237322e-06, %v10912_v17 }
 0x30f   :  { %v10919_v53 = vadd.f32 %v1832_v14, %v1784_v44  ;;  %v2920_v8 = vmul.f32 %v2919_v47, %v10836_v43  ;;  %v2984_v46 = vadd.f32 0.0036580483, %v2983_v20  ;;  %v3072_v58 = vmul.f32 3.8918573e-05, %v10912_v17  ;;  %vm2849_vm14 = vmor %vm2847_vm12, %vm2848_vm13 }
 0x310   :  { %v2995_v34 = vadd.f32 0.014752088, %v2994_v10  ;;  %v2776_v19 = vmul.f32 %v2775_v40, %v2751_v5  ;;  %v2846_v45 = vadd.f32 %v8698_v57, %v2845_v24  ;;  %v2854_v29 = vor.u32 1.1754944e-38, %v2853_v12 }
 0x311   :  { %v3062_v25 = vadd.f32 0.00028619796, %v3061_v60  ;;  %v2906_v33 = vadd.f32 0.05243302, %v2905_v16  ;;  %v10925_v48 = vadd.f32 1.0, %v2920_v8  ;;  %vm2852_vm15 = vcmp.eq.f32.partialorder %v2851_v42, 8.507059e+37 }
 0x312   :  { %v2996_v56 = vmul.f32 %v2995_v34, %v10888_v21  ;;  %v3073_v11 = vadd.f32 0.001143296, %v3072_v58  ;;  %v2850_v50 = vsel %vm2849_vm14, %v8698_v57, %v2846_v45  ;;  %v2985_v26 = vmul.f32 %v2984_v46, %v10888_v21  ;;  %3528 = vmatmul.bf16.gmra.mxu3 %v3252_v54  ;;  %3626 = vmatmul.bf16.gmra.mxu1 %v3252_v54 }
 0x313   :  { %v10930_v4 = vmul.f32 0.70710677, %v10919_v53  ;;  %v2855_v5 = vsel %vm2852_vm15, %v2854_v29, %v2850_v50  ;;  %8699 = vrcp.f32 %v10925_v48  ;;  %v3063_v7 = vmul.f32 %v3062_v25, %v10912_v17 }
 0x314   :  { %v7987_v36 = vclamps-f32 %v2776_v19, 1.0  ;;  %v2856_v18 = vmul.f32 %v2855_v5, %v2831_v35  ;;  %v2997_v3 = vadd.f32 0.112945676, %v2996_v56  ;;  %v2907_v51 = vmul.f32 %v2906_v33, %v10836_v43 }
 0x315   :  { %v3074_v1 = vmul.f32 %v3073_v11, %v10912_v17  ;;  %v3139_v49 = vmul.f32 %v10930_v4, %v10930_v4  ;;  %v2986_v61 = vadd.f32 0.05243302, %v2985_v26  ;;  %v3064_v28 = vadd.f32 0.0036580483, %v3063_v7 }
 0x316   :  { %v7989_v41 = vclamps-f32 %v2856_v18, 1.0  ;;  %v2998_v6 = vmul.f32 %v2997_v3, %v10888_v21  ;;  %v3200_v9 = vadd.f32 1.0, %v7987_v36  ;;  %v1858_v38 = vmul.f32 0.5, %v10747_v62 }
 0x317   :  { %v3075_v2 = vadd.f32 0.014752088, %v3074_v1  ;;  %v10939_v57 = vmin.f32 %v3139_v49, 16.0  ;;  %v2908_v30 = vadd.f32 0.18741608, %v2907_v51  ;;  %v1856_v12 = vmul.f32 0.5, %v10718_v27 }
 0x318   :  { %v3202_v35 = vadd.f32 1.0, %v7989_v41  ;;  %v2999_v52 = vadd.f32 0.4994258, %v2998_v6  ;;  %v2987_v63 = vmul.f32 %v2986_v61, %v10888_v21  ;;  %v3065_v62 = vmul.f32 %v3064_v28, %v10912_v17 }
 0x319   :  { %v8700_v13 = vpop.eup %8699  ;;  %v3076_v37 = vmul.f32 %v3075_v2, %v10912_v17  ;;  %v3141_v42 = vmul.f32 2.1237322e-06, %v10939_v57  ;;  %v3152_v44 = vmul.f32 3.8918573e-05, %v10939_v57  ;;  %v3232_v40 = vmul.f32 %v3200_v9, %v1856_v12  ;;  %v8216_v9 = vld [vmem:[#allocation10 + $0x70] sm:$0xf] }
 0x31a   :  { %v3234_v23 = vmul.f32 %v3202_v35, %v1858_v38  ;;  %v2923_v39 = vmul.f32 %v8700_v13, %v10925_v48  ;;  %v3000_v59 = vmul.f32 %v2999_v52, %v10888_v21  ;;  %v2909_v10 = vmul.f32 %v2908_v30, %v10836_v43  ;;  %v8280_v30 = vld [vmem:[#allocation10 + $0xf0] sm:$0xf]  ;;  %v8613_v12 = vld [vmem:[#allocation10 + $0xf4] sm:$0xf0] }
 0x31b   :  { %v3077_v16 = vadd.f32 0.112945676, %v3076_v37  ;;  %v3142_v54 = vadd.f32 0.00028619796, %v3141_v42  ;;  %v3153_v20 = vadd.f32 0.001143296, %v3152_v44  ;;  %vm2928_vm0 = vweird.f32 %v8700_v13 }
 0x31c   :  { %v2924_v47 = vsub.f32 1.0, %v2923_v39  ;;  %v10951_v14 = vadd.f32 1.0, %v3000_v59  ;;  %v2988_v8 = vadd.f32 0.18741608, %v2987_v63  ;;  %v3254_v34 = vpack.c.bf16 %v3234_v23, %v3232_v40  ;;  %v8596_v63 = vld [vmem:[#allocation10 + $0x74] sm:$0xf] }
 0x31d   :  { %v3078_v27 = vmul.f32 %v3077_v16, %v10912_v17  ;;  %v3143_v24 = vmul.f32 %v3142_v54, %v10939_v57  ;;  %v3154_v46 = vmul.f32 %v3153_v20, %v10939_v57  ;;  %v3066_v58 = vadd.f32 0.05243302, %v3065_v62  ;;  %v8218_v59 = vld [vmem:[#allocation10 + $0x78] sm:$0xf0]  ;;  %v8612_v54 = vld [vmem:[#allocation10 + $0xf4] sm:$0xf] }
 0x31e   :  { %v2925_v60 = vmul.f32 %v8700_v13, %v2924_v47  ;;  %8701 = vrcp.f32 %v10951_v14  ;;  %v2933_v45 = vand.u32 2147483648, %v10925_v48  ;;  %vm2927_vm1 = vweird.f32 %v10925_v48  ;;  %v8282_v40 = vld [vmem:[#allocation10 + $0xf8] sm:$0xf0]  ;;  %v8208_v47 = vld [vmem:[#allocation10 + $0x60] sm:$0xf] }
 0x31f   :  { %v3079_v29 = vadd.f32 0.4994258, %v3078_v27  ;;  %v3144_v43 = vadd.f32 0.0036580483, %v3143_v24  ;;  %v2931_v25 = vand.u32 2147483647, %v10925_v48  ;;  %vm10960_vm2 = vmor %vm2927_vm1, %vm2928_vm0  ;;  %v2989_v50 = vmul.f32 %v2988_v8, %v10888_v21 }
 0x320   :  { %v2926_v19 = vadd.f32 %v8700_v13, %v2925_v60  ;;  %v3155_v33 = vadd.f32 0.014752088, %v3154_v46  ;;  %v2910_v56 = vadd.f32 1.1283791, %v2909_v10  ;;  %v3067_v7 = vmul.f32 %v3066_v58, %v10912_v17  ;;  %v8595_v8 = vld [vmem:[#allocation10 + $0x64] sm:$0xf0] }
 0x321   :  { %v3080_v26 = vmul.f32 %v3079_v29, %v10912_v17  ;;  %v3145_v36 = vmul.f32 %v3144_v43, %v10939_v57  ;;  %v2934_v18 = vor.u32 1.1754944e-38, %v2933_v45  ;;  %vm2932_vm3 = vcmp.eq.f32.partialorder %v2931_v25, 8.507059e+37  ;;  %v8272_v46 = vld [vmem:[#allocation10 + $0xe0] sm:$0xf]  ;;  %v8594_v29 = vld [vmem:[#allocation10 + $0x64] sm:$0xf] }
 0x322   :  { %3533 = vmatmul.bf16.gmra.mxu3 %v3254_v34  ;;  %3631 = vmatmul.bf16.gmra.mxu1 %v3254_v34  ;;  %v2930_v5 = vsel %vm10960_vm2, %v8700_v13, %v2926_v19  ;;  %v3156_v48 = vmul.f32 %v3155_v33, %v10939_v57  ;;  %v3011_v21 = vand.u32 2147483647, %v10951_v14  ;;  %v2990_v41 = vadd.f32 1.1283791, %v2989_v50  ;;  %v8597_v13 = vld [vmem:[#allocation10 + $0x74] sm:$0xf0] }
 0x323   :  { %v10971_v3 = vadd.f32 1.0, %v3080_v26  ;;  %v2935_v49 = vsel %vm2932_vm3, %v2934_v18, %v2930_v5  ;;  %v2911_v6 = vmul.f32 %v2910_v56, %v10820_v31  ;;  %v3068_v28 = vadd.f32 0.18741608, %v3067_v7  ;;  %v8611_v34 = vld [vmem:[#allocation10 + $0xe4] sm:$0xf0] }
 0x324   :  { %v8702_v51 = vpop.eup %8701  ;;  %v3157_v1 = vadd.f32 0.112945676, %v3156_v48  ;;  %v3146_v2 = vadd.f32 0.05243302, %v3145_v36  ;;  %v10978_v38 = vmul.f32 0.5, %v10808_v55  ;;  %vm10983_vm4 = vcmp.eq.f32.partialorder %v3011_v21, 8.507059e+37 }
 0x325   :  { %v3003_v61 = vmul.f32 %v8702_v51, %v10951_v14  ;;  %8703 = vrcp.f32 %v10971_v3  ;;  %v10981_v37 = vmul.f32 %v2935_v49, %v2911_v6  ;;  %v3013_v44 = vand.u32 2147483648, %v10951_v14  ;;  %v8210_v43 = vld [vmem:[#allocation10 + $0x68] sm:$0xf0]  ;;  %v8610_v50 = vld [vmem:[#allocation10 + $0xe4] sm:$0xf] }
 0x326   :  { %v3158_v52 = vmul.f32 %v3157_v1, %v10939_v57  ;;  %v8217_v31 = vor.u32 %v8597_v13, %v8216_v9  ;;  %vm3008_vm5 = vweird.f32 %v8702_v51  ;;  %v8281_v55 = vor.u32 %v8613_v12, %v8280_v30  ;;  %v8274_v26 = vld [vmem:[#allocation10 + $0xe8] sm:$0xf0]  ;;  %v8200_v48 = vld [vmem:[#allocation10 + $0x50] sm:$0xf]  ;;  %v8593_v18 = vld [vmem:[#allocation10 + $0x54] sm:$0xf0] }
 0x327   :  { %v3004_v35 = vsub.f32 1.0, %v3003_v61  ;;  %v2991_v62 = vmul.f32 %v2990_v41, %v10868_v22  ;;  %vm3007_vm6 = vweird.f32 %v10951_v14  ;;  %v8221_v16 = vor.u32 %v8596_v63, %v8218_v59  ;;  %v8264_v49 = vld [vmem:[#allocation10 + $0xd0] sm:$0xf]  ;;  %v8609_v41 = vld [vmem:[#allocation10 + $0xd4] sm:$0xf0] }
 0x328   :  { %v3159_v39 = vadd.f32 0.4994258, %v3158_v52  ;;  %5335 = vmatpush.bf16.msra.mxu2 %v8217_v31  ;;  %v3147_v27 = vmul.f32 %v3146_v2, %v10939_v57  ;;  %5384 = vmatpush.bf16.msra.mxu3 %v8281_v55  ;;  %v8285_v60 = vor.u32 %v8612_v54, %v8282_v40  ;;  %v7991_v22 = vclamps-f32 %v10981_v37, 1.0  ;;  %vm3009_vm7 = vmor %vm3007_vm6, %vm3008_vm5  ;;  %v8592_v9 = vld [vmem:[#allocation10 + $0x54] sm:$0xf] }
 0x329   :  { %v3005_v23 = vmul.f32 %v8702_v51, %v3004_v35  ;;  %v3014_v58 = vor.u32 1.1754944e-38, %v3013_v44  ;;  %5433 = vmatpush.bf16.msrb.mxu0 %v8221_v16  ;;  %v8209_v45 = vor.u32 %v8595_v8, %v8208_v47  ;;  %v8273_v56 = vor.u32 %v8611_v34, %v8272_v46  ;;  %v8202_v35 = vld [vmem:[#allocation10 + $0x58] sm:$0xf0]  ;;  %v8192_v31 = vld [vmem:[#allocation10 + $0x40] sm:$0xf]  ;;  %v3558_v34 = vpop.f32.mrf.mxu0 }
 0x32a   :  { %v3160_v24 = vmul.f32 %v3159_v39, %v10939_v57  ;;  %5482 = vmatpush.bf16.msrb.mxu1 %v8285_v60  ;;  %v8213_v11 = vor.u32 %v8594_v29, %v8210_v43  ;;  %v3093_v7 = vand.u32 2147483648, %v10971_v3  ;;  %v8277_v36 = vor.u32 %v8610_v50, %v8274_v26  ;;  %v8591_v12 = vld [vmem:[#allocation10 + $0x44] sm:$0xf0]  ;;  %v8256_v59 = vld [vmem:[#allocation10 + $0xc0] sm:$0xf] }
 0x32b   :  { %v10990_v20 = vpop.eup %8703  ;;  %v3006_v10 = vadd.f32 %v8702_v51, %v3005_v23  ;;  %v3148_v1 = vadd.f32 0.18741608, %v3147_v27  ;;  %v8201_v6 = vor.u32 %v8593_v18, %v8200_v48  ;;  %v8265_v2 = vor.u32 %v8609_v41, %v8264_v49 }
 0x32c   :  { %v3083_v19 = vmul.f32 %v10990_v20, %v10971_v3  ;;  %v11000_v33 = vadd.f32 1.0, %v3160_v24  ;;  %5336 = vmatpush.bf16.msra.mxu2 %v8209_v45  ;;  %5385 = vmatpush.bf16.msra.mxu3 %v8273_v56  ;;  %vm3088_vm8 = vweird.f32 %v10990_v20  ;;  %v3204_v52 = vadd.f32 1.0, %v7991_v22 }
 0x32d   :  { %v3010_v25 = vsel %vm3009_vm7, %v8702_v51, %v3006_v10  ;;  %v3069_v51 = vmul.f32 %v3068_v28, %v10912_v17  ;;  %5434 = vmatpush.bf16.msrb.mxu0 %v8213_v11  ;;  %v8205_v30 = vor.u32 %v8592_v9, %v8202_v35  ;;  %v8608_v17 = vld [vmem:[#allocation10 + $0xd4] sm:$0xf]  ;;  %v8266_v28 = vld [vmem:[#allocation10 + $0xd8] sm:$0xf0]  ;;  %vm3087_vm9 = vweird.f32 %v10971_v3  ;;  %v3460_v11 = vpop.f32.mrf.mxu2 }
 0x32e   :  { %v3015_v14 = vsel %vm10983_vm4, %v3014_v58, %v3010_v25  ;;  %v3084_v5 = vsub.f32 1.0, %v3083_v19  ;;  %8705 = vrcp.f32 %v11000_v33  ;;  %5483 = vmatpush.bf16.msrb.mxu1 %v8277_v36  ;;  %v3091_v42 = vand.u32 2147483647, %v10971_v3  ;;  %vm11015_vm10 = vmor %vm3087_vm9, %vm3088_vm8 }
 0x32f   :  { %v3016_v21 = vmul.f32 %v3015_v14, %v2991_v62  ;;  %v8269_v44 = vor.u32 %v8608_v17, %v8266_v28  ;;  %v1862_v23 = vmul.f32 0.5, %v10861_v15  ;;  %v8193_v63 = vor.u32 %v8591_v12, %v8192_v31  ;;  %v8607_v62 = vld [vmem:[#allocation10 + $0xc4] sm:$0xf0] }
 0x330   :  { %v3085_v61 = vmul.f32 %v10990_v20, %v3084_v5  ;;  %5337 = vmatpush.bf16.msra.mxu2 %v8201_v6  ;;  %5386 = vmatpush.bf16.msra.mxu3 %v8265_v2  ;;  %v3070_v16 = vadd.f32 1.1283791, %v3069_v51  ;;  %v8257_v54 = vor.u32 %v8607_v62, %v8256_v59  ;;  %v3236_v15 = vmul.f32 %v3204_v52, %v10978_v38  ;;  %v3681_v38 = vld [vmem:[%s13778_s6] sm:$0x3] }
 0x331   :  { %v7993_v13 = vclamps-f32 %v3016_v21, 1.0  ;;  %5435 = vmatpush.bf16.msrb.mxu0 %v8205_v30  ;;  %v3094_v10 = vor.u32 1.1754944e-38, %v3093_v7  ;;  %v3149_v27 = vmul.f32 %v3148_v1, %v10939_v57  ;;  %vm3092_vm11 = vcmp.eq.f32.partialorder %v3091_v42, 8.507059e+37  ;;  %v3560_v6 = vpop.f32.mrf.mxu0 }
 0x332   :  { %v3086_v37 = vadd.f32 %v10990_v20, %v3085_v61  ;;  %5484 = vmatpush.bf16.msrb.mxu1 %v8269_v44  ;;  %v3071_v46 = vmul.f32 %v3070_v16, %v10891_v0  ;;  %v3173_v58 = vand.u32 2147483648, %v11000_v33  ;;  %v11033_v57 = vstv %s13772_s0 }
 0x333   :  { %v3206_v39 = vadd.f32 1.0, %v7993_v13  ;;  %v3150_v22 = vadd.f32 1.1283791, %v3149_v27  ;;  %v3171_v0 = vand.u32 2147483647, %v11000_v33  ;;  %v11036_v25 = vperm.slane %v3681_v38, 1 }
 0x334   :  { %v3090_v3 = vsel %vm11015_vm10, %v10990_v20, %v3086_v37  ;;  %v8706_v40 = vpop.eup %8705  ;;  %5338 = vmatpush.bf16.msra.mxu2 %v8193_v63  ;;  %5387 = vmatpush.bf16.msra.mxu3 %v8257_v54  ;;  %vm3167_vm13 = vweird.f32 %v11000_v33  ;;  %v3174_v50 = vor.u32 1.1754944e-38, %v3173_v58  ;;  %v11048_v49 = vperm.slane %v3681_v38, 0 }
 0x335   :  { %v3238_v47 = vmul.f32 %v3206_v39, %v1862_v23  ;;  %v3163_v24 = vmul.f32 %v8706_v40, %v11000_v33  ;;  %v3095_v60 = vsel %vm3092_vm11, %v3094_v10, %v3090_v3  ;;  %vm3168_vm12 = vweird.f32 %v8706_v40  ;;  %v3462_v12 = vpop.f32.mrf.mxu2 }
 0x336   :  { %v3096_v19 = vmul.f32 %v3095_v60, %v3071_v46  ;;  %vm3169_vm14 = vmor %vm3167_vm13, %vm3168_vm12  ;;  %v3151_v5 = vmul.f32 %v3150_v22, %v10930_v4  ;;  %vm3172_vm15 = vcmp.eq.f32.partialorder %v3171_v0, 8.507059e+37  ;;  %v1864_v52 = vmul.f32 0.5, %v10881_v32  ;;  %v8194_v0 = vld [vmem:[#allocation10 + $0x48] sm:$0xf0] }
 0x337   :  { %v3256_v8 = vpack.c.bf16 %v3238_v47, %v3236_v15  ;;  %v3164_v20 = vsub.f32 1.0, %v3163_v24  ;;  %v1866_v13 = vmul.f32 0.5, %v10919_v53 }
 0x338   :  { %v7995_v14 = vclamps-f32 %v3096_v19, 1.0 }
 0x339   :  { %3538 = vmatmul.bf16.gmra.mxu3 %v3256_v8  ;;  %3636 = vmatmul.bf16.gmra.mxu1 %v3256_v8  ;;  %v3165_v45 = vmul.f32 %v8706_v40, %v3164_v20 }
 0x33a   :  { %v3509_v36 = vpop.f32.mrf.mxu3  ;;  %v3208_v41 = vadd.f32 1.0, %v7995_v14 }
 0x33b   :  { %v3166_v56 = vadd.f32 %v8706_v40, %v3165_v45  ;;  %v3510_v21 = vadd.f32 %v3509_v36, %v3460_v11  ;;  %v8590_v45 = vld [vmem:[#allocation10 + $0x44] sm:$0xf]  ;;  %v8258_v11 = vld [vmem:[#allocation10 + $0xc8] sm:$0xf0] }
 0x33c   :  { %v3607_v29 = vpop.f32.mrf.mxu1  ;;  %v3240_v42 = vmul.f32 %v3208_v41, %v1864_v52 }
 0x33d   :  { %v3608_v43 = vadd.f32 %v3607_v29, %v3558_v34  ;;  %v3170_v7 = vsel %vm3169_vm14, %v8706_v40, %v3166_v56  ;;  %v3649_v33 = vmul.f32 %v11033_v57, %v3510_v21  ;;  %v8606_v29 = vld [vmem:[#allocation10 + $0xc4] sm:$0xf]  ;;  %v8197_v56 = vor.u32 %v8590_v45, %v8194_v0 }
 0x33e   :  { %v3175_v48 = vsel %vm3172_vm15, %v3174_v50, %v3170_v7  ;;  %v8261_v14 = vor.u32 %v8606_v29, %v8258_v11 }
 0x33f   :  { %v3650_v26 = vmul.f32 %v11033_v57, %v3608_v43  ;;  %v3176_v51 = vmul.f32 %v3175_v48, %v3151_v5  ;;  %v11053_v9 = vadd.f32 %v11048_v49, %v3649_v33  ;;  %5436 = vmatpush.bf16.msrb.mxu0 %v8197_v56 }
 0x340   :  { %5485 = vmatpush.bf16.msrb.mxu1 %v8261_v14 }
 0x341   :  { %v11042_v18 = vadd.f32 %v11036_v25, %v3650_v26  ;;  %v7997_v61 = vclamps-f32 %v3176_v51, 1.0  ;;  %v11060_v28 = vmul.f32 0.70710677, %v11053_v9  ;;  %v3563_v26 = vpop.f32.mrf.mxu0 }
 0x342   :  { %v3511_v31 = vpop.f32.mrf.mxu3 }
 0x343   :  { %v11045_v1 = vmul.f32 0.70710677, %v11042_v18  ;;  %v3210_v30 = vadd.f32 1.0, %v7997_v61  ;;  %v3783_v39 = vmul.f32 %v11060_v28, %v11060_v28  ;;  %v3512_v55 = vadd.f32 %v3511_v31, %v3462_v12 }
 0x344   :  { %v3609_v4 = vpop.f32.mrf.mxu1 }
 0x345   :  { %v3823_v2 = vmul.f32 %v11045_v1, %v11045_v1  ;;  %v3610_v35 = vadd.f32 %v3609_v4, %v3560_v6  ;;  %v3242_v44 = vmul.f32 %v3210_v30, %v1866_v13  ;;  %v11069_v59 = vmin.f32 %v3783_v39, 16.0 }
 0x346   :  { %v3651_v3 = vmul.f32 %v11033_v57, %v3512_v55 }
 0x347   :  { %v11057_v17 = vmin.f32 %v3823_v2, 16.0  ;;  %v3652_v37 = vmul.f32 %v11033_v57, %v3610_v35  ;;  %v3258_v53 = vpack.c.bf16 %v3242_v44, %v3240_v42  ;;  %v3796_v40 = vmul.f32 3.8918573e-05, %v11069_v59 }
 0x348   :  { %v3785_v15 = vmul.f32 2.1237322e-06, %v11069_v59  ;;  %v11082_v10 = vadd.f32 %v11048_v49, %v3651_v3 }
 0x349   :  { %v3836_v23 = vmul.f32 3.8918573e-05, %v11057_v17  ;;  %v11067_v32 = vadd.f32 %v11036_v25, %v3652_v37  ;;  %3543 = vmatmul.bf16.gmra.mxu3 %v3258_v53  ;;  %3641 = vmatmul.bf16.gmra.mxu1 %v3258_v53  ;;  %v3825_v62 = vmul.f32 2.1237322e-06, %v11057_v17  ;;  %v3797_v60 = vadd.f32 0.001143296, %v3796_v40 }
 0x34a   :  { %v11088_v20 = vmul.f32 0.70710677, %v11082_v10  ;;  %v3786_v34 = vadd.f32 0.00028619796, %v3785_v15 }
 0x34b   :  { %v3837_v63 = vadd.f32 0.001143296, %v3836_v23  ;;  %v11073_v16 = vmul.f32 0.70710677, %v11067_v32  ;;  %v3826_v24 = vadd.f32 0.00028619796, %v3825_v62  ;;  %v3798_v38 = vmul.f32 %v3797_v60, %v11069_v59 }
 0x34c   :  { %v3863_v50 = vmul.f32 %v11088_v20, %v11088_v20  ;;  %v3787_v5 = vmul.f32 %v3786_v34, %v11069_v59  ;;  %v8248_v34 = vld [vmem:[#allocation10 + $0xb0] sm:$0xf] }
 0x34d   :  { %v3838_v54 = vmul.f32 %v3837_v63, %v11057_v17  ;;  %v3903_v47 = vmul.f32 %v11073_v16, %v11073_v16  ;;  %v3827_v19 = vmul.f32 %v3826_v24, %v11057_v17  ;;  %v3799_v7 = vadd.f32 0.014752088, %v3798_v38 }
 0x34e   :  { %v11100_v4 = vmin.f32 %v3863_v50, 16.0  ;;  %v3788_v2 = vadd.f32 0.0036580483, %v3787_v5 }
 0x34f   :  { %v3839_v27 = vadd.f32 0.014752088, %v3838_v54  ;;  %v11084_v8 = vmin.f32 %v3903_v47, 16.0  ;;  %v3828_v33 = vadd.f32 0.0036580483, %v3827_v19  ;;  %v3800_v41 = vmul.f32 %v3799_v7, %v11069_v59 }
 0x350   :  { %v3865_v12 = vmul.f32 2.1237322e-06, %v11100_v4  ;;  %v3789_v23 = vmul.f32 %v3788_v2, %v11069_v59  ;;  %v8184_v47 = vld [vmem:[#allocation10 + $0x30] sm:$0xf]  ;;  %v3876_v19 = vmul.f32 3.8918573e-05, %v11100_v4 }
 0x351   :  { %v3840_v46 = vmul.f32 %v3839_v27, %v11057_v17  ;;  %v3916_v22 = vmul.f32 3.8918573e-05, %v11084_v8  ;;  %v3801_v35 = vadd.f32 0.112945676, %v3800_v41  ;;  %v3829_v37 = vmul.f32 %v3828_v33, %v11057_v17  ;;  %v3565_v41 = vpop.f32.mrf.mxu0 }
 0x352   :  { %v3905_v44 = vmul.f32 2.1237322e-06, %v11084_v8  ;;  %v3866_v40 = vadd.f32 0.00028619796, %v3865_v12  ;;  %v3790_v15 = vadd.f32 0.05243302, %v3789_v23 }
 0x353   :  { %v3841_v58 = vadd.f32 0.112945676, %v3840_v46  ;;  %v3917_v36 = vadd.f32 0.001143296, %v3916_v22  ;;  %v3802_v42 = vmul.f32 %v3801_v35, %v11069_v59  ;;  %v3830_v63 = vadd.f32 0.05243302, %v3829_v37 }
 0x354   :  { %v3906_v62 = vadd.f32 0.00028619796, %v3905_v44  ;;  %v8589_v46 = vld [vmem:[#allocation10 + $0x34] sm:$0xf0]  ;;  %v3867_v0 = vmul.f32 %v3866_v40, %v11100_v4  ;;  %v3791_v14 = vmul.f32 %v3790_v15, %v11069_v59  ;;  %v11141_v37 = vmul.f32 0.5, %v11042_v18 }
 0x355   :  { %v3842_v43 = vmul.f32 %v3841_v58, %v11057_v17  ;;  %v3918_v61 = vmul.f32 %v3917_v36, %v11084_v8  ;;  %v3803_v39 = vadd.f32 0.4994258, %v3802_v42  ;;  %v3831_v38 = vmul.f32 %v3830_v63, %v11057_v17  ;;  %v8605_v58 = vld [vmem:[#allocation10 + $0xb4] sm:$0xf0]  ;;  %v8604_v12 = vld [vmem:[#allocation10 + $0xb4] sm:$0xf] }
 0x356   :  { %v3612_v48 = vpop.f32.mrf.mxu1  ;;  %v3907_v22 = vmul.f32 %v3906_v62, %v11084_v8  ;;  %v8185_v56 = vor.u32 %v8589_v46, %v8184_v47  ;;  %v8249_v11 = vor.u32 %v8605_v58, %v8248_v34  ;;  %v3792_v35 = vadd.f32 0.18741608, %v3791_v14  ;;  %v8250_v63 = vld [vmem:[#allocation10 + $0xb8] sm:$0xf0] }
 0x357   :  { %v3843_v21 = vadd.f32 0.4994258, %v3842_v43  ;;  %v3613_v51 = vadd.f32 %v3612_v48, %v3563_v26  ;;  %v3919_v52 = vadd.f32 0.014752088, %v3918_v61  ;;  %v3804_v3 = vmul.f32 %v3803_v39, %v11069_v59  ;;  %v3465_v26 = vpop.f32.mrf.mxu2  ;;  %v8186_v14 = vld [vmem:[#allocation10 + $0x38] sm:$0xf0] }
 0x358   :  { %v3832_v7 = vadd.f32 0.18741608, %v3831_v38  ;;  %v3908_v36 = vadd.f32 0.0036580483, %v3907_v22  ;;  %5339 = vmatpush.bf16.msra.mxu2 %v8185_v56  ;;  %5388 = vmatpush.bf16.msra.mxu3 %v8249_v11  ;;  %v3877_v48 = vadd.f32 0.001143296, %v3876_v19  ;;  %v3793_v15 = vmul.f32 %v3792_v35, %v11069_v59 }
 0x359   :  { %v3844_v6 = vmul.f32 %v3843_v21, %v11057_v17  ;;  %v3654_v13 = vmul.f32 %v11033_v57, %v3613_v51  ;;  %v3920_v31 = vmul.f32 %v3919_v52, %v11084_v8  ;;  %v11125_v45 = vadd.f32 1.0, %v3804_v3  ;;  %v8588_v56 = vld [vmem:[#allocation10 + $0x34] sm:$0xf] }
 0x35a   :  { %v3868_v51 = vadd.f32 0.0036580483, %v3867_v0  ;;  %v3833_v42 = vmul.f32 %v3832_v7, %v11057_v17  ;;  %v3909_v44 = vmul.f32 %v3908_v36, %v11084_v8  ;;  %v11147_v39 = vmul.f32 0.5, %v11053_v9 }
 0x35b   :  { %v11103_v30 = vadd.f32 1.0, %v3844_v6  ;;  %v11113_v53 = vadd.f32 %v11036_v25, %v3654_v13  ;;  %v3921_v55 = vadd.f32 0.112945676, %v3920_v31  ;;  %v3878_v6 = vmul.f32 %v3877_v48, %v11100_v4  ;;  %v8176_v48 = vld [vmem:[#allocation10 + $0x20] sm:$0xf] }
 0x35c   :  { %v3514_v29 = vpop.f32.mrf.mxu3  ;;  %v11158_v47 = vmul.f32 0.5, %v11067_v32  ;;  %v3834_v46 = vadd.f32 1.1283791, %v3833_v42  ;;  %v3910_v38 = vadd.f32 0.05243302, %v3909_v44  ;;  %v11164_v22 = vmul.f32 0.5, %v11082_v10 }
 0x35d   :  { %8707 = vrcp.f32 %v11103_v30  ;;  %v3922_v54 = vmul.f32 %v3921_v55, %v11084_v8  ;;  %v11118_v27 = vmul.f32 0.70710677, %v11113_v53  ;;  %v3515_v33 = vadd.f32 %v3514_v29, %v3465_v26 }
 0x35e   :  { %v3614_v21 = vpop.f32.mrf.mxu1  ;;  %8709 = vrcp.f32 %v11125_v45  ;;  %v3879_v31 = vadd.f32 0.014752088, %v3878_v6  ;;  %v3855_v23 = vand.u32 2147483647, %v11103_v30  ;;  %v3869_v55 = vmul.f32 %v3868_v51, %v11100_v4  ;;  %v8240_v51 = vld [vmem:[#allocation10 + $0xa0] sm:$0xf] }
 0x35f   :  { %v3923_v60 = vadd.f32 0.4994258, %v3922_v54  ;;  %v3983_v50 = vmul.f32 %v11118_v27, %v11118_v27  ;;  %v3615_v13 = vadd.f32 %v3614_v21, %v3565_v41  ;;  %v3653_v62 = vmul.f32 %v11033_v57, %v3515_v33  ;;  %v3467_v58 = vpop.f32.mrf.mxu2  ;;  %v8587_v21 = vld [vmem:[#allocation10 + $0x24] sm:$0xf0] }
 0x360   :  { %v3880_v18 = vmul.f32 %v3879_v31, %v11100_v4  ;;  %v8253_v54 = vor.u32 %v8604_v12, %v8250_v63  ;;  %v3857_v34 = vand.u32 2147483648, %v11103_v30  ;;  %vm11166_vm0 = vcmp.eq.f32.partialorder %v3855_v23, 8.507059e+37 }
 0x361   :  { %v3924_v5 = vmul.f32 %v3923_v60, %v11084_v8  ;;  %v11136_v2 = vmin.f32 %v3983_v50, 16.0  ;;  %v3656_v9 = vmul.f32 %v11033_v57, %v3615_v13  ;;  %v3870_v32 = vadd.f32 0.05243302, %v3869_v55 }
 0x362   :  { %5486 = vmatpush.bf16.msrb.mxu1 %v8253_v54  ;;  %v3881_v59 = vadd.f32 0.112945676, %v3880_v18  ;;  %v11171_v0 = vadd.f32 %v11048_v49, %v3653_v62  ;;  %v3794_v11 = vadd.f32 1.1283791, %v3793_v15  ;;  %v11179_v26 = vmul.f32 0.5, %v11113_v53  ;;  %v3568_v62 = vpop.f32.mrf.mxu0 }
 0x363   :  { %v11120_v24 = vpop.eup %8707  ;;  %v11138_v52 = vadd.f32 1.0, %v3924_v5  ;;  %v3985_v17 = vmul.f32 2.1237322e-06, %v11136_v2  ;;  %v11182_v5 = vadd.f32 %v11036_v25, %v3656_v9  ;;  %v3835_v7 = vmul.f32 %v3834_v46, %v11045_v1  ;;  %v8242_v53 = vld [vmem:[#allocation10 + $0xa8] sm:$0xf0] }
 0x364   :  { %v3847_v43 = vmul.f32 %v11120_v24, %v11103_v30  ;;  %v11154_v40 = vpop.eup %8709  ;;  %v3516_v60 = vpop.f32.mrf.mxu3  ;;  %vm3852_vm1 = vweird.f32 %v11120_v24  ;;  %v3882_v50 = vmul.f32 %v3881_v59, %v11100_v4  ;;  %vm3851_vm2 = vweird.f32 %v11103_v30  ;;  %v8603_v30 = vld [vmem:[#allocation10 + $0xa4] sm:$0xf0] }
 0x365   :  { %8711 = vrcp.f32 %v11138_v52  ;;  %v3986_v10 = vadd.f32 0.00028619796, %v3985_v17  ;;  %v3911_v36 = vmul.f32 %v3910_v38, %v11084_v8  ;;  %vm11191_vm3 = vmor %vm3851_vm2, %vm3852_vm1  ;;  %v3871_v41 = vmul.f32 %v3870_v32, %v11100_v4 }
 0x366   :  { %v3848_v61 = vsub.f32 1.0, %v3847_v43  ;;  %v3807_v43 = vmul.f32 %v11154_v40, %v11125_v45  ;;  %v8189_v6 = vor.u32 %v8588_v56, %v8186_v14  ;;  %v11197_v1 = vmul.f32 0.70710677, %v11171_v0  ;;  %v8586_v14 = vld [vmem:[#allocation10 + $0x24] sm:$0xf] }
 0x367   :  { %v3858_v13 = vor.u32 1.1754944e-38, %v3857_v34  ;;  %v3987_v44 = vmul.f32 %v3986_v10, %v11136_v2  ;;  %v3817_v12 = vand.u32 2147483648, %v11125_v45  ;;  %v11206_v55 = vmul.f32 0.70710677, %v11182_v5  ;;  %v3470_v59 = vpop.f32.mrf.mxu2 }
 0x368   :  { %v3849_v3 = vmul.f32 %v11120_v24, %v3848_v61  ;;  %v3883_v61 = vadd.f32 0.4994258, %v3882_v50  ;;  %v3808_v42 = vsub.f32 1.0, %v3807_v43  ;;  %5437 = vmatpush.bf16.msrb.mxu0 %v8189_v6  ;;  %v8177_v63 = vor.u32 %v8587_v21, %v8176_v48 }
 0x369   :  { %v3617_v31 = vpop.f32.mrf.mxu1  ;;  %v3912_v18 = vadd.f32 0.18741608, %v3911_v36  ;;  %v8241_v17 = vor.u32 %v8603_v30, %v8240_v51  ;;  %v3872_v15 = vadd.f32 0.18741608, %v3871_v41  ;;  %v3943_v46 = vmul.f32 %v11197_v1, %v11197_v1  ;;  %v8178_v36 = vld [vmem:[#allocation10 + $0x28] sm:$0xf0] }
 0x36a   :  { %v3850_v29 = vadd.f32 %v11120_v24, %v3849_v3  ;;  %v3884_v23 = vmul.f32 %v3883_v61, %v11100_v4  ;;  %v11209_v3 = vmul.f32 %v3794_v11, %v11060_v28  ;;  %5340 = vmatpush.bf16.msra.mxu2 %v8177_v63  ;;  %v3809_v38 = vmul.f32 %v11154_v40, %v3808_v42  ;;  %v8602_v51 = vld [vmem:[#allocation10 + $0xa4] sm:$0xf] }
 0x36b   :  { %v11187_v33 = vpop.eup %8711  ;;  %vm3811_vm4 = vweird.f32 %v11125_v45  ;;  %v3988_v28 = vadd.f32 0.0036580483, %v3987_v44  ;;  %5389 = vmatpush.bf16.msra.mxu3 %v8241_v17  ;;  %v3517_v32 = vadd.f32 %v3516_v60, %v3467_v58  ;;  %v11222_v19 = vor.u32 1.1754944e-38, %v3817_v12  ;;  %v3570_v17 = vpop.f32.mrf.mxu0 }
 0x36c   :  { %v3854_v35 = vsel %vm11191_vm3, %v11120_v24, %v3850_v29  ;;  %v3927_v24 = vmul.f32 %v11187_v33, %v11138_v52  ;;  %v11215_v9 = vadd.f32 1.0, %v3884_v23  ;;  %v3815_v29 = vand.u32 2147483647, %v11125_v45  ;;  %v8168_v45 = vld [vmem:[#allocation10 + $0x10] sm:$0xf] }
 0x36d   :  { %v3859_v54 = vsel %vm11166_vm0, %v3858_v13, %v3854_v35  ;;  %v4063_v43 = vmul.f32 %v11206_v55, %v11206_v55  ;;  %v3913_v56 = vmul.f32 %v3912_v18, %v11084_v8  ;;  %v3937_v50 = vand.u32 2147483648, %v11138_v52 }
 0x36e   :  { %8713 = vrcp.f32 %v11215_v9  ;;  %v11227_v10 = vmul.f32 %v3859_v54, %v3835_v7  ;;  %v3928_v11 = vsub.f32 1.0, %v3927_v24  ;;  %v3873_v60 = vmul.f32 %v3872_v15, %v11100_v4 }
 0x36f   :  { %v3519_v34 = vpop.f32.mrf.mxu3  ;;  %v11232_v58 = vmin.f32 %v3943_v46, 16.0  ;;  %v3655_v48 = vmul.f32 %v11033_v57, %v3517_v32  ;;  %v3618_v21 = vadd.f32 %v3617_v31, %v3568_v62  ;;  %v3810_v41 = vadd.f32 %v11154_v40, %v3809_v38 }
 0x370   :  { %vm3812_vm5 = vweird.f32 %v11154_v40  ;;  %v3935_v8 = vand.u32 2147483647, %v11138_v52  ;;  %v3989_v7 = vmul.f32 %v3988_v28, %v11136_v2  ;;  %v11239_v61 = vmin.f32 %v4063_v43, 16.0  ;;  %v8585_v28 = vld [vmem:[#allocation10 + $0x14] sm:$0xf0] }
 0x371   :  { %v11242_v6 = vadd.f32 %v11048_v49, %v3655_v48  ;;  %v3658_v4 = vmul.f32 %v11033_v57, %v3618_v21  ;;  %v8181_v30 = vor.u32 %v8586_v14, %v8178_v36  ;;  %vm11245_vm6 = vcmp.eq.f32.partialorder %v3815_v29, 8.507059e+37  ;;  %v3619_v12 = vpop.f32.mrf.mxu1  ;;  %vm11265_vm7 = vmor %vm3811_vm4, %vm3812_vm5  ;;  %v8232_v48 = vld [vmem:[#allocation10 + $0x90] sm:$0xf]  ;;  %v8601_v21 = vld [vmem:[#allocation10 + $0x94] sm:$0xf0] }
 0x372   :  { %v11249_v13 = vadd.f32 1.1283791, %v3913_v56  ;;  %v3929_v42 = vmul.f32 %v11187_v33, %v3928_v11  ;;  %v3938_v44 = vor.u32 1.1754944e-38, %v3937_v50  ;;  %v8245_v31 = vor.u32 %v8602_v51, %v8242_v53  ;;  %v3472_v51 = vpop.f32.mrf.mxu2 }
 0x373   :  { %v8127_v63 = vclamps-f32 %v11227_v10, 1.0  ;;  %v11255_v62 = vadd.f32 1.1283791, %v3873_v60  ;;  %v3945_v18 = vmul.f32 2.1237322e-06, %v11232_v58  ;;  %v11259_v24 = vadd.f32 %v11036_v25, %v3658_v4  ;;  %5438 = vmatpush.bf16.msrb.mxu0 %v8181_v30 }
 0x374   :  { %v11252_v23 = vpop.eup %8713  ;;  %vm3931_vm8 = vweird.f32 %v11138_v52  ;;  %vm3932_vm9 = vweird.f32 %v11187_v33  ;;  %vm11271_vm10 = vcmp.eq.f32.partialorder %v3935_v8, 8.507059e+37  ;;  %v11278_v38 = vmul.f32 0.70710677, %v11242_v6  ;;  %5487 = vmatpush.bf16.msrb.mxu1 %v8245_v31 }
 0x375   :  { %v3887_v46 = vmul.f32 %v11252_v23, %v11215_v9  ;;  %v3814_v32 = vsel %vm11265_vm7, %v11154_v40, %v3810_v41  ;;  %v3990_v29 = vadd.f32 0.05243302, %v3989_v7  ;;  %v4065_v43 = vmul.f32 2.1237322e-06, %v11239_v61  ;;  %vm11299_vm12 = vmor %vm3931_vm8, %vm3932_vm9 }
 0x376   :  { %v11285_v56 = vmul.f32 0.70710677, %v11259_v24  ;;  %v3930_v50 = vadd.f32 %v11187_v33, %v3929_v42  ;;  %v3520_v36 = vadd.f32 %v3519_v34, %v3470_v59  ;;  %v3620_v60 = vadd.f32 %v3619_v12, %v3570_v17 }
 0x377   :  { %v3521_v11 = vpop.f32.mrf.mxu3  ;;  %v3888_v14 = vsub.f32 1.0, %v3887_v46  ;;  %vm3892_vm11 = vweird.f32 %v11252_v23  ;;  %v3897_v53 = vand.u32 2147483648, %v11215_v9  ;;  %v3946_v40 = vadd.f32 0.00028619796, %v3945_v18  ;;  %v8600_v46 = vld [vmem:[#allocation10 + $0x94] sm:$0xf] }
 0x378   :  { %v8169_v41 = vor.u32 %v8585_v28, %v8168_v45  ;;  %v4023_v7 = vmul.f32 %v11278_v38, %v11278_v38  ;;  %v3657_v4 = vmul.f32 %v11033_v57, %v3520_v36  ;;  %v3660_v30 = vmul.f32 %v11033_v57, %v3620_v60  ;;  %v3573_v60 = vpop.f32.mrf.mxu0 }
 0x379   :  { %v3889_v8 = vmul.f32 %v11252_v23, %v3888_v14  ;;  %v3895_v59 = vand.u32 2147483647, %v11215_v9  ;;  %v4066_v42 = vadd.f32 0.00028619796, %v4065_v43  ;;  %v4143_v31 = vmul.f32 %v11285_v56, %v11285_v56 }
 0x37a   :  { %5341 = vmatpush.bf16.msra.mxu2 %v8169_v41  ;;  %v8233_v12 = vor.u32 %v8601_v21, %v8232_v48  ;;  %v3934_v18 = vsel %vm11299_vm12, %v11187_v33, %v3930_v50  ;;  %vm3891_vm13 = vweird.f32 %v11215_v9  ;;  %v11312_v52 = vadd.f32 %v11048_v49, %v3657_v4 }
 0x37b   :  { %v3890_v17 = vadd.f32 %v11252_v23, %v3889_v8  ;;  %v3819_v54 = vsel %vm11245_vm6, %v11222_v19, %v3814_v32  ;;  %vm11319_vm14 = vmor %vm3891_vm13, %vm3892_vm11  ;;  %v3898_v45 = vor.u32 1.1754944e-38, %v3897_v53  ;;  %v3947_v33 = vmul.f32 %v3946_v40, %v11232_v58  ;;  %v3475_v8 = vpop.f32.mrf.mxu2 }
 0x37c   :  { %v11325_v28 = vadd.f32 %v11036_v25, %v3660_v30  ;;  %5390 = vmatpush.bf16.msra.mxu3 %v8233_v12  ;;  %v11330_v43 = vmin.f32 %v4023_v7, 16.0  ;;  %v11333_v19 = vmul.f32 0.70710677, %v11312_v52  ;;  %v3522_v35 = vadd.f32 %v3521_v11, %v3472_v51 }
 0x37d   :  { %v3894_v9 = vsel %vm11319_vm14, %v11252_v23, %v3890_v17  ;;  %v3939_v50 = vsel %vm11271_vm10, %v3938_v44, %v3934_v18  ;;  %vm3896_vm15 = vcmp.eq.f32.partialorder %v3895_v59, 8.507059e+37  ;;  %v4067_v14 = vmul.f32 %v4066_v42, %v11239_v61  ;;  %v8584_v42 = vld [vmem:[#allocation10 + $0x14] sm:$0xf] }
 0x37e   :  { %v11338_v36 = vmin.f32 %v4143_v31, 16.0  ;;  %v3915_v48 = vmul.f32 %v11249_v13, %v11073_v16  ;;  %v3899_v23 = vsel %vm3896_vm15, %v3898_v45, %v3894_v9  ;;  %v3991_v21 = vmul.f32 %v3990_v29, %v11136_v2  ;;  %v8170_v31 = vld [vmem:[#allocation10 + $0x18] sm:$0xf0] }
 0x37f   :  { %v3622_v32 = vpop.f32.mrf.mxu1  ;;  %v4103_v53 = vmul.f32 %v11333_v19, %v11333_v19  ;;  %v5064_v11 = vadd.f32 1.0, %v8127_v63  ;;  %v3820_v44 = vmul.f32 %v3819_v54, %v11209_v3  ;;  %v3875_v15 = vmul.f32 %v11255_v62, %v11088_v20 }
 0x380   :  { %v11351_v51 = vmul.f32 0.70710677, %v11325_v28  ;;  %v3940_v41 = vmul.f32 %v3939_v50, %v3915_v48  ;;  %v3948_v16 = vadd.f32 0.0036580483, %v3947_v33  ;;  %v4025_v13 = vmul.f32 2.1237322e-06, %v11330_v43 }
 0x381   :  { %v3659_v29 = vmul.f32 %v11033_v57, %v3522_v35  ;;  %v3900_v7 = vmul.f32 %v3899_v23, %v3875_v15  ;;  %v4068_v4 = vadd.f32 0.0036580483, %v4067_v14  ;;  %v4145_v10 = vmul.f32 2.1237322e-06, %v11338_v36  ;;  %v3575_v15 = vpop.f32.mrf.mxu0 }
 0x382   :  { %v4223_v3 = vmul.f32 %v11351_v51, %v11351_v51  ;;  %v3992_v63 = vadd.f32 0.18741608, %v3991_v21  ;;  %v11358_v20 = vmin.f32 %v4103_v53, 16.0  ;;  %v3623_v30 = vadd.f32 %v3622_v32, %v3573_v60  ;;  %v8234_v32 = vld [vmem:[#allocation10 + $0x98] sm:$0xf0] }
 0x383   :  { %v11361_v62 = vadd.f32 %v11048_v49, %v3659_v29  ;;  %v8126_v34 = vclamps-f32 %v3820_v44, 1.0  ;;  %v8129_v12 = vclamps-f32 %v3940_v41, 1.0  ;;  %v11366_v18 = vmul.f32 0.5, %v11171_v0 }
 0x384   :  { %v11363_v59 = vmin.f32 %v4223_v3, 16.0  ;;  %v3949_v17 = vmul.f32 %v3948_v16, %v11232_v58  ;;  %v4026_v54 = vadd.f32 0.00028619796, %v4025_v13  ;;  %v8128_v45 = vclamps-f32 %v3900_v7, 1.0 }
 0x385   :  { %v3524_v40 = vpop.f32.mrf.mxu3  ;;  %13977 = vst [vmem:[#allocation24_spill] sm:$0xff] %v11366_v18  ;;  %v4069_v33 = vmul.f32 %v4068_v4, %v11239_v61  ;;  %v4146_v9 = vadd.f32 0.00028619796, %v4145_v10  ;;  %v3662_v35 = vmul.f32 %v11033_v57, %v3623_v30  ;;  %v11372_v50 = vmul.f32 %v5064_v11, %v11141_v37 }
 0x386   :  { %v4105_v14 = vmul.f32 2.1237322e-06, %v11358_v20  ;;  %v11376_v60 = vmul.f32 0.70710677, %v11361_v62  ;;  %v8173_v0 = vor.u32 %v8584_v42, %v8170_v31  ;;  %v5063_v23 = vadd.f32 1.0, %v8126_v34  ;;  %v3477_v42 = vpop.f32.mrf.mxu2 }
 0x387   :  { %v3624_v48 = vpop.f32.mrf.mxu1  ;;  %v3993_v21 = vmul.f32 %v3992_v63, %v11136_v2  ;;  %v4225_v53 = vmul.f32 2.1237322e-06, %v11363_v59  ;;  %v11381_v44 = vadd.f32 %v11036_v25, %v3662_v35  ;;  %v3950_v41 = vadd.f32 0.05243302, %v3949_v17 }
 0x388   :  { %v4027_v37 = vmul.f32 %v4026_v54, %v11330_v43  ;;  %5439 = vmatpush.bf16.msrb.mxu0 %v8173_v0  ;;  %v8237_v11 = vor.u32 %v8600_v46, %v8234_v32  ;;  %v3525_v16 = vadd.f32 %v3524_v40, %v3475_v8  ;;  %v5066_v13 = vadd.f32 1.0, %v8129_v12 }
 0x389   :  { %v5065_v29 = vadd.f32 1.0, %v8128_v45  ;;  %v4070_v7 = vadd.f32 0.05243302, %v4069_v33  ;;  %v4147_v4 = vmul.f32 %v4146_v9, %v11338_v36  ;;  %v4106_v3 = vadd.f32 0.00028619796, %v4105_v14 }
 0x38a   :  { %v4183_v63 = vmul.f32 %v11376_v60, %v11376_v60  ;;  %v11388_v30 = vmul.f32 0.70710677, %v11381_v44  ;;  %5488 = vmatpush.bf16.msrb.mxu1 %v8237_v11  ;;  %v3661_v34 = vmul.f32 %v11033_v57, %v3525_v16  ;;  %v3994_v31 = vadd.f32 1.1283791, %v3993_v21  ;;  %v8583_v14 = vld [vmem:[#allocation10 + $0x4] sm:$0xf0] }
 0x38b   :  { %v11392_v40 = vmul.f32 0.5, %v11182_v5  ;;  %v4226_v8 = vadd.f32 0.00028619796, %v4225_v53  ;;  %v3625_v12 = vadd.f32 %v3624_v48, %v3575_v15  ;;  %v3951_v17 = vmul.f32 %v3950_v41, %v11232_v58  ;;  %v8160_v5 = vld [vmem:[#allocation10] sm:$0xf] }
 0x38c   :  { %v4028_v54 = vadd.f32 0.0036580483, %v4027_v37  ;;  %v4303_v46 = vmul.f32 %v11388_v30, %v11388_v30  ;;  %v11398_v45 = vadd.f32 %v11048_v49, %v3661_v34  ;;  %v5095_v33 = vmul.f32 %v5063_v23, %v11147_v39  ;;  %v8224_v15 = vld [vmem:[#allocation10 + $0x80] sm:$0xf]  ;;  %v8599_v23 = vld [vmem:[#allocation10 + $0x84] sm:$0xf0]  ;;  %v3578_v34 = vpop.f32.mrf.mxu0 }
 0x38d   :  { %v3526_v10 = vpop.f32.mrf.mxu3  ;;  %13978 = vst [vmem:[#allocation25_spill] sm:$0xff] %v11392_v40  ;;  %v5097_v9 = vmul.f32 %v5065_v29, %v11164_v22  ;;  %v4148_v35 = vadd.f32 0.0036580483, %v4147_v4  ;;  %v3664_v32 = vmul.f32 %v11033_v57, %v3625_v12  ;;  %v5098_v0 = vmul.f32 %v5066_v13, %v11158_v47 }
 0x38e   :  { %v4071_v48 = vmul.f32 %v4070_v7, %v11239_v61  ;;  %v4107_v21 = vmul.f32 %v4106_v3, %v11358_v20  ;;  %v11406_v53 = vmin.f32 %v4183_v63, 16.0  ;;  %v4227_v41 = vmul.f32 %v4226_v8, %v11363_v59 }
 0x38f   :  { %v11409_v37 = vmin.f32 %v4303_v46, 16.0  ;;  %v11412_v39 = vmul.f32 0.70710677, %v11398_v45  ;;  %v11415_v22 = vadd.f32 %v11036_v25, %v3664_v32  ;;  %v11418_v47 = vmul.f32 %v3994_v31, %v11118_v27  ;;  %v3627_v29 = vpop.f32.mrf.mxu1 }
 0x390   :  { %v3952_v11 = vadd.f32 0.18741608, %v3951_v17  ;;  %v4029_v16 = vmul.f32 %v4028_v54, %v11330_v43  ;;  %v8161_v13 = vor.u32 %v8583_v14, %v8160_v5  ;;  %v11421_v7 = vpack.c.bf16 %v5097_v9, %v5095_v33 }
 0x391   :  { %v4149_v4 = vmul.f32 %v4148_v35, %v11338_v36  ;;  %v4263_v3 = vmul.f32 %v11412_v39, %v11412_v39  ;;  %v11427_v63 = vmul.f32 0.70710677, %v11415_v22  ;;  %v4072_v8 = vadd.f32 0.18741608, %v4071_v48  ;;  %v3480_v48 = vpop.f32.mrf.mxu2 }
 0x392   :  { %v4108_v12 = vadd.f32 0.0036580483, %v4107_v21  ;;  %v4185_v27 = vmul.f32 2.1237322e-06, %v11406_v53  ;;  %5342 = vmatpush.bf16.msra.mxu2 %v8161_v13  ;;  %v8225_v31 = vor.u32 %v8599_v23, %v8224_v15  ;;  %v5128_v17 = vpack.c.bf16 %v5098_v0, %v11372_v50  ;;  %v8598_v15 = vld [vmem:[#allocation10 + $0x84] sm:$0xf] }
 0x393   :  { %v4228_v54 = vadd.f32 0.0036580483, %v4227_v41  ;;  %v4305_v46 = vmul.f32 2.1237322e-06, %v11409_v37  ;;  %v3527_v33 = vadd.f32 %v3526_v10, %v3477_v42  ;;  %v11433_v35 = vmul.f32 0.5, %v11242_v6 }
 0x394   :  { %v4030_v32 = vadd.f32 0.05243302, %v4029_v16  ;;  %v11435_v5 = vmin.f32 %v4263_v3, 16.0  ;;  %5391 = vmatpush.bf16.msra.mxu3 %v8225_v31  ;;  %v3628_v14 = vadd.f32 %v3627_v29, %v3578_v34  ;;  %v3953_v21 = vmul.f32 %v3952_v11, %v11232_v58  ;;  %v8226_v10 = vld [vmem:[#allocation10 + $0x88] sm:$0xf0] }
 0x395   :  { %v3529_v9 = vpop.f32.mrf.mxu3  ;;  %13979 = vst [vmem:[#allocation39_spill] sm:$0xff] %v11433_v35  ;;  %v4150_v13 = vadd.f32 0.05243302, %v4149_v4  ;;  %v4383_v50 = vmul.f32 %v11427_v63, %v11427_v63  ;;  %v3663_v0 = vmul.f32 %v11033_v57, %v3527_v33  ;;  %5343 = vmatmul.bf16.vlgmr.msra.gmra.mxu2 %v11421_v7  ;;  %v4073_v6 = vmul.f32 %v4072_v8, %v11239_v61  ;;  %v8162_v31 = vld [vmem:[#allocation10 + $0x8] sm:$0xf0] }
 0x396   :  { %v4109_v42 = vmul.f32 %v4108_v12, %v11358_v20  ;;  %v4186_v41 = vadd.f32 0.00028619796, %v4185_v27  ;;  %v3666_v23 = vmul.f32 %v11033_v57, %v3628_v14  ;;  %v11446_v16 = vmul.f32 0.5, %v11259_v24  ;;  %v8582_v27 = vld [vmem:[#allocation10 + $0x4] sm:$0xf] }
 0x397   :  { %v4229_v11 = vmul.f32 %v4228_v54, %v11363_v59  ;;  %v4306_v29 = vadd.f32 0.00028619796, %v4305_v46  ;;  %v11450_v4 = vadd.f32 %v11048_v49, %v3663_v0  ;;  %5392 = vmatmul.bf16.vlgmr.msra.gmra.mxu3 %v5128_v17  ;;  %v4031_v3 = vmul.f32 %v4030_v32, %v11330_v43 }
 0x398   :  { %13980 = vst [vmem:[#allocation26_spill] sm:$0xff] %v11446_v16  ;;  %v4265_v34 = vmul.f32 2.1237322e-06, %v11435_v5  ;;  %v11455_v8 = vadd.f32 %v11036_v25, %v3666_v23  ;;  %v8229_v12 = vor.u32 %v8598_v15, %v8226_v10  ;;  %v3954_v33 = vadd.f32 1.1283791, %v3953_v21  ;;  %v3629_v23 = vpop.f32.mrf.mxu1 }
 0x399   :  { %v4151_v24 = vmul.f32 %v4150_v13, %v11338_v36  ;;  %v11459_v54 = vmul.f32 0.5, %v11312_v52  ;;  %v11461_v46 = vmin.f32 %v4383_v50, 16.0  ;;  %v4074_v14 = vadd.f32 1.1283791, %v4073_v6  ;;  %v3580_v52 = vpop.f32.mrf.mxu0 }
 0x39a   :  { %v4110_v0 = vadd.f32 0.05243302, %v4109_v42  ;;  %v4187_v32 = vmul.f32 %v4186_v41, %v11406_v53  ;;  %v11465_v16 = vmul.f32 0.70710677, %v11450_v4  ;;  %5489 = vmatpush.bf16.msrb.mxu1 %v8229_v12  ;;  %v4230_v15 = vadd.f32 0.05243302, %v4229_v11 }
 0x39b   :  { %13981 = vst [vmem:[#allocation27_spill] sm:$0xff] %v11459_v54  ;;  %v4307_v10 = vmul.f32 %v4306_v29, %v11409_v37  ;;  %v11469_v21 = vmul.f32 0.70710677, %v11455_v8  ;;  %v8165_v13 = vor.u32 %v8582_v27, %v8162_v31  ;;  %v4032_v54 = vadd.f32 0.18741608, %v4031_v3 }
 0x39c   :  { %v4266_v50 = vadd.f32 0.00028619796, %v4265_v34  ;;  %v4343_v6 = vmul.f32 %v11465_v16, %v11465_v16  ;;  %v3530_v42 = vadd.f32 %v3529_v9, %v3480_v48  ;;  %v4152_v41 = vadd.f32 0.18741608, %v4151_v24  ;;  %v3482_v34 = vpop.f32.mrf.mxu2 }
 0x39d   :  { %v4385_v35 = vmul.f32 2.1237322e-06, %v11461_v46  ;;  %v4463_v12 = vmul.f32 %v11469_v21, %v11469_v21  ;;  %5440 = vmatpush.bf16.msrb.mxu0 %v8165_v13  ;;  %5490 = vmatmul.bf16.vlgmr.msrb.gmra.mxu1 %v5128_v17  ;;  %v3630_v11 = vadd.f32 %v3629_v23, %v3580_v52  ;;  %v3531_v29 = vpop.f32.mrf.mxu3  ;;  %v4111_v18 = vmul.f32 %v4110_v0, %v11358_v20 }
 0x39e   :  { %v4188_v27 = vadd.f32 0.0036580483, %v4187_v32  ;;  %v11477_v31 = vmin.f32 %v4343_v6, 16.0  ;;  %v3665_v3 = vmul.f32 %v11033_v57, %v3530_v42  ;;  %v4231_v9 = vmul.f32 %v4230_v15, %v11363_v59 }
 0x39f   :  { %v4308_v48 = vadd.f32 0.0036580483, %v4307_v10  ;;  %v11481_v24 = vmin.f32 %v4463_v12, 16.0  ;;  %v3668_v40 = vmul.f32 %v11033_v57, %v3630_v11  ;;  %v4267_v13 = vmul.f32 %v4266_v50, %v11435_v5 }
 0x3a0   :  { %v4345_v17 = vmul.f32 2.1237322e-06, %v11477_v31  ;;  %v11487_v23 = vadd.f32 %v11048_v49, %v3665_v3  ;;  %5441 = vmatmul.bf16.vlgmr.msrb.gmra.mxu0 %v11421_v7  ;;  %v3532_v0 = vadd.f32 %v3531_v29, %v3482_v34  ;;  %v4033_v32 = vmul.f32 %v4032_v54, %v11330_v43  ;;  %v3632_v3 = vpop.f32.mrf.mxu1 }
 0x3a1   :  { %v11492_v52 = vmul.f32 0.5, %v11325_v28  ;;  %v4386_v15 = vadd.f32 0.00028619796, %v4385_v35  ;;  %v4465_v10 = vmul.f32 2.1237322e-06, %v11481_v24  ;;  %v11496_v6 = vmul.f32 %v3954_v33, %v11197_v1 }
 0x3a2   :  { %v4153_v50 = vmul.f32 %v4152_v41, %v11338_v36  ;;  %v4112_v42 = vadd.f32 0.18741608, %v4111_v18  ;;  %v11500_v12 = vadd.f32 %v11036_v25, %v3668_v40  ;;  %v4189_v7 = vmul.f32 %v4188_v27, %v11406_v53 }
 0x3a3   :  { %13982 = vst [vmem:[#allocation41_spill] sm:$0xff] %v11492_v52  ;;  %v4346_v11 = vadd.f32 0.00028619796, %v4345_v17  ;;  %v11504_v54 = vmul.f32 0.70710677, %v11487_v23  ;;  %v3667_v28 = vmul.f32 %v11033_v57, %v3532_v0  ;;  %v11508_v35 = vmul.f32 %v4074_v14, %v11206_v55  ;;  %v3583_v14 = vpop.f32.mrf.mxu0 }
 0x3a4   :  { %v4232_v29 = vadd.f32 0.18741608, %v4231_v9  ;;  %v4309_v1 = vmul.f32 %v4308_v48, %v11409_v37  ;;  %v4268_v33 = vadd.f32 0.0036580483, %v4267_v13  ;;  %v4034_v41 = vadd.f32 1.1283791, %v4033_v32 }
 0x3a5   :  { %v11512_v18 = vmul.f32 0.5, %v11361_v62  ;;  %v4387_v40 = vmul.f32 %v4386_v15, %v11461_v46  ;;  %v4466_v27 = vadd.f32 0.00028619796, %v4465_v10  ;;  %v4154_v34 = vadd.f32 1.1283791, %v4153_v50 }
 0x3a6   :  { %v4113_v17 = vmul.f32 %v4112_v42, %v11358_v20  ;;  %v4423_v0 = vmul.f32 %v11504_v54, %v11504_v54  ;;  %v11519_v55 = vmul.f32 0.70710677, %v11500_v12  ;;  %v4190_v9 = vadd.f32 0.05243302, %v4189_v7 }
 0x3a7   :  { %13983 = vst [vmem:[#allocation43_spill] sm:$0xff] %v11512_v18  ;;  %v11522_v48 = vmul.f32 0.5, %v11381_v44  ;;  %v4347_v62 = vmul.f32 %v4346_v11, %v11477_v31  ;;  %v11526_v13 = vadd.f32 %v11048_v49, %v3667_v28  ;;  %v4233_v32 = vmul.f32 %v4232_v29, %v11363_v59 }
 0x3a8   :  { %v4310_v15 = vadd.f32 0.05243302, %v4309_v1  ;;  %v4269_v10 = vmul.f32 %v4268_v33, %v11435_v5  ;;  %v3633_v50 = vadd.f32 %v3632_v3, %v3583_v14  ;;  %v11531_v42 = vmul.f32 %v4034_v41, %v11278_v38 }
 0x3a9   :  { %13984 = vst [vmem:[#allocation40_spill] sm:$0xff] %v11522_v48  ;;  %v11534_v18 = vmul.f32 0.5, %v11398_v45  ;;  %v4388_v7 = vadd.f32 0.0036580483, %v4387_v40  ;;  %v4467_v44 = vmul.f32 %v4466_v27, %v11481_v24  ;;  %v11538_v11 = vmul.f32 %v4154_v34, %v11285_v56 }
 0x3aa   :  { %v4114_v28 = vadd.f32 1.1283791, %v4113_v17  ;;  %v11540_v48 = vmin.f32 %v4423_v0, 16.0  ;;  %v4543_v29 = vmul.f32 %v11519_v55, %v11519_v55  ;;  %v4191_v1 = vmul.f32 %v4190_v9, %v11406_v53 }
 0x3ab   :  { %13985 = vst [vmem:[#allocation42_spill] sm:$0xff] %v11534_v18  ;;  %v4348_v33 = vadd.f32 0.0036580483, %v4347_v62  ;;  %v11546_v38 = vmul.f32 0.70710677, %v11526_v13  ;;  %v4311_v40 = vmul.f32 %v4310_v15, %v11409_v37  ;;  %v3670_v56 = vmul.f32 %v11033_v57, %v3633_v50 }
 0x3ac   :  { %13986 = vst [vmem:[#allocation20_spill] sm:$0xff] %v11538_v11  ;;  %v3996_v45 = vmul.f32 3.8918573e-05, %v11136_v2  ;;  %v4234_v41 = vadd.f32 1.1283791, %v4233_v32  ;;  %v4389_v3 = vmul.f32 %v4388_v7, %v11461_v46  ;;  %v11554_v14 = vmul.f32 %v4114_v28, %v11333_v19 }
 0x3ad   :  { %v4270_v27 = vadd.f32 0.05243302, %v4269_v10  ;;  %v4468_v34 = vadd.f32 0.0036580483, %v4467_v44  ;;  %v4076_v0 = vmul.f32 3.8918573e-05, %v11239_v61  ;;  %v4349_v10 = vmul.f32 %v4348_v33, %v11477_v31 }
 0x3ae   :  { %v3997_v17 = vadd.f32 0.001143296, %v3996_v45  ;;  %13987 = vst [vmem:[#allocation19_spill] sm:$0xff] %v11554_v14  ;;  %v11557_v9 = vmul.f32 0.5, %v11415_v22  ;;  %v4425_v62 = vmul.f32 2.1237322e-06, %v11540_v48  ;;  %v4503_v50 = vmul.f32 %v11546_v38, %v11546_v38 }
 0x3af   :  { %v11560_v32 = vmin.f32 %v4543_v29, 16.0  ;;  %v4192_v15 = vadd.f32 0.18741608, %v4191_v1  ;;  %v11567_v44 = vmul.f32 %v4234_v41, %v11351_v51  ;;  %v4312_v19 = vadd.f32 0.18741608, %v4311_v40 }
 0x3b0   :  { %13988 = vst [vmem:[#allocation21_spill] sm:$0xff] %v11557_v9  ;;  %v3998_v7 = vmul.f32 %v3997_v17, %v11136_v2  ;;  %v11570_v28 = vadd.f32 %v11036_v25, %v3670_v56  ;;  %v4077_v22 = vadd.f32 0.001143296, %v4076_v0  ;;  %v4271_v45 = vmul.f32 %v4270_v27, %v11435_v5 }
 0x3b1   :  { %13989 = vst [vmem:[#allocation28_spill] sm:$0xff] %v11567_v44  ;;  %v4390_v29 = vadd.f32 0.05243302, %v4389_v3  ;;  %v4469_v1 = vmul.f32 %v4468_v34, %v11481_v24  ;;  %v11575_v33 = vmul.f32 0.5, %v11450_v4  ;;  %v4426_v9 = vadd.f32 0.00028619796, %v4425_v62 }
 0x3b2   :  { %v3999_v18 = vadd.f32 0.014752088, %v3998_v7  ;;  %v4545_v17 = vmul.f32 2.1237322e-06, %v11560_v32  ;;  %v4078_v51 = vmul.f32 %v4077_v22, %v11239_v61  ;;  %v4193_v41 = vmul.f32 %v4192_v15, %v11406_v53 }
 0x3b3   :  { %13990 = vst [vmem:[#allocation29_spill] sm:$0xff] %v11575_v33  ;;  %v4350_v40 = vadd.f32 0.05243302, %v4349_v10  ;;  %v11580_v56 = vmin.f32 %v4503_v50, 16.0  ;;  %v4313_v27 = vmul.f32 %v4312_v19, %v11409_v37  ;;  %v11585_v3 = vmul.f32 0.5, %v11455_v8 }
 0x3b4   :  { %v4000_v0 = vmul.f32 %v3999_v18, %v11136_v2  ;;  %v11588_v4 = vmul.f32 0.70710677, %v11570_v28  ;;  %v4079_v34 = vadd.f32 0.014752088, %v4078_v51  ;;  %v4272_v62 = vadd.f32 0.18741608, %v4271_v45 }
 0x3b5   :  { %13991 = vst [vmem:[#allocation18_spill] sm:$0xff] %v11585_v3  ;;  %v4391_v7 = vmul.f32 %v4390_v29, %v11461_v46  ;;  %v4470_v22 = vadd.f32 0.05243302, %v4469_v1  ;;  %v4427_v15 = vmul.f32 %v4426_v9, %v11540_v48  ;;  %v4546_v10 = vadd.f32 0.00028619796, %v4545_v17 }
 0x3b6   :  { %13992 = vst [vmem:[#allocation30_spill] sm:$0xff] %v11588_v4  ;;  %v4001_v33 = vadd.f32 0.112945676, %v4000_v0  ;;  %v4080_v50 = vmul.f32 %v4079_v34, %v11239_v61  ;;  %v3956_v18 = vmul.f32 3.8918573e-05, %v11232_v58  ;;  %v4351_v8 = vmul.f32 %v4350_v40, %v11477_v31 }
 0x3b7   :  { %v4194_v19 = vadd.f32 1.1283791, %v4193_v41  ;;  %v4505_v3 = vmul.f32 2.1237322e-06, %v11580_v56  ;;  %v4314_v51 = vadd.f32 1.1283791, %v4313_v27  ;;  %v4623_v45 = vmul.f32 %v11588_v4, %v11588_v4 }
 0x3b8   :  { %v4002_v14 = vmul.f32 %v4001_v33, %v11136_v2  ;;  %v4081_v29 = vadd.f32 0.112945676, %v4080_v50  ;;  %v4036_v1 = vmul.f32 3.8918573e-05, %v11330_v43  ;;  %v4392_v9 = vadd.f32 0.18741608, %v4391_v7 }
 0x3b9   :  { %v4471_v17 = vmul.f32 %v4470_v22, %v11481_v24  ;;  %v3957_v34 = vadd.f32 0.001143296, %v3956_v18  ;;  %v4273_v41 = vmul.f32 %v4272_v62, %v11435_v5  ;;  %v4428_v52 = vadd.f32 0.0036580483, %v4427_v15  ;;  %v3485_v18 = vpop.f32.mrf.mxu2 }
 0x3ba   :  { %v4003_v0 = vadd.f32 0.4994258, %v4002_v14  ;;  %v4547_v40 = vmul.f32 %v4546_v10, %v11560_v32  ;;  %v4082_v44 = vmul.f32 %v4081_v29, %v11239_v61  ;;  %v4352_v33 = vadd.f32 0.18741608, %v4351_v8  ;;  %v3534_v29 = vpop.f32.mrf.mxu3 }
 0x3bb   :  { %v4506_v27 = vadd.f32 0.00028619796, %v4505_v3  ;;  %v3958_v50 = vmul.f32 %v3957_v34, %v11232_v58  ;;  %v11607_v4 = vmul.f32 %v4194_v19, %v11376_v60  ;;  %v11609_v7 = vmin.f32 %v4623_v45, 16.0 }
 0x3bc   :  { %v4004_v11 = vmul.f32 %v4003_v0, %v11136_v2  ;;  %v4083_v14 = vadd.f32 0.4994258, %v4082_v44  ;;  %v4037_v22 = vadd.f32 0.001143296, %v4036_v1  ;;  %v4393_v62 = vmul.f32 %v4392_v9, %v11461_v46 }
 0x3bd   :  { %v4472_v15 = vadd.f32 0.18741608, %v4471_v17  ;;  %v3959_v8 = vadd.f32 0.014752088, %v3958_v50  ;;  %v4429_v3 = vmul.f32 %v4428_v52, %v11540_v48  ;;  %v4548_v2 = vadd.f32 0.0036580483, %v4547_v40 }
 0x3be   :  { %v11612_v10 = vadd.f32 1.0, %v4004_v11  ;;  %v4084_v0 = vmul.f32 %v4083_v14, %v11239_v61  ;;  %v3535_v34 = vadd.f32 %v3534_v29, %v3485_v18  ;;  %v4274_v60 = vadd.f32 1.1283791, %v4273_v41 }
 0x3bf   :  { %v11617_v19 = vmul.f32 0.5, %v11487_v23  ;;  %v4507_v44 = vmul.f32 %v4506_v27, %v11580_v56  ;;  %v11622_v45 = vmul.f32 %v4314_v51, %v11388_v30  ;;  %v4625_v11 = vmul.f32 2.1237322e-06, %v11609_v7  ;;  %v3634_v23 = vpop.f32.mrf.mxu1  ;;  %v3585_v51 = vpop.f32.mrf.mxu0 }
 0x3c0   :  { %8715 = vrcp.f32 %v11612_v10  ;;  %v11625_v1 = vadd.f32 1.0, %v4084_v0  ;;  %v4038_v52 = vmul.f32 %v4037_v22, %v11330_v43  ;;  %v4394_v9 = vadd.f32 1.1283791, %v4393_v62 }
 0x3c1   :  { %13993 = vst [vmem:[#allocation34_spill] sm:$0xff] %v11617_v19  ;;  %v4353_v61 = vmul.f32 %v4352_v33, %v11477_v31  ;;  %v4473_v17 = vmul.f32 %v4472_v15, %v11481_v24  ;;  %v3960_v41 = vmul.f32 %v3959_v8, %v11232_v58  ;;  %v4430_v40 = vadd.f32 0.05243302, %v4429_v3 }
 0x3c2   :  { %v4549_v27 = vmul.f32 %v4548_v2, %v11560_v32  ;;  %8717 = vrcp.f32 %v11625_v1  ;;  %v3669_v30 = vmul.f32 %v11033_v57, %v3535_v34  ;;  %v11635_v50 = vmul.f32 %v4274_v60, %v11412_v39 }
 0x3c3   :  { %v11638_v14 = vmul.f32 0.5, %v11500_v12  ;;  %v11641_v33 = vmul.f32 0.5, %v11526_v13  ;;  %v4508_v22 = vadd.f32 0.0036580483, %v4507_v44  ;;  %v4626_v18 = vadd.f32 0.00028619796, %v4625_v11 }
 0x3c4   :  { %v3635_v62 = vadd.f32 %v3634_v23, %v3585_v51  ;;  %v3961_v15 = vadd.f32 0.112945676, %v3960_v41  ;;  %v4039_v29 = vadd.f32 0.014752088, %v4038_v52  ;;  %v11644_v3 = vmul.f32 %v4394_v9, %v11427_v63 }
 0x3c5   :  { %13994 = vst [vmem:[#allocation31_spill] sm:$0xff] %v11638_v14  ;;  %v11646_v2 = vadd.f32 1.1283791, %v4353_v61  ;;  %v11648_v0 = vadd.f32 1.1283791, %v4473_v17  ;;  %v11651_v39 = vmul.f32 0.5, %v11570_v28  ;;  %v4431_v12 = vmul.f32 %v4430_v40, %v11540_v48 }
 0x3c6   :  { %13995 = vst [vmem:[#allocation32_spill] sm:$0xff] %v11641_v33  ;;  %v8716_v8 = vpop.eup %8715  ;;  %v4550_v13 = vadd.f32 0.05243302, %v4549_v27  ;;  %v11656_v60 = vadd.f32 %v11048_v49, %v3669_v30  ;;  %v4509_v44 = vmul.f32 %v4508_v22, %v11580_v56  ;;  %v4017_v63 = vand.u32 2147483648, %v11612_v10 }
 0x3c7   :  { %13996 = vst [vmem:[#allocation33_spill] sm:$0xff] %v11651_v39  ;;  %v4007_v34 = vmul.f32 %v8716_v8, %v11612_v10  ;;  %v3962_v11 = vmul.f32 %v3961_v15, %v11232_v58  ;;  %v4040_v52 = vmul.f32 %v4039_v29, %v11330_v43  ;;  %v4627_v28 = vmul.f32 %v4626_v18, %v11609_v7 }
 0x3c8   :  { %v8718_v9 = vpop.eup %8717  ;;  %vm4011_vm0 = vweird.f32 %v11612_v10  ;;  %v3672_v17 = vmul.f32 %v11033_v57, %v3635_v62  ;;  %v4015_v23 = vand.u32 2147483647, %v11612_v10  ;;  %v4156_v27 = vmul.f32 3.8918573e-05, %v11338_v36 }
 0x3c9   :  { %v4008_v61 = vsub.f32 1.0, %v4007_v34  ;;  %v4087_v41 = vmul.f32 %v8718_v9, %v11625_v1  ;;  %v3963_v40 = vadd.f32 0.4994258, %v3962_v11  ;;  %vm4012_vm1 = vweird.f32 %v8716_v8 }
 0x3ca   :  { %v11669_v51 = vmul.f32 0.70710677, %v11656_v60  ;;  %v4041_v22 = vadd.f32 0.112945676, %v4040_v52  ;;  %v4018_v15 = vor.u32 1.1754944e-38, %v4017_v63  ;;  %v4097_v39 = vand.u32 2147483648, %v11625_v1  ;;  %vm4013_vm2 = vmor %vm4011_vm0, %vm4012_vm1 }
 0x3cb   :  { %v4009_v30 = vmul.f32 %v8716_v8, %v4008_v61  ;;  %v4088_v18 = vsub.f32 1.0, %v4087_v41  ;;  %v4095_v29 = vand.u32 2147483647, %v11625_v1  ;;  %v3964_v34 = vmul.f32 %v3963_v40, %v11232_v58 }
 0x3cc   :  { %v11675_v33 = vadd.f32 %v11036_v25, %v3672_v17  ;;  %v4042_v11 = vmul.f32 %v4041_v22, %v11330_v43  ;;  %vm4092_vm3 = vweird.f32 %v8718_v9  ;;  %v4157_v63 = vadd.f32 0.001143296, %v4156_v27  ;;  %v3536_v27 = vpop.f32.mrf.mxu3 }
 0x3cd   :  { %v4010_v62 = vadd.f32 %v8716_v8, %v4009_v30  ;;  %v4089_v61 = vmul.f32 %v8718_v9, %v4088_v18  ;;  %v11680_v52 = vadd.f32 1.0, %v3964_v34  ;;  %vm4016_vm4 = vcmp.eq.f32.partialorder %v4015_v23, 8.507059e+37 }
 0x3ce   :  { %v4583_v58 = vmul.f32 %v11669_v51, %v11669_v51  ;;  %v4043_v40 = vadd.f32 0.4994258, %v4042_v11  ;;  %vm4091_vm5 = vweird.f32 %v11625_v1  ;;  %v4510_v17 = vadd.f32 0.05243302, %v4509_v44  ;;  %v3487_v44 = vpop.f32.mrf.mxu2 }
 0x3cf   :  { %v4014_v41 = vsel %vm4013_vm2, %v8716_v8, %v4010_v62  ;;  %v4090_v19 = vadd.f32 %v8718_v9, %v4089_v61  ;;  %8719 = vrcp.f32 %v11680_v52  ;;  %vm4093_vm6 = vmor %vm4091_vm5, %vm4092_vm3  ;;  %v4098_v22 = vor.u32 1.1754944e-38, %v4097_v39 }
 0x3d0   :  { %v4019_v30 = vsel %vm4016_vm4, %v4018_v15, %v4014_v41  ;;  %v11688_v18 = vmul.f32 0.70710677, %v11675_v33  ;;  %vm4096_vm7 = vcmp.eq.f32.partialorder %v4095_v29, 8.507059e+37  ;;  %v4044_v23 = vmul.f32 %v4043_v40, %v11330_v43 }
 0x3d1   :  { %v4020_v10 = vmul.f32 %v4019_v30, %v11418_v47  ;;  %v4094_v8 = vsel %vm4093_vm6, %v8718_v9, %v4090_v19  ;;  %v4158_v15 = vmul.f32 %v4157_v63, %v11338_v36  ;;  %v4551_v34 = vmul.f32 %v4550_v13, %v11560_v32 }
 0x3d2   :  { %v4099_v62 = vsel %vm4096_vm7, %v4098_v22, %v4094_v8  ;;  %v11693_v11 = vmin.f32 %v4583_v58, 16.0  ;;  %v4432_v47 = vadd.f32 0.18741608, %v4431_v12  ;;  %v4628_v61 = vadd.f32 0.0036580483, %v4627_v28 }
 0x3d3   :  { %v8131_v1 = vclamps-f32 %v4020_v10, 1.0  ;;  %v4100_v39 = vmul.f32 %v4099_v62, %v11508_v35  ;;  %v11696_v41 = vadd.f32 1.0, %v4044_v23  ;;  %v11700_v19 = vmul.f32 %v11646_v2, %v11465_v16 }
 0x3d4   :  { %v4511_v43 = vmul.f32 %v4510_v17, %v11580_v56  ;;  %v4703_v13 = vmul.f32 %v11688_v18, %v11688_v18  ;;  %v3537_v9 = vadd.f32 %v3536_v27, %v3487_v44  ;;  %v4159_v12 = vadd.f32 0.014752088, %v4158_v15  ;;  %v13997_v27 = vld [vmem:[#allocation25_spill] sm:$0xff] }
 0x3d5   :  { %v8720_v29 = vpop.eup %8719  ;;  %v8133_v63 = vclamps-f32 %v4100_v39, 1.0  ;;  %v5068_v58 = vadd.f32 1.0, %v8131_v1  ;;  %8721 = vrcp.f32 %v11696_v41  ;;  %v11708_v35 = vmul.f32 %v11648_v0, %v11469_v21 }
 0x3d6   :  { %v11710_v28 = vadd.f32 0.18741608, %v4551_v34  ;;  %v4585_v16 = vmul.f32 2.1237322e-06, %v11693_v11  ;;  %v3967_v2 = vmul.f32 %v8720_v29, %v11680_v52  ;;  %v11715_v40 = vmul.f32 %v4432_v47, %v11540_v48 }
 0x3d7   :  { %v4629_v30 = vmul.f32 %v4628_v61, %v11609_v7  ;;  %v5070_v17 = vadd.f32 1.0, %v8133_v63  ;;  %v4236_v10 = vmul.f32 3.8918573e-05, %v11363_v59  ;;  %v11719_v22 = vadd.f32 0.18741608, %v4511_v43  ;;  %v3637_v61 = vpop.f32.mrf.mxu1 }
 0x3d8   :  { %v11721_v8 = vmin.f32 %v4703_v13, 16.0  ;;  %v3968_v21 = vsub.f32 1.0, %v3967_v2  ;;  %v3671_v0 = vmul.f32 %v11033_v57, %v3537_v9  ;;  %v5100_v23 = vmul.f32 %v5068_v58, %v11179_v26  ;;  %v3588_v9 = vpop.f32.mrf.mxu0 }
 0x3d9   :  { %v5102_v15 = vmul.f32 %v5070_v17, %v13997_v27  ;;  %v3977_v34 = vand.u32 2147483648, %v11680_v52  ;;  %v4160_v1 = vmul.f32 %v4159_v12, %v11338_v36  ;;  %v4586_v62 = vadd.f32 0.00028619796, %v4585_v16 }
 0x3da   :  { %v3969_v44 = vmul.f32 %v8720_v29, %v3968_v21  ;;  %vm3972_vm8 = vweird.f32 %v8720_v29  ;;  %v3975_v47 = vand.u32 2147483647, %v11680_v52  ;;  %v4630_v43 = vadd.f32 0.05243302, %v4629_v30 }
 0x3db   :  { %v8722_v39 = vpop.eup %8721  ;;  %v5130_v13 = vpack.c.bf16 %v5102_v15, %v5100_v23  ;;  %v4161_v63 = vadd.f32 0.112945676, %v4160_v1  ;;  %v4237_v2 = vadd.f32 0.001143296, %v4236_v10  ;;  %vm3971_vm9 = vweird.f32 %v11680_v52 }
 0x3dc   :  { %v3970_v14 = vadd.f32 %v8720_v29, %v3969_v44  ;;  %v4047_v26 = vmul.f32 %v8722_v39, %v11696_v41  ;;  %v11732_v58 = vadd.f32 %v11048_v49, %v3671_v0  ;;  %v4705_v12 = vmul.f32 2.1237322e-06, %v11721_v8  ;;  %vm3973_vm10 = vmor %vm3971_vm9, %vm3972_vm8 }
 0x3dd   :  { %5397 = vmatmul.bf16.gmra.mxu3 %v5130_v13  ;;  %5495 = vmatmul.bf16.gmra.mxu1 %v5130_v13  ;;  %v3978_v16 = vor.u32 1.1754944e-38, %v3977_v34  ;;  %v3638_v30 = vadd.f32 %v3637_v61, %v3588_v9  ;;  %v4162_v17 = vmul.f32 %v4161_v63, %v11338_v36  ;;  %v4587_v10 = vmul.f32 %v4586_v62, %v11693_v11 }
 0x3de   :  { %v3974_v21 = vsel %vm3973_vm10, %v8720_v29, %v3970_v14  ;;  %vm3976_vm11 = vcmp.eq.f32.partialorder %v3975_v47, 8.507059e+37  ;;  %v4048_v52 = vsub.f32 1.0, %v4047_v26  ;;  %v4631_v23 = vmul.f32 %v4630_v43, %v11609_v7 }
 0x3df   :  { %v3979_v27 = vsel %vm3976_vm11, %v3978_v16, %v3974_v21  ;;  %v4055_v0 = vand.u32 2147483647, %v11696_v41  ;;  %v4057_v15 = vand.u32 2147483648, %v11696_v41  ;;  %vm4052_vm12 = vweird.f32 %v8722_v39 }
 0x3e0   :  { %v3980_v1 = vmul.f32 %v3979_v27, %v11496_v6  ;;  %v4049_v44 = vmul.f32 %v8722_v39, %v4048_v52  ;;  %v11743_v34 = vmul.f32 0.70710677, %v11732_v58  ;;  %v4706_v61 = vadd.f32 0.00028619796, %v4705_v12 }
 0x3e1   :  { %v3674_v62 = vmul.f32 %v11033_v57, %v3638_v30  ;;  %v4163_v14 = vadd.f32 0.4994258, %v4162_v17  ;;  %v4238_v29 = vmul.f32 %v4237_v2, %v11363_v59  ;;  %v4588_v47 = vadd.f32 0.0036580483, %v4587_v10 }
 0x3e2   :  { %v4050_v43 = vadd.f32 %v8722_v39, %v4049_v44  ;;  %vm4051_vm13 = vweird.f32 %v11696_v41  ;;  %v4116_v13 = vmul.f32 3.8918573e-05, %v11358_v20  ;;  %vm4056_vm15 = vcmp.eq.f32.partialorder %v4055_v0, 8.507059e+37 }
 0x3e3   :  { %vm4053_vm14 = vmor %vm4051_vm13, %vm4052_vm12  ;;  %v4058_v6 = vor.u32 1.1754944e-38, %v4057_v15  ;;  %v4164_v63 = vmul.f32 %v4163_v14, %v11338_v36  ;;  %v4239_v9 = vadd.f32 0.014752088, %v4238_v29  ;;  %v8130_v26 = vclamps-f32 %v3980_v1, 1.0 }
 0x3e4   :  { %v4054_v16 = vsel %vm4053_vm14, %v8722_v39, %v4050_v43  ;;  %v4663_v12 = vmul.f32 %v11743_v34, %v11743_v34  ;;  %v4117_v30 = vadd.f32 0.001143296, %v4116_v13  ;;  %v11753_v2 = vadd.f32 %v11036_v25, %v3674_v62 }
 0x3e5   :  { %v4059_v17 = vsel %vm4056_vm15, %v4058_v6, %v4054_v16  ;;  %v11755_v10 = vadd.f32 1.0, %v4164_v63  ;;  %v4196_v41 = vmul.f32 3.8918573e-05, %v11406_v53  ;;  %v4553_v21 = vmul.f32 %v11710_v28, %v11560_v32 }
 0x3e6   :  { %v4060_v36 = vmul.f32 %v4059_v17, %v11531_v42  ;;  %v4240_v52 = vmul.f32 %v4239_v9, %v11363_v59  ;;  %v4118_v39 = vmul.f32 %v4117_v30, %v11358_v20  ;;  %v4632_v27 = vadd.f32 0.18741608, %v4631_v23  ;;  %v13999_v30 = vld [vmem:[#allocation39_spill] sm:$0xff] }
 0x3e7   :  { %v4589_v0 = vmul.f32 %v4588_v47, %v11693_v11  ;;  %v4707_v15 = vmul.f32 %v4706_v61, %v11721_v8  ;;  %8723 = vrcp.f32 %v11755_v10  ;;  %v5067_v44 = vadd.f32 1.0, %v8130_v26 }
 0x3e8   :  { %v8132_v1 = vclamps-f32 %v4060_v36, 1.0  ;;  %v11766_v62 = vmin.f32 %v4663_v12, 16.0  ;;  %v4241_v14 = vadd.f32 0.112945676, %v4240_v52  ;;  %v4513_v28 = vmul.f32 %v11719_v22, %v11580_v56  ;;  %v13998_v22 = vld [vmem:[#allocation24_spill] sm:$0xff] }
 0x3e9   :  { %v11771_v42 = vmul.f32 0.70710677, %v11753_v2  ;;  %v4119_v29 = vadd.f32 0.014752088, %v4118_v39  ;;  %v4197_v43 = vadd.f32 0.001143296, %v4196_v41  ;;  %v4633_v16 = vmul.f32 %v4632_v27, %v11609_v7 }
 0x3ea   :  { %v4434_v23 = vadd.f32 1.1283791, %v11715_v40  ;;  %v4554_v47 = vadd.f32 1.1283791, %v4553_v21  ;;  %v5069_v13 = vadd.f32 1.0, %v8132_v1  ;;  %v4242_v61 = vmul.f32 %v4241_v14, %v11363_v59 }
 0x3eb   :  { %v4590_v6 = vadd.f32 0.05243302, %v4589_v0  ;;  %v4708_v63 = vadd.f32 0.0036580483, %v4707_v15  ;;  %v4120_v9 = vmul.f32 %v4119_v29, %v11358_v20  ;;  %v4198_v26 = vmul.f32 %v4197_v43, %v11406_v53  ;;  %v3539_v29 = vpop.f32.mrf.mxu3 }
 0x3ec   :  { %v5099_v12 = vmul.f32 %v5067_v44, %v13998_v22  ;;  %v5101_v17 = vmul.f32 %v5069_v13, %v13999_v30  ;;  %v4243_v36 = vadd.f32 0.4994258, %v4242_v61  ;;  %v4514_v52 = vadd.f32 1.1283791, %v4513_v28 }
 0x3ed   :  { %v8724_v41 = vpop.eup %8723  ;;  %v4665_v40 = vmul.f32 2.1237322e-06, %v11766_v62  ;;  %v4783_v21 = vmul.f32 %v11771_v42, %v11771_v42  ;;  %v4121_v39 = vadd.f32 0.112945676, %v4120_v9  ;;  %v11784_v0 = vmul.f32 %v4434_v23, %v11504_v54  ;;  %v3490_v9 = vpop.f32.mrf.mxu2 }
 0x3ee   :  { %v5129_v15 = vpack.c.bf16 %v5101_v17, %v5099_v12  ;;  %v4167_v1 = vmul.f32 %v8724_v41, %v11755_v10  ;;  %v4244_v27 = vmul.f32 %v4243_v36, %v11363_v59  ;;  %v11789_v44 = vmul.f32 %v4554_v47, %v11519_v55  ;;  %v3639_v36 = vpop.f32.mrf.mxu1 }
 0x3ef   :  { %v4591_v14 = vmul.f32 %v4590_v6, %v11693_v11  ;;  %v4709_v28 = vmul.f32 %v4708_v63, %v11721_v8  ;;  %v4199_v43 = vadd.f32 0.014752088, %v4198_v26  ;;  %v4634_v13 = vadd.f32 1.1283791, %v4633_v16 }
 0x3f0   :  { %5348 = vmatmul.bf16.gmra.mxu2 %v5129_v15  ;;  %5446 = vmatmul.bf16.gmra.mxu0 %v5129_v15  ;;  %v4168_v61 = vsub.f32 1.0, %v4167_v1  ;;  %v11793_v54 = vadd.f32 1.0, %v4244_v27  ;;  %v4122_v23 = vmul.f32 %v4121_v39, %v11358_v20  ;;  %v11797_v59 = vmul.f32 %v4514_v52, %v11546_v38  ;;  %v3590_v27 = vpop.f32.mrf.mxu0 }
 0x3f1   :  { %v4666_v55 = vadd.f32 0.00028619796, %v4665_v40  ;;  %v11799_v47 = vmin.f32 %v4783_v21, 16.0  ;;  %v4316_v6 = vmul.f32 3.8918573e-05, %v11409_v37  ;;  %vm4172_vm0 = vweird.f32 %v8724_v41 }
 0x3f2   :  { %v4169_v63 = vmul.f32 %v8724_v41, %v4168_v61  ;;  %8725 = vrcp.f32 %v11793_v54  ;;  %v3540_v26 = vadd.f32 %v3539_v29, %v3490_v9  ;;  %v4592_v16 = vadd.f32 0.18741608, %v4591_v14  ;;  %v14004_v9 = vld [vmem:[#allocation30_spill] sm:$0xff] }
 0x3f3   :  { %v4710_v22 = vadd.f32 0.05243302, %v4709_v28  ;;  %v4177_v12 = vand.u32 2147483648, %v11755_v10  ;;  %v4200_v30 = vmul.f32 %v4199_v43, %v11406_v53  ;;  %vm4171_vm1 = vweird.f32 %v11755_v10 }
 0x3f4   :  { %v4170_v17 = vadd.f32 %v8724_v41, %v4169_v63  ;;  %v4175_v38 = vand.u32 2147483647, %v11755_v10  ;;  %v4123_v52 = vadd.f32 0.4994258, %v4122_v23  ;;  %v11808_v40 = vmul.f32 0.5, %v11656_v60  ;;  %vm11815_vm2 = vmor %vm4171_vm1, %vm4172_vm0 }
 0x3f5   :  { %v11811_v21 = vmul.f32 0.5, %v11675_v33  ;;  %v4667_v39 = vmul.f32 %v4666_v55, %v11766_v62  ;;  %v4317_v1 = vadd.f32 0.001143296, %v4316_v6  ;;  %v4785_v14 = vmul.f32 2.1237322e-06, %v11799_v47 }
 0x3f6   :  { %14000 = vst [vmem:[#allocation35_spill] sm:$0xff] %v11808_v40  ;;  %v4174_v10 = vsel %vm11815_vm2, %v8724_v41, %v4170_v17  ;;  %v3673_v60 = vmul.f32 %v11033_v57, %v3540_v26  ;;  %v4124_v28 = vmul.f32 %v4123_v52, %v11358_v20  ;;  %v4711_v33 = vmul.f32 %v4710_v22, %v11721_v8  ;;  %v14006_v52 = vld [vmem:[#allocation20_spill] sm:$0xff] }
 0x3f7   :  { %14001 = vst [vmem:[#allocation36_spill] sm:$0xff] %v11811_v21  ;;  %v4178_v29 = vor.u32 1.1754944e-38, %v4177_v12  ;;  %v3640_v43 = vadd.f32 %v3639_v36, %v3590_v27  ;;  %v4201_v61 = vadd.f32 0.112945676, %v4200_v30  ;;  %v11826_v55 = vmul.f32 %v4634_v13, %v14004_v9 }
 0x3f8   :  { %v8726_v23 = vpop.eup %8725  ;;  %v4593_v6 = vmul.f32 %v4592_v16, %v11693_v11  ;;  %v11830_v63 = vmul.f32 0.5, %v11732_v58  ;;  %vm4176_vm3 = vcmp.eq.f32.partialorder %v4175_v38, 8.507059e+37  ;;  %v11833_v17 = vadd.f32 1.0, %v4124_v28 }
 0x3f9   :  { %v4179_v41 = vsel %vm4176_vm3, %v4178_v29, %v4174_v10  ;;  %v4247_v26 = vmul.f32 %v8726_v23, %v11793_v54  ;;  %v4318_v20 = vmul.f32 %v4317_v1, %v11409_v37  ;;  %v4668_v22 = vadd.f32 0.0036580483, %v4667_v39 }
 0x3fa   :  { %14005 = vst [vmem:[#allocation37_spill] sm:$0xff] %v11830_v63  ;;  %v4786_v12 = vadd.f32 0.00028619796, %v4785_v14  ;;  %v11837_v30 = vadd.f32 %v11048_v49, %v3673_v60  ;;  %v4202_v13 = vmul.f32 %v4201_v61, %v11406_v53  ;;  %v4712_v36 = vadd.f32 0.18741608, %v4711_v33  ;;  %v3492_v60 = vpop.f32.mrf.mxu2 }
 0x3fb   :  { %v4248_v16 = vsub.f32 1.0, %v4247_v26  ;;  %v3676_v58 = vmul.f32 %v11033_v57, %v3640_v43  ;;  %8727 = vrcp.f32 %v11833_v17  ;;  %v11842_v38 = vadd.f32 1.1283791, %v4593_v6  ;;  %v3541_v43 = vpop.f32.mrf.mxu3 }
 0x3fc   :  { %v4180_v15 = vmul.f32 %v4179_v41, %v14006_v52  ;;  %v4255_v27 = vand.u32 2147483647, %v11793_v54  ;;  %v4257_v39 = vand.u32 2147483648, %v11793_v54  ;;  %vm4252_vm4 = vweird.f32 %v8726_v23 }
 0x3fd   :  { %v4249_v1 = vmul.f32 %v8726_v23, %v4248_v16  ;;  %v4203_v14 = vadd.f32 0.4994258, %v4202_v13  ;;  %v4319_v10 = vadd.f32 0.014752088, %v4318_v20  ;;  %v4669_v28 = vmul.f32 %v4668_v22, %v11766_v62 }
 0x3fe   :  { %v4787_v33 = vmul.f32 %v4786_v12, %v11799_v47  ;;  %vm4251_vm5 = vweird.f32 %v11793_v54  ;;  %v11851_v29 = vmul.f32 0.70710677, %v11837_v30  ;;  %v11854_v9 = vadd.f32 %v11036_v25, %v3676_v58 }
 0x3ff   :  { %v4250_v61 = vadd.f32 %v8726_v23, %v4249_v1  ;;  %v4204_v6 = vmul.f32 %v4203_v14, %v11406_v53  ;;  %v3542_v41 = vadd.f32 %v3541_v43, %v3492_v60  ;;  %v8135_v26 = vclamps-f32 %v4180_v15, 1.0  ;;  %vm4253_vm6 = vmor %vm4251_vm5, %vm4252_vm4  ;;  %v14008_v14 = vld [vmem:[#allocation28_spill] sm:$0xff] }
 0x400   :  { %14007 = vst [vmem:[#allocation38_spill] sm:$0xff] %v11851_v29  ;;  %vm4256_vm7 = vcmp.eq.f32.partialorder %v4255_v27, 8.507059e+37  ;;  %v4258_v20 = vor.u32 1.1754944e-38, %v4257_v39  ;;  %v4396_v22 = vmul.f32 3.8918573e-05, %v11461_v46  ;;  %v4320_v52 = vmul.f32 %v4319_v10, %v11409_v37 }
 0x401   :  { %v8728_v12 = vpop.eup %8727  ;;  %v4254_v13 = vsel %vm4253_vm6, %v8726_v23, %v4250_v61  ;;  %v11858_v54 = vadd.f32 1.0, %v4204_v6  ;;  %v3675_v16 = vmul.f32 %v11033_v57, %v3542_v41  ;;  %v11863_v58 = vmul.f32 %v4712_v36, %v11721_v8  ;;  %v3642_v61 = vpop.f32.mrf.mxu1 }
 0x402   :  { %v4788_v1 = vadd.f32 0.0036580483, %v4787_v33  ;;  %v4259_v53 = vsel %vm4256_vm7, %v4258_v20, %v4254_v13  ;;  %v4127_v15 = vmul.f32 %v8728_v12, %v11833_v17  ;;  %v4743_v39 = vmul.f32 %v11851_v29, %v11851_v29  ;;  %v3593_v13 = vpop.f32.mrf.mxu0  ;;  %v14011_v29 = vld [vmem:[#allocation41_spill] sm:$0xff] }
 0x403   :  { %v4260_v27 = vmul.f32 %v4259_v53, %v14008_v14  ;;  %v11870_v23 = vmul.f32 0.70710677, %v11854_v9  ;;  %8729 = vrcp.f32 %v11858_v54  ;;  %v4670_v60 = vadd.f32 0.05243302, %v4669_v28 }
 0x404   :  { %v5072_v43 = vadd.f32 1.0, %v8135_v26  ;;  %v4128_v10 = vsub.f32 1.0, %v4127_v15  ;;  %v4137_v36 = vand.u32 2147483648, %v11833_v17  ;;  %v11875_v6 = vadd.f32 %v11048_v49, %v3675_v16 }
 0x405   :  { %14009 = vst [vmem:[#allocation22_spill] sm:$0xff] %v11870_v23  ;;  %v8137_v33 = vclamps-f32 %v4260_v27, 1.0  ;;  %v4321_v41 = vadd.f32 0.112945676, %v4320_v52  ;;  %v4397_v20 = vadd.f32 0.001143296, %v4396_v22  ;;  %v4789_v53 = vmul.f32 %v4788_v1, %v11799_v47 }
 0x406   :  { %v4129_v14 = vmul.f32 %v8728_v12, %v4128_v10  ;;  %vm4132_vm8 = vweird.f32 %v8728_v12  ;;  %v4135_v63 = vand.u32 2147483647, %v11833_v17  ;;  %v11879_v28 = vmin.f32 %v4743_v39, 16.0  ;;  %v14010_v27 = vld [vmem:[#allocation26_spill] sm:$0xff] }
 0x407   :  { %v5074_v40 = vadd.f32 1.0, %v8137_v33  ;;  %v4863_v26 = vmul.f32 %v11870_v23, %v11870_v23  ;;  %v3643_v15 = vadd.f32 %v3642_v61, %v3593_v13  ;;  %v5104_v21 = vmul.f32 %v5072_v43, %v14010_v27 }
 0x408   :  { %v4130_v16 = vadd.f32 %v8728_v12, %v4129_v14  ;;  %vm4131_vm9 = vweird.f32 %v11833_v17  ;;  %v4138_v22 = vor.u32 1.1754944e-38, %v4137_v36  ;;  %v11887_v10 = vmul.f32 0.70710677, %v11875_v6 }
 0x409   :  { %v8730_v52 = vpop.eup %8729  ;;  %v5106_v1 = vmul.f32 %v5074_v40, %v14011_v29  ;;  %vm4133_vm10 = vmor %vm4131_vm9, %vm4132_vm8  ;;  %v4322_v39 = vmul.f32 %v4321_v41, %v11409_v37  ;;  %v4398_v33 = vmul.f32 %v4397_v20, %v11461_v46  ;;  %v4671_v23 = vmul.f32 %v4670_v60, %v11766_v62 }
 0x40a   :  { %14012 = vst [vmem:[#allocation23_spill] sm:$0xff] %v11887_v10  ;;  %v4134_v61 = vsel %vm4133_vm10, %v8728_v12, %v4130_v16  ;;  %vm4136_vm11 = vcmp.eq.f32.partialorder %v4135_v63, 8.507059e+37  ;;  %v4207_v43 = vmul.f32 %v8730_v52, %v11858_v54  ;;  %v4790_v13 = vadd.f32 0.05243302, %v4789_v53 }
 0x40b   :  { %v5132_v17 = vpack.c.bf16 %v5106_v1, %v5104_v21  ;;  %v4139_v36 = vsel %vm4136_vm11, %v4138_v22, %v4134_v61  ;;  %v3678_v14 = vmul.f32 %v11033_v57, %v3643_v15  ;;  %v4745_v40 = vmul.f32 2.1237322e-06, %v11879_v28  ;;  %v14013_v21 = vld [vmem:[#allocation19_spill] sm:$0xff] }
 0x40c   :  { %v11895_v29 = vmin.f32 %v4863_v26, 16.0  ;;  %v4208_v27 = vsub.f32 1.0, %v4207_v43  ;;  %v4276_v41 = vmul.f32 3.8918573e-05, %v11435_v5  ;;  %v4217_v60 = vand.u32 2147483648, %v11858_v54 }
 0x40d   :  { %5402 = vmatmul.bf16.gmra.mxu3 %v5132_v17  ;;  %5500 = vmatmul.bf16.gmra.mxu1 %v5132_v17  ;;  %v4823_v63 = vmul.f32 %v11887_v10, %v11887_v10  ;;  %v4323_v12 = vadd.f32 0.4994258, %v4322_v39  ;;  %v4399_v20 = vadd.f32 0.014752088, %v4398_v33  ;;  %v4140_v53 = vmul.f32 %v4139_v36, %v14013_v21 }
 0x40e   :  { %v4209_v16 = vmul.f32 %v8730_v52, %v4208_v27  ;;  %vm4212_vm12 = vweird.f32 %v8730_v52  ;;  %v4215_v15 = vand.u32 2147483647, %v11858_v54  ;;  %v4672_v26 = vadd.f32 0.18741608, %v4671_v23 }
 0x40f   :  { %v4791_v22 = vmul.f32 %v4790_v13, %v11799_v47  ;;  %v11905_v1 = vadd.f32 %v11036_v25, %v3678_v14  ;;  %v4324_v61 = vmul.f32 %v4323_v12, %v11409_v37  ;;  %v4746_v43 = vadd.f32 0.00028619796, %v4745_v40 }
 0x410   :  { %v4865_v17 = vmul.f32 2.1237322e-06, %v11895_v29  ;;  %v4210_v10 = vadd.f32 %v8730_v52, %v4209_v16  ;;  %vm4211_vm13 = vweird.f32 %v11858_v54  ;;  %v4218_v39 = vor.u32 1.1754944e-38, %v4217_v60 }
 0x411   :  { %14014 = vst [vmem:[#allocation25_spill] sm:$0xff] %v11905_v1  ;;  %vm4213_vm14 = vmor %vm4211_vm13, %vm4212_vm12  ;;  %v11910_v33 = vmin.f32 %v4823_v63, 16.0  ;;  %v11912_v36 = vadd.f32 1.0, %v4324_v61  ;;  %v4400_v23 = vmul.f32 %v4399_v20, %v11461_v46  ;;  %v8134_v13 = vclamps-f32 %v4140_v53, 1.0 }
 0x412   :  { %v4214_v27 = vsel %vm4213_vm14, %v8730_v52, %v4210_v10  ;;  %vm4216_vm15 = vcmp.eq.f32.partialorder %v4215_v15, 8.507059e+37  ;;  %v4277_v14 = vadd.f32 0.001143296, %v4276_v41  ;;  %v4792_v21 = vadd.f32 0.18741608, %v4791_v22 }
 0x413   :  { %v4219_v37 = vsel %vm4216_vm15, %v4218_v39, %v4214_v27  ;;  %v11916_v40 = vmul.f32 0.70710677, %v11905_v1  ;;  %8731 = vrcp.f32 %v11912_v36  ;;  %v4714_v54 = vadd.f32 1.1283791, %v11863_v58 }
 0x414   :  { %v4673_v60 = vmul.f32 %v4672_v26, %v11766_v62  ;;  %v11922_v63 = vmul.f32 0.5, %v11753_v2  ;;  %v4220_v12 = vmul.f32 %v4219_v37, %v11607_v4  ;;  %v4747_v52 = vmul.f32 %v4746_v43, %v11879_v28 }
 0x415   :  { %14015 = vst [vmem:[#allocation24_spill] sm:$0xff] %v11916_v40  ;;  %v4825_v10 = vmul.f32 2.1237322e-06, %v11910_v33  ;;  %v4401_v41 = vadd.f32 0.112945676, %v4400_v23  ;;  %v4278_v20 = vmul.f32 %v4277_v14, %v11435_v5  ;;  %v5071_v15 = vadd.f32 1.0, %v8134_v13 }
 0x416   :  { %v4866_v53 = vadd.f32 0.00028619796, %v4865_v17  ;;  %v8136_v16 = vclamps-f32 %v4220_v12, 1.0  ;;  %v4356_v22 = vmul.f32 3.8918573e-05, %v11477_v31  ;;  %v4793_v58 = vmul.f32 %v4792_v21, %v11799_v47  ;;  %v14016_v12 = vld [vmem:[#allocation27_spill] sm:$0xff] }
 0x417   :  { %v4943_v2 = vmul.f32 %v11916_v40, %v11916_v40  ;;  %v4402_v26 = vmul.f32 %v4401_v41, %v11461_v46  ;;  %v4279_v4 = vadd.f32 0.014752088, %v4278_v20  ;;  %v11935_v61 = vmul.f32 %v11842_v38, %v11669_v51  ;;  %v14017_v20 = vld [vmem:[#allocation43_spill] sm:$0xff]  ;;  %v3595_v40 = vpop.f32.mrf.mxu0 }
 0x418   :  { %v11938_v43 = vmul.f32 %v4714_v54, %v11688_v18  ;;  %v5073_v17 = vadd.f32 1.0, %v8136_v16  ;;  %v4357_v39 = vadd.f32 0.001143296, %v4356_v22  ;;  %v4748_v13 = vadd.f32 0.0036580483, %v4747_v52  ;;  %v3544_v18 = vpop.f32.mrf.mxu3 }
 0x419   :  { %v11940_v23 = vpop.eup %8731  ;;  %v4826_v27 = vadd.f32 0.00028619796, %v4825_v10  ;;  %v4403_v14 = vadd.f32 0.4994258, %v4402_v26  ;;  %v4280_v21 = vmul.f32 %v4279_v4, %v11435_v5  ;;  %v4867_v37 = vmul.f32 %v4866_v53, %v11895_v29  ;;  %v3495_v10 = vpop.f32.mrf.mxu2 }
 0x41a   :  { %v5103_v41 = vmul.f32 %v5071_v15, %v14016_v12  ;;  %v5105_v1 = vmul.f32 %v5073_v17, %v14017_v20  ;;  %v4327_v51 = vmul.f32 %v11940_v23, %v11912_v36  ;;  %v4674_v38 = vadd.f32 1.1283791, %v4673_v60  ;;  %v3644_v60 = vpop.f32.mrf.mxu1 }
 0x41b   :  { %v4794_v54 = vadd.f32 1.1283791, %v4793_v58  ;;  %v11948_v16 = vmin.f32 %v4943_v2, 16.0  ;;  %v4404_v52 = vmul.f32 %v4403_v14, %v11461_v46  ;;  %v4281_v4 = vadd.f32 0.112945676, %v4280_v21 }
 0x41c   :  { %v5131_v22 = vpack.c.bf16 %v5105_v1, %v5103_v41  ;;  %v4328_v26 = vsub.f32 1.0, %v4327_v51  ;;  %v4358_v53 = vmul.f32 %v4357_v39, %v11477_v31  ;;  %v4749_v15 = vmul.f32 %v4748_v13, %v11879_v28 }
 0x41d   :  { %v4827_v17 = vmul.f32 %v4826_v27, %v11910_v33  ;;  %v11954_v12 = vadd.f32 1.0, %v4404_v52  ;;  %v3545_v20 = vadd.f32 %v3544_v18, %v3495_v10  ;;  %v4868_v58 = vadd.f32 0.0036580483, %v4867_v37 }
 0x41e   :  { %5353 = vmatmul.bf16.gmra.mxu2 %v5131_v22  ;;  %5451 = vmatmul.bf16.gmra.mxu0 %v5131_v22  ;;  %v4329_v46 = vmul.f32 %v11940_v23, %v4328_v26  ;;  %v3645_v2 = vadd.f32 %v3644_v60, %v3595_v40  ;;  %v4282_v1 = vmul.f32 %v4281_v4, %v11435_v5  ;;  %v4945_v14 = vmul.f32 2.1237322e-06, %v11948_v16 }
 0x41f   :  { %vm4331_vm0 = vweird.f32 %v11912_v36  ;;  %vm4332_vm1 = vweird.f32 %v11940_v23  ;;  %8733 = vrcp.f32 %v11954_v12  ;;  %v4337_v13 = vand.u32 2147483648, %v11912_v36 }
 0x420   :  { %v4330_v39 = vadd.f32 %v11940_v23, %v4329_v46  ;;  %v4359_v27 = vadd.f32 0.014752088, %v4358_v53  ;;  %v4476_v21 = vmul.f32 3.8918573e-05, %v11481_v24  ;;  %v4335_v37 = vand.u32 2147483647, %v11912_v36  ;;  %vm4333_vm2 = vmor %vm4331_vm0, %vm4332_vm1 }
 0x421   :  { %v3677_v40 = vmul.f32 %v11033_v57, %v3545_v20  ;;  %v3680_v41 = vmul.f32 %v11033_v57, %v3645_v2  ;;  %v4283_v51 = vadd.f32 0.4994258, %v4282_v1  ;;  %v11969_v18 = vmul.f32 %v4674_v38, %v11743_v34 }
 0x422   :  { %v11972_v52 = vmul.f32 0.5, %v11837_v30  ;;  %v11975_v10 = vmul.f32 0.5, %v11854_v9  ;;  %v4869_v22 = vmul.f32 %v4868_v58, %v11895_v29  ;;  %v4828_v26 = vadd.f32 0.0036580483, %v4827_v17 }
 0x423   :  { %v4946_v4 = vadd.f32 0.00028619796, %v4945_v14  ;;  %v4334_v53 = vsel %vm4333_vm2, %v11940_v23, %v4330_v39  ;;  %v11982_v20 = vadd.f32 %v11036_v25, %v3680_v41  ;;  %v4338_v34 = vor.u32 1.1754944e-38, %v4337_v13 }
 0x424   :  { %v4284_v38 = vmul.f32 %v4283_v51, %v11435_v5  ;;  %v4360_v30 = vmul.f32 %v4359_v27, %v11477_v31  ;;  %v4477_v60 = vadd.f32 0.001143296, %v4476_v21  ;;  %v11987_v46 = vmul.f32 %v4794_v54, %v11771_v42 }
 0x425   :  { %14018 = vst [vmem:[#allocation39_spill] sm:$0xff] %v11982_v20  ;;  %v8734_v9 = vpop.eup %8733  ;;  %v4750_v58 = vadd.f32 0.05243302, %v4749_v15  ;;  %vm4336_vm3 = vcmp.eq.f32.partialorder %v4335_v37, 8.507059e+37  ;;  %v11990_v36 = vadd.f32 %v11048_v49, %v3677_v40  ;;  %v11994_v25 = vmul.f32 0.70710677, %v11982_v20 }
 0x426   :  { %v4339_v17 = vsel %vm4336_vm3, %v4338_v34, %v4334_v53  ;;  %v4407_v23 = vmul.f32 %v8734_v9, %v11954_v12  ;;  %v11996_v2 = vadd.f32 1.0, %v4284_v38  ;;  %v4870_v5 = vadd.f32 0.05243302, %v4869_v22 }
 0x427   :  { %14019 = vst [vmem:[#allocation30_spill] sm:$0xff] %v11990_v36  ;;  %v4829_v1 = vmul.f32 %v4828_v26, %v11910_v33  ;;  %v4947_v14 = vmul.f32 %v4946_v4, %v11948_v16  ;;  %v4361_v42 = vadd.f32 0.112945676, %v4360_v30  ;;  %v12001_v54 = vmul.f32 0.5, %v11875_v6 }
 0x428   :  { %14020 = vst [vmem:[#allocation20_spill] sm:$0xff] %v11994_v25  ;;  %v4408_v15 = vsub.f32 1.0, %v4407_v23  ;;  %8735 = vrcp.f32 %v11996_v2  ;;  %v4478_v39 = vmul.f32 %v4477_v60, %v11481_v24  ;;  %v4340_v13 = vmul.f32 %v4339_v17, %v11622_v45 }
 0x429   :  { %v4415_v27 = vand.u32 2147483647, %v11954_v12  ;;  %v4417_v21 = vand.u32 2147483648, %v11954_v12  ;;  %v12009_v37 = vmul.f32 0.70710677, %v11990_v36  ;;  %vm4412_vm4 = vweird.f32 %v8734_v9 }
 0x42a   :  { %v4409_v40 = vmul.f32 %v8734_v9, %v4408_v15  ;;  %v5023_v6 = vmul.f32 %v11994_v25, %v11994_v25  ;;  %v4362_v41 = vmul.f32 %v4361_v42, %v11477_v31  ;;  %v4751_v51 = vmul.f32 %v4750_v58, %v11879_v28 }
 0x42b   :  { %14021 = vst [vmem:[#allocation28_spill] sm:$0xff] %v12009_v37  ;;  %v4871_v22 = vmul.f32 %v4870_v5, %v11895_v29  ;;  %v4830_v26 = vadd.f32 0.05243302, %v4829_v1  ;;  %v4948_v45 = vadd.f32 0.0036580483, %v4947_v14  ;;  %vm4411_vm5 = vweird.f32 %v11954_v12 }
 0x42c   :  { %v4410_v4 = vadd.f32 %v8734_v9, %v4409_v40  ;;  %v4363_v53 = vadd.f32 0.4994258, %v4362_v41  ;;  %v4479_v34 = vadd.f32 0.014752088, %v4478_v39  ;;  %v8139_v38 = vclamps-f32 %v4340_v13, 1.0  ;;  %vm4413_vm6 = vmor %vm4411_vm5, %vm4412_vm4 }
 0x42d   :  { %vm4416_vm7 = vcmp.eq.f32.partialorder %v4415_v27, 8.507059e+37  ;;  %v4418_v30 = vor.u32 1.1754944e-38, %v4417_v21  ;;  %v4903_v60 = vmul.f32 %v12009_v37, %v12009_v37  ;;  %v12019_v42 = vmin.f32 %v5023_v6, 16.0 }
 0x42e   :  { %v8736_v17 = vpop.eup %8735  ;;  %v4414_v23 = vsel %vm4413_vm6, %v8734_v9, %v4410_v4  ;;  %v4364_v58 = vmul.f32 %v4363_v53, %v11477_v31  ;;  %v4480_v5 = vmul.f32 %v4479_v34, %v11481_v24  ;;  %v4752_v1 = vadd.f32 0.18741608, %v4751_v51  ;;  %v3546_v31 = vpop.f32.mrf.mxu3 }
 0x42f   :  { %v4872_v14 = vadd.f32 0.18741608, %v4871_v22  ;;  %v4419_v12 = vsel %vm4416_vm7, %v4418_v30, %v4414_v23  ;;  %v4287_v15 = vmul.f32 %v8736_v17, %v11996_v2  ;;  %v4831_v39 = vmul.f32 %v4830_v26, %v11910_v33  ;;  %v3497_v26 = vpop.f32.mrf.mxu2  ;;  %v14022_v23 = vld [vmem:[#allocation40_spill] sm:$0xff] }
 0x430   :  { %v4949_v13 = vmul.f32 %v4948_v45, %v11948_v16  ;;  %v4420_v27 = vmul.f32 %v4419_v12, %v11644_v3  ;;  %v12027_v21 = vadd.f32 1.0, %v4364_v58  ;;  %v5076_v9 = vadd.f32 1.0, %v8139_v38 }
 0x431   :  { %v12029_v40 = vmin.f32 %v4903_v60, 16.0  ;;  %v4288_v6 = vsub.f32 1.0, %v4287_v15  ;;  %v4481_v41 = vadd.f32 0.112945676, %v4480_v5  ;;  %v5025_v51 = vmul.f32 2.1237322e-06, %v12019_v42 }
 0x432   :  { %v8141_v4 = vclamps-f32 %v4420_v27, 1.0  ;;  %v4297_v22 = vand.u32 2147483648, %v11996_v2  ;;  %8737 = vrcp.f32 %v12027_v21  ;;  %vm4292_vm8 = vweird.f32 %v8736_v17  ;;  %v14023_v15 = vld [vmem:[#allocation21_spill] sm:$0xff] }
 0x433   :  { %v4289_v53 = vmul.f32 %v8736_v17, %v4288_v6  ;;  %v4295_v3 = vand.u32 2147483647, %v11996_v2  ;;  %v4556_v45 = vmul.f32 3.8918573e-05, %v11560_v32  ;;  %v4950_v34 = vadd.f32 0.05243302, %v4949_v13 }
 0x434   :  { %v5078_v38 = vadd.f32 1.0, %v8141_v4  ;;  %v3547_v30 = vadd.f32 %v3546_v31, %v3497_v26  ;;  %v4482_v60 = vmul.f32 %v4481_v41, %v11481_v24  ;;  %v5108_v58 = vmul.f32 %v5076_v9, %v14022_v23 }
 0x435   :  { %v4905_v5 = vmul.f32 2.1237322e-06, %v12029_v40  ;;  %v4290_v12 = vadd.f32 %v8736_v17, %v4289_v53  ;;  %vm4291_vm9 = vweird.f32 %v11996_v2  ;;  %v5026_v6 = vadd.f32 0.00028619796, %v5025_v51 }
 0x436   :  { %v5110_v27 = vmul.f32 %v5078_v38, %v14023_v15  ;;  %vm4293_vm10 = vmor %vm4291_vm9, %vm4292_vm8  ;;  %v4298_v36 = vor.u32 1.1754944e-38, %v4297_v22  ;;  %v4483_v37 = vadd.f32 0.4994258, %v4482_v60  ;;  %v4832_v20 = vadd.f32 0.18741608, %v4831_v39 }
 0x437   :  { %v4294_v25 = vsel %vm4293_vm10, %v8736_v17, %v4290_v12  ;;  %vm4296_vm11 = vcmp.eq.f32.partialorder %v4295_v3, 8.507059e+37  ;;  %v4557_v13 = vadd.f32 0.001143296, %v4556_v45  ;;  %v3679_v9 = vmul.f32 %v11033_v57, %v3547_v30 }
 0x438   :  { %v8738_v31 = vpop.eup %8737  ;;  %v5134_v4 = vpack.c.bf16 %v5110_v27, %v5108_v58  ;;  %v4299_v41 = vsel %vm4296_vm11, %v4298_v36, %v4294_v25  ;;  %v4484_v26 = vmul.f32 %v4483_v37, %v11481_v24  ;;  %v12044_v53 = vmul.f32 %v4752_v1, %v11879_v28 }
 0x439   :  { %v4951_v2 = vmul.f32 %v4950_v34, %v11948_v16  ;;  %v4906_v51 = vadd.f32 0.00028619796, %v4905_v5  ;;  %v4367_v22 = vmul.f32 %v8738_v31, %v12027_v21  ;;  %v5027_v17 = vmul.f32 %v5026_v6, %v12019_v42 }
 0x43a   :  { %5407 = vmatmul.bf16.gmra.mxu3 %v5134_v4  ;;  %5505 = vmatmul.bf16.gmra.mxu1 %v5134_v4  ;;  %v4300_v39 = vmul.f32 %v4299_v41, %v11635_v50  ;;  %v12050_v3 = vadd.f32 1.0, %v4484_v26  ;;  %v4558_v57 = vmul.f32 %v4557_v13, %v11560_v32  ;;  %v12054_v24 = vmul.f32 %v4872_v14, %v11895_v29 }
 0x43b   :  { %v4368_v36 = vsub.f32 1.0, %v4367_v22  ;;  %v4375_v25 = vand.u32 2147483647, %v12027_v21  ;;  %v4436_v37 = vmul.f32 3.8918573e-05, %v11540_v48  ;;  %v12059_v1 = vmul.f32 %v4832_v20, %v11910_v33 }
 0x43c   :  { %v4377_v45 = vand.u32 2147483648, %v12027_v21  ;;  %v12063_v34 = vadd.f32 %v11048_v49, %v3679_v9  ;;  %8739 = vrcp.f32 %v12050_v3  ;;  %v12066_v50 = vadd.f32 0.18741608, %v4951_v2 }
 0x43d   :  { %v12069_v14 = vmul.f32 %v4906_v51, %v12029_v40  ;;  %v4369_v38 = vmul.f32 %v8738_v31, %v4368_v36  ;;  %vm4372_vm12 = vweird.f32 %v8738_v31  ;;  %v12071_v30 = vadd.f32 0.0036580483, %v5027_v17 }
 0x43e   :  { %v8138_v60 = vclamps-f32 %v4300_v39, 1.0  ;;  %vm4371_vm13 = vweird.f32 %v12027_v21  ;;  %v4559_v20 = vadd.f32 0.014752088, %v4558_v57  ;;  %vm4376_vm14 = vcmp.eq.f32.partialorder %v4375_v25, 8.507059e+37 }
 0x43f   :  { %v4370_v23 = vadd.f32 %v8738_v31, %v4369_v38  ;;  %v4495_v49 = vand.u32 2147483647, %v12050_v3  ;;  %v4437_v58 = vadd.f32 0.001143296, %v4436_v37  ;;  %vm4373_vm15 = vmor %vm4371_vm13, %vm4372_vm12  ;;  %v4378_v5 = vor.u32 1.1754944e-38, %v4377_v45 }
 0x440   :  { %v12076_v12 = vmul.f32 0.70710677, %v12063_v34  ;;  %v4560_v15 = vmul.f32 %v4559_v20, %v11560_v32  ;;  %v4516_v27 = vmul.f32 3.8918573e-05, %v11580_v56  ;;  %vm4491_vm0 = vweird.f32 %v12050_v3 }
 0x441   :  { %v4374_v6 = vsel %vm4373_vm15, %v8738_v31, %v4370_v23  ;;  %v4438_v21 = vmul.f32 %v4437_v58, %v11540_v48  ;;  %v4636_v13 = vmul.f32 3.8918573e-05, %v11609_v7  ;;  %v4716_v4 = vmul.f32 3.8918573e-05, %v11721_v8 }
 0x442   :  { %v8740_v41 = vpop.eup %8739  ;;  %v4379_v9 = vsel %vm4376_vm14, %v4378_v5, %v4374_v6  ;;  %v5075_v26 = vadd.f32 1.0, %v8138_v60  ;;  %v4561_v2 = vadd.f32 0.112945676, %v4560_v15  ;;  %v4517_v51 = vadd.f32 0.001143296, %v4516_v27  ;;  %v14026_v6 = vld [vmem:[#allocation42_spill] sm:$0xff] }
 0x443   :  { %v4380_v22 = vmul.f32 %v4379_v9, %v11700_v19  ;;  %v4487_v17 = vmul.f32 %v8740_v41, %v12050_v3  ;;  %vm12086_vm1 = vcmp.eq.f32.partialorder %v4495_v49, 8.507059e+37  ;;  %v4439_v31 = vadd.f32 0.014752088, %v4438_v21 }
 0x444   :  { %v4497_v57 = vand.u32 2147483648, %v12050_v3  ;;  %v4562_v36 = vmul.f32 %v4561_v2, %v11560_v32  ;;  %v4518_v25 = vmul.f32 %v4517_v51, %v11580_v56  ;;  %v4637_v37 = vadd.f32 0.001143296, %v4636_v13  ;;  %v14027_v51 = vld [vmem:[#allocation29_spill] sm:$0xff] }
 0x445   :  { %v8140_v45 = vclamps-f32 %v4380_v22, 1.0  ;;  %v4488_v38 = vsub.f32 1.0, %v4487_v17  ;;  %v4440_v60 = vmul.f32 %v4439_v31, %v11540_v48  ;;  %v4717_v20 = vadd.f32 0.001143296, %v4716_v4 }
 0x446   :  { %vm4492_vm2 = vweird.f32 %v8740_v41  ;;  %v4563_v19 = vadd.f32 0.4994258, %v4562_v36  ;;  %v4519_v23 = vadd.f32 0.014752088, %v4518_v25  ;;  %v4638_v49 = vmul.f32 %v4637_v37, %v11609_v7 }
 0x447   :  { %v5077_v58 = vadd.f32 1.0, %v8140_v45  ;;  %v4489_v5 = vmul.f32 %v8740_v41, %v4488_v38  ;;  %v4441_v15 = vadd.f32 0.112945676, %v4440_v60  ;;  %v4718_v27 = vmul.f32 %v4717_v20, %v11721_v8  ;;  %vm4493_vm3 = vmor %vm4491_vm0, %vm4492_vm2 }
 0x448   :  { %v5107_v21 = vmul.f32 %v5075_v26, %v14026_v6  ;;  %v4564_v9 = vmul.f32 %v4563_v19, %v11560_v32  ;;  %v4520_v13 = vmul.f32 %v4519_v23, %v11580_v56  ;;  %v4639_v2 = vadd.f32 0.014752088, %v4638_v49 }
 0x449   :  { %v5109_v22 = vmul.f32 %v5077_v58, %v14027_v51  ;;  %v4490_v4 = vadd.f32 %v8740_v41, %v4489_v5  ;;  %v4442_v17 = vmul.f32 %v4441_v15, %v11540_v48  ;;  %v4719_v31 = vadd.f32 0.014752088, %v4718_v27 }
 0x44a   :  { %v4498_v36 = vor.u32 1.1754944e-38, %v4497_v57  ;;  %v12104_v25 = vadd.f32 1.0, %v4564_v9  ;;  %v4521_v37 = vadd.f32 0.112945676, %v4520_v13  ;;  %v4640_v26 = vmul.f32 %v4639_v2, %v11609_v7  ;;  %v8621_v9 = vld [vmem:[#allocation12 + $0x38] sm:$0xff] }
 0x44b   :  { %v5133_v32 = vpack.c.bf16 %v5109_v22, %v5107_v21  ;;  %v4494_v45 = vsel %vm4493_vm3, %v8740_v41, %v4490_v4  ;;  %v4443_v38 = vadd.f32 0.4994258, %v4442_v17  ;;  %v4720_v60 = vmul.f32 %v4719_v31, %v11721_v8  ;;  %v8629_v13 = vld [vmem:[#allocation12 + $0x78] sm:$0xff]  ;;  %7159 = vmatpush.bf16.msrb.mxu2 %v8621_v9 }
 0x44c   :  { %v12109_v20 = vadd.f32 1.1283791, %v12044_v53  ;;  %v4953_v19 = vmul.f32 %v12066_v50, %v11948_v16  ;;  %v4499_v3 = vsel %vm12086_vm1, %v4498_v36, %v4494_v45  ;;  %8741 = vrcp.f32 %v12104_v25  ;;  %7208 = vmatpush.bf16.msrb.mxu3 %v8629_v13 }
 0x44d   :  { %v4908_v57 = vadd.f32 0.0036580483, %v12069_v14  ;;  %v5029_v23 = vmul.f32 %v12071_v30, %v12019_v42  ;;  %5358 = vmatmul.bf16.gmra.mxu2 %v5133_v32  ;;  %5456 = vmatmul.bf16.gmra.mxu0 %v5133_v32  ;;  %v4500_v41 = vmul.f32 %v4499_v3, %v11708_v35  ;;  %v4444_v53 = vmul.f32 %v4443_v38, %v11540_v48 }
 0x44e   :  { %v12122_v49 = vadd.f32 1.1283791, %v12054_v24  ;;  %v4522_v50 = vmul.f32 %v4521_v37, %v11580_v56  ;;  %v4641_v39 = vadd.f32 0.112945676, %v4640_v26  ;;  %v4721_v58 = vadd.f32 0.112945676, %v4720_v60 }
 0x44f   :  { %v12126_v5 = vadd.f32 1.1283791, %v12059_v1  ;;  %v4983_v14 = vmul.f32 %v12076_v12, %v12076_v12  ;;  %v8143_v30 = vclamps-f32 %v4500_v41, 1.0  ;;  %v12130_v15 = vadd.f32 1.0, %v4444_v53 }
 0x450   :  { %v12132_v27 = vadd.f32 1.1283791, %v4953_v19  ;;  %v4523_v35 = vadd.f32 0.4994258, %v4522_v50  ;;  %v4642_v48 = vmul.f32 %v4641_v39, %v11609_v7  ;;  %v4722_v24 = vmul.f32 %v4721_v58, %v11721_v8  ;;  %v14030_v50 = vld [vmem:[#allocation18_spill] sm:$0xff] }
 0x451   :  { %v12137_v6 = vmul.f32 %v4908_v57, %v12029_v40  ;;  %v12139_v21 = vadd.f32 0.05243302, %v5029_v23  ;;  %v4575_v1 = vand.u32 2147483647, %v12104_v25  ;;  %8743 = vrcp.f32 %v12130_v15 }
 0x452   :  { %v8742_v2 = vpop.eup %8741  ;;  %v4577_v51 = vand.u32 2147483648, %v12104_v25  ;;  %v4524_v22 = vmul.f32 %v4523_v35, %v11580_v56  ;;  %v4643_v4 = vadd.f32 0.4994258, %v4642_v48  ;;  %v4723_v17 = vadd.f32 0.4994258, %v4722_v24 }
 0x453   :  { %v12145_v31 = vmin.f32 %v4983_v14, 16.0  ;;  %v4567_v36 = vmul.f32 %v8742_v2, %v12104_v25  ;;  %vm4571_vm4 = vweird.f32 %v12104_v25  ;;  %v5080_v37 = vadd.f32 1.0, %v8143_v30 }
 0x454   :  { %v4455_v26 = vand.u32 2147483647, %v12130_v15  ;;  %v12150_v32 = vadd.f32 1.0, %v4524_v22  ;;  %v4644_v45 = vmul.f32 %v4643_v4, %v11609_v7  ;;  %v4724_v38 = vmul.f32 %v4723_v17, %v11721_v8 }
 0x455   :  { %v4568_v56 = vsub.f32 1.0, %v4567_v36  ;;  %vm12154_vm5 = vcmp.eq.f32.partialorder %v4575_v1, 8.507059e+37  ;;  %v4457_v19 = vand.u32 2147483648, %v12130_v15  ;;  %v4596_v3 = vmul.f32 3.8918573e-05, %v11693_v11 }
 0x456   :  { %vm4572_vm6 = vweird.f32 %v8742_v2  ;;  %v4578_v57 = vor.u32 1.1754944e-38, %v4577_v51  ;;  %vm4451_vm7 = vweird.f32 %v12130_v15  ;;  %8745 = vrcp.f32 %v12150_v32 }
 0x457   :  { %v8744_v23 = vpop.eup %8743  ;;  %v4569_v41 = vmul.f32 %v8742_v2, %v4568_v56  ;;  %v4537_v7 = vand.u32 2147483648, %v12150_v32  ;;  %v12163_v8 = vadd.f32 1.0, %v4644_v45  ;;  %v12165_v53 = vadd.f32 1.0, %v4724_v38  ;;  %vm4573_vm9 = vmor %vm4571_vm4, %vm4572_vm6 }
 0x458   :  { %v12168_v39 = vmul.f32 %v5080_v37, %v14030_v50  ;;  %v4447_v58 = vmul.f32 %v8744_v23, %v12130_v15  ;;  %vm12171_vm8 = vcmp.eq.f32.partialorder %v4455_v26, 8.507059e+37  ;;  %v4597_v30 = vadd.f32 0.001143296, %v4596_v3 }
 0x459   :  { %v4570_v35 = vadd.f32 %v8742_v2, %v4569_v41  ;;  %v4458_v48 = vor.u32 1.1754944e-38, %v4457_v19  ;;  %v4535_v24 = vand.u32 2147483647, %v12150_v32  ;;  %8747 = vrcp.f32 %v12163_v8 }
 0x45a   :  { %v4448_v1 = vsub.f32 1.0, %v4447_v58  ;;  %v4657_v9 = vand.u32 2147483648, %v12163_v8  ;;  %8749 = vrcp.f32 %v12165_v53  ;;  %v4676_v13 = vmul.f32 3.8918573e-05, %v11766_v62 }
 0x45b   :  { %v4574_v51 = vsel %vm4573_vm9, %v8742_v2, %v4570_v35  ;;  %vm4452_vm10 = vweird.f32 %v8744_v23  ;;  %vm4531_vm11 = vweird.f32 %v12150_v32  ;;  %v4538_v22 = vor.u32 1.1754944e-38, %v4537_v7 }
 0x45c   :  { %v4655_v4 = vand.u32 2147483647, %v12163_v8  ;;  %v8746_v17 = vpop.eup %8745  ;;  %v4579_v36 = vsel %vm12154_vm5, %v4578_v57, %v4574_v51  ;;  %v4449_v25 = vmul.f32 %v8744_v23, %v4448_v1  ;;  %v4735_v37 = vand.u32 2147483647, %v12165_v53  ;;  %vm4453_vm15 = vmor %vm4451_vm7, %vm4452_vm10 }
 0x45d   :  { %v4598_v26 = vmul.f32 %v4597_v30, %v11693_v11  ;;  %v4580_v45 = vmul.f32 %v4579_v36, %v11789_v44  ;;  %v4527_v38 = vmul.f32 %v8746_v17, %v12150_v32  ;;  %vm12191_vm12 = vcmp.eq.f32.partialorder %v4535_v24, 8.507059e+37 }
 0x45e   :  { %v4658_v56 = vor.u32 1.1754944e-38, %v4657_v9  ;;  %v4737_v19 = vand.u32 2147483648, %v12165_v53  ;;  %v4450_v3 = vadd.f32 %v8744_v23, %v4449_v25  ;;  %vm4532_vm13 = vweird.f32 %v8746_v17 }
 0x45f   :  { %vm4651_vm14 = vweird.f32 %v12163_v8  ;;  %v4599_v60 = vadd.f32 0.014752088, %v4598_v26  ;;  %v4677_v57 = vadd.f32 0.001143296, %v4676_v13  ;;  %v8748_v41 = vpop.eup %8747  ;;  %v8145_v7 = vclamps-f32 %v4580_v45, 1.0  ;;  %v14039_v45 = vld [vmem:[#allocation31_spill] sm:$0xff]  ;;  %vm4533_vm5 = vmor %vm4531_vm11, %vm4532_vm13 }
 0x460   :  { %v4528_v44 = vsub.f32 1.0, %v4527_v38  ;;  %vm4731_vm0 = vweird.f32 %v12165_v53  ;;  %v4796_v50 = vmul.f32 3.8918573e-05, %v11799_v47  ;;  %v4876_v58 = vmul.f32 3.8918573e-05, %v11895_v29  ;;  %v8750_v30 = vpop.eup %8749 }
 0x461   :  { %v4454_v35 = vsel %vm4453_vm15, %v8744_v23, %v4450_v3  ;;  %v4647_v24 = vmul.f32 %v8748_v41, %v12163_v8  ;;  %vm4652_vm1 = vweird.f32 %v8748_v41  ;;  %vm12204_vm2 = vcmp.eq.f32.partialorder %v4655_v4, 8.507059e+37 }
 0x462   :  { %v4600_v9 = vmul.f32 %v4599_v60, %v11693_v11  ;;  %v5082_v15 = vadd.f32 1.0, %v8145_v7  ;;  %v4459_v13 = vsel %vm12171_vm8, %v4458_v48, %v4454_v35  ;;  %v4529_v51 = vmul.f32 %v8746_v17, %v4528_v44  ;;  %vm4653_vm6 = vmor %vm4651_vm14, %vm4652_vm1 }
 0x463   :  { %v4727_v36 = vmul.f32 %v8750_v30, %v12165_v53  ;;  %vm12212_vm3 = vcmp.eq.f32.partialorder %v4735_v37, 8.507059e+37  ;;  %v4460_v23 = vmul.f32 %v4459_v13, %v11784_v0  ;;  %v4648_v26 = vsub.f32 1.0, %v4647_v24 }
 0x464   :  { %vm4732_vm4 = vweird.f32 %v8750_v30  ;;  %v4601_v4 = vadd.f32 0.112945676, %v4600_v9  ;;  %v5114_v38 = vmul.f32 %v5082_v15, %v14039_v45  ;;  %v4530_v3 = vadd.f32 %v8746_v17, %v4529_v51 }
 0x465   :  { %v4728_v60 = vsub.f32 1.0, %v4727_v36  ;;  %v4678_v7 = vmul.f32 %v4677_v57, %v11766_v62  ;;  %v8142_v14 = vclamps-f32 %v4460_v23, 1.0  ;;  %v4649_v48 = vmul.f32 %v8748_v41, %v4648_v26  ;;  %vm4733_vm7 = vmor %vm4731_vm0, %vm4732_vm4 }
 0x466   :  { %v4602_v37 = vmul.f32 %v4601_v4, %v11693_v11  ;;  %v4797_v44 = vadd.f32 0.001143296, %v4796_v50  ;;  %v5136_v0 = vpack.c.bf16 %v5114_v38, %v12168_v39  ;;  %v4534_v35 = vsel %vm4533_vm5, %v8746_v17, %v4530_v3 }
 0x467   :  { %v4729_v24 = vmul.f32 %v8750_v30, %v4728_v60  ;;  %v4679_v9 = vadd.f32 0.014752088, %v4678_v7  ;;  %v4539_v15 = vsel %vm12191_vm12, %v4538_v22, %v4534_v35  ;;  %v4650_v13 = vadd.f32 %v8748_v41, %v4649_v48  ;;  %v14041_v60 = vld [vmem:[#allocation32_spill] sm:$0xff] }
 0x468   :  { %v4738_v51 = vor.u32 1.1754944e-38, %v4737_v19  ;;  %v4603_v57 = vadd.f32 0.4994258, %v4602_v37  ;;  %5412 = vmatmul.bf16.gmra.mxu3 %v5136_v0  ;;  %5510 = vmatmul.bf16.gmra.mxu1 %v5136_v0  ;;  %v4540_v32 = vmul.f32 %v4539_v15, %v11797_v59  ;;  %v4877_v17 = vadd.f32 0.001143296, %v4876_v58  ;;  %v8620_v0 = vld [vmem:[#allocation12 + $0x30] sm:$0xff] }
 0x469   :  { %v4730_v50 = vadd.f32 %v8750_v30, %v4729_v24  ;;  %v4680_v39 = vmul.f32 %v4679_v9, %v11766_v62  ;;  %v5079_v36 = vadd.f32 1.0, %v8142_v14  ;;  %v4654_v23 = vsel %vm4653_vm6, %v8748_v41, %v4650_v13  ;;  %7160 = vmatpush.bf16.msrb.mxu2 %v8620_v0 }
 0x46a   :  { %v4604_v22 = vmul.f32 %v4603_v57, %v11693_v11  ;;  %v4798_v2 = vmul.f32 %v4797_v44, %v11799_v47  ;;  %v8144_v19 = vclamps-f32 %v4540_v32, 1.0  ;;  %v4659_v59 = vsel %vm12204_vm2, %v4658_v56, %v4654_v23 }
 0x46b   :  { %v4734_v8 = vsel %vm4733_vm7, %v8750_v30, %v4730_v50  ;;  %v4681_v26 = vadd.f32 0.112945676, %v4680_v39  ;;  %v4660_v4 = vmul.f32 %v4659_v59, %v11826_v55  ;;  %v4878_v3 = vmul.f32 %v4877_v17, %v11895_v29  ;;  %v14040_v30 = vld [vmem:[#allocation34_spill] sm:$0xff]  ;;  %v14043_v50 = vld [vmem:[#allocation33_spill] sm:$0xff]  ;;  %v14044_v17 = vld [vmem:[#allocation36_spill] sm:$0xff] }
 0x46c   :  { %v4739_v58 = vsel %vm12212_vm3, %v4738_v51, %v4734_v8  ;;  %v12241_v41 = vadd.f32 1.0, %v4604_v22  ;;  %v4799_v45 = vadd.f32 0.014752088, %v4798_v2  ;;  %v5081_v53 = vadd.f32 1.0, %v8144_v19 }
 0x46d   :  { %v4740_v38 = vmul.f32 %v4739_v58, %v11938_v43  ;;  %v4682_v11 = vmul.f32 %v4681_v26, %v11766_v62  ;;  %v12247_v1 = vadd.f32 0.05243302, %v12137_v6  ;;  %v5031_v56 = vmul.f32 %v12139_v21, %v12019_v42  ;;  %v14042_v43 = vld [vmem:[#allocation38_spill] sm:$0xff]  ;;  %v8628_v6 = vld [vmem:[#allocation12 + $0x70] sm:$0xff] }
 0x46e   :  { %v8147_v55 = vclamps-f32 %v4660_v4, 1.0  ;;  %8751 = vrcp.f32 %v12241_v41  ;;  %v5111_v25 = vmul.f32 %v5079_v36, %v14040_v30  ;;  %v5113_v7 = vmul.f32 %v5081_v53, %v14041_v60  ;;  %7209 = vmatpush.bf16.msrb.mxu3 %v8628_v6 }
 0x46f   :  { %v8149_v14 = vclamps-f32 %v4740_v38, 1.0  ;;  %v4683_v48 = vadd.f32 0.4994258, %v4682_v11  ;;  %v12256_v37 = vmul.f32 %v12109_v20, %v14042_v43  ;;  %v4800_v35 = vmul.f32 %v4799_v45, %v11799_v47  ;;  %v14045_v45 = vld [vmem:[#allocation22_spill] sm:$0xff] }
 0x470   :  { %v5084_v44 = vadd.f32 1.0, %v8147_v55  ;;  %v4879_v24 = vadd.f32 0.014752088, %v4878_v3  ;;  %v4985_v21 = vmul.f32 2.1237322e-06, %v12145_v31  ;;  %v5135_v9 = vpack.c.bf16 %v5113_v7, %v5111_v25 }
 0x471   :  { %v5086_v15 = vadd.f32 1.0, %v8149_v14  ;;  %v4684_v13 = vmul.f32 %v4683_v48, %v11766_v62  ;;  %v12261_v51 = vadd.f32 0.18741608, %v5031_v56  ;;  %v4801_v57 = vadd.f32 0.112945676, %v4800_v35 }
 0x472   :  { %v4880_v20 = vmul.f32 %v4879_v24, %v11895_v29  ;;  %v4756_v32 = vmul.f32 3.8918573e-05, %v11879_v28  ;;  %5363 = vmatmul.bf16.gmra.mxu2 %v5135_v9  ;;  %5461 = vmatmul.bf16.gmra.mxu0 %v5135_v9  ;;  %v5116_v39 = vmul.f32 %v5084_v44, %v14043_v50  ;;  %v4836_v22 = vmul.f32 3.8918573e-05, %v11910_v33 }
 0x473   :  { %v5118_v36 = vmul.f32 %v5086_v15, %v14044_v17  ;;  %v12267_v23 = vadd.f32 1.0, %v4684_v13  ;;  %v4802_v2 = vmul.f32 %v4801_v57, %v11799_v47  ;;  %v4956_v8 = vmul.f32 3.8918573e-05, %v11948_v16 }
 0x474   :  { %v8752_v62 = vpop.eup %8751  ;;  %v4881_v19 = vadd.f32 0.112945676, %v4880_v20  ;;  %v4757_v59 = vadd.f32 0.001143296, %v4756_v32  ;;  %v12272_v26 = vadd.f32 0.00028619796, %v4985_v21  ;;  %v12278_v53 = vmul.f32 %v12122_v49, %v14045_v45 }
 0x475   :  { %v5138_v4 = vpack.c.bf16 %v5118_v36, %v5116_v39  ;;  %v4607_v58 = vmul.f32 %v8752_v62, %v12241_v41  ;;  %8753 = vrcp.f32 %v12267_v23  ;;  %v4615_v38 = vand.u32 2147483647, %v12241_v41 }
 0x476   :  { %v4617_v11 = vand.u32 2147483648, %v12241_v41  ;;  %v4803_v3 = vadd.f32 0.4994258, %v4802_v2  ;;  %v4882_v55 = vmul.f32 %v4881_v19, %v11895_v29  ;;  %v4758_v30 = vmul.f32 %v4757_v59, %v11879_v28 }
 0x477   :  { %v4608_v56 = vsub.f32 1.0, %v4607_v58  ;;  %v4837_v25 = vadd.f32 0.001143296, %v4836_v22  ;;  %vm4612_vm8 = vweird.f32 %v8752_v62  ;;  %v4957_v7 = vadd.f32 0.001143296, %v4956_v8 }
 0x478   :  { %v4804_v60 = vmul.f32 %v4803_v3, %v11799_v47  ;;  %v5036_v14 = vmul.f32 3.8918573e-05, %v12019_v42  ;;  %5417 = vmatmul.bf16.gmra.mxu3 %v5138_v4  ;;  %5515 = vmatmul.bf16.gmra.mxu1 %v5138_v4  ;;  %v4883_v48 = vadd.f32 0.4994258, %v4882_v55  ;;  %v4759_v43 = vadd.f32 0.014752088, %v4758_v30 }
 0x479   :  { %v4609_v49 = vmul.f32 %v8752_v62, %v4608_v56  ;;  %v4838_v44 = vmul.f32 %v4837_v25, %v11910_v33  ;;  %vm4611_vm9 = vweird.f32 %v12241_v41  ;;  %vm12288_vm10 = vcmp.eq.f32.partialorder %v4615_v38, 8.507059e+37 }
 0x47a   :  { %v4618_v6 = vor.u32 1.1754944e-38, %v4617_v11  ;;  %v12292_v35 = vadd.f32 1.0, %v4804_v60  ;;  %v4884_v21 = vmul.f32 %v4883_v48, %v11895_v29  ;;  %v4760_v9 = vmul.f32 %v4759_v43, %v11879_v28  ;;  %vm4613_vm11 = vmor %vm4611_vm9, %vm4612_vm8 }
 0x47b   :  { %v8754_v47 = vpop.eup %8753  ;;  %v4610_v24 = vadd.f32 %v8752_v62, %v4609_v49  ;;  %v4839_v15 = vadd.f32 0.014752088, %v4838_v44  ;;  %v4695_v41 = vand.u32 2147483647, %v12267_v23  ;;  %v4697_v57 = vand.u32 2147483648, %v12267_v23 }
 0x47c   :  { %v4687_v13 = vmul.f32 %v8754_v47, %v12267_v23  ;;  %8755 = vrcp.f32 %v12292_v35  ;;  %v12301_v32 = vadd.f32 1.0, %v4884_v21  ;;  %v4958_v50 = vmul.f32 %v4957_v7, %v11948_v16 }
 0x47d   :  { %v4614_v20 = vsel %vm4613_vm11, %v8752_v62, %v4610_v24  ;;  %v5037_v39 = vadd.f32 0.001143296, %v5036_v14  ;;  %v4761_v36 = vadd.f32 0.112945676, %v4760_v9  ;;  %v4840_v22 = vmul.f32 %v4839_v15, %v11910_v33 }
 0x47e   :  { %v4619_v29 = vsel %vm12288_vm10, %v4618_v6, %v4614_v20  ;;  %v4688_v17 = vsub.f32 1.0, %v4687_v13  ;;  %v4815_v19 = vand.u32 2147483647, %v12292_v35  ;;  %v4817_v59 = vand.u32 2147483648, %v12292_v35 }
 0x47f   :  { %v4620_v2 = vmul.f32 %v4619_v29, %v11935_v61  ;;  %8757 = vrcp.f32 %v12301_v32  ;;  %vm4691_vm12 = vweird.f32 %v12267_v23  ;;  %vm4692_vm13 = vweird.f32 %v8754_v47 }
 0x480   :  { %v4689_v62 = vmul.f32 %v8754_v47, %v4688_v17  ;;  %vm12312_vm14 = vcmp.eq.f32.partialorder %v4695_v41, 8.507059e+37  ;;  %v4698_v4 = vor.u32 1.1754944e-38, %v4697_v57  ;;  %v4762_v58 = vmul.f32 %v4761_v36, %v11879_v28  ;;  %vm4693_vm0 = vmor %vm4691_vm12, %vm4692_vm13  ;;  %v8619_v17 = vld [vmem:[#allocation12 + $0x28] sm:$0xff] }
 0x481   :  { %v4841_v45 = vadd.f32 0.112945676, %v4840_v22  ;;  %v4959_v38 = vadd.f32 0.014752088, %v4958_v50  ;;  %vm4811_vm15 = vweird.f32 %v12292_v35  ;;  %v5038_v3 = vmul.f32 %v5037_v39, %v12019_v42  ;;  %v8627_v36 = vld [vmem:[#allocation12 + $0x68] sm:$0xff]  ;;  %7161 = vmatpush.bf16.msrb.mxu2 %v8619_v17 }
 0x482   :  { %v8756_v61 = vpop.eup %8755  ;;  %v4690_v11 = vadd.f32 %v8754_v47, %v4689_v62  ;;  %v4916_v56 = vmul.f32 3.8918573e-05, %v12029_v40  ;;  %v8146_v55 = vclamps-f32 %v4620_v2, 1.0  ;;  %vm12321_vm1 = vcmp.eq.f32.partialorder %v4815_v19, 8.507059e+37  ;;  %7210 = vmatpush.bf16.msrb.mxu3 %v8627_v36 }
 0x483   :  { %v4807_v23 = vmul.f32 %v8756_v61, %v12292_v35  ;;  %v4818_v25 = vor.u32 1.1754944e-38, %v4817_v59  ;;  %v4763_v60 = vadd.f32 0.4994258, %v4762_v58  ;;  %v4842_v14 = vmul.f32 %v4841_v45, %v11910_v33  ;;  %v14055_v45 = vld [vmem:[#allocation37_spill] sm:$0xff] }
 0x484   :  { %v4694_v7 = vsel %vm4693_vm0, %v8754_v47, %v4690_v11  ;;  %v4960_v49 = vmul.f32 %v4959_v38, %v11948_v16  ;;  %v5039_v48 = vadd.f32 0.014752088, %v5038_v3  ;;  %v4895_v6 = vand.u32 2147483647, %v12301_v32 }
 0x485   :  { %v8758_v43 = vpop.eup %8757  ;;  %v4699_v44 = vsel %vm12312_vm14, %v4698_v4, %v4694_v7  ;;  %v4808_v0 = vsub.f32 1.0, %v4807_v23  ;;  %v4764_v24 = vmul.f32 %v4763_v60, %v11879_v28  ;;  %vm4812_vm2 = vweird.f32 %v8756_v61  ;;  %v14054_v4 = vld [vmem:[#allocation35_spill] sm:$0xff] }
 0x486   :  { %v4700_v21 = vmul.f32 %v4699_v44, %v11969_v18  ;;  %v4887_v9 = vmul.f32 %v8758_v43, %v12301_v32  ;;  %v4843_v47 = vadd.f32 0.4994258, %v4842_v14  ;;  %v4961_v41 = vadd.f32 0.112945676, %v4960_v49  ;;  %vm4813_vm4 = vmor %vm4811_vm15, %vm4812_vm2 }
 0x487   :  { %v4809_v15 = vmul.f32 %v8756_v61, %v4808_v0  ;;  %v12333_v13 = vadd.f32 1.0, %v4764_v24  ;;  %v5040_v57 = vmul.f32 %v5039_v48, %v12019_v42  ;;  %v5083_v50 = vadd.f32 1.0, %v8146_v55 }
 0x488   :  { %v8148_v20 = vclamps-f32 %v4700_v21, 1.0  ;;  %v4888_v39 = vsub.f32 1.0, %v4887_v9  ;;  %v4844_v29 = vmul.f32 %v4843_v47, %v11910_v33  ;;  %vm4891_vm3 = vweird.f32 %v12301_v32 }
 0x489   :  { %v4810_v28 = vadd.f32 %v8756_v61, %v4809_v15  ;;  %v4897_v18 = vand.u32 2147483648, %v12301_v32  ;;  %8759 = vrcp.f32 %v12333_v13  ;;  %vm4892_vm5 = vweird.f32 %v8758_v43 }
 0x48a   :  { %v5085_v22 = vadd.f32 1.0, %v8148_v20  ;;  %v4889_v2 = vmul.f32 %v8758_v43, %v4888_v39  ;;  %v12343_v19 = vadd.f32 1.0, %v4844_v29  ;;  %vm12345_vm6 = vcmp.eq.f32.partialorder %v4895_v6, 8.507059e+37  ;;  %vm4893_vm7 = vmor %vm4891_vm3, %vm4892_vm5 }
 0x48b   :  { %v4814_v33 = vsel %vm4813_vm4, %v8756_v61, %v4810_v28  ;;  %v4962_v62 = vmul.f32 %v4961_v41, %v11948_v16  ;;  %v5041_v8 = vadd.f32 0.112945676, %v5040_v57  ;;  %v5115_v58 = vmul.f32 %v5083_v50, %v14054_v4 }
 0x48c   :  { %v5117_v38 = vmul.f32 %v5085_v22, %v14055_v45  ;;  %v4819_v35 = vsel %vm12321_vm1, %v4818_v25, %v4814_v33  ;;  %v4890_v11 = vadd.f32 %v8758_v43, %v4889_v2  ;;  %v4898_v61 = vor.u32 1.1754944e-38, %v4897_v18 }
 0x48d   :  { %v4820_v3 = vmul.f32 %v4819_v35, %v11987_v46  ;;  %8761 = vrcp.f32 %v12343_v19  ;;  %v4917_v55 = vadd.f32 0.001143296, %v4916_v56  ;;  %v4775_v7 = vand.u32 2147483647, %v12333_v13 }
 0x48e   :  { %v5137_v23 = vpack.c.bf16 %v5117_v38, %v5115_v58  ;;  %v4894_v60 = vsel %vm4893_vm7, %v8758_v43, %v4890_v11  ;;  %v4963_v14 = vadd.f32 0.4994258, %v4962_v62  ;;  %v5033_v30 = vmul.f32 %v12261_v51, %v12019_v42 }
 0x48f   :  { %v8760_v49 = vpop.eup %8759  ;;  %v8151_v25 = vclamps-f32 %v4820_v3, 1.0  ;;  %v4899_v46 = vsel %vm12345_vm6, %v4898_v61, %v4894_v60  ;;  %v5042_v32 = vmul.f32 %v5041_v8, %v12019_v42  ;;  %v4987_v48 = vmul.f32 %v12272_v26, %v12145_v31  ;;  %v14058_v8 = vld [vmem:[#allocation23_spill] sm:$0xff]  ;;  %v14059_v3 = vld [vmem:[#allocation24_spill] sm:$0xff] }
 0x490   :  { %5368 = vmatmul.bf16.gmra.mxu2 %v5137_v23  ;;  %5466 = vmatmul.bf16.gmra.mxu0 %v5137_v23  ;;  %v4900_v56 = vmul.f32 %v4899_v46, %v12278_v53  ;;  %v4767_v43 = vmul.f32 %v8760_v49, %v12333_v13  ;;  %v4777_v44 = vand.u32 2147483648, %v12333_v13  ;;  %v4964_v51 = vmul.f32 %v4963_v14, %v11948_v16 }
 0x491   :  { %v5088_v0 = vadd.f32 1.0, %v8151_v25  ;;  %v5043_v6 = vadd.f32 0.4994258, %v5042_v32  ;;  %v4918_v24 = vmul.f32 %v4917_v55, %v12029_v40  ;;  %vm4771_vm8 = vweird.f32 %v12333_v13 }
 0x492   :  { %v8153_v21 = vclamps-f32 %v4900_v56, 1.0  ;;  %v4768_v9 = vsub.f32 1.0, %v4767_v43  ;;  %vm12372_vm9 = vcmp.eq.f32.partialorder %v4775_v7, 8.507059e+37  ;;  %v12376_v53 = vadd.f32 1.0, %v4964_v51 }
 0x493   :  { %v8762_v47 = vpop.eup %8761  ;;  %v5044_v15 = vmul.f32 %v5043_v6, %v12019_v42  ;;  %v4919_v41 = vadd.f32 0.014752088, %v4918_v24  ;;  %v4996_v57 = vmul.f32 3.8918573e-05, %v12145_v31  ;;  %vm4772_vm10 = vweird.f32 %v8760_v49 }
 0x494   :  { %v5090_v16 = vadd.f32 1.0, %v8153_v21  ;;  %v4769_v20 = vmul.f32 %v8760_v49, %v4768_v9  ;;  %v4847_v50 = vmul.f32 %v8762_v47, %v12343_v19  ;;  %v5120_v39 = vmul.f32 %v5088_v0, %v11922_v63  ;;  %vm4773_vm11 = vmor %vm4771_vm8, %vm4772_vm10 }
 0x495   :  { %v4778_v29 = vor.u32 1.1754944e-38, %v4777_v44  ;;  %v4855_v17 = vand.u32 2147483647, %v12343_v19  ;;  %8763 = vrcp.f32 %v12376_v53  ;;  %v12385_v42 = vadd.f32 1.0, %v5044_v15 }
 0x496   :  { %v5122_v36 = vmul.f32 %v5090_v16, %v11975_v10  ;;  %v4770_v28 = vadd.f32 %v8760_v49, %v4769_v20  ;;  %v4848_v18 = vsub.f32 1.0, %v4847_v50  ;;  %vm4852_vm12 = vweird.f32 %v8762_v47 }
 0x497   :  { %v4857_v22 = vand.u32 2147483648, %v12343_v19  ;;  %v4920_v2 = vmul.f32 %v4919_v41, %v12029_v40  ;;  %v4997_v63 = vadd.f32 0.001143296, %v4996_v57  ;;  %8765 = vrcp.f32 %v12385_v42 }
 0x498   :  { %v5140_v33 = vpack.c.bf16 %v5122_v36, %v5120_v39  ;;  %v4774_v59 = vsel %vm4773_vm11, %v8760_v49, %v4770_v28  ;;  %v4849_v62 = vmul.f32 %v8762_v47, %v4848_v18  ;;  %v4835_v10 = vmul.f32 %v12126_v5, %v14058_v8  ;;  %v8626_v8 = vld [vmem:[#allocation12 + $0x60] sm:$0xff] }
 0x499   :  { %v4988_v4 = vadd.f32 0.0036580483, %v4987_v48  ;;  %v4779_v58 = vsel %vm12372_vm9, %v4778_v29, %v4774_v59  ;;  %vm4851_vm13 = vweird.f32 %v12343_v19  ;;  %v4921_v38 = vadd.f32 0.112945676, %v4920_v2  ;;  %v14060_v2 = vld [vmem:[#allocation20_spill] sm:$0xff]  ;;  %7211 = vmatpush.bf16.msrb.mxu3 %v8626_v8 }
 0x49a   :  { %5422 = vmatmul.bf16.gmra.mxu3 %v5140_v33  ;;  %5520 = vmatmul.bf16.gmra.mxu1 %v5140_v33  ;;  %v4780_v13 = vmul.f32 %v4779_v58, %v12256_v37  ;;  %v4850_v45 = vadd.f32 %v8762_v47, %v4849_v62  ;;  %v4998_v35 = vmul.f32 %v4997_v63, %v12145_v31  ;;  %v5034_v55 = vadd.f32 1.1283791, %v5033_v30  ;;  %vm4853_vm14 = vmor %vm4851_vm13, %vm4852_vm12  ;;  %v8618_v62 = vld [vmem:[#allocation12 + $0x20] sm:$0xff]  ;;  %v5491_v58 = vpop.f32.mrf.mxu1 }
 0x49b   :  { %v8764_v11 = vpop.eup %8763  ;;  %v4955_v61 = vmul.f32 %v12132_v27, %v14059_v3  ;;  %v4911_v5 = vmul.f32 %v12247_v1, %v12029_v40  ;;  %v4858_v23 = vor.u32 1.1754944e-38, %v4857_v22  ;;  %vm4856_vm15 = vcmp.eq.f32.partialorder %v4855_v17, 8.507059e+37  ;;  %7162 = vmatpush.bf16.msrb.mxu2 %v8618_v62 }
 0x49c   :  { %v8150_v19 = vclamps-f32 %v4780_v13, 1.0  ;;  %v4854_v60 = vsel %vm4853_vm14, %v8762_v47, %v4850_v45  ;;  %v4967_v37 = vmul.f32 %v8764_v11, %v12376_v53  ;;  %v4977_v14 = vand.u32 2147483648, %v12376_v53  ;;  %v5442_v13 = vpop.f32.mrf.mxu0 }
 0x49d   :  { %v4859_v7 = vsel %vm4856_vm15, %v4858_v23, %v4854_v60  ;;  %v4922_v49 = vmul.f32 %v4921_v38, %v12029_v40  ;;  %v4999_v25 = vadd.f32 0.014752088, %v4998_v35  ;;  %v8766_v46 = vpop.eup %8765  ;;  %v4989_v27 = vmul.f32 %v4988_v4, %v12145_v31  ;;  %v12434_v38 = vld [vmem:[%s13780_s8] sm:$0x3] }
 0x49e   :  { %v4860_v32 = vmul.f32 %v4859_v7, %v4835_v10  ;;  %v4968_v1 = vsub.f32 1.0, %v4967_v37  ;;  %vm4971_vm0 = vweird.f32 %v12376_v53  ;;  %v4975_v30 = vand.u32 2147483647, %v12376_v53 }
 0x49f   :  { %v5047_v48 = vmul.f32 %v8766_v46, %v12385_v42  ;;  %v4923_v56 = vadd.f32 0.4994258, %v4922_v49  ;;  %v5000_v43 = vmul.f32 %v4999_v25, %v12145_v31  ;;  %v5087_v0 = vadd.f32 1.0, %v8150_v19  ;;  %v14061_v19 = vld [vmem:[#allocation25_spill] sm:$0xff]  ;;  %v14062_v49 = vld [vmem:[#allocation39_spill] sm:$0xff] }
 0x4a0   :  { %v8152_v44 = vclamps-f32 %v4860_v32, 1.0  ;;  %v4969_v51 = vmul.f32 %v8764_v11, %v4968_v1  ;;  %vm4972_vm1 = vweird.f32 %v8764_v11  ;;  %v4978_v6 = vor.u32 1.1754944e-38, %v4977_v14 }
 0x4a1   :  { %v5048_v24 = vsub.f32 1.0, %v5047_v48  ;;  %v4924_v21 = vmul.f32 %v4923_v56, %v12029_v40  ;;  %v5001_v9 = vadd.f32 0.112945676, %v5000_v43  ;;  %v5055_v15 = vand.u32 2147483647, %v12385_v42  ;;  %vm4973_vm2 = vmor %vm4971_vm0, %vm4972_vm1 }
 0x4a2   :  { %v5089_v26 = vadd.f32 1.0, %v8152_v44  ;;  %v4970_v47 = vadd.f32 %v8764_v11, %v4969_v51  ;;  %v5057_v41 = vand.u32 2147483648, %v12385_v42  ;;  %vm5052_vm3 = vweird.f32 %v8766_v46 }
 0x4a3   :  { %v5049_v57 = vmul.f32 %v8766_v46, %v5048_v24  ;;  %v12417_v16 = vadd.f32 1.0, %v4924_v21  ;;  %v5002_v20 = vmul.f32 %v5001_v9, %v12145_v31  ;;  %v5119_v50 = vmul.f32 %v5087_v0, %v11972_v52 }
 0x4a4   :  { %v5121_v39 = vmul.f32 %v5089_v26, %v12001_v54  ;;  %v4974_v29 = vsel %vm4973_vm2, %v8764_v11, %v4970_v47  ;;  %vm4976_vm4 = vcmp.eq.f32.partialorder %v4975_v30, 8.507059e+37  ;;  %vm5051_vm5 = vweird.f32 %v12385_v42 }
 0x4a5   :  { %v4979_v17 = vsel %vm4976_vm4, %v4978_v6, %v4974_v29  ;;  %v5050_v36 = vadd.f32 %v8766_v46, %v5049_v57  ;;  %8767 = vrcp.f32 %v12417_v16  ;;  %v4990_v53 = vadd.f32 0.05243302, %v4989_v27  ;;  %vm5053_vm6 = vmor %vm5051_vm5, %vm5052_vm3 }
 0x4a6   :  { %v5139_v28 = vpack.c.bf16 %v5121_v39, %v5119_v50  ;;  %v4980_v18 = vmul.f32 %v4979_v17, %v4955_v61  ;;  %v5058_v22 = vor.u32 1.1754944e-38, %v5057_v41  ;;  %v5035_v63 = vmul.f32 %v5034_v55, %v14060_v2  ;;  %v5393_v2 = vpop.f32.mrf.mxu3 }
 0x4a7   :  { %v5054_v33 = vsel %vm5053_vm6, %v8766_v46, %v5050_v36  ;;  %vm5056_vm7 = vcmp.eq.f32.partialorder %v5055_v15, 8.507059e+37  ;;  %v5003_v52 = vadd.f32 0.4994258, %v5002_v20  ;;  %v4912_v10 = vadd.f32 0.18741608, %v4911_v5  ;;  %v14063_v20 = vld [vmem:[#allocation28_spill] sm:$0xff] }
 0x4a8   :  { %5373 = vmatmul.bf16.gmra.mxu2 %v5139_v28  ;;  %5471 = vmatmul.bf16.gmra.mxu0 %v5139_v28  ;;  %v8155_v54 = vclamps-f32 %v4980_v18, 1.0  ;;  %v5059_v59 = vsel %vm5056_vm7, %v5058_v22, %v5054_v33  ;;  %v12429_v45 = vstv %s13773_s1  ;;  %v4991_v35 = vmul.f32 %v4990_v53, %v12145_v31 }
 0x4a9   :  { %v5060_v42 = vmul.f32 %v5059_v59, %v5035_v63  ;;  %v5004_v4 = vmul.f32 %v5003_v52, %v12145_v31  ;;  %v5492_v11 = vadd.f32 %v5491_v58, %v5442_v13  ;;  %v12438_v3 = vperm.slane %v12434_v38, 1 }
 0x4aa   :  { %v5092_v55 = vadd.f32 1.0, %v8155_v54  ;;  %v3748_v60 = vmul.f32 0.5, %v14061_v19  ;;  %v4913_v14 = vmul.f32 %v4912_v10, %v12029_v40  ;;  %v3750_v25 = vmul.f32 0.5, %v14062_v49  ;;  %v5344_v10 = vpop.f32.mrf.mxu2 }
 0x4ab   :  { %v8768_v61 = vpop.eup %8767  ;;  %v8157_v5 = vclamps-f32 %v5060_v42, 1.0  ;;  %v5005_v23 = vadd.f32 1.0, %v5004_v4  ;;  %v5534_v7 = vmul.f32 %v12429_v45, %v5492_v11  ;;  %v4992_v27 = vadd.f32 0.18741608, %v4991_v35  ;;  %v5493_v35 = vpop.f32.mrf.mxu1 }
 0x4ac   :  { %v4927_v37 = vmul.f32 %v8768_v61, %v12417_v16  ;;  %v5124_v30 = vmul.f32 %v5092_v55, %v3748_v60  ;;  %v4937_v56 = vand.u32 2147483648, %v12417_v16  ;;  %vm4932_vm8 = vweird.f32 %v8768_v61  ;;  %v5444_v11 = vpop.f32.mrf.mxu0 }
 0x4ad   :  { %v5094_v46 = vadd.f32 1.0, %v8157_v5  ;;  %8769 = vrcp.f32 %v5005_v23  ;;  %v12446_v1 = vadd.f32 %v12438_v3, %v5534_v7  ;;  %v4935_v44 = vand.u32 2147483647, %v12417_v16 }
 0x4ae   :  { %v4928_v32 = vsub.f32 1.0, %v4927_v37  ;;  %v4914_v40 = vadd.f32 1.1283791, %v4913_v14  ;;  %v4993_v6 = vmul.f32 %v4992_v27, %v12145_v31  ;;  %vm4931_vm9 = vweird.f32 %v12417_v16  ;;  %v14064_v14 = vld [vmem:[#allocation30_spill] sm:$0xff] }
 0x4af   :  { %v5126_v48 = vmul.f32 %v5094_v46, %v3750_v25  ;;  %v12451_v0 = vmul.f32 0.70710677, %v12446_v1  ;;  %vm4933_vm10 = vmor %vm4931_vm9, %vm4932_vm8  ;;  %v4938_v26 = vor.u32 1.1754944e-38, %v4937_v56  ;;  %vm4936_vm11 = vcmp.eq.f32.partialorder %v4935_v44, 8.507059e+37  ;;  %v5395_v44 = vpop.f32.mrf.mxu3 }
 0x4b0   :  { %v4929_v43 = vmul.f32 %v8768_v61, %v4928_v32  ;;  %v4915_v50 = vmul.f32 %v4914_v40, %v14063_v20  ;;  %v4994_v31 = vadd.f32 1.1283791, %v4993_v6  ;;  %v5015_v29 = vand.u32 2147483647, %v5005_v23 }
 0x4b1   :  { %v5142_v51 = vpack.c.bf16 %v5126_v48, %v5124_v30  ;;  %v5707_v21 = vmul.f32 %v12451_v0, %v12451_v0  ;;  %v5017_v17 = vand.u32 2147483648, %v5005_v23  ;;  %vm5011_vm13 = vweird.f32 %v5005_v23 }
 0x4b2   :  { %v4930_v24 = vadd.f32 %v8768_v61, %v4929_v43  ;;  %v4995_v33 = vmul.f32 %v4994_v31, %v12076_v12  ;;  %vm5016_vm15 = vcmp.eq.f32.partialorder %v5015_v29, 8.507059e+37  ;;  %v5394_v4 = vadd.f32 %v5393_v2, %v5344_v10  ;;  %v5346_v40 = vpop.f32.mrf.mxu2 }
 0x4b3   :  { %v8770_v9 = vpop.eup %8769  ;;  %5427 = vmatmul.bf16.gmra.mxu3 %v5142_v51  ;;  %5525 = vmatmul.bf16.gmra.mxu1 %v5142_v51  ;;  %v12457_v41 = vmin.f32 %v5707_v21, 16.0  ;;  %v5018_v52 = vor.u32 1.1754944e-38, %v5017_v17  ;;  %v12468_v12 = vperm.slane %v12434_v38, 0  ;;  %v5494_v55 = vadd.f32 %v5493_v35, %v5444_v11 }
 0x4b4   :  { %v4934_v47 = vsel %vm4933_vm10, %v8768_v61, %v4930_v24  ;;  %v5007_v15 = vmul.f32 %v8770_v9, %v5005_v23  ;;  %vm5012_vm12 = vweird.f32 %v8770_v9  ;;  %v5533_v5 = vmul.f32 %v12429_v45, %v5394_v4 }
 0x4b5   :  { %v4939_v57 = vsel %vm4936_vm11, %v4938_v26, %v4934_v47  ;;  %v5720_v16 = vmul.f32 3.8918573e-05, %v12457_v41  ;;  %v5709_v36 = vmul.f32 2.1237322e-06, %v12457_v41  ;;  %vm5013_vm14 = vmor %vm5011_vm13, %vm5012_vm12  ;;  %v5536_v7 = vmul.f32 %v12429_v45, %v5494_v55 }
 0x4b6   :  { %v5008_v39 = vsub.f32 1.0, %v5007_v15  ;;  %v4940_v53 = vmul.f32 %v4939_v57, %v4915_v50  ;;  %v12471_v37 = vadd.f32 %v12468_v12, %v5533_v5  ;;  %v3747_v49 = vmul.f32 0.5, %v14064_v14  ;;  %v5447_v57 = vpop.f32.mrf.mxu0 }
 0x4b7   :  { %v5721_v18 = vadd.f32 0.001143296, %v5720_v16  ;;  %v5710_v54 = vadd.f32 0.00028619796, %v5709_v36  ;;  %v3749_v25 = vmul.f32 0.5, %v12063_v34  ;;  %v12481_v30 = vadd.f32 %v12438_v3, %v5536_v7  ;;  %v5496_v16 = vpop.f32.mrf.mxu1 }
 0x4b8   :  { %v5009_v28 = vmul.f32 %v8770_v9, %v5008_v39  ;;  %v8154_v59 = vclamps-f32 %v4940_v53, 1.0  ;;  %v12478_v38 = vmul.f32 0.70710677, %v12471_v37  ;;  %v5396_v6 = vadd.f32 %v5395_v44, %v5346_v40 }
 0x4b9   :  { %v5722_v63 = vmul.f32 %v5721_v18, %v12457_v41  ;;  %v5711_v61 = vmul.f32 %v5710_v54, %v12457_v41  ;;  %v12486_v34 = vmul.f32 0.70710677, %v12481_v30  ;;  %v5497_v17 = vadd.f32 %v5496_v16, %v5447_v57  ;;  %v8625_v16 = vld [vmem:[#allocation12 + $0x58] sm:$0xff] }
 0x4ba   :  { %v5010_v22 = vadd.f32 %v8770_v9, %v5009_v28  ;;  %v5091_v19 = vadd.f32 1.0, %v8154_v59  ;;  %v5667_v51 = vmul.f32 %v12478_v38, %v12478_v38  ;;  %v5535_v15 = vmul.f32 %v12429_v45, %v5396_v6  ;;  %7212 = vmatpush.bf16.msrb.mxu3 %v8625_v16 }
 0x4bb   :  { %v5723_v8 = vadd.f32 0.014752088, %v5722_v63  ;;  %v5712_v32 = vadd.f32 0.0036580483, %v5711_v61  ;;  %v5787_v47 = vmul.f32 %v12486_v34, %v12486_v34  ;;  %v5538_v59 = vmul.f32 %v12429_v45, %v5497_v17 }
 0x4bc   :  { %v5014_v62 = vsel %vm5013_vm14, %v8770_v9, %v5010_v22  ;;  %v5123_v48 = vmul.f32 %v5091_v19, %v3747_v49  ;;  %v12490_v26 = vmin.f32 %v5667_v51, 16.0  ;;  %v12502_v29 = vadd.f32 %v12468_v12, %v5535_v15 }
 0x4bd   :  { %v5019_v42 = vsel %vm5016_vm15, %v5018_v52, %v5014_v62  ;;  %v5724_v13 = vmul.f32 %v5723_v8, %v12457_v41  ;;  %v5713_v9 = vmul.f32 %v5712_v32, %v12457_v41  ;;  %v12499_v39 = vmin.f32 %v5787_v47, 16.0 }
 0x4be   :  { %v5020_v58 = vmul.f32 %v5019_v42, %v4995_v33  ;;  %v5669_v50 = vmul.f32 2.1237322e-06, %v12490_v26  ;;  %v5680_v31 = vmul.f32 3.8918573e-05, %v12490_v26  ;;  %v12510_v33 = vmul.f32 0.70710677, %v12502_v29 }
 0x4bf   :  { %v5725_v60 = vadd.f32 0.112945676, %v5724_v13  ;;  %v5714_v36 = vadd.f32 0.05243302, %v5713_v9  ;;  %v5789_v18 = vmul.f32 2.1237322e-06, %v12499_v39  ;;  %v12527_v19 = vadd.f32 %v12438_v3, %v5538_v59 }
 0x4c0   :  { %v8156_v23 = vclamps-f32 %v5020_v58, 1.0  ;;  %v5670_v53 = vadd.f32 0.00028619796, %v5669_v50  ;;  %v5681_v28 = vadd.f32 0.001143296, %v5680_v31  ;;  %v5747_v42 = vmul.f32 %v12510_v33, %v12510_v33  ;;  %v8617_v31 = vld [vmem:[#allocation12 + $0x18] sm:$0xff] }
 0x4c1   :  { %v5726_v27 = vmul.f32 %v5725_v60, %v12457_v41  ;;  %v5800_v22 = vmul.f32 3.8918573e-05, %v12499_v39  ;;  %v5790_v52 = vadd.f32 0.00028619796, %v5789_v18  ;;  %v5715_v62 = vmul.f32 %v5714_v36, %v12457_v41  ;;  %7163 = vmatpush.bf16.msrb.mxu2 %v8617_v31 }
 0x4c2   :  { %v5093_v46 = vadd.f32 1.0, %v8156_v23  ;;  %v5671_v2 = vmul.f32 %v5670_v53, %v12490_v26  ;;  %v5682_v63 = vmul.f32 %v5681_v28, %v12490_v26  ;;  %v12524_v23 = vmin.f32 %v5747_v42, 16.0 }
 0x4c3   :  { %v5727_v43 = vadd.f32 0.4994258, %v5726_v27  ;;  %v5801_v54 = vadd.f32 0.001143296, %v5800_v22  ;;  %v5791_v58 = vmul.f32 %v5790_v52, %v12499_v39  ;;  %v5716_v60 = vadd.f32 0.18741608, %v5715_v62  ;;  %v5398_v52 = vpop.f32.mrf.mxu3 }
 0x4c4   :  { %v5125_v56 = vmul.f32 %v5093_v46, %v3749_v25  ;;  %v5672_v8 = vadd.f32 0.0036580483, %v5671_v2  ;;  %v5683_v10 = vadd.f32 0.014752088, %v5682_v63  ;;  %v5749_v46 = vmul.f32 2.1237322e-06, %v12524_v23 }
 0x4c5   :  { %v5728_v21 = vmul.f32 %v5727_v43, %v12457_v41  ;;  %v5802_v13 = vmul.f32 %v5801_v54, %v12499_v39  ;;  %v5792_v5 = vadd.f32 0.0036580483, %v5791_v58  ;;  %v5760_v27 = vmul.f32 3.8918573e-05, %v12524_v23 }
 0x4c6   :  { %v5141_v24 = vpack.c.bf16 %v5125_v56, %v5123_v48  ;;  %v5673_v11 = vmul.f32 %v5672_v8, %v12490_v26  ;;  %v5684_v61 = vmul.f32 %v5683_v10, %v12490_v26  ;;  %v5750_v44 = vadd.f32 0.00028619796, %v5749_v46  ;;  %v5449_v10 = vpop.f32.mrf.mxu0 }
 0x4c7   :  { %v12495_v20 = vadd.f32 1.0, %v5728_v21  ;;  %v5803_v55 = vadd.f32 0.014752088, %v5802_v13  ;;  %v5793_v56 = vmul.f32 %v5792_v5, %v12499_v39  ;;  %v12536_v40 = vmul.f32 0.70710677, %v12527_v19 }
 0x4c8   :  { %5378 = vmatmul.bf16.gmra.mxu2 %v5141_v24  ;;  %5476 = vmatmul.bf16.gmra.mxu0 %v5141_v24  ;;  %v5685_v14 = vadd.f32 0.112945676, %v5684_v61  ;;  %v5674_v49 = vadd.f32 0.05243302, %v5673_v11  ;;  %v5717_v51 = vmul.f32 %v5716_v60, %v12457_v41  ;;  %v5761_v24 = vadd.f32 0.001143296, %v5760_v27  ;;  %v5349_v41 = vpop.f32.mrf.mxu2  ;;  %v5498_v61 = vpop.f32.mrf.mxu1 }
 0x4c9   :  { %8771 = vrcp.f32 %v12495_v20  ;;  %v5804_v25 = vmul.f32 %v5803_v55, %v12499_v39  ;;  %v5751_v47 = vmul.f32 %v5750_v44, %v12524_v23  ;;  %v5794_v50 = vadd.f32 0.05243302, %v5793_v56 }
 0x4ca   :  { %v5686_v48 = vmul.f32 %v5685_v14, %v12490_v26  ;;  %v5675_v21 = vmul.f32 %v5674_v49, %v12490_v26  ;;  %v5762_v17 = vmul.f32 %v5761_v24, %v12524_v23  ;;  %v5739_v36 = vand.u32 2147483647, %v12495_v20 }
 0x4cb   :  { %v5805_v43 = vadd.f32 0.112945676, %v5804_v25  ;;  %v5741_v53 = vand.u32 2147483648, %v12495_v20  ;;  %v5867_v18 = vmul.f32 %v12536_v40, %v12536_v40  ;;  %vm5735_vm1 = vweird.f32 %v12495_v20 }
 0x4cc   :  { %v5687_v6 = vadd.f32 0.4994258, %v5686_v48  ;;  %v5752_v2 = vadd.f32 0.0036580483, %v5751_v47  ;;  %v5763_v63 = vadd.f32 0.014752088, %v5762_v17  ;;  %v5399_v8 = vadd.f32 %v5398_v52, %v5349_v41 }
 0x4cd   :  { %v5806_v9 = vmul.f32 %v5805_v43, %v12499_v39  ;;  %v5718_v54 = vadd.f32 1.1283791, %v5717_v51  ;;  %v5676_v42 = vadd.f32 0.18741608, %v5675_v21  ;;  %v5795_v58 = vmul.f32 %v5794_v50, %v12499_v39  ;;  %v5400_v21 = vpop.f32.mrf.mxu3  ;;  %v8624_v47 = vld [vmem:[#allocation12 + $0x50] sm:$0xff] }
 0x4ce   :  { %v5688_v57 = vmul.f32 %v5687_v6, %v12490_v26  ;;  %v5742_v13 = vor.u32 1.1754944e-38, %v5741_v53  ;;  %v12567_v11 = vmin.f32 %v5867_v18, 16.0  ;;  %vm5740_vm3 = vcmp.eq.f32.partialorder %v5739_v36, 8.507059e+37  ;;  %v5452_v17 = vpop.f32.mrf.mxu0  ;;  %7213 = vmatpush.bf16.msrb.mxu3 %v8624_v47  ;;  %v8623_v47 = vld [vmem:[#allocation12 + $0x48] sm:$0xff] }
 0x4cf   :  { %v12516_v4 = vpop.eup %8771  ;;  %v5807_v28 = vadd.f32 0.4994258, %v5806_v9  ;;  %v5753_v5 = vmul.f32 %v5752_v2, %v12524_v23  ;;  %v5764_v55 = vmul.f32 %v5763_v63, %v12524_v23  ;;  %v5719_v14 = vmul.f32 %v5718_v54, %v12451_v0  ;;  %v8616_v9 = vld [vmem:[#allocation12 + $0x10] sm:$0xff] }
 0x4d0   :  { %v5731_v35 = vmul.f32 %v12516_v4, %v12495_v20  ;;  %vm5736_vm0 = vweird.f32 %v12516_v4  ;;  %v12551_v22 = vadd.f32 1.0, %v5688_v57  ;;  %v5677_v49 = vmul.f32 %v5676_v42, %v12490_v26  ;;  %v5351_v43 = vpop.f32.mrf.mxu2  ;;  %7164 = vmatpush.bf16.msrb.mxu2 %v8616_v9  ;;  %v5501_v63 = vpop.f32.mrf.mxu1 }
 0x4d1   :  { %vm12555_vm2 = vmor %vm5735_vm1, %vm5736_vm0  ;;  %v5808_v62 = vmul.f32 %v5807_v28, %v12499_v39  ;;  %v5796_v25 = vadd.f32 0.18741608, %v5795_v58  ;;  %v5765_v46 = vadd.f32 0.112945676, %v5764_v55  ;;  %v5869_v27 = vmul.f32 2.1237322e-06, %v12567_v11 }
 0x4d2   :  { %v5732_v7 = vsub.f32 1.0, %v5731_v35  ;;  %8773 = vrcp.f32 %v12551_v22  ;;  %v5754_v56 = vadd.f32 0.05243302, %v5753_v5  ;;  %v12585_v26 = vadd.f32 1.1283791, %v5677_v49  ;;  %7214 = vmatpush.bf16.msrb.mxu3 %v8623_v47 }
 0x4d3   :  { %v12565_v35 = vadd.f32 1.0, %v5808_v62  ;;  %v5766_v51 = vmul.f32 %v5765_v46, %v12524_v23  ;;  %v5797_v24 = vmul.f32 %v5796_v25, %v12499_v39  ;;  %v5604_v57 = vmul.f32 0.5, %v12446_v1 }
 0x4d4   :  { %v5733_v32 = vmul.f32 %v12516_v4, %v5732_v7  ;;  %v5499_v7 = vadd.f32 %v5498_v61, %v5449_v10  ;;  %v5870_v16 = vadd.f32 0.00028619796, %v5869_v27  ;;  %v5755_v53 = vmul.f32 %v5754_v56, %v12524_v23 }
 0x4d5   :  { %8775 = vrcp.f32 %v12565_v35  ;;  %v5767_v31 = vadd.f32 0.4994258, %v5766_v51  ;;  %v5401_v28 = vadd.f32 %v5400_v21, %v5351_v43  ;;  %vm5695_vm4 = vweird.f32 %v12551_v22 }
 0x4d6   :  { %v5734_v15 = vadd.f32 %v12516_v4, %v5733_v32  ;;  %v5540_v0 = vmul.f32 %v12429_v45, %v5499_v7  ;;  %v5699_v52 = vand.u32 2147483647, %v12551_v22  ;;  %v5798_v54 = vadd.f32 1.1283791, %v5797_v24 }
 0x4d7   :  { %v5768_v18 = vmul.f32 %v5767_v31, %v12524_v23  ;;  %v5819_v62 = vand.u32 2147483647, %v12565_v35  ;;  %v5756_v42 = vadd.f32 0.18741608, %v5755_v53  ;;  %v5539_v58 = vmul.f32 %v12429_v45, %v5401_v28 }
 0x4d8   :  { %v5738_v20 = vsel %vm12555_vm2, %v12516_v4, %v5734_v15  ;;  %v5537_v4 = vmul.f32 %v12429_v45, %v5399_v8  ;;  %v12576_v32 = vpop.eup %8773  ;;  %v12597_v1 = vadd.f32 %v12438_v3, %v5540_v0  ;;  %v5821_v8 = vand.u32 2147483648, %v12565_v35  ;;  %v5354_v7 = vpop.f32.mrf.mxu2 }
 0x4d9   :  { %v5743_v60 = vsel %vm5740_vm3, %v5742_v13, %v5738_v20  ;;  %v5691_v44 = vmul.f32 %v12576_v32, %v12551_v22  ;;  %vm5696_vm5 = vweird.f32 %v12576_v32  ;;  %v12604_v10 = vadd.f32 1.0, %v5768_v18  ;;  %v5454_v0 = vpop.f32.mrf.mxu0 }
 0x4da   :  { %v5744_v48 = vmul.f32 %v5743_v60, %v5719_v14  ;;  %v12582_v6 = vadd.f32 %v12468_v12, %v5537_v4  ;;  %v12612_v5 = vmul.f32 0.70710677, %v12597_v1  ;;  %v5701_v60 = vand.u32 2147483648, %v12551_v22  ;;  %vm12622_vm9 = vmor %vm5695_vm4, %vm5696_vm5 }
 0x4db   :  { %v8776_v15 = vpop.eup %8775  ;;  %v5692_v50 = vsub.f32 1.0, %v5691_v44  ;;  %8777 = vrcp.f32 %v12604_v10  ;;  %vm5815_vm7 = vweird.f32 %v12565_v35  ;;  %v5799_v14 = vmul.f32 %v5798_v54, %v12486_v34  ;;  %v5403_v34 = vpop.f32.mrf.mxu3 }
 0x4dc   :  { %v8287_v41 = vclamps-f32 %v5744_v48, 1.0  ;;  %v5811_v36 = vmul.f32 %v8776_v15, %v12565_v35  ;;  %v12594_v2 = vmul.f32 0.70710677, %v12582_v6  ;;  %vm5816_vm6 = vweird.f32 %v8776_v15 }
 0x4dd   :  { %v5693_v39 = vmul.f32 %v12576_v32, %v5692_v50  ;;  %vm5817_vm8 = vmor %vm5815_vm7, %vm5816_vm6  ;;  %v5822_v49 = vor.u32 1.1754944e-38, %v5821_v8  ;;  %v5871_v25 = vmul.f32 %v5870_v16, %v12567_v11  ;;  %v5502_v46 = vadd.f32 %v5501_v63, %v5452_v17  ;;  %v5503_v16 = vpop.f32.mrf.mxu1 }
 0x4de   :  { %v5812_v59 = vsub.f32 1.0, %v5811_v36  ;;  %v5827_v61 = vmul.f32 %v12594_v2, %v12594_v2  ;;  %v6948_v55 = vadd.f32 1.0, %v8287_v41  ;;  %vm5820_vm10 = vcmp.eq.f32.partialorder %v5819_v62, 8.507059e+37 }
 0x4df   :  { %v5694_v13 = vadd.f32 %v12576_v32, %v5693_v39  ;;  %v5757_v35 = vmul.f32 %v5756_v42, %v12524_v23  ;;  %v12628_v56 = vadd.f32 %v12468_v12, %v5539_v58  ;;  %v5947_v22 = vmul.f32 %v12612_v5, %v12612_v5 }
 0x4e0   :  { %v5813_v20 = vmul.f32 %v8776_v15, %v5812_v59  ;;  %v12633_v51 = vmin.f32 %v5827_v61, 16.0  ;;  %v5702_v24 = vor.u32 1.1754944e-38, %v5701_v60  ;;  %v5606_v21 = vmul.f32 0.5, %v12481_v30  ;;  %v5356_v61 = vpop.f32.mrf.mxu2 }
 0x4e1   :  { %v5698_v43 = vsel %vm12622_vm9, %v12576_v32, %v5694_v13  ;;  %v12639_v23 = vmul.f32 0.70710677, %v12628_v56  ;;  %v6980_v50 = vmul.f32 %v6948_v55, %v5604_v57  ;;  %v5679_v32 = vmul.f32 %v12585_v26, %v12478_v38  ;;  %v8615_v13 = vld [vmem:[#allocation12 + $0x8] sm:$0xff] }
 0x4e2   :  { %v5814_v4 = vadd.f32 %v8776_v15, %v5813_v20  ;;  %vm5700_vm11 = vcmp.eq.f32.partialorder %v5699_v52, 8.507059e+37  ;;  %v5542_v31 = vmul.f32 %v12429_v45, %v5502_v46  ;;  %v5872_v53 = vadd.f32 0.0036580483, %v5871_v25  ;;  %v8622_v52 = vld [vmem:[#allocation12 + $0x40] sm:$0xff]  ;;  %7165 = vmatpush.bf16.msrb.mxu2 %v8615_v13 }
 0x4e3   :  { %v5703_v17 = vsel %vm5700_vm11, %v5702_v24, %v5698_v43  ;;  %v5758_v30 = vadd.f32 1.1283791, %v5757_v35  ;;  %v5829_v28 = vmul.f32 2.1237322e-06, %v12633_v51  ;;  %v12646_v39 = vmin.f32 %v5947_v22, 16.0  ;;  %7215 = vmatpush.bf16.msrb.mxu3 %v8622_v52  ;;  %v5405_v46 = vpop.f32.mrf.mxu3 }
 0x4e4   :  { %v5818_v48 = vsel %vm5817_vm8, %v8776_v15, %v5814_v4  ;;  %v8778_v15 = vpop.eup %8777  ;;  %v12649_v57 = vadd.f32 %v12438_v3, %v5542_v31  ;;  %v5907_v26 = vmul.f32 %v12639_v23, %v12639_v23  ;;  %v5404_v63 = vadd.f32 %v5403_v34, %v5354_v7  ;;  %v5457_v34 = vpop.f32.mrf.mxu0 }
 0x4e5   :  { %v5823_v44 = vsel %vm5820_vm10, %v5822_v49, %v5818_v48  ;;  %v5771_v36 = vmul.f32 %v8778_v15, %v12604_v10  ;;  %v5704_v54 = vmul.f32 %v5703_v17, %v5679_v32  ;;  %v5779_v59 = vand.u32 2147483647, %v12604_v10 }
 0x4e6   :  { %v5824_v9 = vmul.f32 %v5823_v44, %v5799_v14  ;;  %v5781_v62 = vand.u32 2147483648, %v12604_v10  ;;  %v12656_v8 = vmul.f32 0.70710677, %v12649_v57  ;;  %vm5776_vm12 = vweird.f32 %v8778_v15 }
 0x4e7   :  { %v5772_v38 = vsub.f32 1.0, %v5771_v36  ;;  %v5541_v58 = vmul.f32 %v12429_v45, %v5404_v63  ;;  %vm5775_vm13 = vweird.f32 %v12604_v10  ;;  %v5830_v55 = vadd.f32 0.00028619796, %v5829_v28 }
 0x4e8   :  { %v8289_v41 = vclamps-f32 %v5824_v9, 1.0  ;;  %v5949_v60 = vmul.f32 2.1237322e-06, %v12646_v39  ;;  %v5504_v4 = vadd.f32 %v5503_v16, %v5454_v0  ;;  %v12661_v49 = vmin.f32 %v5907_v26, 16.0  ;;  %vm5777_vm14 = vmor %vm5775_vm13, %vm5776_vm12  ;;  %v8614_v0 = vld [vmem:[#allocation12] sm:$0xff]  ;;  %v5506_v9 = vpop.f32.mrf.mxu1 }
 0x4e9   :  { %v5773_v42 = vmul.f32 %v8778_v15, %v5772_v38  ;;  %v12664_v25 = vadd.f32 %v12468_v12, %v5541_v58  ;;  %v5759_v27 = vmul.f32 %v5758_v30, %v12510_v33  ;;  %v5782_v48 = vor.u32 1.1754944e-38, %v5781_v62  ;;  %7166 = vmatpush.bf16.msrb.mxu2 %v8614_v0  ;;  %v5359_v62 = vpop.f32.mrf.mxu2 }
 0x4ea   :  { %v6950_v18 = vadd.f32 1.0, %v8289_v41  ;;  %v6027_v10 = vmul.f32 %v12656_v8, %v12656_v8  ;;  %v5544_v35 = vmul.f32 %v12429_v45, %v5504_v4  ;;  %v8286_v43 = vclamps-f32 %v5704_v54, 1.0 }
 0x4eb   :  { %v5774_v14 = vadd.f32 %v8778_v15, %v5773_v42  ;;  %vm5780_vm15 = vcmp.eq.f32.partialorder %v5779_v59, 8.507059e+37  ;;  %v12672_v22 = vmul.f32 0.70710677, %v12664_v25  ;;  %v5831_v33 = vmul.f32 %v5830_v55, %v12633_v51 }
 0x4ec   :  { %v6982_v20 = vmul.f32 %v6950_v18, %v5606_v21  ;;  %v5950_v21 = vadd.f32 0.00028619796, %v5949_v60  ;;  %v12679_v31 = vadd.f32 %v12438_v3, %v5544_v35  ;;  %v12682_v16 = vmin.f32 %v6027_v10, 16.0 }
 0x4ed   :  { %v5778_v44 = vsel %vm5777_vm14, %v8778_v15, %v5774_v14  ;;  %v5987_v32 = vmul.f32 %v12672_v22, %v12672_v22  ;;  %v5603_v15 = vmul.f32 0.5, %v12471_v37  ;;  %v5406_v17 = vadd.f32 %v5405_v46, %v5356_v61  ;;  %v5408_v61 = vpop.f32.mrf.mxu3  ;;  %v5459_v14 = vpop.f32.mrf.mxu0 }
 0x4ee   :  { %v7012_v7 = vpack.c.bf16 %v6982_v20, %v6980_v50  ;;  %v5783_v24 = vsel %vm5780_vm15, %v5782_v48, %v5778_v44  ;;  %v5909_v50 = vmul.f32 2.1237322e-06, %v12661_v49  ;;  %v6947_v41 = vadd.f32 1.0, %v8286_v43 }
 0x4ef   :  { %v5784_v47 = vmul.f32 %v5783_v24, %v5759_v27  ;;  %v5605_v36 = vmul.f32 0.5, %v12502_v29  ;;  %v5873_v28 = vmul.f32 %v5872_v53, %v12567_v11  ;;  %v5832_v18 = vadd.f32 0.0036580483, %v5831_v33 }
 0x4f0   :  { %7216 = vmatmul.bf16.vlgmr.msrb.gmra.mxu3 %v7012_v7  ;;  %v12686_v38 = vmin.f32 %v5987_v32, 16.0  ;;  %v12689_v26 = vmul.f32 0.70710677, %v12679_v31  ;;  %v5543_v63 = vmul.f32 %v12429_v45, %v5406_v17  ;;  %v5951_v37 = vmul.f32 %v5950_v21, %v12646_v39  ;;  %v5508_v43 = vpop.f32.mrf.mxu1 }
 0x4f1   :  { %v8288_v30 = vclamps-f32 %v5784_v47, 1.0  ;;  %v5910_v54 = vadd.f32 0.00028619796, %v5909_v50  ;;  %v5507_v59 = vadd.f32 %v5506_v9, %v5457_v34  ;;  %v6029_v20 = vmul.f32 2.1237322e-06, %v12682_v16 }
 0x4f2   :  { %v6107_v29 = vmul.f32 %v12689_v26, %v12689_v26  ;;  %v12697_v53 = vadd.f32 %v12468_v12, %v5543_v63  ;;  %v6979_v42 = vmul.f32 %v6947_v41, %v5603_v15  ;;  %v5874_v13 = vadd.f32 0.05243302, %v5873_v28 }
 0x4f3   :  { %v6949_v52 = vadd.f32 1.0, %v8288_v30  ;;  %v5546_v55 = vmul.f32 %v12429_v45, %v5507_v59  ;;  %v5833_v60 = vmul.f32 %v5832_v18, %v12633_v51  ;;  %v5989_v4 = vmul.f32 2.1237322e-06, %v12686_v38 }
 0x4f4   :  { %v12702_v7 = vmin.f32 %v6107_v29, 16.0  ;;  %v5952_v27 = vadd.f32 0.0036580483, %v5951_v37  ;;  %v5911_v48 = vmul.f32 %v5910_v54, %v12661_v49  ;;  %v12706_v10 = vmul.f32 0.70710677, %v12697_v53 }
 0x4f5   :  { %v6981_v58 = vmul.f32 %v6949_v52, %v5605_v36  ;;  %v6030_v35 = vadd.f32 0.00028619796, %v6029_v20  ;;  %v12709_v34 = vadd.f32 %v12438_v3, %v5546_v55  ;;  %v5409_v44 = vadd.f32 %v5408_v61, %v5359_v62  ;;  %v5361_v52 = vpop.f32.mrf.mxu2 }
 0x4f6   :  { %v5875_v0 = vmul.f32 %v5874_v13, %v12567_v11  ;;  %v6109_v24 = vmul.f32 2.1237322e-06, %v12702_v7  ;;  %v6067_v33 = vmul.f32 %v12706_v10, %v12706_v10  ;;  %v5509_v21 = vadd.f32 %v5508_v43, %v5459_v14 }
 0x4f7   :  { %v7011_v46 = vpack.c.bf16 %v6981_v58, %v6979_v42  ;;  %v5834_v9 = vadd.f32 0.05243302, %v5833_v60  ;;  %v5990_v47 = vadd.f32 0.00028619796, %v5989_v4  ;;  %v5953_v50 = vmul.f32 %v5952_v27, %v12646_v39  ;;  %v5410_v58 = vpop.f32.mrf.mxu3  ;;  %v5462_v27 = vpop.f32.mrf.mxu0 }
 0x4f8   :  { %v5912_v32 = vadd.f32 0.0036580483, %v5911_v48  ;;  %v12717_v15 = vmul.f32 0.70710677, %v12709_v34  ;;  %v5545_v17 = vmul.f32 %v12429_v45, %v5409_v44  ;;  %v6031_v41 = vmul.f32 %v6030_v35, %v12682_v16 }
 0x4f9   :  { %7167 = vmatmul.bf16.vlgmr.msrb.gmra.mxu2 %v7011_v46  ;;  %v12721_v36 = vmin.f32 %v6067_v33, 16.0  ;;  %v5548_v30 = vmul.f32 %v12429_v45, %v5509_v21  ;;  %v5876_v28 = vadd.f32 0.18741608, %v5875_v0  ;;  %v6110_v18 = vadd.f32 0.00028619796, %v6109_v24  ;;  %v5511_v21 = vpop.f32.mrf.mxu1 }
 0x4fa   :  { %v12725_v63 = vadd.f32 %v12468_v12, %v5545_v17  ;;  %v5835_v37 = vmul.f32 %v5834_v9, %v12633_v51  ;;  %v5991_v54 = vmul.f32 %v5990_v47, %v12686_v38  ;;  %v5954_v62 = vadd.f32 0.05243302, %v5953_v50 }
 0x4fb   :  { %v12730_v59 = vadd.f32 %v12438_v3, %v5548_v30  ;;  %v5913_v20 = vmul.f32 %v5912_v32, %v12661_v49  ;;  %v6187_v29 = vmul.f32 %v12717_v15, %v12717_v15  ;;  %v12739_v13 = vmul.f32 0.5, %v12527_v19 }
 0x4fc   :  { %v12736_v42 = vmul.f32 0.70710677, %v12725_v63  ;;  %v6032_v61 = vadd.f32 0.0036580483, %v6031_v41  ;;  %v6069_v55 = vmul.f32 2.1237322e-06, %v12721_v36  ;;  %v5877_v60 = vmul.f32 %v5876_v28, %v12567_v11 }
 0x4fd   :  { %14069 = vst [vmem:[#allocation26_spill] sm:$0xff] %v12739_v13  ;;  %v6111_v4 = vmul.f32 %v6110_v18, %v12702_v7  ;;  %v12747_v46 = vmul.f32 0.70710677, %v12730_v59  ;;  %v12750_v48 = vmul.f32 0.5, %v12582_v6  ;;  %v12753_v19 = vmul.f32 0.5, %v12597_v1 }
 0x4fe   :  { %v6147_v14 = vmul.f32 %v12736_v42, %v12736_v42  ;;  %v5992_v35 = vadd.f32 0.0036580483, %v5991_v54  ;;  %v5411_v43 = vadd.f32 %v5410_v58, %v5361_v52  ;;  %v5836_v44 = vadd.f32 0.18741608, %v5835_v37 }
 0x4ff   :  { %14070 = vst [vmem:[#allocation41_spill] sm:$0xff] %v12750_v48  ;;  %v5955_v0 = vmul.f32 %v5954_v62, %v12646_v39  ;;  %v5914_v24 = vadd.f32 0.05243302, %v5913_v20  ;;  %v12756_v33 = vmin.f32 %v6187_v29, 16.0  ;;  %v6033_v9 = vmul.f32 %v6032_v61, %v12682_v16  ;;  %v5364_v29 = vpop.f32.mrf.mxu2 }
 0x500   :  { %14071 = vst [vmem:[#allocation19_spill] sm:$0xff] %v12753_v19  ;;  %v6070_v47 = vadd.f32 0.00028619796, %v6069_v55  ;;  %v5547_v50 = vmul.f32 %v12429_v45, %v5411_v43  ;;  %v5512_v32 = vadd.f32 %v5511_v21, %v5462_v27  ;;  %v5878_v6 = vadd.f32 1.1283791, %v5877_v60  ;;  %v5413_v27 = vpop.f32.mrf.mxu3 }
 0x501   :  { %v6112_v17 = vadd.f32 0.0036580483, %v6111_v4  ;;  %v12760_v41 = vmin.f32 %v6147_v14, 16.0  ;;  %v6267_v1 = vmul.f32 %v12747_v46, %v12747_v46  ;;  %v12765_v30 = vmul.f32 0.5, %v12628_v56 }
 0x502   :  { %v5993_v28 = vmul.f32 %v5992_v35, %v12686_v38  ;;  %v12769_v18 = vadd.f32 %v12468_v12, %v5547_v50  ;;  %v5550_v52 = vmul.f32 %v12429_v45, %v5512_v32  ;;  %v5837_v37 = vmul.f32 %v5836_v44, %v12633_v51  ;;  %v5464_v50 = vpop.f32.mrf.mxu0 }
 0x503   :  { %14072 = vst [vmem:[#allocation27_spill] sm:$0xff] %v12765_v30  ;;  %v5956_v54 = vadd.f32 0.18741608, %v5955_v0  ;;  %v5915_v62 = vmul.f32 %v5914_v24, %v12661_v49  ;;  %v6189_v20 = vmul.f32 2.1237322e-06, %v12756_v33  ;;  %v12776_v58 = vmul.f32 0.5, %v12649_v57 }
 0x504   :  { %v6034_v56 = vadd.f32 0.05243302, %v6033_v9  ;;  %v6071_v61 = vmul.f32 %v6070_v47, %v12721_v36  ;;  %v12780_v55 = vmul.f32 0.70710677, %v12769_v18  ;;  %v6113_v60 = vmul.f32 %v6112_v17, %v12702_v7 }
 0x505   :  { %14073 = vst [vmem:[#allocation43_spill] sm:$0xff] %v12776_v58  ;;  %v6149_v4 = vmul.f32 2.1237322e-06, %v12760_v41  ;;  %v12784_v14 = vmin.f32 %v6267_v1, 16.0  ;;  %v12787_v35 = vadd.f32 %v12438_v3, %v5550_v52  ;;  %v12790_v43 = vmul.f32 0.5, %v12664_v25  ;;  %v5513_v58 = vpop.f32.mrf.mxu1 }
 0x506   :  { %v5994_v57 = vadd.f32 0.05243302, %v5993_v28  ;;  %v6227_v44 = vmul.f32 %v12780_v55, %v12780_v55  ;;  %v5414_v0 = vadd.f32 %v5413_v27, %v5364_v29  ;;  %v5838_v24 = vadd.f32 1.1283791, %v5837_v37 }
 0x507   :  { %14074 = vst [vmem:[#allocation40_spill] sm:$0xff] %v12790_v43  ;;  %v5957_v21 = vmul.f32 %v5956_v54, %v12646_v39  ;;  %v5916_v9 = vadd.f32 0.18741608, %v5915_v62  ;;  %v6190_v47 = vadd.f32 0.00028619796, %v6189_v20  ;;  %v6035_v32 = vmul.f32 %v6034_v56, %v12682_v16 }
 0x508   :  { %v6072_v17 = vadd.f32 0.0036580483, %v6071_v61  ;;  %v12796_v1 = vmin.f32 %v6227_v44, 16.0  ;;  %v12799_v52 = vmul.f32 0.70710677, %v12787_v35  ;;  %v5549_v37 = vmul.f32 %v12429_v45, %v5414_v0 }
 0x509   :  { %v6114_v25 = vadd.f32 0.05243302, %v6113_v60  ;;  %v6150_v28 = vadd.f32 0.00028619796, %v6149_v4  ;;  %v6269_v43 = vmul.f32 2.1237322e-06, %v12784_v14  ;;  %v5995_v54 = vmul.f32 %v5994_v57, %v12686_v38 }
 0x50a   :  { %v6229_v62 = vmul.f32 2.1237322e-06, %v12796_v1  ;;  %v6347_v20 = vmul.f32 %v12799_v52, %v12799_v52  ;;  %v5514_v29 = vadd.f32 %v5513_v58, %v5464_v50  ;;  %v5958_v56 = vadd.f32 1.1283791, %v5957_v21  ;;  %v5366_v50 = vpop.f32.mrf.mxu2 }
 0x50b   :  { %v5917_v61 = vmul.f32 %v5916_v9, %v12661_v49  ;;  %v6191_v27 = vmul.f32 %v6190_v47, %v12756_v33  ;;  %v12810_v60 = vadd.f32 %v12468_v12, %v5549_v37  ;;  %v6036_v4 = vadd.f32 0.18741608, %v6035_v32 }
 0x50c   :  { %v6073_v44 = vmul.f32 %v6072_v17, %v12721_v36  ;;  %v12813_v0 = vmin.f32 %v6347_v20, 16.0  ;;  %v5552_v57 = vmul.f32 %v12429_v45, %v5514_v29  ;;  %v6115_v30 = vmul.f32 %v6114_v25, %v12702_v7 }
 0x50d   :  { %v6151_v48 = vmul.f32 %v6150_v28, %v12760_v41  ;;  %v6270_v58 = vadd.f32 0.00028619796, %v6269_v43  ;;  %v6230_v21 = vadd.f32 0.00028619796, %v6229_v62  ;;  %v12819_v9 = vmul.f32 %v5878_v6, %v12536_v40  ;;  %v5415_v28 = vpop.f32.mrf.mxu3 }
 0x50e   :  { %v5996_v47 = vadd.f32 0.18741608, %v5995_v54  ;;  %v6349_v37 = vmul.f32 2.1237322e-06, %v12813_v0  ;;  %v12823_v32 = vmul.f32 0.70710677, %v12810_v60  ;;  %v12826_v17 = vmul.f32 %v5838_v24, %v12594_v2 }
 0x50f   :  { %v12829_v20 = vmul.f32 0.5, %v12679_v31  ;;  %v6192_v25 = vadd.f32 0.0036580483, %v6191_v27  ;;  %v12832_v43 = vadd.f32 %v12438_v3, %v5552_v57  ;;  %v5918_v62 = vadd.f32 1.1283791, %v5917_v61 }
 0x510   :  { %v6037_v40 = vmul.f32 %v6036_v4, %v12682_v16  ;;  %v6074_v6 = vadd.f32 0.05243302, %v6073_v44  ;;  %v5416_v54 = vadd.f32 %v5415_v28, %v5366_v50  ;;  %v6116_v29 = vadd.f32 0.18741608, %v6115_v30 }
 0x511   :  { %v6152_v19 = vadd.f32 0.0036580483, %v6151_v48  ;;  %v6271_v13 = vmul.f32 %v6270_v58, %v12784_v14  ;;  %v6231_v2 = vmul.f32 %v6230_v21, %v12796_v1  ;;  %v12838_v24 = vmul.f32 %v5958_v56, %v12612_v5  ;;  %v5467_v21 = vpop.f32.mrf.mxu0 }
 0x512   :  { %v5997_v31 = vmul.f32 %v5996_v47, %v12686_v38  ;;  %v6350_v27 = vadd.f32 0.00028619796, %v6349_v37  ;;  %v6307_v57 = vmul.f32 %v12823_v32, %v12823_v32  ;;  %v12844_v61 = vmul.f32 0.5, %v12697_v53 }
 0x513   :  { %v12847_v4 = vmul.f32 0.5, %v12709_v34  ;;  %v6193_v48 = vmul.f32 %v6192_v25, %v12756_v33  ;;  %v12851_v30 = vmul.f32 0.70710677, %v12832_v43  ;;  %v12854_v5 = vmul.f32 %v5918_v62, %v12639_v23  ;;  %v5516_v62 = vpop.f32.mrf.mxu1 }
 0x514   :  { %14075 = vst [vmem:[#allocation21_spill] sm:$0xff] %v12844_v61  ;;  %v6038_v56 = vadd.f32 1.1283791, %v6037_v40  ;;  %v6075_v44 = vmul.f32 %v6074_v6, %v12721_v36  ;;  %v5551_v58 = vmul.f32 %v12429_v45, %v5416_v54  ;;  %v6117_v53 = vmul.f32 %v6116_v29, %v12702_v7 }
 0x515   :  { %14076 = vst [vmem:[#allocation42_spill] sm:$0xff] %v12847_v4  ;;  %v6153_v50 = vmul.f32 %v6152_v19, %v12760_v41  ;;  %v6272_v34 = vadd.f32 0.0036580483, %v6271_v13  ;;  %v6232_v47 = vadd.f32 0.0036580483, %v6231_v2  ;;  %v12861_v25 = vmul.f32 0.5, %v12725_v63 }
 0x516   :  { %v5998_v37 = vadd.f32 1.1283791, %v5997_v31  ;;  %v6351_v28 = vmul.f32 %v6350_v27, %v12813_v0  ;;  %v12864_v23 = vmin.f32 %v6307_v57, 16.0  ;;  %v6194_v40 = vadd.f32 0.05243302, %v6193_v48 }
 0x517   :  { %14077 = vst [vmem:[#allocation29_spill] sm:$0xff] %v12861_v25  ;;  %v12867_v6 = vmul.f32 0.5, %v12730_v59  ;;  %v6427_v54 = vmul.f32 %v12851_v30, %v12851_v30  ;;  %v5517_v29 = vadd.f32 %v5516_v62, %v5467_v21  ;;  %v12872_v13 = vmul.f32 %v6038_v56, %v12656_v8 }
 0x518   :  { %v6076_v19 = vadd.f32 0.18741608, %v6075_v44  ;;  %v12875_v63 = vadd.f32 %v12468_v12, %v5551_v58  ;;  %v5880_v2 = vmul.f32 3.8918573e-05, %v12567_v11  ;;  %v6118_v31 = vadd.f32 1.1283791, %v6117_v53 }
 0x519   :  { %14078 = vst [vmem:[#allocation18_spill] sm:$0xff] %v12867_v6  ;;  %v6154_v27 = vadd.f32 0.05243302, %v6153_v50  ;;  %v6273_v57 = vmul.f32 %v6272_v34, %v12784_v14  ;;  %v6233_v59 = vmul.f32 %v6232_v47, %v12796_v1  ;;  %v12881_v48 = vmul.f32 %v5998_v37, %v12672_v22 }
 0x51a   :  { %v6352_v25 = vadd.f32 0.0036580483, %v6351_v28  ;;  %v6309_v21 = vmul.f32 2.1237322e-06, %v12864_v23  ;;  %v5881_v8 = vadd.f32 0.001143296, %v5880_v2  ;;  %v6195_v56 = vmul.f32 %v6194_v40, %v12756_v33 }
 0x51b   :  { %14079 = vst [vmem:[#allocation31_spill] sm:$0xff] %v12881_v48  ;;  %v12885_v44 = vmin.f32 %v6427_v54, 16.0  ;;  %v5554_v58 = vmul.f32 %v12429_v45, %v5517_v29  ;;  %v5960_v53 = vmul.f32 3.8918573e-05, %v12646_v39  ;;  %v6077_v50 = vmul.f32 %v6076_v19, %v12721_v36 }
 0x51c   :  { %v12891_v34 = vmul.f32 0.5, %v12769_v18  ;;  %v12894_v22 = vmul.f32 0.70710677, %v12875_v63  ;;  %v5882_v47 = vmul.f32 %v5881_v8, %v12567_v11  ;;  %v6155_v37 = vmul.f32 %v6154_v27, %v12760_v41 }
 0x51d   :  { %v6274_v28 = vadd.f32 0.05243302, %v6273_v57  ;;  %v6234_v62 = vadd.f32 0.05243302, %v6233_v59  ;;  %v12899_v40 = vmul.f32 0.5, %v12787_v35  ;;  %v12902_v54 = vmul.f32 %v6118_v31, %v12689_v26 }
 0x51e   :  { %14080 = vst [vmem:[#allocation34_spill] sm:$0xff] %v12891_v34  ;;  %v6353_v29 = vmul.f32 %v6352_v25, %v12813_v0  ;;  %v6310_v19 = vadd.f32 0.00028619796, %v6309_v21  ;;  %v5883_v18 = vadd.f32 0.014752088, %v5882_v47  ;;  %v12907_v6 = vadd.f32 %v12438_v3, %v5554_v58 }
 0x51f   :  { %14081 = vst [vmem:[#allocation32_spill] sm:$0xff] %v12899_v40  ;;  %v6196_v2 = vadd.f32 0.18741608, %v6195_v56  ;;  %v6429_v34 = vmul.f32 2.1237322e-06, %v12885_v44  ;;  %v6387_v57 = vmul.f32 %v12894_v22, %v12894_v22  ;;  %v6275_v25 = vmul.f32 %v6274_v28, %v12784_v14 }
 0x520   :  { %v5961_v8 = vadd.f32 0.001143296, %v5960_v53  ;;  %v6078_v27 = vadd.f32 1.1283791, %v6077_v50  ;;  %v5884_v35 = vmul.f32 %v5883_v18, %v12567_v11  ;;  %v5840_v26 = vmul.f32 3.8918573e-05, %v12633_v51 }
 0x521   :  { %v6156_v31 = vadd.f32 0.18741608, %v6155_v37  ;;  %v6235_v59 = vmul.f32 %v6234_v62, %v12796_v1  ;;  %v6354_v56 = vadd.f32 0.05243302, %v6353_v29  ;;  %v6311_v58 = vmul.f32 %v6310_v19, %v12864_v23 }
 0x522   :  { %v5962_v21 = vmul.f32 %v5961_v8, %v12646_v39  ;;  %v5885_v47 = vadd.f32 0.112945676, %v5884_v35  ;;  %v5841_v53 = vadd.f32 0.001143296, %v5840_v26  ;;  %v6197_v50 = vmul.f32 %v6196_v2, %v12756_v33 }
 0x523   :  { %v6430_v40 = vadd.f32 0.00028619796, %v6429_v34  ;;  %v12919_v4 = vmul.f32 0.70710677, %v12907_v6  ;;  %v12921_v61 = vmin.f32 %v6387_v57, 16.0  ;;  %v12927_v29 = vmul.f32 %v6078_v27, %v12706_v10 }
 0x524   :  { %v5963_v18 = vadd.f32 0.014752088, %v5962_v21  ;;  %v5886_v37 = vmul.f32 %v5885_v47, %v12567_v11  ;;  %v5842_v28 = vmul.f32 %v5841_v53, %v12633_v51  ;;  %v5920_v62 = vmul.f32 3.8918573e-05, %v12661_v49 }
 0x525   :  { %14082 = vst [vmem:[#allocation38_spill] sm:$0xff] %v12927_v29  ;;  %v6276_v19 = vadd.f32 0.18741608, %v6275_v25  ;;  %v6236_v8 = vadd.f32 0.18741608, %v6235_v59  ;;  %v6157_v34 = vmul.f32 %v6156_v31, %v12760_v41  ;;  %v6355_v57 = vmul.f32 %v6354_v56, %v12813_v0 }
 0x526   :  { %v5964_v2 = vmul.f32 %v5963_v18, %v12646_v39  ;;  %v6312_v35 = vadd.f32 0.0036580483, %v6311_v58  ;;  %v5887_v26 = vadd.f32 0.4994258, %v5886_v37  ;;  %v5843_v21 = vadd.f32 0.014752088, %v5842_v28 }
 0x527   :  { %v6431_v47 = vmul.f32 %v6430_v40, %v12885_v44  ;;  %v6507_v53 = vmul.f32 %v12919_v4, %v12919_v4  ;;  %v6389_v10 = vmul.f32 2.1237322e-06, %v12921_v61  ;;  %v5921_v59 = vadd.f32 0.001143296, %v5920_v62 }
 0x528   :  { %v5965_v48 = vadd.f32 0.112945676, %v5964_v2  ;;  %v5888_v27 = vmul.f32 %v5887_v26, %v12567_v11  ;;  %v5844_v25 = vmul.f32 %v5843_v21, %v12633_v51  ;;  %v6198_v18 = vadd.f32 1.1283791, %v6197_v50 }
 0x529   :  { %v6277_v31 = vmul.f32 %v6276_v19, %v12784_v14  ;;  %v12940_v58 = vmul.f32 0.5, %v12810_v60  ;;  %v6313_v40 = vmul.f32 %v6312_v35, %v12864_v23  ;;  %v5922_v2 = vmul.f32 %v5921_v59, %v12661_v49  ;;  %v5369_v60 = vpop.f32.mrf.mxu2 }
 0x52a   :  { %v5966_v56 = vmul.f32 %v5965_v48, %v12646_v39  ;;  %v12944_v37 = vadd.f32 1.0, %v5888_v27  ;;  %v5845_v28 = vadd.f32 0.112945676, %v5844_v25  ;;  %v6158_v29 = vadd.f32 1.1283791, %v6157_v34  ;;  %v5418_v25 = vpop.f32.mrf.mxu3 }
 0x52b   :  { %14083 = vst [vmem:[#allocation33_spill] sm:$0xff] %v12940_v58  ;;  %v6237_v11 = vmul.f32 %v6236_v8, %v12796_v1  ;;  %v6356_v26 = vadd.f32 0.18741608, %v6355_v57  ;;  %v6432_v50 = vadd.f32 0.0036580483, %v6431_v47  ;;  %v12948_v19 = vmin.f32 %v6507_v53, 16.0 }
 0x52c   :  { %v5967_v62 = vadd.f32 0.4994258, %v5966_v56  ;;  %v6390_v21 = vadd.f32 0.00028619796, %v6389_v10  ;;  %8779 = vrcp.f32 %v12944_v37  ;;  %v12952_v48 = vmul.f32 %v6198_v18, %v12717_v15 }
 0x52d   :  { %v6278_v35 = vadd.f32 1.1283791, %v6277_v31  ;;  %v12955_v27 = vmul.f32 0.5, %v12832_v43  ;;  %v6314_v8 = vadd.f32 0.05243302, %v6313_v40  ;;  %v5419_v57 = vadd.f32 %v5418_v25, %v5369_v60 }
 0x52e   :  { %v5968_v34 = vmul.f32 %v5967_v62, %v12646_v39  ;;  %v5846_v47 = vmul.f32 %v5845_v28, %v12633_v51  ;;  %v5923_v10 = vadd.f32 0.014752088, %v5922_v2  ;;  %v12960_v53 = vmul.f32 %v6158_v29, %v12736_v42  ;;  %v5469_v39 = vpop.f32.mrf.mxu0 }
 0x52f   :  { %14084 = vst [vmem:[#allocation36_spill] sm:$0xff] %v12955_v27  ;;  %v6238_v59 = vadd.f32 1.1283791, %v6237_v11  ;;  %v6357_v56 = vmul.f32 %v6356_v26, %v12813_v0  ;;  %v6433_v18 = vmul.f32 %v6432_v50, %v12885_v44  ;;  %v6391_v43 = vmul.f32 %v6390_v21, %v12921_v61  ;;  %v5518_v26 = vpop.f32.mrf.mxu1 }
 0x530   :  { %14085 = vst [vmem:[#allocation22_spill] sm:$0xff] %v12960_v53  ;;  %v12963_v15 = vadd.f32 1.0, %v5968_v34  ;;  %v6509_v31 = vmul.f32 2.1237322e-06, %v12948_v19  ;;  %v5847_v40 = vadd.f32 0.4994258, %v5846_v47  ;;  %v12969_v62 = vmul.f32 %v6278_v35, %v12747_v46 }
 0x531   :  { %v12972_v28 = vmul.f32 0.5, %v12875_v63  ;;  %v6040_v42 = vmul.f32 3.8918573e-05, %v12682_v16  ;;  %v6315_v2 = vmul.f32 %v6314_v8, %v12864_v23  ;;  %v12978_v11 = vmul.f32 0.5, %v12907_v6 }
 0x532   :  { %8781 = vrcp.f32 %v12963_v15  ;;  %v8780_v29 = vpop.eup %8779  ;;  %v5553_v50 = vmul.f32 %v12429_v45, %v5419_v57  ;;  %v5924_v21 = vmul.f32 %v5923_v10, %v12661_v49  ;;  %v12982_v46 = vadd.f32 1.1283791, %v6357_v56 }
 0x533   :  { %14086 = vst [vmem:[#allocation35_spill] sm:$0xff] %v12972_v28  ;;  %v5891_v63 = vmul.f32 %v8780_v29, %v12944_v37  ;;  %v5519_v60 = vadd.f32 %v5518_v26, %v5469_v39  ;;  %v5848_v35 = vmul.f32 %v5847_v40, %v12633_v51  ;;  %v12987_v25 = vmul.f32 %v6238_v59, %v12780_v55 }
 0x534   :  { %14087 = vst [vmem:[#allocation37_spill] sm:$0xff] %v12978_v11  ;;  %v6434_v34 = vadd.f32 0.05243302, %v6433_v18  ;;  %v6392_v8 = vadd.f32 0.0036580483, %v6391_v43  ;;  %v5901_v56 = vand.u32 2147483648, %v12944_v37  ;;  %v12994_v58 = vadd.f32 %v12468_v12, %v5553_v50 }
 0x535   :  { %14088 = vst [vmem:[#allocation23_spill] sm:$0xff] %v12987_v25  ;;  %v6510_v47 = vadd.f32 0.00028619796, %v6509_v31  ;;  %v5892_v6 = vsub.f32 1.0, %v5891_v63  ;;  %v5899_v11 = vand.u32 2147483647, %v12944_v37  ;;  %vm5896_vm0 = vweird.f32 %v8780_v29 }
 0x536   :  { %v12990_v28 = vadd.f32 1.0, %v5848_v35  ;;  %v6041_v57 = vadd.f32 0.001143296, %v6040_v42  ;;  %v6316_v10 = vadd.f32 0.18741608, %v6315_v2  ;;  %v5556_v55 = vmul.f32 %v12429_v45, %v5519_v60 }
 0x537   :  { %v5925_v39 = vadd.f32 0.112945676, %v5924_v21  ;;  %v5893_v40 = vmul.f32 %v8780_v29, %v5892_v6  ;;  %v6435_v59 = vmul.f32 %v6434_v34, %v12885_v44  ;;  %v6393_v18 = vmul.f32 %v6392_v8, %v12921_v61 }
 0x538   :  { %v8782_v51 = vpop.eup %8781  ;;  %8783 = vrcp.f32 %v12990_v28  ;;  %v6511_v43 = vmul.f32 %v6510_v47, %v12948_v19  ;;  %vm5895_vm1 = vweird.f32 %v12944_v37  ;;  %vm5900_vm2 = vcmp.eq.f32.partialorder %v5899_v11, 8.507059e+37 }
 0x539   :  { %v5971_v31 = vmul.f32 %v8782_v51, %v12963_v15  ;;  %v5894_v42 = vadd.f32 %v8780_v29, %v5893_v40  ;;  %v6042_v2 = vmul.f32 %v6041_v57, %v12682_v16  ;;  %vm5897_vm3 = vmor %vm5895_vm1, %vm5896_vm0  ;;  %v5902_v26 = vor.u32 1.1754944e-38, %v5901_v56 }
 0x53a   :  { %v5979_v21 = vand.u32 2147483647, %v12963_v15  ;;  %v5926_v63 = vmul.f32 %v5925_v39, %v12661_v49  ;;  %v5981_v35 = vand.u32 2147483648, %v12963_v15  ;;  %v13008_v34 = vmul.f32 0.70710677, %v12994_v58 }
 0x53b   :  { %v5972_v50 = vsub.f32 1.0, %v5971_v31  ;;  %v5898_v60 = vsel %vm5897_vm3, %v8780_v29, %v5894_v42  ;;  %v13011_v8 = vadd.f32 %v12438_v3, %v5556_v55  ;;  %vm5976_vm4 = vweird.f32 %v8782_v51  ;;  %v5371_v42 = vpop.f32.mrf.mxu2 }
 0x53c   :  { %v5903_v37 = vsel %vm5900_vm2, %v5902_v26, %v5898_v60  ;;  %v5927_v47 = vadd.f32 0.4994258, %v5926_v63  ;;  %v6317_v57 = vmul.f32 %v6316_v10, %v12864_v23  ;;  %v6512_v56 = vadd.f32 0.0036580483, %v6511_v43 }
 0x53d   :  { %v5973_v11 = vmul.f32 %v8782_v51, %v5972_v50  ;;  %v5904_v39 = vmul.f32 %v5903_v37, %v12819_v9  ;;  %v6043_v29 = vadd.f32 0.014752088, %v6042_v2  ;;  %v6394_v40 = vadd.f32 0.05243302, %v6393_v18  ;;  %v5420_v18 = vpop.f32.mrf.mxu3 }
 0x53e   :  { %v13013_v6 = vpop.eup %8783  ;;  %vm5975_vm5 = vweird.f32 %v12963_v15  ;;  %v5982_v26 = vor.u32 1.1754944e-38, %v5981_v35  ;;  %v6467_v50 = vmul.f32 %v13008_v34, %v13008_v34  ;;  %v13023_v63 = vmul.f32 0.70710677, %v13011_v8 }
 0x53f   :  { %v5974_v31 = vadd.f32 %v8782_v51, %v5973_v11  ;;  %v5851_v55 = vmul.f32 %v13013_v6, %v12990_v28  ;;  %vm5977_vm6 = vmor %vm5975_vm5, %vm5976_vm4  ;;  %v5928_v10 = vmul.f32 %v5927_v47, %v12661_v49  ;;  %v8291_v9 = vclamps-f32 %v5904_v39, 1.0 }
 0x540   :  { %vm5980_vm7 = vcmp.eq.f32.partialorder %v5979_v21, 8.507059e+37  ;;  %v5421_v37 = vadd.f32 %v5420_v18, %v5371_v42  ;;  %v6044_v11 = vmul.f32 %v6043_v29, %v12682_v16  ;;  %v6513_v35 = vmul.f32 %v6512_v56, %v12948_v19 }
 0x541   :  { %v5978_v43 = vsel %vm5977_vm6, %v8782_v51, %v5974_v31  ;;  %v5852_v2 = vsub.f32 1.0, %v5851_v55  ;;  %v13026_v60 = vadd.f32 1.0, %v5928_v10  ;;  %v6120_v53 = vmul.f32 3.8918573e-05, %v12702_v7 }
 0x542   :  { %v5983_v15 = vsel %vm5980_vm7, %v5982_v26, %v5978_v43  ;;  %v13033_v49 = vmin.f32 %v6467_v50, 16.0  ;;  %v6587_v51 = vmul.f32 %v13023_v63, %v13023_v63  ;;  %vm5856_vm8 = vweird.f32 %v13013_v6  ;;  %v5521_v50 = vpop.f32.mrf.mxu1 }
 0x543   :  { %v5984_v27 = vmul.f32 %v5983_v15, %v12838_v24  ;;  %v5853_v25 = vmul.f32 %v13013_v6, %v5852_v2  ;;  %8785 = vrcp.f32 %v13026_v60  ;;  %v6952_v47 = vadd.f32 1.0, %v8291_v9  ;;  %v5472_v2 = vpop.f32.mrf.mxu0 }
 0x544   :  { %v5861_v56 = vand.u32 2147483648, %v12990_v28  ;;  %vm5855_vm9 = vweird.f32 %v12990_v28  ;;  %v5859_v24 = vand.u32 2147483647, %v12990_v28  ;;  %v5555_v29 = vmul.f32 %v12429_v45, %v5421_v37 }
 0x545   :  { %v8293_v21 = vclamps-f32 %v5984_v27, 1.0  ;;  %v5854_v39 = vadd.f32 %v13013_v6, %v5853_v25  ;;  %v6045_v31 = vadd.f32 0.112945676, %v6044_v11  ;;  %v13046_v55 = vmul.f32 %v12982_v46, %v12799_v52  ;;  %vm13049_vm10 = vmor %vm5855_vm9, %vm5856_vm8  ;;  %v14092_v52 = vld [vmem:[#allocation26_spill] sm:$0xff] }
 0x546   :  { %v6436_v42 = vadd.f32 0.18741608, %v6435_v59  ;;  %v6395_v26 = vmul.f32 %v6394_v40, %v12921_v61  ;;  %v6469_v25 = vmul.f32 2.1237322e-06, %v13033_v49  ;;  %v13054_v10 = vmin.f32 %v6587_v51, 16.0  ;;  %v14093_v59 = vld [vmem:[#allocation19_spill] sm:$0xff] }
 0x547   :  { %14089 = vst [vmem:[#allocation24_spill] sm:$0xff] %v13046_v55  ;;  %v6954_v27 = vadd.f32 1.0, %v8293_v21  ;;  %v5858_v28 = vsel %vm13049_vm10, %v13013_v6, %v5854_v39  ;;  %v6121_v9 = vadd.f32 0.001143296, %v6120_v53  ;;  %v6318_v43 = vadd.f32 1.1283791, %v6317_v57 }
 0x548   :  { %v6984_v46 = vmul.f32 %v6952_v47, %v14092_v52  ;;  %v5862_v40 = vor.u32 1.1754944e-38, %v5861_v56  ;;  %v6514_v37 = vadd.f32 0.05243302, %v6513_v35  ;;  %vm5860_vm11 = vcmp.eq.f32.partialorder %v5859_v24, 8.507059e+37 }
 0x549   :  { %v6986_v18 = vmul.f32 %v6954_v27, %v14093_v59  ;;  %v8786_v15 = vpop.eup %8785  ;;  %v13062_v11 = vadd.f32 %v12468_v12, %v5555_v29  ;;  %v6046_v51 = vmul.f32 %v6045_v31, %v12682_v16  ;;  %v6396_v21 = vadd.f32 0.18741608, %v6395_v26 }
 0x54a   :  { %v5863_v6 = vsel %vm5860_vm11, %v5862_v40, %v5858_v28  ;;  %v5931_v53 = vmul.f32 %v8786_v15, %v13026_v60  ;;  %v6470_v57 = vadd.f32 0.00028619796, %v6469_v25  ;;  %v6589_v47 = vmul.f32 2.1237322e-06, %v13054_v10 }
 0x54b   :  { %v7014_v55 = vpack.c.bf16 %v6986_v18, %v6984_v46  ;;  %v5522_v39 = vadd.f32 %v5521_v50, %v5472_v2  ;;  %v6122_v56 = vmul.f32 %v6121_v9, %v12702_v7  ;;  %v6437_v35 = vmul.f32 %v6436_v42, %v12885_v44 }
 0x54c   :  { %v5932_v24 = vsub.f32 1.0, %v5931_v53  ;;  %v6047_v29 = vadd.f32 0.4994258, %v6046_v51  ;;  %v6000_v27 = vmul.f32 3.8918573e-05, %v12686_v38  ;;  %v6515_v31 = vmul.f32 %v6514_v37, %v12948_v19 }
 0x54d   :  { %7221 = vmatmul.bf16.gmra.mxu3 %v7014_v55  ;;  %v5864_v26 = vmul.f32 %v5863_v6, %v12826_v17  ;;  %v5941_v28 = vand.u32 2147483648, %v13026_v60  ;;  %v13074_v25 = vmul.f32 0.70710677, %v13062_v11  ;;  %vm5936_vm12 = vweird.f32 %v8786_v15 }
 0x54e   :  { %v5933_v52 = vmul.f32 %v8786_v15, %v5932_v24  ;;  %v5939_v9 = vand.u32 2147483647, %v13026_v60  ;;  %v6048_v42 = vmul.f32 %v6047_v29, %v12682_v16  ;;  %v6471_v55 = vmul.f32 %v6470_v57, %v13033_v49 }
 0x54f   :  { %v6590_v46 = vadd.f32 0.00028619796, %v6589_v47  ;;  %v5558_v59 = vmul.f32 %v12429_v45, %v5522_v39  ;;  %v6123_v18 = vadd.f32 0.014752088, %v6122_v56  ;;  %vm5935_vm13 = vweird.f32 %v13026_v60 }
 0x550   :  { %v5934_v40 = vadd.f32 %v8786_v15, %v5933_v52  ;;  %v13081_v17 = vadd.f32 1.0, %v6048_v42  ;;  %v6001_v2 = vadd.f32 0.001143296, %v6000_v27  ;;  %v8290_v37 = vclamps-f32 %v5864_v26, 1.0  ;;  %vm5937_vm14 = vmor %vm5935_vm13, %vm5936_vm12 }
 0x551   :  { %v5942_v51 = vor.u32 1.1754944e-38, %v5941_v28  ;;  %v6547_v50 = vmul.f32 %v13074_v25, %v13074_v25  ;;  %v6124_v16 = vmul.f32 %v6123_v18, %v12702_v7  ;;  %v6397_v6 = vmul.f32 %v6396_v21, %v12921_v61 }
 0x552   :  { %v5938_v53 = vsel %vm5937_vm14, %v8786_v15, %v5934_v40  ;;  %vm5940_vm15 = vcmp.eq.f32.partialorder %v5939_v9, 8.507059e+37  ;;  %8787 = vrcp.f32 %v13081_v17  ;;  %v6472_v57 = vadd.f32 0.0036580483, %v6471_v55 }
 0x553   :  { %v6591_v60 = vmul.f32 %v6590_v46, %v13054_v10  ;;  %v5943_v47 = vsel %vm5940_vm15, %v5942_v51, %v5938_v53  ;;  %v13090_v39 = vadd.f32 %v12438_v3, %v5558_v59  ;;  %v6125_v24 = vadd.f32 0.112945676, %v6124_v16  ;;  %v5423_v16 = vpop.f32.mrf.mxu3  ;;  %v5374_v53 = vpop.f32.mrf.mxu2 }
 0x554   :  { %v5944_v56 = vmul.f32 %v5943_v47, %v12854_v5  ;;  %v6002_v29 = vmul.f32 %v6001_v2, %v12686_v38  ;;  %v6080_v27 = vmul.f32 3.8918573e-05, %v12721_v36  ;;  %v13096_v21 = vmul.f32 %v6318_v43, %v12823_v32 }
 0x555   :  { %v6516_v15 = vadd.f32 0.18741608, %v6515_v31  ;;  %v6951_v26 = vadd.f32 1.0, %v8290_v37  ;;  %v13098_v28 = vmin.f32 %v6547_v50, 16.0  ;;  %v6438_v52 = vadd.f32 1.1283791, %v6437_v35 }
 0x556   :  { %14094 = vst [vmem:[#allocation20_spill] sm:$0xff] %v13096_v21  ;;  %v8292_v9 = vclamps-f32 %v5944_v56, 1.0  ;;  %v6126_v42 = vmul.f32 %v6125_v24, %v12702_v7  ;;  %v6003_v55 = vadd.f32 0.014752088, %v6002_v29  ;;  %v6398_v46 = vadd.f32 1.1283791, %v6397_v6 }
 0x557   :  { %v6473_v5 = vmul.f32 %v6472_v57, %v13033_v49  ;;  %v6592_v59 = vadd.f32 0.0036580483, %v6591_v60  ;;  %v13103_v18 = vmul.f32 0.70710677, %v13090_v39  ;;  %v6081_v2 = vadd.f32 0.001143296, %v6080_v27 }
 0x558   :  { %v13105_v40 = vpop.eup %8787  ;;  %v6953_v32 = vadd.f32 1.0, %v8292_v9  ;;  %v6127_v43 = vadd.f32 0.4994258, %v6126_v42  ;;  %v6004_v31 = vmul.f32 %v6003_v55, %v12686_v38  ;;  %v6517_v35 = vmul.f32 %v6516_v15, %v12948_v19  ;;  %v14095_v37 = vld [vmem:[#allocation41_spill] sm:$0xff]  ;;  %v14096_v57 = vld [vmem:[#allocation27_spill] sm:$0xff]  ;;  %v5474_v55 = vpop.f32.mrf.mxu0 }
 0x559   :  { %v6983_v51 = vmul.f32 %v6951_v26, %v14095_v37  ;;  %v6549_v50 = vmul.f32 2.1237322e-06, %v13098_v28  ;;  %v6051_v6 = vmul.f32 %v13105_v40, %v13081_v17  ;;  %v5424_v56 = vadd.f32 %v5423_v16, %v5374_v53 }
 0x55a   :  { %v6985_v60 = vmul.f32 %v6953_v32, %v14096_v57  ;;  %v6128_v47 = vmul.f32 %v6127_v43, %v12702_v7  ;;  %v6005_v24 = vadd.f32 0.112945676, %v6004_v31  ;;  %v6474_v29 = vadd.f32 0.05243302, %v6473_v5  ;;  %v5523_v5 = vpop.f32.mrf.mxu1 }
 0x55b   :  { %v6593_v27 = vmul.f32 %v6592_v59, %v13054_v10  ;;  %v6667_v15 = vmul.f32 %v13103_v18, %v13103_v18  ;;  %v6052_v26 = vsub.f32 1.0, %v6051_v6  ;;  %v6082_v21 = vmul.f32 %v6081_v2, %v12721_v36 }
 0x55c   :  { %v7013_v9 = vpack.c.bf16 %v6985_v60, %v6983_v51  ;;  %v13118_v42 = vadd.f32 1.0, %v6128_v47  ;;  %v6006_v37 = vmul.f32 %v6005_v24, %v12686_v38  ;;  %v13123_v32 = vmul.f32 %v6438_v52, %v12851_v30 }
 0x55d   :  { %v6518_v7 = vadd.f32 1.1283791, %v6517_v35  ;;  %v6550_v43 = vadd.f32 0.00028619796, %v6549_v50  ;;  %v6053_v59 = vmul.f32 %v13105_v40, %v6052_v26  ;;  %v13127_v31 = vmul.f32 %v6398_v46, %v12894_v22 }
 0x55e   :  { %7172 = vmatmul.bf16.gmra.mxu2 %v7013_v9  ;;  %8789 = vrcp.f32 %v13118_v42  ;;  %v5557_v51 = vmul.f32 %v12429_v45, %v5424_v56  ;;  %v5524_v16 = vadd.f32 %v5523_v5, %v5474_v55  ;;  %v6594_v6 = vadd.f32 0.05243302, %v6593_v27 }
 0x55f   :  { %v13131_v53 = vmin.f32 %v6667_v15, 16.0  ;;  %v6054_v30 = vadd.f32 %v13105_v40, %v6053_v59  ;;  %vm6056_vm0 = vweird.f32 %v13105_v40  ;;  %v6475_v52 = vmul.f32 %v6474_v29, %v13033_v49 }
 0x560   :  { %v6061_v2 = vand.u32 2147483648, %v13081_v17  ;;  %v6007_v35 = vadd.f32 0.4994258, %v6006_v37  ;;  %v6083_v22 = vadd.f32 0.014752088, %v6082_v21  ;;  %v13138_v46 = vmul.f32 %v6518_v7, %v12919_v4 }
 0x561   :  { %v6551_v50 = vmul.f32 %v6550_v43, %v13098_v28  ;;  %vm6055_vm1 = vweird.f32 %v13081_v17  ;;  %v6059_v57 = vand.u32 2147483647, %v13081_v17  ;;  %v13144_v60 = vmul.f32 0.5, %v12994_v58 }
 0x562   :  { %vm13146_vm2 = vmor %vm6055_vm1, %vm6056_vm0  ;;  %v13151_v56 = vadd.f32 %v12468_v12, %v5557_v51  ;;  %v5560_v21 = vmul.f32 %v12429_v45, %v5524_v16  ;;  %v6008_v4 = vmul.f32 %v6007_v35, %v12686_v38  ;;  %v13156_v24 = vmul.f32 0.5, %v13011_v8 }
 0x563   :  { %14097 = vst [vmem:[#allocation25_spill] sm:$0xff] %v13144_v60  ;;  %v6595_v29 = vmul.f32 %v6594_v6, %v13054_v10  ;;  %v6669_v17 = vmul.f32 2.1237322e-06, %v13131_v53  ;;  %v6058_v58 = vsel %vm13146_vm2, %v13105_v40, %v6054_v30  ;;  %v6476_v15 = vadd.f32 0.18741608, %v6475_v52 }
 0x564   :  { %v8790_v27 = vpop.eup %8789  ;;  %v6062_v26 = vor.u32 1.1754944e-38, %v6061_v2  ;;  %v13163_v9 = vadd.f32 1.0, %v6008_v4  ;;  %v6084_v55 = vmul.f32 %v6083_v22, %v12721_v36  ;;  %v6552_v37 = vadd.f32 0.0036580483, %v6551_v50 }
 0x565   :  { %vm6060_vm3 = vcmp.eq.f32.partialorder %v6059_v57, 8.507059e+37  ;;  %v6131_v38 = vmul.f32 %v8790_v27, %v13118_v42  ;;  %v6200_v8 = vmul.f32 3.8918573e-05, %v12756_v33  ;;  %v13169_v43 = vmul.f32 0.70710677, %v13151_v56 }
 0x566   :  { %v6063_v7 = vsel %vm6060_vm3, %v6062_v26, %v6058_v58  ;;  %v13172_v5 = vadd.f32 %v12438_v3, %v5560_v21  ;;  %8791 = vrcp.f32 %v13163_v9  ;;  %v13175_v40 = vadd.f32 0.18741608, %v6595_v29 }
 0x567   :  { %v13178_v59 = vmul.f32 0.5, %v13062_v11  ;;  %v6670_v51 = vadd.f32 0.00028619796, %v6669_v17  ;;  %v6132_v16 = vsub.f32 1.0, %v6131_v38  ;;  %v6477_v6 = vmul.f32 %v6476_v15, %v13033_v49 }
 0x568   :  { %v6139_v30 = vand.u32 2147483647, %v13118_v42  ;;  %v6141_v52 = vand.u32 2147483648, %v13118_v42  ;;  %v6085_v2 = vadd.f32 0.112945676, %v6084_v55  ;;  %v6064_v35 = vmul.f32 %v6063_v7, %v12872_v13 }
 0x569   :  { %14100 = vst [vmem:[#allocation39_spill] sm:$0xff] %v13178_v59  ;;  %v6133_v22 = vmul.f32 %v8790_v27, %v6132_v16  ;;  %vm6136_vm4 = vweird.f32 %v8790_v27  ;;  %v6201_v50 = vadd.f32 0.001143296, %v6200_v8  ;;  %v6553_v57 = vmul.f32 %v6552_v37, %v13098_v28  ;;  %v5376_v8 = vpop.f32.mrf.mxu2  ;;  %v5477_v59 = vpop.f32.mrf.mxu0 }
 0x56a   :  { %v6627_v11 = vmul.f32 %v13169_v43, %v13169_v43  ;;  %v13188_v47 = vmul.f32 0.70710677, %v13172_v5  ;;  %v6086_v21 = vmul.f32 %v6085_v2, %v12721_v36  ;;  %v6671_v4 = vmul.f32 %v6670_v51, %v13131_v53 }
 0x56b   :  { %v6134_v29 = vadd.f32 %v8790_v27, %v6133_v22  ;;  %vm6135_vm5 = vweird.f32 %v13118_v42  ;;  %v6202_v13 = vmul.f32 %v6201_v50, %v12756_v33  ;;  %vm6140_vm7 = vcmp.eq.f32.partialorder %v6139_v30, 8.507059e+37  ;;  %v5425_v42 = vpop.f32.mrf.mxu3 }
 0x56c   :  { %v13194_v17 = vpop.eup %8791  ;;  %vm6137_vm6 = vmor %vm6135_vm5, %vm6136_vm4  ;;  %v6142_v58 = vor.u32 1.1754944e-38, %v6141_v52  ;;  %v6087_v15 = vadd.f32 0.4994258, %v6086_v21  ;;  %v6280_v26 = vmul.f32 3.8918573e-05, %v12784_v14  ;;  %v8295_v55 = vclamps-f32 %v6064_v35, 1.0 }
 0x56d   :  { %v6138_v37 = vsel %vm6137_vm6, %v8790_v27, %v6134_v29  ;;  %v6011_v38 = vmul.f32 %v13194_v17, %v13163_v9  ;;  %v6203_v7 = vadd.f32 0.014752088, %v6202_v13  ;;  %v13199_v16 = vmin.f32 %v6627_v11, 16.0 }
 0x56e   :  { %v6143_v51 = vsel %vm6140_vm7, %v6142_v58, %v6138_v37  ;;  %v6747_v2 = vmul.f32 %v13188_v47, %v13188_v47  ;;  %v6088_v30 = vmul.f32 %v6087_v15, %v12721_v36  ;;  %v6554_v52 = vadd.f32 0.05243302, %v6553_v57  ;;  %v5526_v15 = vpop.f32.mrf.mxu1 }
 0x56f   :  { %v6144_v22 = vmul.f32 %v6143_v51, %v12902_v54  ;;  %v6012_v50 = vsub.f32 1.0, %v6011_v38  ;;  %v5426_v35 = vadd.f32 %v5425_v42, %v5376_v8  ;;  %vm6015_vm8 = vweird.f32 %v13163_v9 }
 0x570   :  { %v13206_v27 = vadd.f32 1.0, %v6088_v30  ;;  %v6204_v21 = vmul.f32 %v6203_v7, %v12756_v33  ;;  %v6281_v29 = vadd.f32 0.001143296, %v6280_v26  ;;  %v6956_v13 = vadd.f32 1.0, %v8295_v55 }
 0x571   :  { %v8297_v11 = vclamps-f32 %v6144_v22, 1.0  ;;  %v6013_v58 = vmul.f32 %v13194_v17, %v6012_v50  ;;  %v5559_v37 = vmul.f32 %v12429_v45, %v5426_v35  ;;  %v6629_v36 = vmul.f32 2.1237322e-06, %v13199_v16  ;;  %v14101_v22 = vld [vmem:[#allocation43_spill] sm:$0xff] }
 0x572   :  { %v13212_v57 = vmin.f32 %v6747_v2, 16.0  ;;  %vm6016_vm9 = vweird.f32 %v13194_v17  ;;  %8793 = vrcp.f32 %v13206_v27  ;;  %v6019_v26 = vand.u32 2147483647, %v13163_v9 }
 0x573   :  { %v6958_v54 = vadd.f32 1.0, %v8297_v11  ;;  %v6014_v38 = vadd.f32 %v13194_v17, %v6013_v58  ;;  %v6021_v55 = vand.u32 2147483648, %v13163_v9  ;;  %v13220_v8 = vadd.f32 %v12468_v12, %v5559_v37  ;;  %vm13231_vm10 = vmor %vm6015_vm8, %vm6016_vm9 }
 0x574   :  { %v5527_v7 = vadd.f32 %v5526_v15, %v5477_v59  ;;  %v6205_v51 = vadd.f32 0.112945676, %v6204_v21  ;;  %v6282_v42 = vmul.f32 %v6281_v29, %v12784_v14  ;;  %v13223_v2 = vadd.f32 1.1283791, %v6477_v6 }
 0x575   :  { %v6672_v30 = vadd.f32 0.0036580483, %v6671_v4  ;;  %v6988_v50 = vmul.f32 %v6956_v13, %v14101_v22  ;;  %v6990_v35 = vmul.f32 %v6958_v54, %v12829_v20  ;;  %v6597_v59 = vmul.f32 %v13175_v40, %v13054_v10 }
 0x576   :  { %v6630_v21 = vadd.f32 0.00028619796, %v6629_v36  ;;  %v6749_v6 = vmul.f32 2.1237322e-06, %v13212_v57  ;;  %v6018_v4 = vsel %vm13231_vm10, %v13194_v17, %v6014_v38  ;;  %v6022_v20 = vor.u32 1.1754944e-38, %v6021_v55 }
 0x577   :  { %v7016_v29 = vpack.c.bf16 %v6990_v35, %v6988_v50  ;;  %v13242_v13 = vmul.f32 0.70710677, %v13220_v8  ;;  %v5562_v9 = vmul.f32 %v12429_v45, %v5527_v7  ;;  %v6555_v37 = vmul.f32 %v6554_v52, %v13098_v28  ;;  %v14105_v50 = vld [vmem:[#allocation31_spill] sm:$0xff] }
 0x578   :  { %v8794_v58 = vpop.eup %8793  ;;  %vm6020_vm11 = vcmp.eq.f32.partialorder %v6019_v26, 8.507059e+37  ;;  %v6206_v40 = vmul.f32 %v6205_v51, %v12756_v33  ;;  %v6283_v36 = vadd.f32 0.014752088, %v6282_v42  ;;  %v6673_v54 = vmul.f32 %v6672_v30, %v13131_v53 }
 0x579   :  { %7226 = vmatmul.bf16.gmra.mxu3 %v7016_v29  ;;  %v6023_v15 = vsel %vm6020_vm11, %v6022_v20, %v6018_v4  ;;  %v6091_v17 = vmul.f32 %v8794_v58, %v13206_v27  ;;  %v6707_v38 = vmul.f32 %v13242_v13, %v13242_v13  ;;  %v6631_v55 = vmul.f32 %v6630_v21, %v13199_v16 }
 0x57a   :  { %v13253_v7 = vadd.f32 %v12438_v3, %v5562_v9  ;;  %v6207_v22 = vadd.f32 0.4994258, %v6206_v40  ;;  %v6160_v52 = vmul.f32 3.8918573e-05, %v12760_v41  ;;  %v6750_v26 = vadd.f32 0.00028619796, %v6749_v6 }
 0x57b   :  { %v6092_v51 = vsub.f32 1.0, %v6091_v17  ;;  %v13256_v42 = vmin.f32 %v6707_v38, 16.0  ;;  %v6284_v30 = vmul.f32 %v6283_v36, %v12784_v14  ;;  %v6024_v35 = vmul.f32 %v6023_v15, %v14105_v50 }
 0x57c   :  { %14104 = vst [vmem:[#allocation28_spill] sm:$0xff] %v13253_v7  ;;  %v6099_v11 = vand.u32 2147483647, %v13206_v27  ;;  %v6101_v4 = vand.u32 2147483648, %v13206_v27  ;;  %v13263_v21 = vmul.f32 0.70710677, %v13253_v7  ;;  %vm6096_vm12 = vweird.f32 %v8794_v58 }
 0x57d   :  { %v6093_v29 = vmul.f32 %v8794_v58, %v6092_v51  ;;  %v6709_v20 = vmul.f32 2.1237322e-06, %v13256_v42  ;;  %v6208_v6 = vmul.f32 %v6207_v22, %v12756_v33  ;;  %v6632_v9 = vadd.f32 0.0036580483, %v6631_v55 }
 0x57e   :  { %14106 = vst [vmem:[#allocation30_spill] sm:$0xff] %v13263_v21  ;;  %v6827_v40 = vmul.f32 %v13263_v21, %v13263_v21  ;;  %v6285_v36 = vadd.f32 0.112945676, %v6284_v30  ;;  %v6161_v17 = vadd.f32 0.001143296, %v6160_v52  ;;  %v6751_v15 = vmul.f32 %v6750_v26, %v13212_v57 }
 0x57f   :  { %v6094_v38 = vadd.f32 %v8794_v58, %v6093_v29  ;;  %vm6095_vm13 = vweird.f32 %v13206_v27  ;;  %v13271_v50 = vadd.f32 1.0, %v6208_v6  ;;  %v8294_v7 = vclamps-f32 %v6024_v35, 1.0  ;;  %v14107_v6 = vld [vmem:[#allocation38_spill] sm:$0xff] }
 0x580   :  { %vm6097_vm14 = vmor %vm6095_vm13, %vm6096_vm12  ;;  %vm6100_vm15 = vcmp.eq.f32.partialorder %v6099_v11, 8.507059e+37  ;;  %v6102_v51 = vor.u32 1.1754944e-38, %v6101_v4  ;;  %v6286_v60 = vmul.f32 %v6285_v36, %v12784_v14  ;;  %v6710_v55 = vadd.f32 0.00028619796, %v6709_v20 }
 0x581   :  { %v6098_v33 = vsel %vm6097_vm14, %v8794_v58, %v6094_v38  ;;  %v13274_v22 = vmin.f32 %v6827_v40, 16.0  ;;  %8795 = vrcp.f32 %v13271_v50  ;;  %v6556_v52 = vadd.f32 0.18741608, %v6555_v37 }
 0x582   :  { %v6633_v26 = vmul.f32 %v6632_v9, %v13199_v16  ;;  %v6103_v30 = vsel %vm6100_vm15, %v6102_v51, %v6098_v33  ;;  %v6162_v27 = vmul.f32 %v6161_v17, %v12760_v41  ;;  %v6598_v29 = vadd.f32 1.1283791, %v6597_v59 }
 0x583   :  { %v6104_v35 = vmul.f32 %v6103_v30, %v14107_v6  ;;  %v6287_v21 = vadd.f32 0.4994258, %v6286_v60  ;;  %v6240_v11 = vmul.f32 3.8918573e-05, %v12796_v1  ;;  %v13282_v4 = vmul.f32 0.5, %v13090_v39 }
 0x584   :  { %v6674_v58 = vadd.f32 0.05243302, %v6673_v54  ;;  %v6752_v20 = vadd.f32 0.0036580483, %v6751_v15  ;;  %v6955_v40 = vadd.f32 1.0, %v8294_v7  ;;  %v6711_v37 = vmul.f32 %v6710_v55, %v13256_v42 }
 0x585   :  { %14108 = vst [vmem:[#allocation26_spill] sm:$0xff] %v13282_v4  ;;  %v8296_v36 = vclamps-f32 %v6104_v35, 1.0  ;;  %v6829_v9 = vmul.f32 2.1237322e-06, %v13274_v22  ;;  %v6288_v38 = vmul.f32 %v6287_v21, %v12784_v14  ;;  %v13289_v59 = vmul.f32 %v13223_v2, %v13008_v34  ;;  %v14109_v21 = vld [vmem:[#allocation40_spill] sm:$0xff]  ;;  %v5379_v2 = vpop.f32.mrf.mxu2  ;;  %v5428_v35 = vpop.f32.mrf.mxu3 }
 0x586   :  { %v6557_v60 = vmul.f32 %v6556_v52, %v13098_v28  ;;  %v6634_v17 = vadd.f32 0.05243302, %v6633_v26  ;;  %v6163_v51 = vadd.f32 0.014752088, %v6162_v27  ;;  %v13293_v54 = vmul.f32 %v6598_v29, %v13023_v63  ;;  %v14110_v52 = vld [vmem:[#allocation21_spill] sm:$0xff] }
 0x587   :  { %v8796_v39 = vpop.eup %8795  ;;  %v6957_v7 = vadd.f32 1.0, %v8296_v36  ;;  %v13295_v15 = vadd.f32 1.0, %v6288_v38  ;;  %v6241_v33 = vadd.f32 0.001143296, %v6240_v11  ;;  %v6675_v55 = vmul.f32 %v6674_v58, %v13131_v53 }
 0x588   :  { %v6753_v14 = vmul.f32 %v6752_v20, %v13212_v57  ;;  %v6987_v30 = vmul.f32 %v6955_v40, %v14109_v21  ;;  %v6211_v34 = vmul.f32 %v8796_v39, %v13271_v50  ;;  %v6712_v27 = vadd.f32 0.0036580483, %v6711_v37 }
 0x589   :  { %v6989_v26 = vmul.f32 %v6957_v7, %v14110_v52  ;;  %v6830_v6 = vadd.f32 0.00028619796, %v6829_v9  ;;  %8797 = vrcp.f32 %v13295_v15  ;;  %v13303_v63 = vadd.f32 1.1283791, %v6557_v60 }
 0x58a   :  { %v6635_v29 = vmul.f32 %v6634_v17, %v13199_v16  ;;  %v6212_v11 = vsub.f32 1.0, %v6211_v34  ;;  %v6164_v58 = vmul.f32 %v6163_v51, %v12760_v41  ;;  %v6221_v40 = vand.u32 2147483648, %v13271_v50 }
 0x58b   :  { %v7015_v20 = vpack.c.bf16 %v6989_v26, %v6987_v30  ;;  %v5429_v36 = vadd.f32 %v5428_v35, %v5379_v2  ;;  %v6242_v38 = vmul.f32 %v6241_v33, %v12796_v1  ;;  %vm6216_vm0 = vweird.f32 %v8796_v39 }
 0x58c   :  { %v6213_v21 = vmul.f32 %v8796_v39, %v6212_v11  ;;  %v6219_v37 = vand.u32 2147483647, %v13271_v50  ;;  %v6360_v9 = vmul.f32 3.8918573e-05, %v12813_v0  ;;  %v6676_v60 = vadd.f32 0.18741608, %v6675_v55  ;;  %v5479_v55 = vpop.f32.mrf.mxu0 }
 0x58d   :  { %v6754_v7 = vadd.f32 0.05243302, %v6753_v14  ;;  %7177 = vmatmul.bf16.gmra.mxu2 %v7015_v20  ;;  %v6713_v17 = vmul.f32 %v6712_v27, %v13256_v42  ;;  %v6831_v34 = vmul.f32 %v6830_v6, %v13274_v22  ;;  %v13314_v51 = vmul.f32 0.5, %v13151_v56 }
 0x58e   :  { %v6214_v30 = vadd.f32 %v8796_v39, %v6213_v21  ;;  %vm6215_vm1 = vweird.f32 %v13271_v50  ;;  %v6165_v33 = vadd.f32 0.112945676, %v6164_v58  ;;  %v6636_v52 = vadd.f32 0.18741608, %v6635_v29 }
 0x58f   :  { %14111 = vst [vmem:[#allocation19_spill] sm:$0xff] %v13314_v51  ;;  %v8798_v2 = vpop.eup %8797  ;;  %vm6217_vm2 = vmor %vm6215_vm1, %vm6216_vm0  ;;  %v6222_v26 = vor.u32 1.1754944e-38, %v6221_v40  ;;  %v5561_v35 = vmul.f32 %v12429_v45, %v5429_v36  ;;  %v6243_v14 = vadd.f32 0.014752088, %v6242_v38  ;;  %vm6220_vm3 = vcmp.eq.f32.partialorder %v6219_v37, 8.507059e+37  ;;  %v5528_v51 = vpop.f32.mrf.mxu1 }
 0x590   :  { %v6218_v11 = vsel %vm6217_vm2, %v8796_v39, %v6214_v30  ;;  %v6291_v27 = vmul.f32 %v8798_v2, %v13295_v15  ;;  %v6361_v6 = vadd.f32 0.001143296, %v6360_v9  ;;  %v6755_v56 = vmul.f32 %v6754_v7, %v13212_v57 }
 0x591   :  { %v6714_v20 = vadd.f32 0.05243302, %v6713_v17  ;;  %v6832_v21 = vadd.f32 0.0036580483, %v6831_v34  ;;  %v6223_v50 = vsel %vm6220_vm3, %v6222_v26, %v6218_v11  ;;  %v6299_v29 = vand.u32 2147483647, %v13295_v15 }
 0x592   :  { %v6292_v58 = vsub.f32 1.0, %v6291_v27  ;;  %v5529_v4 = vadd.f32 %v5528_v51, %v5479_v55  ;;  %v6166_v40 = vmul.f32 %v6165_v33, %v12760_v41  ;;  %vm6296_vm4 = vweird.f32 %v8798_v2 }
 0x593   :  { %v6301_v36 = vand.u32 2147483648, %v13295_v15  ;;  %v13324_v39 = vadd.f32 %v12468_v12, %v5561_v35  ;;  %v6244_v38 = vmul.f32 %v6243_v14, %v12796_v1  ;;  %v6224_v37 = vmul.f32 %v6223_v50, %v12952_v48 }
 0x594   :  { %v6293_v9 = vmul.f32 %v8798_v2, %v6292_v58  ;;  %v6167_v7 = vadd.f32 0.4994258, %v6166_v40  ;;  %v6362_v17 = vmul.f32 %v6361_v6, %v12813_v0  ;;  %v6756_v34 = vadd.f32 0.18741608, %v6755_v56 }
 0x595   :  { %v6715_v30 = vmul.f32 %v6714_v20, %v13256_v42  ;;  %vm6295_vm5 = vweird.f32 %v13295_v15  ;;  %v6245_v51 = vadd.f32 0.112945676, %v6244_v38  ;;  %v6833_v33 = vmul.f32 %v6832_v21, %v13274_v22 }
 0x596   :  { %v6294_v26 = vadd.f32 %v8798_v2, %v6293_v9  ;;  %v5564_v35 = vmul.f32 %v12429_v45, %v5529_v4  ;;  %v6168_v55 = vmul.f32 %v6167_v7, %v12760_v41  ;;  %vm6297_vm6 = vmor %vm6295_vm5, %vm6296_vm4  ;;  %vm6300_vm7 = vcmp.eq.f32.partialorder %v6299_v29, 8.507059e+37 }
 0x597   :  { %v6302_v48 = vor.u32 1.1754944e-38, %v6301_v36  ;;  %v13336_v14 = vmul.f32 0.70710677, %v13324_v39  ;;  %v6246_v11 = vmul.f32 %v6245_v51, %v12796_v1  ;;  %v8299_v27 = vclamps-f32 %v6224_v37, 1.0 }
 0x598   :  { %v6298_v6 = vsel %vm6297_vm6, %v8798_v2, %v6294_v26  ;;  %v13339_v15 = vadd.f32 1.0, %v6168_v55  ;;  %v6363_v56 = vadd.f32 0.014752088, %v6362_v17  ;;  %v6677_v20 = vmul.f32 %v6676_v60, %v13131_v53 }
 0x599   :  { %v6637_v4 = vmul.f32 %v6636_v52, %v13199_v16  ;;  %v6303_v21 = vsel %vm6300_vm7, %v6302_v48, %v6298_v6  ;;  %v6247_v41 = vadd.f32 0.4994258, %v6246_v11  ;;  %v6757_v50 = vmul.f32 %v6756_v34, %v13212_v57  ;;  %v14113_v48 = vld [vmem:[#allocation18_spill] sm:$0xff] }
 0x59a   :  { %v6716_v58 = vadd.f32 0.18741608, %v6715_v30  ;;  %v6304_v29 = vmul.f32 %v6303_v21, %v12969_v62  ;;  %8799 = vrcp.f32 %v13339_v15  ;;  %v6834_v40 = vadd.f32 0.05243302, %v6833_v33 }
 0x59b   :  { %v6787_v2 = vmul.f32 %v13336_v14, %v13336_v14  ;;  %v13349_v36 = vadd.f32 %v12438_v3, %v5564_v35  ;;  %v6248_v60 = vmul.f32 %v6247_v41, %v12796_v1  ;;  %v6960_v52 = vadd.f32 1.0, %v8299_v27 }
 0x59c   :  { %v8301_v38 = vclamps-f32 %v6304_v29, 1.0  ;;  %v6364_v37 = vmul.f32 %v6363_v56, %v12813_v0  ;;  %v6440_v9 = vmul.f32 3.8918573e-05, %v12885_v44  ;;  %v13356_v62 = vmul.f32 %v13303_v63, %v13074_v25  ;;  %v14112_v63 = vld [vmem:[#allocation42_spill] sm:$0xff] }
 0x59d   :  { %v6678_v7 = vadd.f32 1.1283791, %v6677_v20  ;;  %v6638_v17 = vadd.f32 1.1283791, %v6637_v4  ;;  %v13358_v34 = vadd.f32 1.0, %v6248_v60  ;;  %v13361_v30 = vmul.f32 0.5, %v13172_v5 }
 0x59e   :  { %v6758_v3 = vadd.f32 1.1283791, %v6757_v50  ;;  %v6717_v1 = vmul.f32 %v6716_v58, %v13256_v42  ;;  %v6962_v51 = vadd.f32 1.0, %v8301_v38  ;;  %v6835_v33 = vmul.f32 %v6834_v40, %v13274_v22 }
 0x59f   :  { %v13365_v26 = vmin.f32 %v6787_v2, 16.0  ;;  %v13368_v35 = vmul.f32 0.70710677, %v13349_v36  ;;  %8801 = vrcp.f32 %v13358_v34  ;;  %v6992_v55 = vmul.f32 %v6960_v52, %v14112_v63  ;;  %v5381_v2 = vpop.f32.mrf.mxu2 }
 0x5a0   :  { %v8800_v25 = vpop.eup %8799  ;;  %v6994_v11 = vmul.f32 %v6962_v51, %v14113_v48  ;;  %v6365_v5 = vadd.f32 0.112945676, %v6364_v37  ;;  %v6441_v27 = vadd.f32 0.001143296, %v6440_v9  ;;  %v13374_v6 = vmul.f32 %v6678_v7, %v13103_v18  ;;  %v5430_v7 = vpop.f32.mrf.mxu3 }
 0x5a1   :  { %v13377_v56 = vmul.f32 %v6638_v17, %v13169_v43  ;;  %v13380_v20 = vmul.f32 0.5, %v13220_v8  ;;  %v6171_v4 = vmul.f32 %v8800_v25, %v13339_v15  ;;  %v13384_v21 = vmul.f32 %v6758_v3, %v13188_v47 }
 0x5a2   :  { %v6718_v41 = vadd.f32 1.1283791, %v6717_v1  ;;  %v7018_v50 = vpack.c.bf16 %v6994_v11, %v6992_v55  ;;  %v6179_v58 = vand.u32 2147483647, %v13339_v15  ;;  %v6836_v29 = vadd.f32 0.18741608, %v6835_v33 }
 0x5a3   :  { %v6907_v18 = vmul.f32 %v13368_v35, %v13368_v35  ;;  %v6172_v40 = vsub.f32 1.0, %v6171_v4  ;;  %v6181_v43 = vand.u32 2147483648, %v13339_v15  ;;  %v6789_v8 = vmul.f32 2.1237322e-06, %v13365_v26 }
 0x5a4   :  { %7231 = vmatmul.bf16.gmra.mxu3 %v7018_v50  ;;  %v6366_v60 = vmul.f32 %v6365_v5, %v12813_v0  ;;  %v6442_v47 = vmul.f32 %v6441_v27, %v12885_v44  ;;  %v6320_v38 = vmul.f32 3.8918573e-05, %v12864_v23  ;;  %vm6175_vm8 = vweird.f32 %v13339_v15 }
 0x5a5   :  { %v8802_v52 = vpop.eup %8801  ;;  %v6173_v37 = vmul.f32 %v8800_v25, %v6172_v40  ;;  %vm6176_vm9 = vweird.f32 %v8800_v25  ;;  %v6400_v9 = vmul.f32 3.8918573e-05, %v12921_v61  ;;  %vm13396_vm10 = vcmp.eq.f32.partialorder %v6179_v58, 8.507059e+37 }
 0x5a6   :  { %v6251_v3 = vmul.f32 %v8802_v52, %v13358_v34  ;;  %v6367_v1 = vadd.f32 0.4994258, %v6366_v60  ;;  %v6443_v51 = vadd.f32 0.014752088, %v6442_v47  ;;  %v6182_v63 = vor.u32 1.1754944e-38, %v6181_v43  ;;  %vm6177_vm11 = vmor %vm6175_vm8, %vm6176_vm9 }
 0x5a7   :  { %v6174_v33 = vadd.f32 %v8800_v25, %v6173_v37  ;;  %v6259_v55 = vand.u32 2147483647, %v13358_v34  ;;  %v5431_v48 = vadd.f32 %v5430_v7, %v5381_v2  ;;  %v6321_v27 = vadd.f32 0.001143296, %v6320_v38  ;;  %v14116_v37 = vld [vmem:[#allocation22_spill] sm:$0xff] }
 0x5a8   :  { %v6252_v11 = vsub.f32 1.0, %v6251_v3  ;;  %v6368_v15 = vmul.f32 %v6367_v1, %v12813_v0  ;;  %v6444_v5 = vmul.f32 %v6443_v51, %v12885_v44  ;;  %vm6256_vm12 = vweird.f32 %v8802_v52 }
 0x5a9   :  { %v6178_v4 = vsel %vm6177_vm11, %v8800_v25, %v6174_v33  ;;  %v6261_v50 = vand.u32 2147483648, %v13358_v34  ;;  %v6401_v58 = vadd.f32 0.001143296, %v6400_v9  ;;  %v13409_v2 = vmin.f32 %v6907_v18, 16.0 }
 0x5aa   :  { %v6183_v40 = vsel %vm13396_vm10, %v6182_v63, %v6178_v4  ;;  %v6253_v60 = vmul.f32 %v8802_v52, %v6252_v11  ;;  %v13407_v43 = vadd.f32 1.0, %v6368_v15  ;;  %v6445_v47 = vadd.f32 0.112945676, %v6444_v5  ;;  %v14117_v15 = vld [vmem:[#allocation23_spill] sm:$0xff] }
 0x5ab   :  { %v6184_v7 = vmul.f32 %v6183_v40, %v14116_v37  ;;  %v6322_v0 = vmul.f32 %v6321_v27, %v12864_v23  ;;  %v6402_v38 = vmul.f32 %v6401_v58, %v12921_v61  ;;  %v13415_v25 = vmul.f32 %v6718_v41, %v13242_v13 }
 0x5ac   :  { %v6254_v3 = vadd.f32 %v8802_v52, %v6253_v60  ;;  %vm6255_vm13 = vweird.f32 %v13358_v34  ;;  %8803 = vrcp.f32 %v13407_v43  ;;  %v6262_v17 = vor.u32 1.1754944e-38, %v6261_v50 }
 0x5ad   :  { %v8298_v9 = vclamps-f32 %v6184_v7, 1.0  ;;  %vm6257_vm14 = vmor %vm6255_vm13, %vm6256_vm12  ;;  %v5563_v18 = vmul.f32 %v12429_v45, %v5431_v48  ;;  %v6446_v1 = vmul.f32 %v6445_v47, %v12885_v44  ;;  %vm6260_vm15 = vcmp.eq.f32.partialorder %v6259_v55, 8.507059e+37 }
 0x5ae   :  { %v6258_v51 = vsel %vm6257_vm14, %v8802_v52, %v6254_v3  ;;  %v6323_v33 = vadd.f32 0.014752088, %v6322_v0  ;;  %v6403_v63 = vadd.f32 0.014752088, %v6402_v38  ;;  %v13423_v13 = vmul.f32 %v6836_v29, %v13274_v22 }
 0x5af   :  { %v6790_v41 = vadd.f32 0.00028619796, %v6789_v8  ;;  %v6909_v34 = vmul.f32 2.1237322e-06, %v13409_v2  ;;  %v6263_v11 = vsel %vm6260_vm15, %v6262_v17, %v6258_v51  ;;  %v6447_v27 = vadd.f32 0.4994258, %v6446_v1 }
 0x5b0   :  { %v6264_v5 = vmul.f32 %v6263_v11, %v14117_v15  ;;  %v6324_v4 = vmul.f32 %v6323_v33, %v12864_v23  ;;  %v6404_v45 = vmul.f32 %v6403_v63, %v12921_v61  ;;  %v6959_v48 = vadd.f32 1.0, %v8298_v9  ;;  %v14118_v51 = vld [vmem:[#allocation29_spill] sm:$0xff]  ;;  %v14119_v63 = vld [vmem:[#allocation34_spill] sm:$0xff] }
 0x5b1   :  { %v13430_v52 = vadd.f32 %v12468_v12, %v5563_v18  ;;  %v6520_v55 = vmul.f32 3.8918573e-05, %v12948_v19  ;;  %v6600_v29 = vmul.f32 3.8918573e-05, %v13054_v10  ;;  %v6448_v58 = vmul.f32 %v6447_v27, %v12885_v44 }
 0x5b2   :  { %v8804_v50 = vpop.eup %8803  ;;  %v8300_v8 = vclamps-f32 %v6264_v5, 1.0  ;;  %v6325_v40 = vadd.f32 0.112945676, %v6324_v4  ;;  %v6405_v60 = vadd.f32 0.112945676, %v6404_v45  ;;  %v6791_v47 = vmul.f32 %v6790_v41, %v13365_v26 }
 0x5b3   :  { %v6910_v37 = vadd.f32 0.00028619796, %v6909_v34  ;;  %v6371_v7 = vmul.f32 %v8804_v50, %v13407_v43  ;;  %v6521_v0 = vadd.f32 0.001143296, %v6520_v55  ;;  %v13437_v3 = vadd.f32 1.0, %v6448_v58 }
 0x5b4   :  { %v6961_v38 = vadd.f32 1.0, %v8300_v8  ;;  %v6326_v12 = vmul.f32 %v6325_v40, %v12864_v23  ;;  %v6406_v9 = vmul.f32 %v6405_v60, %v12921_v61  ;;  %v13442_v17 = vmul.f32 0.70710677, %v13430_v52 }
 0x5b5   :  { %v6372_v18 = vsub.f32 1.0, %v6371_v7  ;;  %v6381_v44 = vand.u32 2147483648, %v13407_v43  ;;  %v6522_v1 = vmul.f32 %v6521_v0, %v12948_v19  ;;  %v6991_v33 = vmul.f32 %v6959_v48, %v14118_v51  ;;  %v14120_v51 = vld [vmem:[#allocation24_spill] sm:$0xff] }
 0x5b6   :  { %v6993_v41 = vmul.f32 %v6961_v38, %v14119_v63  ;;  %8805 = vrcp.f32 %v13437_v3  ;;  %v6601_v34 = vadd.f32 0.001143296, %v6600_v29  ;;  %vm6376_vm0 = vweird.f32 %v8804_v50 }
 0x5b7   :  { %v6373_v11 = vmul.f32 %v8804_v50, %v6372_v18  ;;  %v6379_v15 = vand.u32 2147483647, %v13407_v43  ;;  %v6327_v5 = vadd.f32 0.4994258, %v6326_v12  ;;  %v6792_v27 = vadd.f32 0.0036580483, %v6791_v47 }
 0x5b8   :  { %v7017_v4 = vpack.c.bf16 %v6993_v41, %v6991_v33  ;;  %v6407_v45 = vadd.f32 0.4994258, %v6406_v9  ;;  %v6523_v55 = vadd.f32 0.014752088, %v6522_v1  ;;  %v6911_v8 = vmul.f32 %v6910_v37, %v13409_v2 }
 0x5b9   :  { %v6374_v58 = vadd.f32 %v8804_v50, %v6373_v11  ;;  %vm6375_vm1 = vweird.f32 %v13407_v43  ;;  %v6328_v48 = vmul.f32 %v6327_v5, %v12864_v23  ;;  %v6382_v40 = vor.u32 1.1754944e-38, %v6381_v44 }
 0x5ba   :  { %7182 = vmatmul.bf16.gmra.mxu2 %v7017_v4  ;;  %vm6377_vm2 = vmor %vm6375_vm1, %vm6376_vm0  ;;  %v6408_v29 = vmul.f32 %v6407_v45, %v12921_v61  ;;  %v6524_v60 = vmul.f32 %v6523_v55, %v12948_v19  ;;  %v6602_v7 = vmul.f32 %v6601_v34, %v13054_v10  ;;  %v6867_v47 = vmul.f32 %v13442_v17, %v13442_v17 }
 0x5bb   :  { %v6378_v0 = vsel %vm6377_vm2, %v8804_v50, %v6374_v58  ;;  %vm6380_vm3 = vcmp.eq.f32.partialorder %v6379_v15, 8.507059e+37  ;;  %v13458_v37 = vadd.f32 1.0, %v6328_v48  ;;  %v13461_v43 = vmul.f32 %v6792_v27, %v13365_v26 }
 0x5bc   :  { %v8806_v38 = vpop.eup %8805  ;;  %v6383_v23 = vsel %vm6380_vm3, %v6382_v40, %v6378_v0  ;;  %v6459_v12 = vand.u32 2147483647, %v13437_v3  ;;  %v13464_v9 = vadd.f32 1.0, %v6408_v29  ;;  %v6461_v18 = vand.u32 2147483648, %v13437_v3 }
 0x5bd   :  { %v6451_v61 = vmul.f32 %v8806_v38, %v13437_v3  ;;  %v6525_v44 = vadd.f32 0.112945676, %v6524_v60  ;;  %v6603_v1 = vadd.f32 0.014752088, %v6602_v7  ;;  %v6384_v50 = vmul.f32 %v6383_v23, %v14120_v51 }
 0x5be   :  { %8807 = vrcp.f32 %v13458_v37  ;;  %v6480_v33 = vmul.f32 3.8918573e-05, %v13033_v49  ;;  %v6560_v63 = vmul.f32 3.8918573e-05, %v13098_v28  ;;  %v13472_v41 = vadd.f32 0.0036580483, %v6911_v8 }
 0x5bf   :  { %v13474_v34 = vmin.f32 %v6867_v47, 16.0  ;;  %v6452_v11 = vsub.f32 1.0, %v6451_v61  ;;  %8809 = vrcp.f32 %v13464_v9  ;;  %vm6455_vm4 = vweird.f32 %v13437_v3 }
 0x5c0   :  { %vm6456_vm5 = vweird.f32 %v8806_v38  ;;  %vm13478_vm6 = vcmp.eq.f32.partialorder %v6459_v12, 8.507059e+37  ;;  %v6341_v5 = vand.u32 2147483648, %v13458_v37  ;;  %v6339_v4 = vand.u32 2147483647, %v13458_v37 }
 0x5c1   :  { %v6453_v27 = vmul.f32 %v8806_v38, %v6452_v11  ;;  %v6526_v45 = vmul.f32 %v6525_v44, %v12948_v19  ;;  %v6604_v55 = vmul.f32 %v6603_v1, %v13054_v10  ;;  %v8303_v8 = vclamps-f32 %v6384_v50, 1.0  ;;  %vm6457_vm8 = vmor %vm6455_vm4, %vm6456_vm5 }
 0x5c2   :  { %v6462_v58 = vor.u32 1.1754944e-38, %v6461_v18  ;;  %v6481_v48 = vadd.f32 0.001143296, %v6480_v33  ;;  %v6561_v40 = vadd.f32 0.001143296, %v6560_v63  ;;  %vm6335_vm7 = vweird.f32 %v13458_v37 }
 0x5c3   :  { %v6454_v29 = vadd.f32 %v8806_v38, %v6453_v27  ;;  %v6527_v60 = vadd.f32 0.4994258, %v6526_v45  ;;  %v6605_v7 = vadd.f32 0.112945676, %v6604_v55  ;;  %v6342_v0 = vor.u32 1.1754944e-38, %v6341_v5 }
 0x5c4   :  { %v8808_v47 = vpop.eup %8807  ;;  %vm6415_vm9 = vweird.f32 %v13464_v9  ;;  %v6419_v23 = vand.u32 2147483647, %v13464_v9  ;;  %v6482_v12 = vmul.f32 %v6481_v48, %v13033_v49  ;;  %v6562_v61 = vmul.f32 %v6561_v40, %v13098_v28 }
 0x5c5   :  { %v8810_v18 = vpop.eup %8809  ;;  %v6458_v44 = vsel %vm6457_vm8, %v8806_v38, %v6454_v29  ;;  %v6331_v1 = vmul.f32 %v8808_v47, %v13458_v37  ;;  %vm13495_vm10 = vcmp.eq.f32.partialorder %v6339_v4, 8.507059e+37  ;;  %v6421_v3 = vand.u32 2147483648, %v13464_v9 }
 0x5c6   :  { %v6528_v50 = vmul.f32 %v6527_v60, %v12948_v19  ;;  %v6463_v33 = vsel %vm13478_vm6, %v6462_v58, %v6458_v44  ;;  %v6964_v63 = vadd.f32 1.0, %v8303_v8  ;;  %v6411_v11 = vmul.f32 %v8810_v18, %v13464_v9  ;;  %v14127_v44 = vld [vmem:[#allocation32_spill] sm:$0xff] }
 0x5c7   :  { %v6606_v5 = vmul.f32 %v6605_v7, %v13054_v10  ;;  %v6464_v38 = vmul.f32 %v6463_v33, %v13123_v32  ;;  %v6332_v27 = vsub.f32 1.0, %v6331_v1  ;;  %v6483_v4 = vadd.f32 0.014752088, %v6482_v12 }
 0x5c8   :  { %v13506_v45 = vadd.f32 1.0, %v6528_v50  ;;  %v6412_v55 = vsub.f32 1.0, %v6411_v11  ;;  %vm13508_vm11 = vcmp.eq.f32.partialorder %v6419_v23, 8.507059e+37  ;;  %v6563_v40 = vadd.f32 0.014752088, %v6562_v61  ;;  %v14128_v11 = vld [vmem:[#allocation36_spill] sm:$0xff] }
 0x5c9   :  { %v6607_v19 = vadd.f32 0.4994258, %v6606_v5  ;;  %v8305_v15 = vclamps-f32 %v6464_v38, 1.0  ;;  %v6333_v58 = vmul.f32 %v8808_v47, %v6332_v27  ;;  %vm6336_vm12 = vweird.f32 %v8808_v47 }
 0x5ca   :  { %8811 = vrcp.f32 %v13506_v45  ;;  %v6413_v8 = vmul.f32 %v8810_v18, %v6412_v55  ;;  %vm6416_vm13 = vweird.f32 %v8810_v18  ;;  %v6422_v29 = vor.u32 1.1754944e-38, %v6421_v3  ;;  %vm6337_vm14 = vmor %vm6335_vm7, %vm6336_vm12 }
 0x5cb   :  { %v6608_v32 = vmul.f32 %v6607_v19, %v13054_v10  ;;  %v6966_v60 = vadd.f32 1.0, %v8305_v15  ;;  %v6334_v7 = vadd.f32 %v8808_v47, %v6333_v58  ;;  %v6484_v12 = vmul.f32 %v6483_v4, %v13033_v49  ;;  %vm6417_vm15 = vmor %vm6415_vm9, %vm6416_vm13  ;;  %v14129_v19 = vld [vmem:[#allocation20_spill] sm:$0xff] }
 0x5cc   :  { %v6564_v23 = vmul.f32 %v6563_v40, %v13098_v28  ;;  %v6996_v1 = vmul.f32 %v6964_v63, %v14127_v44  ;;  %v6414_v61 = vadd.f32 %v8810_v18, %v6413_v8  ;;  %v6539_v50 = vand.u32 2147483647, %v13506_v45 }
 0x5cd   :  { %v13520_v33 = vadd.f32 1.0, %v6608_v32  ;;  %v6998_v3 = vmul.f32 %v6966_v60, %v14128_v11  ;;  %v6338_v5 = vsel %vm6337_vm14, %v8808_v47, %v6334_v7  ;;  %v6485_v10 = vadd.f32 0.112945676, %v6484_v12 }
 0x5ce   :  { %v6565_v38 = vadd.f32 0.112945676, %v6564_v23  ;;  %v6343_v27 = vsel %vm13495_vm10, %v6342_v0, %v6338_v5  ;;  %v6418_v63 = vsel %vm6417_vm15, %v8810_v18, %v6414_v61  ;;  %v6680_v37 = vmul.f32 3.8918573e-05, %v13131_v53 }
 0x5cf   :  { %8813 = vrcp.f32 %v13520_v33  ;;  %v7020_v55 = vpack.c.bf16 %v6998_v3, %v6996_v1  ;;  %v6344_v40 = vmul.f32 %v6343_v27, %v14129_v19  ;;  %v6423_v47 = vsel %vm13508_vm11, %v6422_v29, %v6418_v63  ;;  %v14132_v3 = vld [vmem:[#allocation33_spill] sm:$0xff]  ;;  %v14133_v63 = vld [vmem:[#allocation35_spill] sm:$0xff] }
 0x5d0   :  { %v8812_v4 = vpop.eup %8811  ;;  %v6541_v9 = vand.u32 2147483648, %v13506_v45  ;;  %v6424_v15 = vmul.f32 %v6423_v47, %v13127_v31  ;;  %vm6535_vm0 = vweird.f32 %v13506_v45  ;;  %v6760_v0 = vmul.f32 3.8918573e-05, %v13212_v57 }
 0x5d1   :  { %v6531_v58 = vmul.f32 %v8812_v4, %v13506_v45  ;;  %7236 = vmatmul.bf16.gmra.mxu3 %v7020_v55  ;;  %v8302_v18 = vclamps-f32 %v6344_v40, 1.0  ;;  %vm13537_vm1 = vcmp.eq.f32.partialorder %v6539_v50, 8.507059e+37  ;;  %v6486_v8 = vmul.f32 %v6485_v10, %v13033_v49 }
 0x5d2   :  { %v6566_v48 = vmul.f32 %v6565_v38, %v13098_v28  ;;  %v8304_v29 = vclamps-f32 %v6424_v15, 1.0  ;;  %v6619_v31 = vand.u32 2147483647, %v13520_v33  ;;  %v6681_v60 = vadd.f32 0.001143296, %v6680_v37 }
 0x5d3   :  { %v6532_v32 = vsub.f32 1.0, %v6531_v58  ;;  %v6963_v7 = vadd.f32 1.0, %v8302_v18  ;;  %v6542_v12 = vor.u32 1.1754944e-38, %v6541_v9  ;;  %v6487_v23 = vadd.f32 0.4994258, %v6486_v8 }
 0x5d4   :  { %v6567_v44 = vadd.f32 0.4994258, %v6566_v48  ;;  %v6965_v61 = vadd.f32 1.0, %v8304_v29  ;;  %vm6536_vm2 = vweird.f32 %v8812_v4  ;;  %v6682_v50 = vmul.f32 %v6681_v60, %v13131_v53 }
 0x5d5   :  { %v8814_v1 = vpop.eup %8813  ;;  %v6533_v11 = vmul.f32 %v8812_v4, %v6532_v32  ;;  %v6995_v5 = vmul.f32 %v6963_v7, %v14132_v3  ;;  %v6488_v38 = vmul.f32 %v6487_v23, %v13033_v49  ;;  %v6761_v27 = vadd.f32 0.001143296, %v6760_v0  ;;  %vm6537_vm3 = vmor %vm6535_vm0, %vm6536_vm2 }
 0x5d6   :  { %v6611_v10 = vmul.f32 %v8814_v1, %v13520_v33  ;;  %v6997_v55 = vmul.f32 %v6965_v61, %v14133_v63  ;;  %v6568_v19 = vmul.f32 %v6567_v44, %v13098_v28  ;;  %v6683_v40 = vadd.f32 0.014752088, %v6682_v50 }
 0x5d7   :  { %v6534_v37 = vadd.f32 %v8812_v4, %v6533_v11  ;;  %vm6616_vm4 = vweird.f32 %v8814_v1  ;;  %v6621_v9 = vand.u32 2147483648, %v13520_v33  ;;  %v13553_v15 = vadd.f32 1.0, %v6488_v38 }
 0x5d8   :  { %v6612_v47 = vsub.f32 1.0, %v6611_v10  ;;  %v7019_v58 = vpack.c.bf16 %v6997_v55, %v6995_v5  ;;  %v13555_v8 = vadd.f32 1.0, %v6568_v19  ;;  %v6684_v49 = vmul.f32 %v6683_v40, %v13131_v53 }
 0x5d9   :  { %v6538_v18 = vsel %vm6537_vm3, %v8812_v4, %v6534_v37  ;;  %8815 = vrcp.f32 %v13553_v15  ;;  %v6762_v45 = vmul.f32 %v6761_v27, %v13212_v57  ;;  %v13564_v48 = vmul.f32 %v13472_v41, %v13409_v2 }
 0x5da   :  { %v6543_v0 = vsel %vm13537_vm1, %v6542_v12, %v6538_v18  ;;  %v6613_v28 = vmul.f32 %v8814_v1, %v6612_v47  ;;  %7187 = vmatmul.bf16.gmra.mxu2 %v7019_v58  ;;  %8817 = vrcp.f32 %v13555_v8  ;;  %v6640_v4 = vmul.f32 3.8918573e-05, %v13199_v16 }
 0x5db   :  { %v6544_v29 = vmul.f32 %v6543_v0, %v13138_v46  ;;  %v13570_v32 = vmul.f32 2.1237322e-06, %v13474_v34  ;;  %vm6615_vm5 = vweird.f32 %v13520_v33  ;;  %vm6620_vm6 = vcmp.eq.f32.partialorder %v6619_v31, 8.507059e+37 }
 0x5dc   :  { %v6614_v51 = vadd.f32 %v8814_v1, %v6613_v28  ;;  %vm6617_vm7 = vmor %vm6615_vm5, %vm6616_vm4  ;;  %v6622_v7 = vor.u32 1.1754944e-38, %v6621_v9  ;;  %v6499_v41 = vand.u32 2147483647, %v13553_v15  ;;  %v6685_v12 = vadd.f32 0.112945676, %v6684_v49 }
 0x5dd   :  { %v8307_v60 = vclamps-f32 %v6544_v29, 1.0  ;;  %v6501_v46 = vand.u32 2147483648, %v13553_v15  ;;  %v6579_v44 = vand.u32 2147483647, %v13555_v8  ;;  %v6763_v61 = vadd.f32 0.014752088, %v6762_v45 }
 0x5de   :  { %v6618_v23 = vsel %vm6617_vm7, %v8814_v1, %v6614_v51  ;;  %vm6495_vm8 = vweird.f32 %v13553_v15  ;;  %v6686_v33 = vmul.f32 %v6685_v12, %v13131_v53  ;;  %v6641_v31 = vadd.f32 0.001143296, %v6640_v4 }
 0x5df   :  { %v6623_v11 = vsel %vm6620_vm6, %v6622_v7, %v6618_v23  ;;  %v6968_v50 = vadd.f32 1.0, %v8307_v60  ;;  %v8816_v3 = vpop.eup %8815  ;;  %vm6575_vm9 = vweird.f32 %v13555_v8  ;;  %v6581_v10 = vand.u32 2147483648, %v13555_v8 }
 0x5e0   :  { %v6624_v5 = vmul.f32 %v6623_v11, %v13293_v54  ;;  %v6764_v1 = vmul.f32 %v6763_v61, %v13212_v57  ;;  %v6720_v38 = vmul.f32 3.8918573e-05, %v13256_v42  ;;  %v8818_v27 = vpop.eup %8817  ;;  %v6491_v63 = vmul.f32 %v8816_v3, %v13553_v15  ;;  %v14136_v54 = vld [vmem:[#allocation37_spill] sm:$0xff] }
 0x5e1   :  { %vm13585_vm10 = vcmp.eq.f32.partialorder %v6499_v41, 8.507059e+37  ;;  %v6687_v37 = vadd.f32 0.4994258, %v6686_v33  ;;  %v6840_v19 = vmul.f32 3.8918573e-05, %v13274_v22  ;;  %v7000_v47 = vmul.f32 %v6968_v50, %v14136_v54 }
 0x5e2   :  { %v8309_v40 = vclamps-f32 %v6624_v5, 1.0  ;;  %v6571_v9 = vmul.f32 %v8818_v27, %v13555_v8  ;;  %v6765_v58 = vadd.f32 0.112945676, %v6764_v1  ;;  %v6492_v18 = vsub.f32 1.0, %v6491_v63 }
 0x5e3   :  { %v6688_v49 = vmul.f32 %v6687_v37, %v13131_v53  ;;  %v6642_v0 = vmul.f32 %v6641_v31, %v13199_v16  ;;  %v6721_v28 = vadd.f32 0.001143296, %v6720_v38  ;;  %vm6496_vm11 = vweird.f32 %v8816_v3 }
 0x5e4   :  { %v6970_v45 = vadd.f32 1.0, %v8309_v40  ;;  %v6572_v29 = vsub.f32 1.0, %v6571_v9  ;;  %v6766_v4 = vmul.f32 %v6765_v58, %v13212_v57  ;;  %v6493_v51 = vmul.f32 %v8816_v3, %v6492_v18  ;;  %vm6497_vm14 = vmor %vm6495_vm8, %vm6496_vm11 }
 0x5e5   :  { %v13595_v60 = vadd.f32 1.0, %v6688_v49  ;;  %v6643_v7 = vadd.f32 0.014752088, %v6642_v0  ;;  %v6722_v41 = vmul.f32 %v6721_v28, %v13256_v42  ;;  %vm6576_vm12 = vweird.f32 %v8818_v27 }
 0x5e6   :  { %v7002_v12 = vmul.f32 %v6970_v45, %v13156_v24  ;;  %v6573_v23 = vmul.f32 %v8818_v27, %v6572_v29  ;;  %v6767_v61 = vadd.f32 0.4994258, %v6766_v4  ;;  %v6494_v53 = vadd.f32 %v8816_v3, %v6493_v51  ;;  %vm6577_vm15 = vmor %vm6575_vm9, %vm6576_vm12 }
 0x5e7   :  { %v6502_v11 = vor.u32 1.1754944e-38, %v6501_v46  ;;  %vm13599_vm13 = vcmp.eq.f32.partialorder %v6579_v44, 8.507059e+37  ;;  %8819 = vrcp.f32 %v13595_v60  ;;  %v6841_v24 = vadd.f32 0.001143296, %v6840_v19 }
 0x5e8   :  { %v7022_v33 = vpack.c.bf16 %v7002_v12, %v7000_v47  ;;  %v6574_v31 = vadd.f32 %v8818_v27, %v6573_v23  ;;  %v6768_v5 = vmul.f32 %v6767_v61, %v13212_v57  ;;  %v6498_v1 = vsel %vm6497_vm14, %v8816_v3, %v6494_v53  ;;  %v14142_v53 = vld [vmem:[#allocation39_spill] sm:$0xff] }
 0x5e9   :  { %v6582_v46 = vor.u32 1.1754944e-38, %v6581_v10  ;;  %v6644_v44 = vmul.f32 %v6643_v7, %v13199_v16  ;;  %v6723_v38 = vadd.f32 0.014752088, %v6722_v41  ;;  %v6503_v63 = vsel %vm13585_vm10, %v6502_v11, %v6498_v1  ;;  %v14141_v7 = vld [vmem:[#allocation25_spill] sm:$0xff] }
 0x5ea   :  { %7241 = vmatmul.bf16.gmra.mxu3 %v7022_v33  ;;  %v6578_v37 = vsel %vm6577_vm15, %v8818_v27, %v6574_v31  ;;  %v6699_v15 = vand.u32 2147483647, %v13595_v60  ;;  %v13614_v40 = vadd.f32 1.0, %v6768_v5  ;;  %v6504_v57 = vmul.f32 %v6503_v63, %v13289_v59 }
 0x5eb   :  { %v6583_v3 = vsel %vm13599_vm13, %v6582_v46, %v6578_v37  ;;  %v6645_v8 = vadd.f32 0.112945676, %v6644_v44  ;;  %v6724_v10 = vmul.f32 %v6723_v38, %v13256_v42  ;;  %v6914_v19 = vadd.f32 0.05243302, %v13564_v48 }
 0x5ec   :  { %v6584_v54 = vmul.f32 %v6583_v3, %v13356_v62  ;;  %8821 = vrcp.f32 %v13614_v40  ;;  %v6842_v27 = vmul.f32 %v6841_v24, %v13274_v22  ;;  %v6870_v47 = vadd.f32 0.00028619796, %v13570_v32 }
 0x5ed   :  { %v8820_v55 = vpop.eup %8819  ;;  %v8306_v9 = vclamps-f32 %v6504_v57, 1.0  ;;  %v6646_v59 = vmul.f32 %v6645_v8, %v13199_v16  ;;  %v6725_v58 = vadd.f32 0.112945676, %v6724_v10  ;;  %vm6695_vm0 = vweird.f32 %v13595_v60 }
 0x5ee   :  { %v8308_v18 = vclamps-f32 %v6584_v54, 1.0  ;;  %v6691_v49 = vmul.f32 %v8820_v55, %v13595_v60  ;;  %v6701_v48 = vand.u32 2147483648, %v13595_v60  ;;  %vm13629_vm1 = vcmp.eq.f32.partialorder %v6699_v15, 8.507059e+37 }
 0x5ef   :  { %v6967_v0 = vadd.f32 1.0, %v8306_v9  ;;  %v6647_v28 = vadd.f32 0.4994258, %v6646_v59  ;;  %v6726_v45 = vmul.f32 %v6725_v58, %v13256_v42  ;;  %v6843_v4 = vadd.f32 0.014752088, %v6842_v27 }
 0x5f0   :  { %v6969_v32 = vadd.f32 1.0, %v8308_v18  ;;  %v6692_v29 = vsub.f32 1.0, %v6691_v49  ;;  %v6920_v51 = vmul.f32 3.8918573e-05, %v13409_v2  ;;  %vm6696_vm2 = vweird.f32 %v8820_v55 }
 0x5f1   :  { %v6999_v41 = vmul.f32 %v6967_v0, %v14141_v7  ;;  %v6648_v12 = vmul.f32 %v6647_v28, %v13199_v16  ;;  %v6727_v23 = vadd.f32 0.4994258, %v6726_v45  ;;  %v6844_v33 = vmul.f32 %v6843_v4, %v13274_v22  ;;  %vm6697_vm3 = vmor %vm6695_vm0, %vm6696_vm2 }
 0x5f2   :  { %v8822_v61 = vpop.eup %8821  ;;  %v7001_v11 = vmul.f32 %v6969_v32, %v14142_v53  ;;  %v6693_v50 = vmul.f32 %v8820_v55, %v6692_v29  ;;  %v6921_v31 = vadd.f32 0.001143296, %v6920_v51  ;;  %v6702_v5 = vor.u32 1.1754944e-38, %v6701_v48 }
 0x5f3   :  { %v6771_v24 = vmul.f32 %v8822_v61, %v13614_v40  ;;  %v13640_v1 = vadd.f32 1.0, %v6648_v12  ;;  %v6728_v46 = vmul.f32 %v6727_v23, %v13256_v42  ;;  %v6845_v63 = vadd.f32 0.112945676, %v6844_v33 }
 0x5f4   :  { %v7021_v44 = vpack.c.bf16 %v7001_v11, %v6999_v41  ;;  %v6694_v38 = vadd.f32 %v8820_v55, %v6693_v50  ;;  %v6922_v16 = vmul.f32 %v6921_v31, %v13409_v2  ;;  %v6779_v15 = vand.u32 2147483647, %v13614_v40 }
 0x5f5   :  { %v6772_v37 = vsub.f32 1.0, %v6771_v24  ;;  %v6781_v57 = vand.u32 2147483648, %v13614_v40  ;;  %8823 = vrcp.f32 %v13640_v1  ;;  %v13650_v8 = vadd.f32 1.0, %v6728_v46 }
 0x5f6   :  { %7192 = vmatmul.bf16.gmra.mxu2 %v7021_v44  ;;  %v6698_v3 = vsel %vm6697_vm3, %v8820_v55, %v6694_v38  ;;  %v6846_v42 = vmul.f32 %v6845_v63, %v13274_v22  ;;  %v6800_v10 = vmul.f32 3.8918573e-05, %v13365_v26  ;;  %vm6776_vm4 = vweird.f32 %v8822_v61  ;;  %v14143_v63 = vld [vmem:[#allocation26_spill] sm:$0xff] }
 0x5f7   :  { %v6703_v54 = vsel %vm13629_vm1, %v6702_v5, %v6698_v3  ;;  %v6773_v60 = vmul.f32 %v8822_v61, %v6772_v37  ;;  %v6923_v27 = vadd.f32 0.014752088, %v6922_v16  ;;  %v13657_v9 = vmul.f32 %v6914_v19, %v13409_v2 }
 0x5f8   :  { %v6871_v59 = vmul.f32 %v6870_v47, %v13474_v34  ;;  %v6704_v58 = vmul.f32 %v6703_v54, %v13374_v6  ;;  %8825 = vrcp.f32 %v13650_v8  ;;  %vm6775_vm5 = vweird.f32 %v13614_v40 }
 0x5f9   :  { %v6774_v55 = vadd.f32 %v8822_v61, %v6773_v60  ;;  %v6782_v18 = vor.u32 1.1754944e-38, %v6781_v57  ;;  %v6847_v49 = vadd.f32 0.4994258, %v6846_v42  ;;  %vm6777_vm6 = vmor %vm6775_vm5, %vm6776_vm4  ;;  %v6924_v0 = vmul.f32 %v6923_v27, %v13409_v2 }
 0x5fa   :  { %v8311_v48 = vclamps-f32 %v6704_v58, 1.0  ;;  %v6801_v62 = vadd.f32 0.001143296, %v6800_v10  ;;  %v6880_v28 = vmul.f32 3.8918573e-05, %v13474_v34  ;;  %vm6780_vm7 = vcmp.eq.f32.partialorder %v6779_v15, 8.507059e+37 }
 0x5fb   :  { %v8824_v19 = vpop.eup %8823  ;;  %v6778_v45 = vsel %vm6777_vm6, %v8822_v61, %v6774_v55  ;;  %v6661_v47 = vand.u32 2147483648, %v13640_v1  ;;  %v6848_v6 = vmul.f32 %v6847_v49, %v13274_v22  ;;  %v6872_v32 = vadd.f32 0.0036580483, %v6871_v59 }
 0x5fc   :  { %v6783_v29 = vsel %vm6780_vm7, %v6782_v18, %v6778_v45  ;;  %v6651_v40 = vmul.f32 %v8824_v19, %v13640_v1  ;;  %vm6655_vm8 = vweird.f32 %v13640_v1  ;;  %v6925_v7 = vadd.f32 0.112945676, %v6924_v0 }
 0x5fd   :  { %v6784_v4 = vmul.f32 %v6783_v29, %v13384_v21  ;;  %v13670_v51 = vadd.f32 1.0, %v6848_v6  ;;  %v6802_v41 = vmul.f32 %v6801_v62, %v13365_v26  ;;  %v6972_v23 = vadd.f32 1.0, %v8311_v48 }
 0x5fe   :  { %v8826_v12 = vpop.eup %8825  ;;  %v6652_v61 = vsub.f32 1.0, %v6651_v40  ;;  %v6659_v53 = vand.u32 2147483647, %v13640_v1  ;;  %v6881_v11 = vadd.f32 0.001143296, %v6880_v28  ;;  %v6662_v50 = vor.u32 1.1754944e-38, %v6661_v47 }
 0x5ff   :  { %v8313_v22 = vclamps-f32 %v6784_v4, 1.0  ;;  %v6731_v33 = vmul.f32 %v8826_v12, %v13650_v8  ;;  %8827 = vrcp.f32 %v13670_v51  ;;  %vm6656_vm9 = vweird.f32 %v8824_v19 }
 0x600   :  { %v6653_v31 = vmul.f32 %v8824_v19, %v6652_v61  ;;  %v6739_v21 = vand.u32 2147483647, %v13650_v8  ;;  %v6741_v5 = vand.u32 2147483648, %v13650_v8  ;;  %v6926_v44 = vmul.f32 %v6925_v7, %v13409_v2  ;;  %vm6657_vm11 = vmor %vm6655_vm8, %vm6656_vm9 }
 0x601   :  { %v6974_v24 = vadd.f32 1.0, %v8313_v22  ;;  %v6732_v46 = vsub.f32 1.0, %v6731_v33  ;;  %v6803_v38 = vadd.f32 0.014752088, %v6802_v41  ;;  %v7004_v16 = vmul.f32 %v6972_v23, %v14143_v63 }
 0x602   :  { %v6654_v37 = vadd.f32 %v8824_v19, %v6653_v31  ;;  %vm6736_vm10 = vweird.f32 %v8826_v12  ;;  %v6882_v15 = vmul.f32 %v6881_v11, %v13474_v34  ;;  %v6927_v42 = vadd.f32 0.4994258, %v6926_v44 }
 0x603   :  { %v7006_v57 = vmul.f32 %v6974_v24, %v13361_v30  ;;  %v6733_v3 = vmul.f32 %v8826_v12, %v6732_v46  ;;  %v6804_v10 = vmul.f32 %v6803_v38, %v13365_v26  ;;  %vm6660_vm12 = vcmp.eq.f32.partialorder %v6659_v53, 8.507059e+37  ;;  %v14146_v24 = vld [vmem:[#allocation19_spill] sm:$0xff] }
 0x604   :  { %v6658_v54 = vsel %vm6657_vm11, %v8824_v19, %v6654_v37  ;;  %vm6735_vm13 = vweird.f32 %v13650_v8  ;;  %v6883_v60 = vadd.f32 0.014752088, %v6882_v15  ;;  %v6928_v18 = vmul.f32 %v6927_v42, %v13409_v2  ;;  %v7168_v42 = vpop.f32.mrf.mxu2 }
 0x605   :  { %v8828_v27 = vpop.eup %8827  ;;  %v7024_v59 = vpack.c.bf16 %v7006_v57, %v7004_v16  ;;  %v6663_v58 = vsel %vm6660_vm12, %v6662_v50, %v6658_v54  ;;  %v6734_v55 = vadd.f32 %v8826_v12, %v6733_v3  ;;  %vm6737_vm14 = vmor %vm6735_vm13, %vm6736_vm10  ;;  %v6742_v1 = vor.u32 1.1754944e-38, %v6741_v5  ;;  %v14147_v16 = vld [vmem:[#allocation30_spill] sm:$0xff]  ;;  %v7217_v57 = vpop.f32.mrf.mxu3 }
 0x606   :  { %v6664_v30 = vmul.f32 %v6663_v58, %v13377_v56  ;;  %v6851_v49 = vmul.f32 %v8828_v27, %v13670_v51  ;;  %v6805_v48 = vadd.f32 0.112945676, %v6804_v10  ;;  %vm6740_vm15 = vcmp.eq.f32.partialorder %v6739_v21, 8.507059e+37  ;;  %v13723_v3 = vld [vmem:[%s13782_s10] ss:$0 sm:$0xff]  ;;  %s8999_s10 = smov [#allocation13]  }
 0x607   :  { %7246 = vmatmul.bf16.gmra.mxu3 %v7024_v59  ;;  %v6738_v0 = vsel %vm6737_vm14, %v8826_v12, %v6734_v55  ;;  %v13690_v62 = vadd.f32 1.0, %v6928_v18  ;;  %v6884_v8 = vmul.f32 %v6883_v60, %v13474_v34  ;;  %v6794_v56 = vadd.f32 0.05243302, %v13461_v43  ;;  %s7277_s14 = sshll.u32 %s8999_s10, 4  ;;  %s7278_s14 = int_to_ptr.vmem [resolvable:$true] %s7277_s14 }
 0x608   :  { %v8310_v28 = vclamps-f32 %v6664_v30, 1.0  ;;  %v6743_v19 = vsel %vm6740_vm15, %v6742_v1, %v6738_v0  ;;  %v6852_v45 = vsub.f32 1.0, %v6851_v49  ;;  %v6806_v47 = vmul.f32 %v6805_v48, %v13365_v26 }
 0x609   :  { %v6916_v6 = vadd.f32 0.18741608, %v13657_v9  ;;  %v6744_v29 = vmul.f32 %v6743_v19, %v13415_v25  ;;  %8829 = vrcp.f32 %v13690_v62  ;;  %v6873_v40 = vmul.f32 %v6872_v32, %v13474_v34 }
 0x60a   :  { %v6853_v4 = vmul.f32 %v8828_v27, %v6852_v45  ;;  %vm6856_vm0 = vweird.f32 %v8828_v27  ;;  %v6807_v7 = vadd.f32 0.4994258, %v6806_v47  ;;  %v6971_v12 = vadd.f32 1.0, %v8310_v28 }
 0x60b   :  { %v8312_v41 = vclamps-f32 %v6744_v29, 1.0  ;;  %v6861_v23 = vand.u32 2147483648, %v13670_v51  ;;  %v6885_v61 = vadd.f32 0.112945676, %v6884_v8  ;;  %vm6855_vm1 = vweird.f32 %v13670_v51 }
 0x60c   :  { %v6854_v53 = vadd.f32 %v8828_v27, %v6853_v4  ;;  %v6859_v43 = vand.u32 2147483647, %v13670_v51  ;;  %v6808_v9 = vmul.f32 %v6807_v7, %v13365_v26  ;;  %v6838_v25 = vadd.f32 1.1283791, %v13423_v13  ;;  %vm13705_vm2 = vmor %vm6855_vm1, %vm6856_vm0 }
 0x60d   :  { %v6795_v11 = vmul.f32 %v6794_v56, %v13365_v26  ;;  %v6973_v32 = vadd.f32 1.0, %v8312_v41  ;;  %v6886_v50 = vmul.f32 %v6885_v61, %v13474_v34  ;;  %v6917_v33 = vmul.f32 %v6916_v6, %v13409_v2  ;;  %v7219_v4 = vpop.f32.mrf.mxu3 }
 0x60e   :  { %v6874_v31 = vadd.f32 0.05243302, %v6873_v40  ;;  %v6858_v21 = vsel %vm13705_vm2, %v8828_v27, %v6854_v53  ;;  %v13713_v51 = vadd.f32 1.0, %v6808_v9  ;;  %v7003_v13 = vmul.f32 %v6971_v12, %v14146_v24 }
 0x60f   :  { %v8830_v5 = vpop.eup %8829  ;;  %v7005_v46 = vmul.f32 %v6973_v32, %v13380_v20  ;;  %v6862_v44 = vor.u32 1.1754944e-38, %v6861_v23  ;;  %v6887_v38 = vadd.f32 0.4994258, %v6886_v50  ;;  %vm6860_vm3 = vcmp.eq.f32.partialorder %v6859_v43, 8.507059e+37 }
 0x610   :  { %v6931_v63 = vmul.f32 %v8830_v5, %v13690_v62  ;;  %8831 = vrcp.f32 %v13713_v51  ;;  %v6839_v2 = vmul.f32 %v6838_v25, %v14147_v16  ;;  %v6796_v10 = vadd.f32 0.18741608, %v6795_v11  ;;  %v14148_v11 = vld [vmem:[#allocation28_spill] sm:$0xff] }
 0x611   :  { %v7023_v37 = vpack.c.bf16 %v7005_v46, %v7003_v13  ;;  %v6863_v15 = vsel %vm6860_vm3, %v6862_v44, %v6858_v21  ;;  %v6918_v20 = vadd.f32 1.1283791, %v6917_v33  ;;  %v6888_v60 = vmul.f32 %v6887_v38, %v13474_v34 }
 0x612   :  { %v6932_v54 = vsub.f32 1.0, %v6931_v63  ;;  %v6875_v27 = vmul.f32 %v6874_v31, %v13474_v34  ;;  %v6939_v59 = vand.u32 2147483647, %v13690_v62  ;;  %v6941_v58 = vand.u32 2147483648, %v13690_v62 }
 0x613   :  { %7197 = vmatmul.bf16.gmra.mxu2 %v7023_v37  ;;  %v7169_v55 = vadd.f32 %v13723_v3, %v7168_v42  ;;  %v6864_v18 = vmul.f32 %v6863_v15, %v6839_v2  ;;  %vm6936_vm4 = vweird.f32 %v8830_v5  ;;  %v13730_v1 = vadd.f32 1.0, %v6888_v60 }
 0x614   :  { %v6933_v30 = vmul.f32 %v8830_v5, %v6932_v54  ;;  %v6797_v0 = vmul.f32 %v6796_v10, %v13365_v26  ;;  %vm6935_vm5 = vweird.f32 %v13690_v62  ;;  %v6876_v28 = vadd.f32 0.18741608, %v6875_v27  ;;  %v7170_v26 = vpop.f32.mrf.mxu2 }
 0x615   :  { %v7218_v49 = vadd.f32 %v7217_v57, %v7169_v55  ;;  %8833 = vrcp.f32 %v13730_v1  ;;  %vm6937_vm6 = vmor %vm6935_vm5, %vm6936_vm4  ;;  %v6942_v19 = vor.u32 1.1754944e-38, %v6941_v58  ;;  %v6919_v47 = vmul.f32 %v6918_v20, %v13368_v35  ;;  %v7222_v2 = vpop.f32.mrf.mxu3 }
 0x616   :  { %v8832_v48 = vpop.eup %8831  ;;  %v6934_v8 = vadd.f32 %v8830_v5, %v6933_v30  ;;  %v8315_v56 = vclamps-f32 %v6864_v18, 1.0  ;;  %vm6940_vm7 = vcmp.eq.f32.partialorder %v6939_v59, 8.507059e+37  ;;  %v6798_v7 = vadd.f32 1.1283791, %v6797_v0 }
 0x617   :  { %v6811_v45 = vmul.f32 %v8832_v48, %v13713_v51  ;;  %7257 = vst [vmem:[#allocation13] sm:$0xff] %v7218_v49  ;;  %v6821_v62 = vand.u32 2147483648, %v13713_v51  ;;  %v7171_v12 = vadd.f32 %v13723_v3, %v7170_v26  ;;  %v6877_v23 = vmul.f32 %v6876_v28, %v13474_v34 }
 0x618   :  { %v6938_v6 = vsel %vm6937_vm6, %v8830_v5, %v6934_v8  ;;  %vm6816_vm8 = vweird.f32 %v8832_v48  ;;  %v6819_v53 = vand.u32 2147483647, %v13713_v51  ;;  %v6976_v9 = vadd.f32 1.0, %v8315_v56 }
 0x619   :  { %v6943_v29 = vsel %vm6940_vm7, %v6942_v19, %v6938_v6  ;;  %v6812_v40 = vsub.f32 1.0, %v6811_v45  ;;  %v7220_v25 = vadd.f32 %v7219_v4, %v7171_v12  ;;  %v5632_v32 = vmul.f32 0.5, %v14148_v11 }
 0x61a   :  { %v6944_v41 = vmul.f32 %v6943_v29, %v6919_v47  ;;  %vm6815_vm9 = vweird.f32 %v13713_v51  ;;  %v6799_v33 = vmul.f32 %v6798_v7, %v13336_v14  ;;  %v5634_v31 = vmul.f32 0.5, %v13349_v36 }
 0x61b   :  { %v6813_v61 = vmul.f32 %v8832_v48, %v6812_v40  ;;  %v8834_v35 = vpop.eup %8833  ;;  %vm6817_vm10 = vmor %vm6815_vm9, %vm6816_vm8  ;;  %v6822_v21 = vor.u32 1.1754944e-38, %v6821_v62  ;;  %7258 = vst [vmem:[#allocation13 + $0x8] sm:$0xff] %v7220_v25  ;;  %v6878_v5 = vadd.f32 1.1283791, %v6877_v23  ;;  %vm6820_vm11 = vcmp.eq.f32.partialorder %v6819_v53, 8.507059e+37 }
 0x61c   :  { %v8317_v43 = vclamps-f32 %v6944_v41, 1.0  ;;  %v6891_v50 = vmul.f32 %v8834_v35, %v13730_v1  ;;  %v7008_v46 = vmul.f32 %v6976_v9, %v5632_v32  ;;  %v6901_v63 = vand.u32 2147483648, %v13730_v1  ;;  %v7173_v36 = vpop.f32.mrf.mxu2 }
 0x61d   :  { %v6814_v22 = vadd.f32 %v8832_v48, %v6813_v61  ;;  %vm6896_vm12 = vweird.f32 %v8834_v35  ;;  %v6899_v14 = vand.u32 2147483647, %v13730_v1  ;;  %v7174_v15 = vadd.f32 %v13723_v3, %v7173_v36  ;;  %v7224_v18 = vpop.f32.mrf.mxu3 }
 0x61e   :  { %v6978_v34 = vadd.f32 1.0, %v8317_v43  ;;  %v6892_v13 = vsub.f32 1.0, %v6891_v50  ;;  %vm6895_vm13 = vweird.f32 %v13730_v1  ;;  %v6902_v42 = vor.u32 1.1754944e-38, %v6901_v63 }
 0x61f   :  { %v6818_v24 = vsel %vm6817_vm10, %v8832_v48, %v6814_v22  ;;  %vm6897_vm14 = vmor %vm6895_vm13, %vm6896_vm12  ;;  %v7223_v10 = vadd.f32 %v7222_v2, %v7174_v15  ;;  %v6879_v20 = vmul.f32 %v6878_v5, %v13442_v17  ;;  %vm6900_vm15 = vcmp.eq.f32.partialorder %v6899_v14, 8.507059e+37 }
 0x620   :  { %v7010_v44 = vmul.f32 %v6978_v34, %v5634_v31  ;;  %v6823_v38 = vsel %vm6820_vm11, %v6822_v21, %v6818_v24  ;;  %v6893_v16 = vmul.f32 %v8834_v35, %v6892_v13  ;;  %v5631_v1 = vmul.f32 0.5, %v13324_v39 }
 0x621   :  { %v6824_v51 = vmul.f32 %v6823_v38, %v6799_v33  ;;  %7259 = vst [vmem:[#allocation13 + $0x10] sm:$0xff] %v7223_v10  ;;  %v5633_v48 = vmul.f32 0.5, %v13430_v52 }
 0x622   :  { %v7026_v37 = vpack.c.bf16 %v7010_v44, %v7008_v46  ;;  %v6894_v57 = vadd.f32 %v8834_v35, %v6893_v16 }
 0x623   :  { %v8314_v54 = vclamps-f32 %v6824_v51, 1.0 }
 0x624   :  { %7251 = vmatmul.bf16.gmra.mxu3 %v7026_v37  ;;  %v6898_v60 = vsel %vm6897_vm14, %v8834_v35, %v6894_v57  ;;  %v7175_v30 = vpop.f32.mrf.mxu2 }
 0x625   :  { %v6903_v27 = vsel %vm6900_vm15, %v6902_v42, %v6898_v60  ;;  %v6975_v55 = vadd.f32 1.0, %v8314_v54  ;;  %v7176_v49 = vadd.f32 %v13723_v3, %v7175_v30  ;;  %v7227_v45 = vpop.f32.mrf.mxu3 }
 0x626   :  { %v6904_v59 = vmul.f32 %v6903_v27, %v6879_v20 }
 0x627   :  { %v7225_v8 = vadd.f32 %v7224_v18, %v7176_v49  ;;  %v7007_v28 = vmul.f32 %v6975_v55, %v5631_v1 }
 0x628   :  { %v8316_v58 = vclamps-f32 %v6904_v59, 1.0 }
 0x629   :  { %7260 = vst [vmem:[#allocation13 + $0x18] sm:$0xff] %v7225_v8 }
 0x62a   :  { %v6977_v0 = vadd.f32 1.0, %v8316_v58 }
 0x62c   :  { %v7009_v17 = vmul.f32 %v6977_v0, %v5633_v48  ;;  %v7178_v47 = vpop.f32.mrf.mxu2 }
 0x62d   :  { %v7179_v56 = vadd.f32 %v13723_v3, %v7178_v47  ;;  %v7229_v29 = vpop.f32.mrf.mxu3 }
 0x62e   :  { %v7025_v19 = vpack.c.bf16 %v7009_v17, %v7007_v28 }
 0x62f   :  { %v7228_v6 = vadd.f32 %v7227_v45, %v7179_v56 }
 0x630   :  { %7202 = vmatmul.bf16.gmra.mxu2 %v7025_v19 }
 0x631   :  { %7261 = vst [vmem:[#allocation13 + $0x20] sm:$0xff] %v7228_v6 }
 0x634   :  { %v7180_v40 = vpop.f32.mrf.mxu2 }
 0x635   :  { %v7181_v4 = vadd.f32 %v13723_v3, %v7180_v40  ;;  %v7232_v52 = vpop.f32.mrf.mxu3 }
 0x637   :  { %v7230_v39 = vadd.f32 %v7229_v29, %v7181_v4 }
 0x639   :  { %7262 = vst [vmem:[#allocation13 + $0x28] sm:$0xff] %v7230_v39 }
 0x63d   :  { %v7183_v26 = vpop.f32.mrf.mxu2  ;;  %v7234_v23 = vpop.f32.mrf.mxu3 }
 0x63e   :  { %v7184_v7 = vadd.f32 %v13723_v3, %v7183_v26 }
 0x640   :  { %v7233_v41 = vadd.f32 %v7232_v52, %v7184_v7 }
 0x642   :  { %7263 = vst [vmem:[#allocation13 + $0x30] sm:$0xff] %v7233_v41 }
 0x645   :  { %v7185_v62 = vpop.f32.mrf.mxu2 }
 0x646   :  { %v7186_v12 = vadd.f32 %v13723_v3, %v7185_v62 }
 0x648   :  { %v7235_v61 = vadd.f32 %v7234_v23, %v7186_v12 }
 0x64a   :  { %7264 = vst [vmem:[#allocation13 + $0x38] sm:$0xff] %v7235_v61 }
 0x654   :  { %v7237_v53 = vpop.f32.mrf.mxu3 }
 0x65c   :  { %v7239_v32 = vpop.f32.mrf.mxu3 }
 0x65d   :  { %v7188_v35 = vpop.f32.mrf.mxu2 }
 0x65e   :  { %v7189_v43 = vadd.f32 %v13723_v3, %v7188_v35 }
 0x660   :  { %v7238_v9 = vadd.f32 %v7237_v53, %v7189_v43 }
 0x662   :  { %7265 = vst [vmem:[#allocation13 + $0x40] sm:$0xff] %v7238_v9 }
 0x665   :  { %v7190_v25 = vpop.f32.mrf.mxu2 }
 0x666   :  { %v7191_v11 = vadd.f32 %v13723_v3, %v7190_v25 }
 0x668   :  { %v7240_v22 = vadd.f32 %v7239_v32, %v7191_v11 }
 0x66a   :  { %7266 = vst [vmem:[#allocation13 + $0x48] sm:$0xff] %v7240_v22 }
 0x66d   :  { %v7242_v50 = vpop.f32.mrf.mxu3 }
 0x675   :  { %v7244_v24 = vpop.f32.mrf.mxu3 }
 0x679   :  { %v7193_v33 = vpop.f32.mrf.mxu2 }
 0x67a   :  { %v7194_v31 = vadd.f32 %v13723_v3, %v7193_v33 }
 0x67c   :  { %v7243_v34 = vadd.f32 %v7242_v50, %v7194_v31 }
 0x67e   :  { %7267 = vst [vmem:[#allocation13 + $0x50] sm:$0xff] %v7243_v34 }
 0x681   :  { %v7195_v21 = vpop.f32.mrf.mxu2 }
 0x682   :  { %v7196_v5 = vadd.f32 %v13723_v3, %v7195_v21 }
 0x684   :  { %v7245_v13 = vadd.f32 %v7244_v24, %v7196_v5 }
 0x686   :  { %7268 = vst [vmem:[#allocation13 + $0x58] sm:$0xff] %v7245_v13 }
 0x68a   :  { %v7247_v46 = vpop.f32.mrf.mxu3 }
 0x692   :  { %v7249_v14 = vpop.f32.mrf.mxu3 }
 0x696   :  { %v7198_v44 = vpop.f32.mrf.mxu2 }
 0x697   :  { %v7199_v38 = vadd.f32 %v13723_v3, %v7198_v44 }
 0x699   :  { %v7248_v63 = vadd.f32 %v7247_v46, %v7199_v38 }
 0x69b   :  { %7269 = vst [vmem:[#allocation13 + $0x60] sm:$0xff] %v7248_v63 }
 0x69e   :  { %v7200_v51 = vpop.f32.mrf.mxu2 }
 0x69f   :  { %v7201_v16 = vadd.f32 %v13723_v3, %v7200_v51 }
 0x6a1   :  { %v7250_v2 = vadd.f32 %v7249_v14, %v7201_v16 }
 0x6a3   :  { %7270 = vst [vmem:[#allocation13 + $0x68] sm:$0xff] %v7250_v2 }
 0x6a7   :  { %v7252_v36 = vpop.f32.mrf.mxu3 }
 0x6af   :  { %v7254_v20 = vpop.f32.mrf.mxu3 }
 0x6b3   :  { %v7203_v37 = vpop.f32.mrf.mxu2 }
 0x6b4   :  { %v7204_v15 = vadd.f32 %v13723_v3, %v7203_v37 }
 0x6b6   :  { %v7253_v57 = vadd.f32 %v7252_v36, %v7204_v15 }
 0x6b8   :  { %7271 = vst [vmem:[#allocation13 + $0x70] sm:$0xff] %v7253_v57 }
 0x6bb   :  { %v7205_v42 = vpop.f32.mrf.mxu2 }
 0x6bc   :  { %v7206_v10 = vadd.f32 %v13723_v3, %v7205_v42 }
 0x6be   :  { %v7255_v54 = vadd.f32 %v7254_v20, %v7206_v10 }
 0x6c0   :  { %7272 = vst [vmem:[#allocation13 + $0x78] sm:$0xff] %v7255_v54 }
 0x6c1   :  { %7285 = dma.vmem_to_hbm [thread:$0]  %s7278_s14, 2048, %s7280_s17, [#allocation6], %s8989_s25, %s8989_s25, %s8990_s26  }
 0x6c2   :  { %8986 = dma.done.wait [#allocation6], 2048  }
 0x6c3   :  { %8987 = vsyncadd [#allocation6], 4294965248 }
 0x6c4   :  { %7290 = vsyncpa [#allocation5], 1 }
 0x6c5   :  { %7291 = vsyncpa [#allocation8], 1 }
 0x6c6   :  { %7292 = vsyncpa [#allocation11], 1 }
 0x6c7   :  { %7293 = vsyncpa [#allocation6], 1 }

</bundles_post_ra>
